<compile_context>
chip_gen: v6e
topology: v6e:2x2x1
jax: 0.10.0
libtpu: 0.0.40
codegen_flags: <defaults>
</compile_context>

<pallas_src>
import jax
import jax.numpy as jnp
from jax.experimental import pallas as pl
from jax.experimental.pallas import tpu as pltpu

D = 128              # hidden width (stand-in for the module's hard-coded 512)
CIN = 3              # input channels (Conv1d(3, 512) in the reference)
L = D                # LayerNorm(512) over the last (length) axis forces L == D
COUT = 3             # relax: Conv1d(512, 3)
DEPTHS = (2, 2, 2)   # blocks per stage (small stand-in for depths[:3])
NB = sum(DEPTHS)
LN_EPS = 1e-5        # nn.LayerNorm default (downsample layers + Block.norm)
FINAL_LN_EPS = 1e-6  # self.norm eps
GRN_EPS = 1e-6
INV_SQRT2 = 0.7071067811865476


# ----------------------------------------------------------------------------- fused kernel

def convnextv2_kernel(
    x_ref,
    ds0_w_ref, ds0_b_ref, ds0_g_ref, ds0_bb_ref,
    ds1_g_ref, ds1_bb_ref, ds1_w_ref, ds1_b_ref,
    ds2_g_ref, ds2_bb_ref, ds2_w_ref, ds2_b_ref,
    dww_ref, dwb_ref, lng_ref, lnb_ref,
    w1_ref, b1_ref, gg_ref, gb_ref, w2_ref, b2_ref,
    relax_w_ref, relax_b_ref,
    norm_g_ref, norm_b_ref,
    head_w_ref, head_b_ref,
    o_ref,
):
    def ln_last(v, g, b, eps):
        # LayerNorm over the last axis (biased variance, like PyTorch).
        mu = jnp.mean(v, axis=-1, keepdims=True)
        var = jnp.mean((v - mu) * (v - mu), axis=-1, keepdims=True)
        return (v - mu) * jax.lax.rsqrt(var + eps) * g + b

    # ---- downsample_layers, channels-first (D, L); LayerNorm(L) is over lanes ----
    x = x_ref[...]                                                          # (CIN, L)
    h = jnp.dot(ds0_w_ref[...], x, preferred_element_type=jnp.float32) + ds0_b_ref[...]
    h = ln_last(h, ds0_g_ref[...], ds0_bb_ref[...], LN_EPS)                 # (D, L)
    h = ln_last(h, ds1_g_ref[...], ds1_bb_ref[...], LN_EPS)
    h = jnp.dot(ds1_w_ref[...], h, preferred_element_type=jnp.float32) + ds1_b_ref[...]
    h = ln_last(h, ds2_g_ref[...], ds2_bb_ref[...], LN_EPS)
    h = jnp.dot(ds2_w_ref[...], h, preferred_element_type=jnp.float32) + ds2_b_ref[...]

    # ---- stages: keep the activation in (L, D); Blocks need no per-block transposes ----
    t = h.T                                                                 # (L, D)
    for i in range(NB):                                                     # static unroll
        res = t
        # depthwise Conv1d(k=1, groups=dim): per-channel scale + bias
        xd = t * dww_ref[i] + dwb_ref[i]                                    # (1, D) broadcasts
        # Block.norm = LayerNorm(dim) over channels (last axis here)
        y = ln_last(xd, lng_ref[i], lnb_ref[i], LN_EPS)
        # pwconv1 (weight pre-transposed to (Din, Dout)) + exact GELU
        hh = jnp.dot(y, w1_ref[i], preferred_element_type=jnp.float32) + b1_ref[i]
        hh = 0.5 * hh * (1.0 + jax.lax.erf(hh * INV_SQRT2))
        # GRN: reference takes norm(p=2, dim=(1,2)) of the (1, L, D) tensor -> scalar Gx,
        #      and Gx.mean(dim=-1) of a size-1 axis is a no-op.
        ssq = jnp.sum(hh * hh, axis=-1, keepdims=True)                      # (L, 1)
        gx = jnp.sqrt(jnp.sum(ssq, axis=0, keepdims=True))                  # (1, 1)
        nx = gx / (gx + GRN_EPS)
        g = gg_ref[i] * (hh * nx) + gb_ref[i] + hh
        # pwconv2 (pre-transposed) + residual (drop_path == Identity)
        z = jnp.dot(g, w2_ref[i], preferred_element_type=jnp.float32) + b2_ref[i]
        t = res + z

    # ---- relax -> norm -> head, channels-first again (all last-axis ops over L) ----
    hc = t.T                                                                # (D, L)
    r = jnp.dot(relax_w_ref[...], hc, preferred_element_type=jnp.float32) + relax_b_ref[...]  # (3, L)
    r = ln_last(r, norm_g_ref[...], norm_b_ref[...], FINAL_LN_EPS)
    # head: Linear(L, L) over the last axis; weight pre-transposed to (Lin, Lout)
    o_ref[...] = jnp.dot(r, head_w_ref[...], preferred_element_type=jnp.float32) + head_b_ref[...]


# ----------------------------------------------------------------------------- parameters

def _trunc_normal(key, shape, std=0.02):
    # trunc_normal_(w, std=0.02, a=-std, b=std)
    return (std * jax.random.truncated_normal(key, -1.0, 1.0, shape)).astype(jnp.float32)


def init_params(key):
    keys = iter(jax.random.split(key, 16))
    p = {}
    # downsample_layers[0]: Conv1d(CIN, D, 1) -> LayerNorm(L)
    p["ds0_w"] = _trunc_normal(next(keys), (D, CIN))
    p["ds0_b"] = jnp.zeros((D, 1), jnp.float32)
    p["ds0_ln_g"] = jnp.ones((1, L), jnp.float32)
    p["ds0_ln_b"] = jnp.zeros((1, L), jnp.float32)
    # downsample_layers[1..2]: LayerNorm(L) -> Conv1d(D, D, 1)
    for i in (1, 2):
        p[f"ds{i}_ln_g"] = jnp.ones((1, L), jnp.float32)
        p[f"ds{i}_ln_b"] = jnp.zeros((1, L), jnp.float32)
        p[f"ds{i}_w"] = _trunc_normal(next(keys), (D, D))
        p[f"ds{i}_b"] = jnp.zeros((D, 1), jnp.float32)
    # stages: per-block params stacked with a leading block axis (static-indexed in-kernel)
    p["blocks"] = {
        "dw_w": _trunc_normal(next(keys), (NB, 1, D)),   # Conv1d(D,D,1,groups=D) weight
        "dw_b": jnp.zeros((NB, 1, D), jnp.float32),
        "ln_g": jnp.ones((NB, 1, D), jnp.float32),
        "ln_b": jnp.zeros((NB, 1, D), jnp.float32),
        "w1t": _trunc_normal(next(keys), (NB, D, D)),    # pwconv1, stored (Din, Dout)
        "b1": jnp.zeros((NB, 1, D), jnp.float32),
        "grn_g": jnp.zeros((NB, 1, D), jnp.float32),     # GRN gamma init = 0
        "grn_b": jnp.zeros((NB, 1, D), jnp.float32),     # GRN beta  init = 0
        "w2t": _trunc_normal(next(keys), (NB, D, D)),    # pwconv2, stored (Din, Dout)
        "b2": jnp.zeros((NB, 1, D), jnp.float32),
    }
    # relax: Conv1d(D, 3, 1)
    p["relax_w"] = _trunc_normal(next(keys), (COUT, D))
    p["relax_b"] = jnp.zeros((COUT, 1), jnp.float32)
    # final norm: LayerNorm(L, eps=1e-6)
    p["norm_g"] = jnp.ones((1, L), jnp.float32)
    p["norm_b"] = jnp.zeros((1, L), jnp.float32)
    # head: Linear(L, L), stored pre-transposed (head_init_scale = 1.0 -> no-op rescale)
    p["head_wt"] = _trunc_normal(next(keys), (L, L))
    p["head_b"] = jnp.zeros((1, L), jnp.float32)
    return p


def _flatten_params(p):
    b = p["blocks"]
    return (
        p["ds0_w"], p["ds0_b"], p["ds0_ln_g"], p["ds0_ln_b"],
        p["ds1_ln_g"], p["ds1_ln_b"], p["ds1_w"], p["ds1_b"],
        p["ds2_ln_g"], p["ds2_ln_b"], p["ds2_w"], p["ds2_b"],
        b["dw_w"], b["dw_b"], b["ln_g"], b["ln_b"],
        b["w1t"], b["b1"], b["grn_g"], b["grn_b"], b["w2t"], b["b2"],
        p["relax_w"], p["relax_b"],
        p["norm_g"], p["norm_b"],
        p["head_wt"], p["head_b"],
    )


# ----------------------------------------------------------------------------- forward

@jax.jit
def convnextv2_forward(params, x, mask=None):
    # `mask` is accepted for signature parity but unused by the reference forward().
    del mask
    flat = _flatten_params(params)
    n_in = 1 + len(flat)
    out = pl.pallas_call(
        convnextv2_kernel,
        out_shape=jax.ShapeDtypeStruct((COUT, L), jnp.float32),
        in_specs=[pl.BlockSpec(memory_space=pltpu.MemorySpace.VMEM)] * n_in,
        out_specs=pl.BlockSpec(memory_space=pltpu.MemorySpace.VMEM),
    )(x, *flat)
    return out[None]  # (1, 3, L), matching PyTorch's (1, 3, 512)


if __name__ == "__main__":
    key = jax.random.PRNGKey(0)
    k_params, k_x = jax.random.split(key)
    params = init_params(k_params)
    x = jax.random.normal(k_x, (CIN, L), dtype=jnp.float32)   # analog of PyTorch x: (3, 512)
    mask = jnp.zeros((1, L), dtype=bool)                      # unused by forward()
    out = convnextv2_forward(params, x, mask)
    jax.block_until_ready(out)
    assert out.shape == (1, COUT, L) and out.dtype == jnp.float32
    assert bool(jnp.all(jnp.isfinite(out)))
    print("KERNEL_OK")
</pallas_src>

<mosaic_0001>
module attributes {stable_mosaic.version = 11 : i64} {
  func.func @convnextv2_kernel(%arg0: memref<3x128xf32, #tpu.memory_space<vmem>>, %arg1: memref<128x3xf32, #tpu.memory_space<vmem>>, %arg2: memref<128x1xf32, #tpu.memory_space<vmem>>, %arg3: memref<1x128xf32, #tpu.memory_space<vmem>>, %arg4: memref<1x128xf32, #tpu.memory_space<vmem>>, %arg5: memref<1x128xf32, #tpu.memory_space<vmem>>, %arg6: memref<1x128xf32, #tpu.memory_space<vmem>>, %arg7: memref<128x128xf32, #tpu.memory_space<vmem>>, %arg8: memref<128x1xf32, #tpu.memory_space<vmem>>, %arg9: memref<1x128xf32, #tpu.memory_space<vmem>>, %arg10: memref<1x128xf32, #tpu.memory_space<vmem>>, %arg11: memref<128x128xf32, #tpu.memory_space<vmem>>, %arg12: memref<128x1xf32, #tpu.memory_space<vmem>>, %arg13: memref<6x1x128xf32, #tpu.memory_space<vmem>>, %arg14: memref<6x1x128xf32, #tpu.memory_space<vmem>>, %arg15: memref<6x1x128xf32, #tpu.memory_space<vmem>>, %arg16: memref<6x1x128xf32, #tpu.memory_space<vmem>>, %arg17: memref<6x128x128xf32, #tpu.memory_space<vmem>>, %arg18: memref<6x1x128xf32, #tpu.memory_space<vmem>>, %arg19: memref<6x1x128xf32, #tpu.memory_space<vmem>>, %arg20: memref<6x1x128xf32, #tpu.memory_space<vmem>>, %arg21: memref<6x128x128xf32, #tpu.memory_space<vmem>>, %arg22: memref<6x1x128xf32, #tpu.memory_space<vmem>>, %arg23: memref<3x128xf32, #tpu.memory_space<vmem>>, %arg24: memref<3x1xf32, #tpu.memory_space<vmem>>, %arg25: memref<1x128xf32, #tpu.memory_space<vmem>>, %arg26: memref<1x128xf32, #tpu.memory_space<vmem>>, %arg27: memref<128x128xf32, #tpu.memory_space<vmem>>, %arg28: memref<1x128xf32, #tpu.memory_space<vmem>>, %arg29: memref<3x128xf32, #tpu.memory_space<vmem>>) attributes {dimension_semantics = [], scalar_prefetch = 0 : i64, scratch_operands = 0 : i64, tpu.core_type = #tpu.core_type<tc>} {
    %c0 = arith.constant 0 : index
    %c0_0 = arith.constant 0 : index
    %0 = vector.load %arg0[%c0, %c0_0] : memref<3x128xf32, #tpu.memory_space<vmem>>, vector<3x128xf32>
    %c0_1 = arith.constant 0 : index
    %c0_2 = arith.constant 0 : index
    %1 = vector.load %arg1[%c0_1, %c0_2] : memref<128x3xf32, #tpu.memory_space<vmem>>, vector<128x3xf32>
    %cst = arith.constant dense<0.000000e+00> : vector<128x128xf32>
    %2 = tpu.matmul %1, %0, %cst {dimension_numbers = #tpu.dot_dimension_numbers<[1], [0], [0], [1], [0, 0, 1, 1], [], []>} : vector<128x3xf32>, vector<3x128xf32>, vector<128x128xf32> -> vector<128x128xf32>
    %c0_3 = arith.constant 0 : index
    %c0_4 = arith.constant 0 : index
    %3 = vector.load %arg2[%c0_3, %c0_4] : memref<128x1xf32, #tpu.memory_space<vmem>>, vector<128x1xf32>
    %4 = vector.broadcast %3 : vector<128x1xf32> to vector<128x128xf32>
    %5 = arith.addf %2, %4 : vector<128x128xf32>
    %c0_5 = arith.constant 0 : index
    %c0_6 = arith.constant 0 : index
    %6 = vector.load %arg3[%c0_5, %c0_6] : memref<1x128xf32, #tpu.memory_space<vmem>>, vector<1x128xf32>
    %c0_7 = arith.constant 0 : index
    %c0_8 = arith.constant 0 : index
    %7 = vector.load %arg4[%c0_7, %c0_8] : memref<1x128xf32, #tpu.memory_space<vmem>>, vector<1x128xf32>
    %cst_9 = arith.constant dense<0.000000e+00> : vector<128xf32>
    %8 = vector.multi_reduction <add>, %5, %cst_9 [1] : vector<128x128xf32> to vector<128xf32>
    %9 = vector.shape_cast %8 : vector<128xf32> to vector<128x1xf32>
    %cst_10 = arith.constant 1.280000e+02 : f32
    %10 = vector.broadcast %cst_10 : f32 to vector<128x1xf32>
    %11 = arith.divf %9, %10 : vector<128x1xf32>
    %12 = vector.broadcast %11 : vector<128x1xf32> to vector<128x128xf32>
    %13 = arith.subf %5, %12 : vector<128x128xf32>
    %14 = vector.broadcast %11 : vector<128x1xf32> to vector<128x128xf32>
    %15 = arith.subf %5, %14 : vector<128x128xf32>
    %16 = arith.mulf %13, %15 : vector<128x128xf32>
    %cst_11 = arith.constant dense<0.000000e+00> : vector<128xf32>
    %17 = vector.multi_reduction <add>, %16, %cst_11 [1] : vector<128x128xf32> to vector<128xf32>
    %18 = vector.shape_cast %17 : vector<128xf32> to vector<128x1xf32>
    %cst_12 = arith.constant 1.280000e+02 : f32
    %19 = vector.broadcast %cst_12 : f32 to vector<128x1xf32>
    %20 = arith.divf %18, %19 : vector<128x1xf32>
    %21 = vector.broadcast %11 : vector<128x1xf32> to vector<128x128xf32>
    %22 = arith.subf %5, %21 : vector<128x128xf32>
    %cst_13 = arith.constant 9.99999974E-6 : f32
    %23 = vector.broadcast %cst_13 : f32 to vector<128x1xf32>
    %24 = arith.addf %20, %23 : vector<128x1xf32>
    %25 = math.rsqrt %24 : vector<128x1xf32>
    %26 = vector.broadcast %25 : vector<128x1xf32> to vector<128x128xf32>
    %27 = arith.mulf %22, %26 : vector<128x128xf32>
    %28 = vector.broadcast %6 : vector<1x128xf32> to vector<128x128xf32>
    %29 = arith.mulf %27, %28 : vector<128x128xf32>
    %30 = vector.broadcast %7 : vector<1x128xf32> to vector<128x128xf32>
    %31 = arith.addf %29, %30 : vector<128x128xf32>
    %c0_14 = arith.constant 0 : index
    %c0_15 = arith.constant 0 : index
    %32 = vector.load %arg5[%c0_14, %c0_15] : memref<1x128xf32, #tpu.memory_space<vmem>>, vector<1x128xf32>
    %c0_16 = arith.constant 0 : index
    %c0_17 = arith.constant 0 : index
    %33 = vector.load %arg6[%c0_16, %c0_17] : memref<1x128xf32, #tpu.memory_space<vmem>>, vector<1x128xf32>
    %cst_18 = arith.constant dense<0.000000e+00> : vector<128xf32>
    %34 = vector.multi_reduction <add>, %31, %cst_18 [1] : vector<128x128xf32> to vector<128xf32>
    %35 = vector.shape_cast %34 : vector<128xf32> to vector<128x1xf32>
    %cst_19 = arith.constant 1.280000e+02 : f32
    %36 = vector.broadcast %cst_19 : f32 to vector<128x1xf32>
    %37 = arith.divf %35, %36 : vector<128x1xf32>
    %38 = vector.broadcast %37 : vector<128x1xf32> to vector<128x128xf32>
    %39 = arith.subf %31, %38 : vector<128x128xf32>
    %40 = vector.broadcast %37 : vector<128x1xf32> to vector<128x128xf32>
    %41 = arith.subf %31, %40 : vector<128x128xf32>
    %42 = arith.mulf %39, %41 : vector<128x128xf32>
    %cst_20 = arith.constant dense<0.000000e+00> : vector<128xf32>
    %43 = vector.multi_reduction <add>, %42, %cst_20 [1] : vector<128x128xf32> to vector<128xf32>
    %44 = vector.shape_cast %43 : vector<128xf32> to vector<128x1xf32>
    %cst_21 = arith.constant 1.280000e+02 : f32
    %45 = vector.broadcast %cst_21 : f32 to vector<128x1xf32>
    %46 = arith.divf %44, %45 : vector<128x1xf32>
    %47 = vector.broadcast %37 : vector<128x1xf32> to vector<128x128xf32>
    %48 = arith.subf %31, %47 : vector<128x128xf32>
    %cst_22 = arith.constant 9.99999974E-6 : f32
    %49 = vector.broadcast %cst_22 : f32 to vector<128x1xf32>
    %50 = arith.addf %46, %49 : vector<128x1xf32>
    %51 = math.rsqrt %50 : vector<128x1xf32>
    %52 = vector.broadcast %51 : vector<128x1xf32> to vector<128x128xf32>
    %53 = arith.mulf %48, %52 : vector<128x128xf32>
    %54 = vector.broadcast %32 : vector<1x128xf32> to vector<128x128xf32>
    %55 = arith.mulf %53, %54 : vector<128x128xf32>
    %56 = vector.broadcast %33 : vector<1x128xf32> to vector<128x128xf32>
    %57 = arith.addf %55, %56 : vector<128x128xf32>
    %c0_23 = arith.constant 0 : index
    %c0_24 = arith.constant 0 : index
    %58 = vector.load %arg7[%c0_23, %c0_24] : memref<128x128xf32, #tpu.memory_space<vmem>>, vector<128x128xf32>
    %cst_25 = arith.constant dense<0.000000e+00> : vector<128x128xf32>
    %59 = tpu.matmul %58, %57, %cst_25 {dimension_numbers = #tpu.dot_dimension_numbers<[1], [0], [0], [1], [0, 0, 1, 1], [], []>} : vector<128x128xf32>, vector<128x128xf32>, vector<128x128xf32> -> vector<128x128xf32>
    %c0_26 = arith.constant 0 : index
    %c0_27 = arith.constant 0 : index
    %60 = vector.load %arg8[%c0_26, %c0_27] : memref<128x1xf32, #tpu.memory_space<vmem>>, vector<128x1xf32>
    %61 = vector.broadcast %60 : vector<128x1xf32> to vector<128x128xf32>
    %62 = arith.addf %59, %61 : vector<128x128xf32>
    %c0_28 = arith.constant 0 : index
    %c0_29 = arith.constant 0 : index
    %63 = vector.load %arg9[%c0_28, %c0_29] : memref<1x128xf32, #tpu.memory_space<vmem>>, vector<1x128xf32>
    %c0_30 = arith.constant 0 : index
    %c0_31 = arith.constant 0 : index
    %64 = vector.load %arg10[%c0_30, %c0_31] : memref<1x128xf32, #tpu.memory_space<vmem>>, vector<1x128xf32>
    %cst_32 = arith.constant dense<0.000000e+00> : vector<128xf32>
    %65 = vector.multi_reduction <add>, %62, %cst_32 [1] : vector<128x128xf32> to vector<128xf32>
    %66 = vector.shape_cast %65 : vector<128xf32> to vector<128x1xf32>
    %cst_33 = arith.constant 1.280000e+02 : f32
    %67 = vector.broadcast %cst_33 : f32 to vector<128x1xf32>
    %68 = arith.divf %66, %67 : vector<128x1xf32>
    %69 = vector.broadcast %68 : vector<128x1xf32> to vector<128x128xf32>
    %70 = arith.subf %62, %69 : vector<128x128xf32>
    %71 = vector.broadcast %68 : vector<128x1xf32> to vector<128x128xf32>
    %72 = arith.subf %62, %71 : vector<128x128xf32>
    %73 = arith.mulf %70, %72 : vector<128x128xf32>
    %cst_34 = arith.constant dense<0.000000e+00> : vector<128xf32>
    %74 = vector.multi_reduction <add>, %73, %cst_34 [1] : vector<128x128xf32> to vector<128xf32>
    %75 = vector.shape_cast %74 : vector<128xf32> to vector<128x1xf32>
    %cst_35 = arith.constant 1.280000e+02 : f32
    %76 = vector.broadcast %cst_35 : f32 to vector<128x1xf32>
    %77 = arith.divf %75, %76 : vector<128x1xf32>
    %78 = vector.broadcast %68 : vector<128x1xf32> to vector<128x128xf32>
    %79 = arith.subf %62, %78 : vector<128x128xf32>
    %cst_36 = arith.constant 9.99999974E-6 : f32
    %80 = vector.broadcast %cst_36 : f32 to vector<128x1xf32>
    %81 = arith.addf %77, %80 : vector<128x1xf32>
    %82 = math.rsqrt %81 : vector<128x1xf32>
    %83 = vector.broadcast %82 : vector<128x1xf32> to vector<128x128xf32>
    %84 = arith.mulf %79, %83 : vector<128x128xf32>
    %85 = vector.broadcast %63 : vector<1x128xf32> to vector<128x128xf32>
    %86 = arith.mulf %84, %85 : vector<128x128xf32>
    %87 = vector.broadcast %64 : vector<1x128xf32> to vector<128x128xf32>
    %88 = arith.addf %86, %87 : vector<128x128xf32>
    %c0_37 = arith.constant 0 : index
    %c0_38 = arith.constant 0 : index
    %89 = vector.load %arg11[%c0_37, %c0_38] : memref<128x128xf32, #tpu.memory_space<vmem>>, vector<128x128xf32>
    %cst_39 = arith.constant dense<0.000000e+00> : vector<128x128xf32>
    %90 = tpu.matmul %89, %88, %cst_39 {dimension_numbers = #tpu.dot_dimension_numbers<[1], [0], [0], [1], [0, 0, 1, 1], [], []>} : vector<128x128xf32>, vector<128x128xf32>, vector<128x128xf32> -> vector<128x128xf32>
    %c0_40 = arith.constant 0 : index
    %c0_41 = arith.constant 0 : index
    %91 = vector.load %arg12[%c0_40, %c0_41] : memref<128x1xf32, #tpu.memory_space<vmem>>, vector<128x1xf32>
    %92 = vector.broadcast %91 : vector<128x1xf32> to vector<128x128xf32>
    %93 = arith.addf %90, %92 : vector<128x128xf32>
    %94 = tpu.transpose %93, [1, 0] : vector<128x128xf32> -> vector<128x128xf32>
    %c0_42 = arith.constant 0 : index
    %c0_43 = arith.constant 0 : index
    %c0_44 = arith.constant 0 : index
    %95 = vector.load %arg13[%c0_42, %c0_43, %c0_44] : memref<6x1x128xf32, #tpu.memory_space<vmem>>, vector<1x1x128xf32>
    %96 = vector.shape_cast %95 : vector<1x1x128xf32> to vector<1x128xf32>
    %97 = vector.broadcast %96 : vector<1x128xf32> to vector<128x128xf32>
    %98 = arith.mulf %94, %97 : vector<128x128xf32>
    %c0_45 = arith.constant 0 : index
    %c0_46 = arith.constant 0 : index
    %c0_47 = arith.constant 0 : index
    %99 = vector.load %arg14[%c0_45, %c0_46, %c0_47] : memref<6x1x128xf32, #tpu.memory_space<vmem>>, vector<1x1x128xf32>
    %100 = vector.shape_cast %99 : vector<1x1x128xf32> to vector<1x128xf32>
    %101 = vector.broadcast %100 : vector<1x128xf32> to vector<128x128xf32>
    %102 = arith.addf %98, %101 : vector<128x128xf32>
    %c0_48 = arith.constant 0 : index
    %c0_49 = arith.constant 0 : index
    %c0_50 = arith.constant 0 : index
    %103 = vector.load %arg15[%c0_48, %c0_49, %c0_50] : memref<6x1x128xf32, #tpu.memory_space<vmem>>, vector<1x1x128xf32>
    %104 = vector.shape_cast %103 : vector<1x1x128xf32> to vector<1x128xf32>
    %c0_51 = arith.constant 0 : index
    %c0_52 = arith.constant 0 : index
    %c0_53 = arith.constant 0 : index
    %105 = vector.load %arg16[%c0_51, %c0_52, %c0_53] : memref<6x1x128xf32, #tpu.memory_space<vmem>>, vector<1x1x128xf32>
    %106 = vector.shape_cast %105 : vector<1x1x128xf32> to vector<1x128xf32>
    %cst_54 = arith.constant dense<0.000000e+00> : vector<128xf32>
    %107 = vector.multi_reduction <add>, %102, %cst_54 [1] : vector<128x128xf32> to vector<128xf32>
    %108 = vector.shape_cast %107 : vector<128xf32> to vector<128x1xf32>
    %cst_55 = arith.constant 1.280000e+02 : f32
    %109 = vector.broadcast %cst_55 : f32 to vector<128x1xf32>
    %110 = arith.divf %108, %109 : vector<128x1xf32>
    %111 = vector.broadcast %110 : vector<128x1xf32> to vector<128x128xf32>
    %112 = arith.subf %102, %111 : vector<128x128xf32>
    %113 = vector.broadcast %110 : vector<128x1xf32> to vector<128x128xf32>
    %114 = arith.subf %102, %113 : vector<128x128xf32>
    %115 = arith.mulf %112, %114 : vector<128x128xf32>
    %cst_56 = arith.constant dense<0.000000e+00> : vector<128xf32>
    %116 = vector.multi_reduction <add>, %115, %cst_56 [1] : vector<128x128xf32> to vector<128xf32>
    %117 = vector.shape_cast %116 : vector<128xf32> to vector<128x1xf32>
    %cst_57 = arith.constant 1.280000e+02 : f32
    %118 = vector.broadcast %cst_57 : f32 to vector<128x1xf32>
    %119 = arith.divf %117, %118 : vector<128x1xf32>
    %120 = vector.broadcast %110 : vector<128x1xf32> to vector<128x128xf32>
    %121 = arith.subf %102, %120 : vector<128x128xf32>
    %cst_58 = arith.constant 9.99999974E-6 : f32
    %122 = vector.broadcast %cst_58 : f32 to vector<128x1xf32>
    %123 = arith.addf %119, %122 : vector<128x1xf32>
    %124 = math.rsqrt %123 : vector<128x1xf32>
    %125 = vector.broadcast %124 : vector<128x1xf32> to vector<128x128xf32>
    %126 = arith.mulf %121, %125 : vector<128x128xf32>
    %127 = vector.broadcast %104 : vector<1x128xf32> to vector<128x128xf32>
    %128 = arith.mulf %126, %127 : vector<128x128xf32>
    %129 = vector.broadcast %106 : vector<1x128xf32> to vector<128x128xf32>
    %130 = arith.addf %128, %129 : vector<128x128xf32>
    %c0_59 = arith.constant 0 : index
    %c0_60 = arith.constant 0 : index
    %c0_61 = arith.constant 0 : index
    %131 = vector.load %arg17[%c0_59, %c0_60, %c0_61] : memref<6x128x128xf32, #tpu.memory_space<vmem>>, vector<1x128x128xf32>
    %132 = vector.shape_cast %131 : vector<1x128x128xf32> to vector<128x128xf32>
    %cst_62 = arith.constant dense<0.000000e+00> : vector<128x128xf32>
    %133 = tpu.matmul %130, %132, %cst_62 {dimension_numbers = #tpu.dot_dimension_numbers<[1], [0], [0], [1], [0, 0, 1, 1], [], []>} : vector<128x128xf32>, vector<128x128xf32>, vector<128x128xf32> -> vector<128x128xf32>
    %c0_63 = arith.constant 0 : index
    %c0_64 = arith.constant 0 : index
    %c0_65 = arith.constant 0 : index
    %134 = vector.load %arg18[%c0_63, %c0_64, %c0_65] : memref<6x1x128xf32, #tpu.memory_space<vmem>>, vector<1x1x128xf32>
    %135 = vector.shape_cast %134 : vector<1x1x128xf32> to vector<1x128xf32>
    %136 = vector.broadcast %135 : vector<1x128xf32> to vector<128x128xf32>
    %137 = arith.addf %133, %136 : vector<128x128xf32>
    %cst_66 = arith.constant 5.000000e-01 : f32
    %138 = vector.broadcast %cst_66 : f32 to vector<128x128xf32>
    %139 = arith.mulf %138, %137 : vector<128x128xf32>
    %cst_67 = arith.constant 0.707106769 : f32
    %140 = vector.broadcast %cst_67 : f32 to vector<128x128xf32>
    %141 = arith.mulf %137, %140 : vector<128x128xf32>
    %142 = math.erf %141 : vector<128x128xf32>
    %cst_68 = arith.constant 1.000000e+00 : f32
    %143 = vector.broadcast %cst_68 : f32 to vector<128x128xf32>
    %144 = arith.addf %143, %142 : vector<128x128xf32>
    %145 = arith.mulf %139, %144 : vector<128x128xf32>
    %146 = arith.mulf %145, %145 : vector<128x128xf32>
    %cst_69 = arith.constant dense<0.000000e+00> : vector<128xf32>
    %147 = vector.multi_reduction <add>, %146, %cst_69 [1] : vector<128x128xf32> to vector<128xf32>
    %148 = vector.shape_cast %147 : vector<128xf32> to vector<128x1xf32>
    %cst_70 = arith.constant dense<0.000000e+00> : vector<1xf32>
    %149 = vector.multi_reduction <add>, %148, %cst_70 [0] : vector<128x1xf32> to vector<1xf32>
    %150 = vector.shape_cast %149 : vector<1xf32> to vector<1x1xf32>
    %151 = math.sqrt %150 : vector<1x1xf32>
    %cst_71 = arith.constant 9.99999997E-7 : f32
    %152 = vector.broadcast %cst_71 : f32 to vector<1x1xf32>
    %153 = arith.addf %151, %152 : vector<1x1xf32>
    %154 = arith.divf %151, %153 : vector<1x1xf32>
    %c0_72 = arith.constant 0 : index
    %c0_73 = arith.constant 0 : index
    %c0_74 = arith.constant 0 : index
    %155 = vector.load %arg19[%c0_72, %c0_73, %c0_74] : memref<6x1x128xf32, #tpu.memory_space<vmem>>, vector<1x1x128xf32>
    %156 = vector.shape_cast %155 : vector<1x1x128xf32> to vector<1x128xf32>
    %157 = vector.broadcast %154 : vector<1x1xf32> to vector<128x128xf32>
    %158 = arith.mulf %145, %157 : vector<128x128xf32>
    %159 = vector.broadcast %156 : vector<1x128xf32> to vector<128x128xf32>
    %160 = arith.mulf %159, %158 : vector<128x128xf32>
    %c0_75 = arith.constant 0 : index
    %c0_76 = arith.constant 0 : index
    %c0_77 = arith.constant 0 : index
    %161 = vector.load %arg20[%c0_75, %c0_76, %c0_77] : memref<6x1x128xf32, #tpu.memory_space<vmem>>, vector<1x1x128xf32>
    %162 = vector.shape_cast %161 : vector<1x1x128xf32> to vector<1x128xf32>
    %163 = vector.broadcast %162 : vector<1x128xf32> to vector<128x128xf32>
    %164 = arith.addf %160, %163 : vector<128x128xf32>
    %165 = arith.addf %164, %145 : vector<128x128xf32>
    %c0_78 = arith.constant 0 : index
    %c0_79 = arith.constant 0 : index
    %c0_80 = arith.constant 0 : index
    %166 = vector.load %arg21[%c0_78, %c0_79, %c0_80] : memref<6x128x128xf32, #tpu.memory_space<vmem>>, vector<1x128x128xf32>
    %167 = vector.shape_cast %166 : vector<1x128x128xf32> to vector<128x128xf32>
    %cst_81 = arith.constant dense<0.000000e+00> : vector<128x128xf32>
    %168 = tpu.matmul %165, %167, %cst_81 {dimension_numbers = #tpu.dot_dimension_numbers<[1], [0], [0], [1], [0, 0, 1, 1], [], []>} : vector<128x128xf32>, vector<128x128xf32>, vector<128x128xf32> -> vector<128x128xf32>
    %c0_82 = arith.constant 0 : index
    %c0_83 = arith.constant 0 : index
    %c0_84 = arith.constant 0 : index
    %169 = vector.load %arg22[%c0_82, %c0_83, %c0_84] : memref<6x1x128xf32, #tpu.memory_space<vmem>>, vector<1x1x128xf32>
    %170 = vector.shape_cast %169 : vector<1x1x128xf32> to vector<1x128xf32>
    %171 = vector.broadcast %170 : vector<1x128xf32> to vector<128x128xf32>
    %172 = arith.addf %168, %171 : vector<128x128xf32>
    %173 = arith.addf %94, %172 : vector<128x128xf32>
    %c1 = arith.constant 1 : index
    %c0_85 = arith.constant 0 : index
    %c0_86 = arith.constant 0 : index
    %174 = vector.load %arg13[%c1, %c0_85, %c0_86] : memref<6x1x128xf32, #tpu.memory_space<vmem>>, vector<1x1x128xf32>
    %175 = vector.shape_cast %174 : vector<1x1x128xf32> to vector<1x128xf32>
    %176 = vector.broadcast %175 : vector<1x128xf32> to vector<128x128xf32>
    %177 = arith.mulf %173, %176 : vector<128x128xf32>
    %c1_87 = arith.constant 1 : index
    %c0_88 = arith.constant 0 : index
    %c0_89 = arith.constant 0 : index
    %178 = vector.load %arg14[%c1_87, %c0_88, %c0_89] : memref<6x1x128xf32, #tpu.memory_space<vmem>>, vector<1x1x128xf32>
    %179 = vector.shape_cast %178 : vector<1x1x128xf32> to vector<1x128xf32>
    %180 = vector.broadcast %179 : vector<1x128xf32> to vector<128x128xf32>
    %181 = arith.addf %177, %180 : vector<128x128xf32>
    %c1_90 = arith.constant 1 : index
    %c0_91 = arith.constant 0 : index
    %c0_92 = arith.constant 0 : index
    %182 = vector.load %arg15[%c1_90, %c0_91, %c0_92] : memref<6x1x128xf32, #tpu.memory_space<vmem>>, vector<1x1x128xf32>
    %183 = vector.shape_cast %182 : vector<1x1x128xf32> to vector<1x128xf32>
    %c1_93 = arith.constant 1 : index
    %c0_94 = arith.constant 0 : index
    %c0_95 = arith.constant 0 : index
    %184 = vector.load %arg16[%c1_93, %c0_94, %c0_95] : memref<6x1x128xf32, #tpu.memory_space<vmem>>, vector<1x1x128xf32>
    %185 = vector.shape_cast %184 : vector<1x1x128xf32> to vector<1x128xf32>
    %cst_96 = arith.constant dense<0.000000e+00> : vector<128xf32>
    %186 = vector.multi_reduction <add>, %181, %cst_96 [1] : vector<128x128xf32> to vector<128xf32>
    %187 = vector.shape_cast %186 : vector<128xf32> to vector<128x1xf32>
    %cst_97 = arith.constant 1.280000e+02 : f32
    %188 = vector.broadcast %cst_97 : f32 to vector<128x1xf32>
    %189 = arith.divf %187, %188 : vector<128x1xf32>
    %190 = vector.broadcast %189 : vector<128x1xf32> to vector<128x128xf32>
    %191 = arith.subf %181, %190 : vector<128x128xf32>
    %192 = vector.broadcast %189 : vector<128x1xf32> to vector<128x128xf32>
    %193 = arith.subf %181, %192 : vector<128x128xf32>
    %194 = arith.mulf %191, %193 : vector<128x128xf32>
    %cst_98 = arith.constant dense<0.000000e+00> : vector<128xf32>
    %195 = vector.multi_reduction <add>, %194, %cst_98 [1] : vector<128x128xf32> to vector<128xf32>
    %196 = vector.shape_cast %195 : vector<128xf32> to vector<128x1xf32>
    %cst_99 = arith.constant 1.280000e+02 : f32
    %197 = vector.broadcast %cst_99 : f32 to vector<128x1xf32>
    %198 = arith.divf %196, %197 : vector<128x1xf32>
    %199 = vector.broadcast %189 : vector<128x1xf32> to vector<128x128xf32>
    %200 = arith.subf %181, %199 : vector<128x128xf32>
    %cst_100 = arith.constant 9.99999974E-6 : f32
    %201 = vector.broadcast %cst_100 : f32 to vector<128x1xf32>
    %202 = arith.addf %198, %201 : vector<128x1xf32>
    %203 = math.rsqrt %202 : vector<128x1xf32>
    %204 = vector.broadcast %203 : vector<128x1xf32> to vector<128x128xf32>
    %205 = arith.mulf %200, %204 : vector<128x128xf32>
    %206 = vector.broadcast %183 : vector<1x128xf32> to vector<128x128xf32>
    %207 = arith.mulf %205, %206 : vector<128x128xf32>
    %208 = vector.broadcast %185 : vector<1x128xf32> to vector<128x128xf32>
    %209 = arith.addf %207, %208 : vector<128x128xf32>
    %c1_101 = arith.constant 1 : index
    %c0_102 = arith.constant 0 : index
    %c0_103 = arith.constant 0 : index
    %210 = vector.load %arg17[%c1_101, %c0_102, %c0_103] : memref<6x128x128xf32, #tpu.memory_space<vmem>>, vector<1x128x128xf32>
    %211 = vector.shape_cast %210 : vector<1x128x128xf32> to vector<128x128xf32>
    %cst_104 = arith.constant dense<0.000000e+00> : vector<128x128xf32>
    %212 = tpu.matmul %209, %211, %cst_104 {dimension_numbers = #tpu.dot_dimension_numbers<[1], [0], [0], [1], [0, 0, 1, 1], [], []>} : vector<128x128xf32>, vector<128x128xf32>, vector<128x128xf32> -> vector<128x128xf32>
    %c1_105 = arith.constant 1 : index
    %c0_106 = arith.constant 0 : index
    %c0_107 = arith.constant 0 : index
    %213 = vector.load %arg18[%c1_105, %c0_106, %c0_107] : memref<6x1x128xf32, #tpu.memory_space<vmem>>, vector<1x1x128xf32>
    %214 = vector.shape_cast %213 : vector<1x1x128xf32> to vector<1x128xf32>
    %215 = vector.broadcast %214 : vector<1x128xf32> to vector<128x128xf32>
    %216 = arith.addf %212, %215 : vector<128x128xf32>
    %cst_108 = arith.constant 5.000000e-01 : f32
    %217 = vector.broadcast %cst_108 : f32 to vector<128x128xf32>
    %218 = arith.mulf %217, %216 : vector<128x128xf32>
    %cst_109 = arith.constant 0.707106769 : f32
    %219 = vector.broadcast %cst_109 : f32 to vector<128x128xf32>
    %220 = arith.mulf %216, %219 : vector<128x128xf32>
    %221 = math.erf %220 : vector<128x128xf32>
    %cst_110 = arith.constant 1.000000e+00 : f32
    %222 = vector.broadcast %cst_110 : f32 to vector<128x128xf32>
    %223 = arith.addf %222, %221 : vector<128x128xf32>
    %224 = arith.mulf %218, %223 : vector<128x128xf32>
    %225 = arith.mulf %224, %224 : vector<128x128xf32>
    %cst_111 = arith.constant dense<0.000000e+00> : vector<128xf32>
    %226 = vector.multi_reduction <add>, %225, %cst_111 [1] : vector<128x128xf32> to vector<128xf32>
    %227 = vector.shape_cast %226 : vector<128xf32> to vector<128x1xf32>
    %cst_112 = arith.constant dense<0.000000e+00> : vector<1xf32>
    %228 = vector.multi_reduction <add>, %227, %cst_112 [0] : vector<128x1xf32> to vector<1xf32>
    %229 = vector.shape_cast %228 : vector<1xf32> to vector<1x1xf32>
    %230 = math.sqrt %229 : vector<1x1xf32>
    %cst_113 = arith.constant 9.99999997E-7 : f32
    %231 = vector.broadcast %cst_113 : f32 to vector<1x1xf32>
    %232 = arith.addf %230, %231 : vector<1x1xf32>
    %233 = arith.divf %230, %232 : vector<1x1xf32>
    %c1_114 = arith.constant 1 : index
    %c0_115 = arith.constant 0 : index
    %c0_116 = arith.constant 0 : index
    %234 = vector.load %arg19[%c1_114, %c0_115, %c0_116] : memref<6x1x128xf32, #tpu.memory_space<vmem>>, vector<1x1x128xf32>
    %235 = vector.shape_cast %234 : vector<1x1x128xf32> to vector<1x128xf32>
    %236 = vector.broadcast %233 : vector<1x1xf32> to vector<128x128xf32>
    %237 = arith.mulf %224, %236 : vector<128x128xf32>
    %238 = vector.broadcast %235 : vector<1x128xf32> to vector<128x128xf32>
    %239 = arith.mulf %238, %237 : vector<128x128xf32>
    %c1_117 = arith.constant 1 : index
    %c0_118 = arith.constant 0 : index
    %c0_119 = arith.constant 0 : index
    %240 = vector.load %arg20[%c1_117, %c0_118, %c0_119] : memref<6x1x128xf32, #tpu.memory_space<vmem>>, vector<1x1x128xf32>
    %241 = vector.shape_cast %240 : vector<1x1x128xf32> to vector<1x128xf32>
    %242 = vector.broadcast %241 : vector<1x128xf32> to vector<128x128xf32>
    %243 = arith.addf %239, %242 : vector<128x128xf32>
    %244 = arith.addf %243, %224 : vector<128x128xf32>
    %c1_120 = arith.constant 1 : index
    %c0_121 = arith.constant 0 : index
    %c0_122 = arith.constant 0 : index
    %245 = vector.load %arg21[%c1_120, %c0_121, %c0_122] : memref<6x128x128xf32, #tpu.memory_space<vmem>>, vector<1x128x128xf32>
    %246 = vector.shape_cast %245 : vector<1x128x128xf32> to vector<128x128xf32>
    %cst_123 = arith.constant dense<0.000000e+00> : vector<128x128xf32>
    %247 = tpu.matmul %244, %246, %cst_123 {dimension_numbers = #tpu.dot_dimension_numbers<[1], [0], [0], [1], [0, 0, 1, 1], [], []>} : vector<128x128xf32>, vector<128x128xf32>, vector<128x128xf32> -> vector<128x128xf32>
    %c1_124 = arith.constant 1 : index
    %c0_125 = arith.constant 0 : index
    %c0_126 = arith.constant 0 : index
    %248 = vector.load %arg22[%c1_124, %c0_125, %c0_126] : memref<6x1x128xf32, #tpu.memory_space<vmem>>, vector<1x1x128xf32>
    %249 = vector.shape_cast %248 : vector<1x1x128xf32> to vector<1x128xf32>
    %250 = vector.broadcast %249 : vector<1x128xf32> to vector<128x128xf32>
    %251 = arith.addf %247, %250 : vector<128x128xf32>
    %252 = arith.addf %173, %251 : vector<128x128xf32>
    %c2 = arith.constant 2 : index
    %c0_127 = arith.constant 0 : index
    %c0_128 = arith.constant 0 : index
    %253 = vector.load %arg13[%c2, %c0_127, %c0_128] : memref<6x1x128xf32, #tpu.memory_space<vmem>>, vector<1x1x128xf32>
    %254 = vector.shape_cast %253 : vector<1x1x128xf32> to vector<1x128xf32>
    %255 = vector.broadcast %254 : vector<1x128xf32> to vector<128x128xf32>
    %256 = arith.mulf %252, %255 : vector<128x128xf32>
    %c2_129 = arith.constant 2 : index
    %c0_130 = arith.constant 0 : index
    %c0_131 = arith.constant 0 : index
    %257 = vector.load %arg14[%c2_129, %c0_130, %c0_131] : memref<6x1x128xf32, #tpu.memory_space<vmem>>, vector<1x1x128xf32>
    %258 = vector.shape_cast %257 : vector<1x1x128xf32> to vector<1x128xf32>
    %259 = vector.broadcast %258 : vector<1x128xf32> to vector<128x128xf32>
    %260 = arith.addf %256, %259 : vector<128x128xf32>
    %c2_132 = arith.constant 2 : index
    %c0_133 = arith.constant 0 : index
    %c0_134 = arith.constant 0 : index
    %261 = vector.load %arg15[%c2_132, %c0_133, %c0_134] : memref<6x1x128xf32, #tpu.memory_space<vmem>>, vector<1x1x128xf32>
    %262 = vector.shape_cast %261 : vector<1x1x128xf32> to vector<1x128xf32>
    %c2_135 = arith.constant 2 : index
    %c0_136 = arith.constant 0 : index
    %c0_137 = arith.constant 0 : index
    %263 = vector.load %arg16[%c2_135, %c0_136, %c0_137] : memref<6x1x128xf32, #tpu.memory_space<vmem>>, vector<1x1x128xf32>
    %264 = vector.shape_cast %263 : vector<1x1x128xf32> to vector<1x128xf32>
    %cst_138 = arith.constant dense<0.000000e+00> : vector<128xf32>
    %265 = vector.multi_reduction <add>, %260, %cst_138 [1] : vector<128x128xf32> to vector<128xf32>
    %266 = vector.shape_cast %265 : vector<128xf32> to vector<128x1xf32>
    %cst_139 = arith.constant 1.280000e+02 : f32
    %267 = vector.broadcast %cst_139 : f32 to vector<128x1xf32>
    %268 = arith.divf %266, %267 : vector<128x1xf32>
    %269 = vector.broadcast %268 : vector<128x1xf32> to vector<128x128xf32>
    %270 = arith.subf %260, %269 : vector<128x128xf32>
    %271 = vector.broadcast %268 : vector<128x1xf32> to vector<128x128xf32>
    %272 = arith.subf %260, %271 : vector<128x128xf32>
    %273 = arith.mulf %270, %272 : vector<128x128xf32>
    %cst_140 = arith.constant dense<0.000000e+00> : vector<128xf32>
    %274 = vector.multi_reduction <add>, %273, %cst_140 [1] : vector<128x128xf32> to vector<128xf32>
    %275 = vector.shape_cast %274 : vector<128xf32> to vector<128x1xf32>
    %cst_141 = arith.constant 1.280000e+02 : f32
    %276 = vector.broadcast %cst_141 : f32 to vector<128x1xf32>
    %277 = arith.divf %275, %276 : vector<128x1xf32>
    %278 = vector.broadcast %268 : vector<128x1xf32> to vector<128x128xf32>
    %279 = arith.subf %260, %278 : vector<128x128xf32>
    %cst_142 = arith.constant 9.99999974E-6 : f32
    %280 = vector.broadcast %cst_142 : f32 to vector<128x1xf32>
    %281 = arith.addf %277, %280 : vector<128x1xf32>
    %282 = math.rsqrt %281 : vector<128x1xf32>
    %283 = vector.broadcast %282 : vector<128x1xf32> to vector<128x128xf32>
    %284 = arith.mulf %279, %283 : vector<128x128xf32>
    %285 = vector.broadcast %262 : vector<1x128xf32> to vector<128x128xf32>
    %286 = arith.mulf %284, %285 : vector<128x128xf32>
    %287 = vector.broadcast %264 : vector<1x128xf32> to vector<128x128xf32>
    %288 = arith.addf %286, %287 : vector<128x128xf32>
    %c2_143 = arith.constant 2 : index
    %c0_144 = arith.constant 0 : index
    %c0_145 = arith.constant 0 : index
    %289 = vector.load %arg17[%c2_143, %c0_144, %c0_145] : memref<6x128x128xf32, #tpu.memory_space<vmem>>, vector<1x128x128xf32>
    %290 = vector.shape_cast %289 : vector<1x128x128xf32> to vector<128x128xf32>
    %cst_146 = arith.constant dense<0.000000e+00> : vector<128x128xf32>
    %291 = tpu.matmul %288, %290, %cst_146 {dimension_numbers = #tpu.dot_dimension_numbers<[1], [0], [0], [1], [0, 0, 1, 1], [], []>} : vector<128x128xf32>, vector<128x128xf32>, vector<128x128xf32> -> vector<128x128xf32>
    %c2_147 = arith.constant 2 : index
    %c0_148 = arith.constant 0 : index
    %c0_149 = arith.constant 0 : index
    %292 = vector.load %arg18[%c2_147, %c0_148, %c0_149] : memref<6x1x128xf32, #tpu.memory_space<vmem>>, vector<1x1x128xf32>
    %293 = vector.shape_cast %292 : vector<1x1x128xf32> to vector<1x128xf32>
    %294 = vector.broadcast %293 : vector<1x128xf32> to vector<128x128xf32>
    %295 = arith.addf %291, %294 : vector<128x128xf32>
    %cst_150 = arith.constant 5.000000e-01 : f32
    %296 = vector.broadcast %cst_150 : f32 to vector<128x128xf32>
    %297 = arith.mulf %296, %295 : vector<128x128xf32>
    %cst_151 = arith.constant 0.707106769 : f32
    %298 = vector.broadcast %cst_151 : f32 to vector<128x128xf32>
    %299 = arith.mulf %295, %298 : vector<128x128xf32>
    %300 = math.erf %299 : vector<128x128xf32>
    %cst_152 = arith.constant 1.000000e+00 : f32
    %301 = vector.broadcast %cst_152 : f32 to vector<128x128xf32>
    %302 = arith.addf %301, %300 : vector<128x128xf32>
    %303 = arith.mulf %297, %302 : vector<128x128xf32>
    %304 = arith.mulf %303, %303 : vector<128x128xf32>
    %cst_153 = arith.constant dense<0.000000e+00> : vector<128xf32>
    %305 = vector.multi_reduction <add>, %304, %cst_153 [1] : vector<128x128xf32> to vector<128xf32>
    %306 = vector.shape_cast %305 : vector<128xf32> to vector<128x1xf32>
    %cst_154 = arith.constant dense<0.000000e+00> : vector<1xf32>
    %307 = vector.multi_reduction <add>, %306, %cst_154 [0] : vector<128x1xf32> to vector<1xf32>
    %308 = vector.shape_cast %307 : vector<1xf32> to vector<1x1xf32>
    %309 = math.sqrt %308 : vector<1x1xf32>
    %cst_155 = arith.constant 9.99999997E-7 : f32
    %310 = vector.broadcast %cst_155 : f32 to vector<1x1xf32>
    %311 = arith.addf %309, %310 : vector<1x1xf32>
    %312 = arith.divf %309, %311 : vector<1x1xf32>
    %c2_156 = arith.constant 2 : index
    %c0_157 = arith.constant 0 : index
    %c0_158 = arith.constant 0 : index
    %313 = vector.load %arg19[%c2_156, %c0_157, %c0_158] : memref<6x1x128xf32, #tpu.memory_space<vmem>>, vector<1x1x128xf32>
    %314 = vector.shape_cast %313 : vector<1x1x128xf32> to vector<1x128xf32>
    %315 = vector.broadcast %312 : vector<1x1xf32> to vector<128x128xf32>
    %316 = arith.mulf %303, %315 : vector<128x128xf32>
    %317 = vector.broadcast %314 : vector<1x128xf32> to vector<128x128xf32>
    %318 = arith.mulf %317, %316 : vector<128x128xf32>
    %c2_159 = arith.constant 2 : index
    %c0_160 = arith.constant 0 : index
    %c0_161 = arith.constant 0 : index
    %319 = vector.load %arg20[%c2_159, %c0_160, %c0_161] : memref<6x1x128xf32, #tpu.memory_space<vmem>>, vector<1x1x128xf32>
    %320 = vector.shape_cast %319 : vector<1x1x128xf32> to vector<1x128xf32>
    %321 = vector.broadcast %320 : vector<1x128xf32> to vector<128x128xf32>
    %322 = arith.addf %318, %321 : vector<128x128xf32>
    %323 = arith.addf %322, %303 : vector<128x128xf32>
    %c2_162 = arith.constant 2 : index
    %c0_163 = arith.constant 0 : index
    %c0_164 = arith.constant 0 : index
    %324 = vector.load %arg21[%c2_162, %c0_163, %c0_164] : memref<6x128x128xf32, #tpu.memory_space<vmem>>, vector<1x128x128xf32>
    %325 = vector.shape_cast %324 : vector<1x128x128xf32> to vector<128x128xf32>
    %cst_165 = arith.constant dense<0.000000e+00> : vector<128x128xf32>
    %326 = tpu.matmul %323, %325, %cst_165 {dimension_numbers = #tpu.dot_dimension_numbers<[1], [0], [0], [1], [0, 0, 1, 1], [], []>} : vector<128x128xf32>, vector<128x128xf32>, vector<128x128xf32> -> vector<128x128xf32>
    %c2_166 = arith.constant 2 : index
    %c0_167 = arith.constant 0 : index
    %c0_168 = arith.constant 0 : index
    %327 = vector.load %arg22[%c2_166, %c0_167, %c0_168] : memref<6x1x128xf32, #tpu.memory_space<vmem>>, vector<1x1x128xf32>
    %328 = vector.shape_cast %327 : vector<1x1x128xf32> to vector<1x128xf32>
    %329 = vector.broadcast %328 : vector<1x128xf32> to vector<128x128xf32>
    %330 = arith.addf %326, %329 : vector<128x128xf32>
    %331 = arith.addf %252, %330 : vector<128x128xf32>
    %c3 = arith.constant 3 : index
    %c0_169 = arith.constant 0 : index
    %c0_170 = arith.constant 0 : index
    %332 = vector.load %arg13[%c3, %c0_169, %c0_170] : memref<6x1x128xf32, #tpu.memory_space<vmem>>, vector<1x1x128xf32>
    %333 = vector.shape_cast %332 : vector<1x1x128xf32> to vector<1x128xf32>
    %334 = vector.broadcast %333 : vector<1x128xf32> to vector<128x128xf32>
    %335 = arith.mulf %331, %334 : vector<128x128xf32>
    %c3_171 = arith.constant 3 : index
    %c0_172 = arith.constant 0 : index
    %c0_173 = arith.constant 0 : index
    %336 = vector.load %arg14[%c3_171, %c0_172, %c0_173] : memref<6x1x128xf32, #tpu.memory_space<vmem>>, vector<1x1x128xf32>
    %337 = vector.shape_cast %336 : vector<1x1x128xf32> to vector<1x128xf32>
    %338 = vector.broadcast %337 : vector<1x128xf32> to vector<128x128xf32>
    %339 = arith.addf %335, %338 : vector<128x128xf32>
    %c3_174 = arith.constant 3 : index
    %c0_175 = arith.constant 0 : index
    %c0_176 = arith.constant 0 : index
    %340 = vector.load %arg15[%c3_174, %c0_175, %c0_176] : memref<6x1x128xf32, #tpu.memory_space<vmem>>, vector<1x1x128xf32>
    %341 = vector.shape_cast %340 : vector<1x1x128xf32> to vector<1x128xf32>
    %c3_177 = arith.constant 3 : index
    %c0_178 = arith.constant 0 : index
    %c0_179 = arith.constant 0 : index
    %342 = vector.load %arg16[%c3_177, %c0_178, %c0_179] : memref<6x1x128xf32, #tpu.memory_space<vmem>>, vector<1x1x128xf32>
    %343 = vector.shape_cast %342 : vector<1x1x128xf32> to vector<1x128xf32>
    %cst_180 = arith.constant dense<0.000000e+00> : vector<128xf32>
    %344 = vector.multi_reduction <add>, %339, %cst_180 [1] : vector<128x128xf32> to vector<128xf32>
    %345 = vector.shape_cast %344 : vector<128xf32> to vector<128x1xf32>
    %cst_181 = arith.constant 1.280000e+02 : f32
    %346 = vector.broadcast %cst_181 : f32 to vector<128x1xf32>
    %347 = arith.divf %345, %346 : vector<128x1xf32>
    %348 = vector.broadcast %347 : vector<128x1xf32> to vector<128x128xf32>
    %349 = arith.subf %339, %348 : vector<128x128xf32>
    %350 = vector.broadcast %347 : vector<128x1xf32> to vector<128x128xf32>
    %351 = arith.subf %339, %350 : vector<128x128xf32>
    %352 = arith.mulf %349, %351 : vector<128x128xf32>
    %cst_182 = arith.constant dense<0.000000e+00> : vector<128xf32>
    %353 = vector.multi_reduction <add>, %352, %cst_182 [1] : vector<128x128xf32> to vector<128xf32>
    %354 = vector.shape_cast %353 : vector<128xf32> to vector<128x1xf32>
    %cst_183 = arith.constant 1.280000e+02 : f32
    %355 = vector.broadcast %cst_183 : f32 to vector<128x1xf32>
    %356 = arith.divf %354, %355 : vector<128x1xf32>
    %357 = vector.broadcast %347 : vector<128x1xf32> to vector<128x128xf32>
    %358 = arith.subf %339, %357 : vector<128x128xf32>
    %cst_184 = arith.constant 9.99999974E-6 : f32
    %359 = vector.broadcast %cst_184 : f32 to vector<128x1xf32>
    %360 = arith.addf %356, %359 : vector<128x1xf32>
    %361 = math.rsqrt %360 : vector<128x1xf32>
    %362 = vector.broadcast %361 : vector<128x1xf32> to vector<128x128xf32>
    %363 = arith.mulf %358, %362 : vector<128x128xf32>
    %364 = vector.broadcast %341 : vector<1x128xf32> to vector<128x128xf32>
    %365 = arith.mulf %363, %364 : vector<128x128xf32>
    %366 = vector.broadcast %343 : vector<1x128xf32> to vector<128x128xf32>
    %367 = arith.addf %365, %366 : vector<128x128xf32>
    %c3_185 = arith.constant 3 : index
    %c0_186 = arith.constant 0 : index
    %c0_187 = arith.constant 0 : index
    %368 = vector.load %arg17[%c3_185, %c0_186, %c0_187] : memref<6x128x128xf32, #tpu.memory_space<vmem>>, vector<1x128x128xf32>
    %369 = vector.shape_cast %368 : vector<1x128x128xf32> to vector<128x128xf32>
    %cst_188 = arith.constant dense<0.000000e+00> : vector<128x128xf32>
    %370 = tpu.matmul %367, %369, %cst_188 {dimension_numbers = #tpu.dot_dimension_numbers<[1], [0], [0], [1], [0, 0, 1, 1], [], []>} : vector<128x128xf32>, vector<128x128xf32>, vector<128x128xf32> -> vector<128x128xf32>
    %c3_189 = arith.constant 3 : index
    %c0_190 = arith.constant 0 : index
    %c0_191 = arith.constant 0 : index
    %371 = vector.load %arg18[%c3_189, %c0_190, %c0_191] : memref<6x1x128xf32, #tpu.memory_space<vmem>>, vector<1x1x128xf32>
    %372 = vector.shape_cast %371 : vector<1x1x128xf32> to vector<1x128xf32>
    %373 = vector.broadcast %372 : vector<1x128xf32> to vector<128x128xf32>
    %374 = arith.addf %370, %373 : vector<128x128xf32>
    %cst_192 = arith.constant 5.000000e-01 : f32
    %375 = vector.broadcast %cst_192 : f32 to vector<128x128xf32>
    %376 = arith.mulf %375, %374 : vector<128x128xf32>
    %cst_193 = arith.constant 0.707106769 : f32
    %377 = vector.broadcast %cst_193 : f32 to vector<128x128xf32>
    %378 = arith.mulf %374, %377 : vector<128x128xf32>
    %379 = math.erf %378 : vector<128x128xf32>
    %cst_194 = arith.constant 1.000000e+00 : f32
    %380 = vector.broadcast %cst_194 : f32 to vector<128x128xf32>
    %381 = arith.addf %380, %379 : vector<128x128xf32>
    %382 = arith.mulf %376, %381 : vector<128x128xf32>
    %383 = arith.mulf %382, %382 : vector<128x128xf32>
    %cst_195 = arith.constant dense<0.000000e+00> : vector<128xf32>
    %384 = vector.multi_reduction <add>, %383, %cst_195 [1] : vector<128x128xf32> to vector<128xf32>
    %385 = vector.shape_cast %384 : vector<128xf32> to vector<128x1xf32>
    %cst_196 = arith.constant dense<0.000000e+00> : vector<1xf32>
    %386 = vector.multi_reduction <add>, %385, %cst_196 [0] : vector<128x1xf32> to vector<1xf32>
    %387 = vector.shape_cast %386 : vector<1xf32> to vector<1x1xf32>
    %388 = math.sqrt %387 : vector<1x1xf32>
    %cst_197 = arith.constant 9.99999997E-7 : f32
    %389 = vector.broadcast %cst_197 : f32 to vector<1x1xf32>
    %390 = arith.addf %388, %389 : vector<1x1xf32>
    %391 = arith.divf %388, %390 : vector<1x1xf32>
    %c3_198 = arith.constant 3 : index
    %c0_199 = arith.constant 0 : index
    %c0_200 = arith.constant 0 : index
    %392 = vector.load %arg19[%c3_198, %c0_199, %c0_200] : memref<6x1x128xf32, #tpu.memory_space<vmem>>, vector<1x1x128xf32>
    %393 = vector.shape_cast %392 : vector<1x1x128xf32> to vector<1x128xf32>
    %394 = vector.broadcast %391 : vector<1x1xf32> to vector<128x128xf32>
    %395 = arith.mulf %382, %394 : vector<128x128xf32>
    %396 = vector.broadcast %393 : vector<1x128xf32> to vector<128x128xf32>
    %397 = arith.mulf %396, %395 : vector<128x128xf32>
    %c3_201 = arith.constant 3 : index
    %c0_202 = arith.constant 0 : index
    %c0_203 = arith.constant 0 : index
    %398 = vector.load %arg20[%c3_201, %c0_202, %c0_203] : memref<6x1x128xf32, #tpu.memory_space<vmem>>, vector<1x1x128xf32>
    %399 = vector.shape_cast %398 : vector<1x1x128xf32> to vector<1x128xf32>
    %400 = vector.broadcast %399 : vector<1x128xf32> to vector<128x128xf32>
    %401 = arith.addf %397, %400 : vector<128x128xf32>
    %402 = arith.addf %401, %382 : vector<128x128xf32>
    %c3_204 = arith.constant 3 : index
    %c0_205 = arith.constant 0 : index
    %c0_206 = arith.constant 0 : index
    %403 = vector.load %arg21[%c3_204, %c0_205, %c0_206] : memref<6x128x128xf32, #tpu.memory_space<vmem>>, vector<1x128x128xf32>
    %404 = vector.shape_cast %403 : vector<1x128x128xf32> to vector<128x128xf32>
    %cst_207 = arith.constant dense<0.000000e+00> : vector<128x128xf32>
    %405 = tpu.matmul %402, %404, %cst_207 {dimension_numbers = #tpu.dot_dimension_numbers<[1], [0], [0], [1], [0, 0, 1, 1], [], []>} : vector<128x128xf32>, vector<128x128xf32>, vector<128x128xf32> -> vector<128x128xf32>
    %c3_208 = arith.constant 3 : index
    %c0_209 = arith.constant 0 : index
    %c0_210 = arith.constant 0 : index
    %406 = vector.load %arg22[%c3_208, %c0_209, %c0_210] : memref<6x1x128xf32, #tpu.memory_space<vmem>>, vector<1x1x128xf32>
    %407 = vector.shape_cast %406 : vector<1x1x128xf32> to vector<1x128xf32>
    %408 = vector.broadcast %407 : vector<1x128xf32> to vector<128x128xf32>
    %409 = arith.addf %405, %408 : vector<128x128xf32>
    %410 = arith.addf %331, %409 : vector<128x128xf32>
    %c4 = arith.constant 4 : index
    %c0_211 = arith.constant 0 : index
    %c0_212 = arith.constant 0 : index
    %411 = vector.load %arg13[%c4, %c0_211, %c0_212] : memref<6x1x128xf32, #tpu.memory_space<vmem>>, vector<1x1x128xf32>
    %412 = vector.shape_cast %411 : vector<1x1x128xf32> to vector<1x128xf32>
    %413 = vector.broadcast %412 : vector<1x128xf32> to vector<128x128xf32>
    %414 = arith.mulf %410, %413 : vector<128x128xf32>
    %c4_213 = arith.constant 4 : index
    %c0_214 = arith.constant 0 : index
    %c0_215 = arith.constant 0 : index
    %415 = vector.load %arg14[%c4_213, %c0_214, %c0_215] : memref<6x1x128xf32, #tpu.memory_space<vmem>>, vector<1x1x128xf32>
    %416 = vector.shape_cast %415 : vector<1x1x128xf32> to vector<1x128xf32>
    %417 = vector.broadcast %416 : vector<1x128xf32> to vector<128x128xf32>
    %418 = arith.addf %414, %417 : vector<128x128xf32>
    %c4_216 = arith.constant 4 : index
    %c0_217 = arith.constant 0 : index
    %c0_218 = arith.constant 0 : index
    %419 = vector.load %arg15[%c4_216, %c0_217, %c0_218] : memref<6x1x128xf32, #tpu.memory_space<vmem>>, vector<1x1x128xf32>
    %420 = vector.shape_cast %419 : vector<1x1x128xf32> to vector<1x128xf32>
    %c4_219 = arith.constant 4 : index
    %c0_220 = arith.constant 0 : index
    %c0_221 = arith.constant 0 : index
    %421 = vector.load %arg16[%c4_219, %c0_220, %c0_221] : memref<6x1x128xf32, #tpu.memory_space<vmem>>, vector<1x1x128xf32>
    %422 = vector.shape_cast %421 : vector<1x1x128xf32> to vector<1x128xf32>
    %cst_222 = arith.constant dense<0.000000e+00> : vector<128xf32>
    %423 = vector.multi_reduction <add>, %418, %cst_222 [1] : vector<128x128xf32> to vector<128xf32>
    %424 = vector.shape_cast %423 : vector<128xf32> to vector<128x1xf32>
    %cst_223 = arith.constant 1.280000e+02 : f32
    %425 = vector.broadcast %cst_223 : f32 to vector<128x1xf32>
    %426 = arith.divf %424, %425 : vector<128x1xf32>
    %427 = vector.broadcast %426 : vector<128x1xf32> to vector<128x128xf32>
    %428 = arith.subf %418, %427 : vector<128x128xf32>
    %429 = vector.broadcast %426 : vector<128x1xf32> to vector<128x128xf32>
    %430 = arith.subf %418, %429 : vector<128x128xf32>
    %431 = arith.mulf %428, %430 : vector<128x128xf32>
    %cst_224 = arith.constant dense<0.000000e+00> : vector<128xf32>
    %432 = vector.multi_reduction <add>, %431, %cst_224 [1] : vector<128x128xf32> to vector<128xf32>
    %433 = vector.shape_cast %432 : vector<128xf32> to vector<128x1xf32>
    %cst_225 = arith.constant 1.280000e+02 : f32
    %434 = vector.broadcast %cst_225 : f32 to vector<128x1xf32>
    %435 = arith.divf %433, %434 : vector<128x1xf32>
    %436 = vector.broadcast %426 : vector<128x1xf32> to vector<128x128xf32>
    %437 = arith.subf %418, %436 : vector<128x128xf32>
    %cst_226 = arith.constant 9.99999974E-6 : f32
    %438 = vector.broadcast %cst_226 : f32 to vector<128x1xf32>
    %439 = arith.addf %435, %438 : vector<128x1xf32>
    %440 = math.rsqrt %439 : vector<128x1xf32>
    %441 = vector.broadcast %440 : vector<128x1xf32> to vector<128x128xf32>
    %442 = arith.mulf %437, %441 : vector<128x128xf32>
    %443 = vector.broadcast %420 : vector<1x128xf32> to vector<128x128xf32>
    %444 = arith.mulf %442, %443 : vector<128x128xf32>
    %445 = vector.broadcast %422 : vector<1x128xf32> to vector<128x128xf32>
    %446 = arith.addf %444, %445 : vector<128x128xf32>
    %c4_227 = arith.constant 4 : index
    %c0_228 = arith.constant 0 : index
    %c0_229 = arith.constant 0 : index
    %447 = vector.load %arg17[%c4_227, %c0_228, %c0_229] : memref<6x128x128xf32, #tpu.memory_space<vmem>>, vector<1x128x128xf32>
    %448 = vector.shape_cast %447 : vector<1x128x128xf32> to vector<128x128xf32>
    %cst_230 = arith.constant dense<0.000000e+00> : vector<128x128xf32>
    %449 = tpu.matmul %446, %448, %cst_230 {dimension_numbers = #tpu.dot_dimension_numbers<[1], [0], [0], [1], [0, 0, 1, 1], [], []>} : vector<128x128xf32>, vector<128x128xf32>, vector<128x128xf32> -> vector<128x128xf32>
    %c4_231 = arith.constant 4 : index
    %c0_232 = arith.constant 0 : index
    %c0_233 = arith.constant 0 : index
    %450 = vector.load %arg18[%c4_231, %c0_232, %c0_233] : memref<6x1x128xf32, #tpu.memory_space<vmem>>, vector<1x1x128xf32>
    %451 = vector.shape_cast %450 : vector<1x1x128xf32> to vector<1x128xf32>
    %452 = vector.broadcast %451 : vector<1x128xf32> to vector<128x128xf32>
    %453 = arith.addf %449, %452 : vector<128x128xf32>
    %cst_234 = arith.constant 5.000000e-01 : f32
    %454 = vector.broadcast %cst_234 : f32 to vector<128x128xf32>
    %455 = arith.mulf %454, %453 : vector<128x128xf32>
    %cst_235 = arith.constant 0.707106769 : f32
    %456 = vector.broadcast %cst_235 : f32 to vector<128x128xf32>
    %457 = arith.mulf %453, %456 : vector<128x128xf32>
    %458 = math.erf %457 : vector<128x128xf32>
    %cst_236 = arith.constant 1.000000e+00 : f32
    %459 = vector.broadcast %cst_236 : f32 to vector<128x128xf32>
    %460 = arith.addf %459, %458 : vector<128x128xf32>
    %461 = arith.mulf %455, %460 : vector<128x128xf32>
    %462 = arith.mulf %461, %461 : vector<128x128xf32>
    %cst_237 = arith.constant dense<0.000000e+00> : vector<128xf32>
    %463 = vector.multi_reduction <add>, %462, %cst_237 [1] : vector<128x128xf32> to vector<128xf32>
    %464 = vector.shape_cast %463 : vector<128xf32> to vector<128x1xf32>
    %cst_238 = arith.constant dense<0.000000e+00> : vector<1xf32>
    %465 = vector.multi_reduction <add>, %464, %cst_238 [0] : vector<128x1xf32> to vector<1xf32>
    %466 = vector.shape_cast %465 : vector<1xf32> to vector<1x1xf32>
    %467 = math.sqrt %466 : vector<1x1xf32>
    %cst_239 = arith.constant 9.99999997E-7 : f32
    %468 = vector.broadcast %cst_239 : f32 to vector<1x1xf32>
    %469 = arith.addf %467, %468 : vector<1x1xf32>
    %470 = arith.divf %467, %469 : vector<1x1xf32>
    %c4_240 = arith.constant 4 : index
    %c0_241 = arith.constant 0 : index
    %c0_242 = arith.constant 0 : index
    %471 = vector.load %arg19[%c4_240, %c0_241, %c0_242] : memref<6x1x128xf32, #tpu.memory_space<vmem>>, vector<1x1x128xf32>
    %472 = vector.shape_cast %471 : vector<1x1x128xf32> to vector<1x128xf32>
    %473 = vector.broadcast %470 : vector<1x1xf32> to vector<128x128xf32>
    %474 = arith.mulf %461, %473 : vector<128x128xf32>
    %475 = vector.broadcast %472 : vector<1x128xf32> to vector<128x128xf32>
    %476 = arith.mulf %475, %474 : vector<128x128xf32>
    %c4_243 = arith.constant 4 : index
    %c0_244 = arith.constant 0 : index
    %c0_245 = arith.constant 0 : index
    %477 = vector.load %arg20[%c4_243, %c0_244, %c0_245] : memref<6x1x128xf32, #tpu.memory_space<vmem>>, vector<1x1x128xf32>
    %478 = vector.shape_cast %477 : vector<1x1x128xf32> to vector<1x128xf32>
    %479 = vector.broadcast %478 : vector<1x128xf32> to vector<128x128xf32>
    %480 = arith.addf %476, %479 : vector<128x128xf32>
    %481 = arith.addf %480, %461 : vector<128x128xf32>
    %c4_246 = arith.constant 4 : index
    %c0_247 = arith.constant 0 : index
    %c0_248 = arith.constant 0 : index
    %482 = vector.load %arg21[%c4_246, %c0_247, %c0_248] : memref<6x128x128xf32, #tpu.memory_space<vmem>>, vector<1x128x128xf32>
    %483 = vector.shape_cast %482 : vector<1x128x128xf32> to vector<128x128xf32>
    %cst_249 = arith.constant dense<0.000000e+00> : vector<128x128xf32>
    %484 = tpu.matmul %481, %483, %cst_249 {dimension_numbers = #tpu.dot_dimension_numbers<[1], [0], [0], [1], [0, 0, 1, 1], [], []>} : vector<128x128xf32>, vector<128x128xf32>, vector<128x128xf32> -> vector<128x128xf32>
    %c4_250 = arith.constant 4 : index
    %c0_251 = arith.constant 0 : index
    %c0_252 = arith.constant 0 : index
    %485 = vector.load %arg22[%c4_250, %c0_251, %c0_252] : memref<6x1x128xf32, #tpu.memory_space<vmem>>, vector<1x1x128xf32>
    %486 = vector.shape_cast %485 : vector<1x1x128xf32> to vector<1x128xf32>
    %487 = vector.broadcast %486 : vector<1x128xf32> to vector<128x128xf32>
    %488 = arith.addf %484, %487 : vector<128x128xf32>
    %489 = arith.addf %410, %488 : vector<128x128xf32>
    %c5 = arith.constant 5 : index
    %c0_253 = arith.constant 0 : index
    %c0_254 = arith.constant 0 : index
    %490 = vector.load %arg13[%c5, %c0_253, %c0_254] : memref<6x1x128xf32, #tpu.memory_space<vmem>>, vector<1x1x128xf32>
    %491 = vector.shape_cast %490 : vector<1x1x128xf32> to vector<1x128xf32>
    %492 = vector.broadcast %491 : vector<1x128xf32> to vector<128x128xf32>
    %493 = arith.mulf %489, %492 : vector<128x128xf32>
    %c5_255 = arith.constant 5 : index
    %c0_256 = arith.constant 0 : index
    %c0_257 = arith.constant 0 : index
    %494 = vector.load %arg14[%c5_255, %c0_256, %c0_257] : memref<6x1x128xf32, #tpu.memory_space<vmem>>, vector<1x1x128xf32>
    %495 = vector.shape_cast %494 : vector<1x1x128xf32> to vector<1x128xf32>
    %496 = vector.broadcast %495 : vector<1x128xf32> to vector<128x128xf32>
    %497 = arith.addf %493, %496 : vector<128x128xf32>
    %c5_258 = arith.constant 5 : index
    %c0_259 = arith.constant 0 : index
    %c0_260 = arith.constant 0 : index
    %498 = vector.load %arg15[%c5_258, %c0_259, %c0_260] : memref<6x1x128xf32, #tpu.memory_space<vmem>>, vector<1x1x128xf32>
    %499 = vector.shape_cast %498 : vector<1x1x128xf32> to vector<1x128xf32>
    %c5_261 = arith.constant 5 : index
    %c0_262 = arith.constant 0 : index
    %c0_263 = arith.constant 0 : index
    %500 = vector.load %arg16[%c5_261, %c0_262, %c0_263] : memref<6x1x128xf32, #tpu.memory_space<vmem>>, vector<1x1x128xf32>
    %501 = vector.shape_cast %500 : vector<1x1x128xf32> to vector<1x128xf32>
    %cst_264 = arith.constant dense<0.000000e+00> : vector<128xf32>
    %502 = vector.multi_reduction <add>, %497, %cst_264 [1] : vector<128x128xf32> to vector<128xf32>
    %503 = vector.shape_cast %502 : vector<128xf32> to vector<128x1xf32>
    %cst_265 = arith.constant 1.280000e+02 : f32
    %504 = vector.broadcast %cst_265 : f32 to vector<128x1xf32>
    %505 = arith.divf %503, %504 : vector<128x1xf32>
    %506 = vector.broadcast %505 : vector<128x1xf32> to vector<128x128xf32>
    %507 = arith.subf %497, %506 : vector<128x128xf32>
    %508 = vector.broadcast %505 : vector<128x1xf32> to vector<128x128xf32>
    %509 = arith.subf %497, %508 : vector<128x128xf32>
    %510 = arith.mulf %507, %509 : vector<128x128xf32>
    %cst_266 = arith.constant dense<0.000000e+00> : vector<128xf32>
    %511 = vector.multi_reduction <add>, %510, %cst_266 [1] : vector<128x128xf32> to vector<128xf32>
    %512 = vector.shape_cast %511 : vector<128xf32> to vector<128x1xf32>
    %cst_267 = arith.constant 1.280000e+02 : f32
    %513 = vector.broadcast %cst_267 : f32 to vector<128x1xf32>
    %514 = arith.divf %512, %513 : vector<128x1xf32>
    %515 = vector.broadcast %505 : vector<128x1xf32> to vector<128x128xf32>
    %516 = arith.subf %497, %515 : vector<128x128xf32>
    %cst_268 = arith.constant 9.99999974E-6 : f32
    %517 = vector.broadcast %cst_268 : f32 to vector<128x1xf32>
    %518 = arith.addf %514, %517 : vector<128x1xf32>
    %519 = math.rsqrt %518 : vector<128x1xf32>
    %520 = vector.broadcast %519 : vector<128x1xf32> to vector<128x128xf32>
    %521 = arith.mulf %516, %520 : vector<128x128xf32>
    %522 = vector.broadcast %499 : vector<1x128xf32> to vector<128x128xf32>
    %523 = arith.mulf %521, %522 : vector<128x128xf32>
    %524 = vector.broadcast %501 : vector<1x128xf32> to vector<128x128xf32>
    %525 = arith.addf %523, %524 : vector<128x128xf32>
    %c5_269 = arith.constant 5 : index
    %c0_270 = arith.constant 0 : index
    %c0_271 = arith.constant 0 : index
    %526 = vector.load %arg17[%c5_269, %c0_270, %c0_271] : memref<6x128x128xf32, #tpu.memory_space<vmem>>, vector<1x128x128xf32>
    %527 = vector.shape_cast %526 : vector<1x128x128xf32> to vector<128x128xf32>
    %cst_272 = arith.constant dense<0.000000e+00> : vector<128x128xf32>
    %528 = tpu.matmul %525, %527, %cst_272 {dimension_numbers = #tpu.dot_dimension_numbers<[1], [0], [0], [1], [0, 0, 1, 1], [], []>} : vector<128x128xf32>, vector<128x128xf32>, vector<128x128xf32> -> vector<128x128xf32>
    %c5_273 = arith.constant 5 : index
    %c0_274 = arith.constant 0 : index
    %c0_275 = arith.constant 0 : index
    %529 = vector.load %arg18[%c5_273, %c0_274, %c0_275] : memref<6x1x128xf32, #tpu.memory_space<vmem>>, vector<1x1x128xf32>
    %530 = vector.shape_cast %529 : vector<1x1x128xf32> to vector<1x128xf32>
    %531 = vector.broadcast %530 : vector<1x128xf32> to vector<128x128xf32>
    %532 = arith.addf %528, %531 : vector<128x128xf32>
    %cst_276 = arith.constant 5.000000e-01 : f32
    %533 = vector.broadcast %cst_276 : f32 to vector<128x128xf32>
    %534 = arith.mulf %533, %532 : vector<128x128xf32>
    %cst_277 = arith.constant 0.707106769 : f32
    %535 = vector.broadcast %cst_277 : f32 to vector<128x128xf32>
    %536 = arith.mulf %532, %535 : vector<128x128xf32>
    %537 = math.erf %536 : vector<128x128xf32>
    %cst_278 = arith.constant 1.000000e+00 : f32
    %538 = vector.broadcast %cst_278 : f32 to vector<128x128xf32>
    %539 = arith.addf %538, %537 : vector<128x128xf32>
    %540 = arith.mulf %534, %539 : vector<128x128xf32>
    %541 = arith.mulf %540, %540 : vector<128x128xf32>
    %cst_279 = arith.constant dense<0.000000e+00> : vector<128xf32>
    %542 = vector.multi_reduction <add>, %541, %cst_279 [1] : vector<128x128xf32> to vector<128xf32>
    %543 = vector.shape_cast %542 : vector<128xf32> to vector<128x1xf32>
    %cst_280 = arith.constant dense<0.000000e+00> : vector<1xf32>
    %544 = vector.multi_reduction <add>, %543, %cst_280 [0] : vector<128x1xf32> to vector<1xf32>
    %545 = vector.shape_cast %544 : vector<1xf32> to vector<1x1xf32>
    %546 = math.sqrt %545 : vector<1x1xf32>
    %cst_281 = arith.constant 9.99999997E-7 : f32
    %547 = vector.broadcast %cst_281 : f32 to vector<1x1xf32>
    %548 = arith.addf %546, %547 : vector<1x1xf32>
    %549 = arith.divf %546, %548 : vector<1x1xf32>
    %c5_282 = arith.constant 5 : index
    %c0_283 = arith.constant 0 : index
    %c0_284 = arith.constant 0 : index
    %550 = vector.load %arg19[%c5_282, %c0_283, %c0_284] : memref<6x1x128xf32, #tpu.memory_space<vmem>>, vector<1x1x128xf32>
    %551 = vector.shape_cast %550 : vector<1x1x128xf32> to vector<1x128xf32>
    %552 = vector.broadcast %549 : vector<1x1xf32> to vector<128x128xf32>
    %553 = arith.mulf %540, %552 : vector<128x128xf32>
    %554 = vector.broadcast %551 : vector<1x128xf32> to vector<128x128xf32>
    %555 = arith.mulf %554, %553 : vector<128x128xf32>
    %c5_285 = arith.constant 5 : index
    %c0_286 = arith.constant 0 : index
    %c0_287 = arith.constant 0 : index
    %556 = vector.load %arg20[%c5_285, %c0_286, %c0_287] : memref<6x1x128xf32, #tpu.memory_space<vmem>>, vector<1x1x128xf32>
    %557 = vector.shape_cast %556 : vector<1x1x128xf32> to vector<1x128xf32>
    %558 = vector.broadcast %557 : vector<1x128xf32> to vector<128x128xf32>
    %559 = arith.addf %555, %558 : vector<128x128xf32>
    %560 = arith.addf %559, %540 : vector<128x128xf32>
    %c5_288 = arith.constant 5 : index
    %c0_289 = arith.constant 0 : index
    %c0_290 = arith.constant 0 : index
    %561 = vector.load %arg21[%c5_288, %c0_289, %c0_290] : memref<6x128x128xf32, #tpu.memory_space<vmem>>, vector<1x128x128xf32>
    %562 = vector.shape_cast %561 : vector<1x128x128xf32> to vector<128x128xf32>
    %cst_291 = arith.constant dense<0.000000e+00> : vector<128x128xf32>
    %563 = tpu.matmul %560, %562, %cst_291 {dimension_numbers = #tpu.dot_dimension_numbers<[1], [0], [0], [1], [0, 0, 1, 1], [], []>} : vector<128x128xf32>, vector<128x128xf32>, vector<128x128xf32> -> vector<128x128xf32>
    %c5_292 = arith.constant 5 : index
    %c0_293 = arith.constant 0 : index
    %c0_294 = arith.constant 0 : index
    %564 = vector.load %arg22[%c5_292, %c0_293, %c0_294] : memref<6x1x128xf32, #tpu.memory_space<vmem>>, vector<1x1x128xf32>
    %565 = vector.shape_cast %564 : vector<1x1x128xf32> to vector<1x128xf32>
    %566 = vector.broadcast %565 : vector<1x128xf32> to vector<128x128xf32>
    %567 = arith.addf %563, %566 : vector<128x128xf32>
    %568 = arith.addf %489, %567 : vector<128x128xf32>
    %569 = tpu.transpose %568, [1, 0] : vector<128x128xf32> -> vector<128x128xf32>
    %c0_295 = arith.constant 0 : index
    %c0_296 = arith.constant 0 : index
    %570 = vector.load %arg23[%c0_295, %c0_296] : memref<3x128xf32, #tpu.memory_space<vmem>>, vector<3x128xf32>
    %cst_297 = arith.constant dense<0.000000e+00> : vector<3x128xf32>
    %571 = tpu.matmul %570, %569, %cst_297 {dimension_numbers = #tpu.dot_dimension_numbers<[1], [0], [0], [1], [0, 0, 1, 1], [], []>} : vector<3x128xf32>, vector<128x128xf32>, vector<3x128xf32> -> vector<3x128xf32>
    %c0_298 = arith.constant 0 : index
    %c0_299 = arith.constant 0 : index
    %572 = vector.load %arg24[%c0_298, %c0_299] : memref<3x1xf32, #tpu.memory_space<vmem>>, vector<3x1xf32>
    %573 = vector.broadcast %572 : vector<3x1xf32> to vector<3x128xf32>
    %574 = arith.addf %571, %573 : vector<3x128xf32>
    %c0_300 = arith.constant 0 : index
    %c0_301 = arith.constant 0 : index
    %575 = vector.load %arg25[%c0_300, %c0_301] : memref<1x128xf32, #tpu.memory_space<vmem>>, vector<1x128xf32>
    %c0_302 = arith.constant 0 : index
    %c0_303 = arith.constant 0 : index
    %576 = vector.load %arg26[%c0_302, %c0_303] : memref<1x128xf32, #tpu.memory_space<vmem>>, vector<1x128xf32>
    %cst_304 = arith.constant dense<0.000000e+00> : vector<3xf32>
    %577 = vector.multi_reduction <add>, %574, %cst_304 [1] : vector<3x128xf32> to vector<3xf32>
    %578 = vector.shape_cast %577 : vector<3xf32> to vector<3x1xf32>
    %cst_305 = arith.constant 1.280000e+02 : f32
    %579 = vector.broadcast %cst_305 : f32 to vector<3x1xf32>
    %580 = arith.divf %578, %579 : vector<3x1xf32>
    %581 = vector.broadcast %580 : vector<3x1xf32> to vector<3x128xf32>
    %582 = arith.subf %574, %581 : vector<3x128xf32>
    %583 = vector.broadcast %580 : vector<3x1xf32> to vector<3x128xf32>
    %584 = arith.subf %574, %583 : vector<3x128xf32>
    %585 = arith.mulf %582, %584 : vector<3x128xf32>
    %cst_306 = arith.constant dense<0.000000e+00> : vector<3xf32>
    %586 = vector.multi_reduction <add>, %585, %cst_306 [1] : vector<3x128xf32> to vector<3xf32>
    %587 = vector.shape_cast %586 : vector<3xf32> to vector<3x1xf32>
    %cst_307 = arith.constant 1.280000e+02 : f32
    %588 = vector.broadcast %cst_307 : f32 to vector<3x1xf32>
    %589 = arith.divf %587, %588 : vector<3x1xf32>
    %590 = vector.broadcast %580 : vector<3x1xf32> to vector<3x128xf32>
    %591 = arith.subf %574, %590 : vector<3x128xf32>
    %cst_308 = arith.constant 9.99999997E-7 : f32
    %592 = vector.broadcast %cst_308 : f32 to vector<3x1xf32>
    %593 = arith.addf %589, %592 : vector<3x1xf32>
    %594 = math.rsqrt %593 : vector<3x1xf32>
    %595 = vector.broadcast %594 : vector<3x1xf32> to vector<3x128xf32>
    %596 = arith.mulf %591, %595 : vector<3x128xf32>
    %597 = vector.broadcast %575 : vector<1x128xf32> to vector<3x128xf32>
    %598 = arith.mulf %596, %597 : vector<3x128xf32>
    %599 = vector.broadcast %576 : vector<1x128xf32> to vector<3x128xf32>
    %600 = arith.addf %598, %599 : vector<3x128xf32>
    %c0_309 = arith.constant 0 : index
    %c0_310 = arith.constant 0 : index
    %601 = vector.load %arg27[%c0_309, %c0_310] : memref<128x128xf32, #tpu.memory_space<vmem>>, vector<128x128xf32>
    %cst_311 = arith.constant dense<0.000000e+00> : vector<3x128xf32>
    %602 = tpu.matmul %600, %601, %cst_311 {dimension_numbers = #tpu.dot_dimension_numbers<[1], [0], [0], [1], [0, 0, 1, 1], [], []>} : vector<3x128xf32>, vector<128x128xf32>, vector<3x128xf32> -> vector<3x128xf32>
    %c0_312 = arith.constant 0 : index
    %c0_313 = arith.constant 0 : index
    %603 = vector.load %arg28[%c0_312, %c0_313] : memref<1x128xf32, #tpu.memory_space<vmem>>, vector<1x128xf32>
    %604 = vector.broadcast %603 : vector<1x128xf32> to vector<3x128xf32>
    %605 = arith.addf %602, %604 : vector<3x128xf32>
    %c0_314 = arith.constant 0 : index
    %c0_315 = arith.constant 0 : index
    %606 = vector.load %arg29[%c0_314, %c0_315] : memref<3x128xf32, #tpu.memory_space<vmem>>, vector<3x128xf32>
    tpu.vector_store %arg29[%c0_314, %c0_315], %605 {strides = array<i32>} : memref<3x128xf32, #tpu.memory_space<vmem>>, vector<3x128xf32>,
    return
  }
}

</mosaic_0001>

<bundles_post_ra>
// kernel: convnextv2_forward.1
= control target key start
LH: loop header
LB: loop body
LE: loop exit
PB: predicated region body
PF: predicated region fallthrough
CT: control target
= control target key end

     0   :  { %s9182_s6 = smov 1   ;;  %s9183_s10 = smov 2   ;;  %s12965_s0 = inlined_call_operand.smem [shape: u32[30], index: -1, kind: input, shape index: {}] }
   0x1   :  { %s9226_s5 = sld [smem:[%s12965_s0]]   ;;  %s9184_s14 = smov 3  }
   0x2   :  { %s9231_s9 = sld [smem:[%s12965_s0 + %s9182_s6]]   ;;  %s9185_s18 = smov 4  }
   0x3   :  { %s9236_s13 = sld [smem:[%s12965_s0 + %s9183_s10]]   ;;  %s9186_s22 = smov 5  }
   0x4   :  { %s9241_s17 = sld [smem:[%s12965_s0 + %s9184_s14]]   ;;  %s9187_s26 = smov 6  }
   0x5   :  { %s9246_s21 = sld [smem:[%s12965_s0 + %s9185_s18]]   ;;  %s9188_s30 = smov 7  }
   0x6   :  { %s9251_s25 = sld [smem:[%s12965_s0 + %s9186_s22]]   ;;  %s9189_s4 = smov 8  }
   0x7   :  { %s9256_s29 = sld [smem:[%s12965_s0 + %s9187_s26]]   ;;  %s9190_s10 = smov 9  }
   0x8   :  { %s9261_s3 = sld [smem:[%s12965_s0 + %s9188_s30]]   ;;  %s9191_s15 = smov 10  }
   0x9   :  { %s9266_s8 = sld [smem:[%s12965_s0 + %s9189_s4]]   ;;  %s9192_s20 = smov 11  }
   0xa   :  { %s9271_s14 = sld [smem:[%s12965_s0 + %s9190_s10]]   ;;  %s9193_s26 = smov 12  }
   0xb   :  { %s9276_s19 = sld [smem:[%s12965_s0 + %s9191_s15]]   ;;  %s9194_s1 = smov 13  }
   0xc   :  { %s9281_s24 = sld [smem:[%s12965_s0 + %s9192_s20]]   ;;  %s9195_s7 = smov 14  }
   0xd   :  { %s9286_s30 = sld [smem:[%s12965_s0 + %s9193_s26]]   ;;  %s9196_s15 = smov 15  }
   0xe   :  { %s9291_s6 = sld [smem:[%s12965_s0 + %s9194_s1]]   ;;  %s9197_s22 = smov 16  }
   0xf   :  { %s9296_s12 = sld [smem:[%s12965_s0 + %s9195_s7]]   ;;  %s9198_s28 = smov 17  }
  0x10   :  { %s9301_s20 = sld [smem:[%s12965_s0 + %s9196_s15]]   ;;  %s9199_s7 = smov 18  }
  0x11   :  { %12974 = sst [smem:[#allocation8_spill]] %s9276_s19  ;;  %s9200_s15 = smov 19  }
  0x12   :  { %s9306_s27 = sld [smem:[%s12965_s0 + %s9197_s22]]   ;;  %s9201_s22 = smov 20  }
  0x13   :  { %s9311_s4 = sld [smem:[%s12965_s0 + %s9198_s28]]   ;;  %s9202_s28 = smov 21  }
  0x14   :  { %12975 = sst [smem:[#allocation9_spill]] %s9291_s6 }
  0x15   :  { %12976 = sst [smem:[#allocation10_spill]] %s9296_s12 }
  0x16   :  { %12977 = sst [smem:[#allocation11_spill]] %s9301_s20 }
  0x17   :  { %s9316_s12 = sld [smem:[%s12965_s0 + %s9199_s7]]   ;;  %s9203_s7 = smov 22  }
  0x18   :  { %12978 = sst [smem:[#allocation12_spill]] %s9306_s27 }
  0x19   :  { %s9321_s20 = sld [smem:[%s12965_s0 + %s9200_s15]]   ;;  %s9204_s15 = smov 23  }
  0x1a   :  { %s9326_s27 = sld [smem:[%s12965_s0 + %s9201_s22]]   ;;  %s9205_s22 = smov 24  }
  0x1b   :  { %s9331_s6 = sld [smem:[%s12965_s0 + %s9202_s28]]   ;;  %s9206_s28 = smov 25  }
  0x1c   :  { %s9351_s19 = sld [smem:[%s12965_s0 + %s9206_s28]]   ;;  %s9210_s28 = smov 29  }
  0x1d   :  { %12979 = sst [smem:[#allocation13_spill]] %s9316_s12 }
  0x1e   :  { %s9336_s12 = sld [smem:[%s12965_s0 + %s9203_s7]]   ;;  %s9207_s7 = smov 26  }
  0x1f   :  { %12980 = sst [smem:[#allocation14_spill]] %s9321_s20 }
  0x20   :  { %12981 = sst [smem:[#allocation15_spill]] %s9326_s27 }
  0x21   :  { %s9341_s20 = sld [smem:[%s12965_s0 + %s9204_s15]]   ;;  %s9208_s15 = smov 27  }
  0x22   :  { %s9346_s27 = sld [smem:[%s12965_s0 + %s9205_s22]]   ;;  %s9209_s22 = smov 28  }
  0x23   :  { %12985 = sst [smem:[#allocation19_spill]] %s9351_s19 }
  0x24   :  { %12982 = sst [smem:[#allocation16_spill]] %s9336_s12 }
  0x25   :  { %s9356_s12 = sld [smem:[%s12965_s0 + %s9207_s7]]  }
  0x26   :  { %s9371_s19 = sld [smem:[%s12965_s0 + %s9210_s28]]  }
  0x27   :  { %12983 = sst [smem:[#allocation17_spill]] %s9341_s20 }
  0x28   :  { %12984 = sst [smem:[#allocation18_spill]] %s9346_s27 }
  0x29   :  { %s9361_s20 = sld [smem:[%s12965_s0 + %s9208_s15]]  }
  0x2a   :  { %s9366_s27 = sld [smem:[%s12965_s0 + %s9209_s22]]  }
  0x2b   :  { %64 = vsyncpa [#allocation3], 0 }
  0x2c   :  { %65 = vsyncpa [#allocation5], 0  ;;  %s9211_s7 = smov [#allocation2]  }
  0x2d   :  { %s105_s10 = sshll.u32 %s9211_s7, 4  ;;  %s106_s10 = int_to_ptr.vmem [resolvable:$true] %s105_s10 }
  0x2e   :  { %s9146_s11 = scalar_lea.vmem %s106_s10, 12288  ;;  %p9151_p1 = scmp.lt.s32.totalorder %s106_s10, %s106_s10 }
  0x2f   :  { %p9147_p0 = scmp.ne.s32.totalorder %s106_s10, %s9146_s11  ;;  %p9152_p2 = scmp.lt.s32.totalorder %s9146_s11, %s9146_s11 }
  0x31   :  { %p9153_p3 = por %p9152_p2, %p9151_p1 }
  0x33   :  { %p9154_p4 = pnand %p9153_p3, %p9147_p0 }
  0x35   :  { %9157 = shalt.err (!%p9154_p4)
}
  0x36   :  { %s9212_s15 = smov 128   ;;  %s9213_s16 = smov 8  }
  0x37   :  { %111 = dma.hbm_to_vmem [thread:$0]  %s9311_s4, 12288, %s106_s10, [#allocation3], %s9212_s15, %s9212_s15, %s9213_s16  }
  0x38   :  { %s9214_s18 = smov [#allocation4]  }
  0x39   :  { %s123_s22 = sshll.u32 %s9214_s18, 4  ;;  %s124_s22 = int_to_ptr.vmem [resolvable:$true] %s123_s22 }
  0x3a   :  { %s9166_s0 = scalar_lea.vmem %s124_s22, 12288  ;;  %p9171_p6 = scmp.lt.s32.totalorder %s124_s22, %s124_s22 }
  0x3b   :  { %p9167_p5 = scmp.ne.s32.totalorder %s124_s22, %s9166_s0  ;;  %p9172_p7 = scmp.lt.s32.totalorder %s9166_s0, %s9166_s0 }
  0x3d   :  { %p9173_p8 = por %p9172_p7, %p9171_p6 }
  0x3f   :  { %p9174_p9 = pnand %p9173_p8, %p9167_p5 }
  0x41   :  { %9177 = shalt.err (!%p9174_p9)
}
  0x42   :  { %129 = dma.hbm_to_vmem [thread:$0]  %s9331_s6, 12288, %s124_s22, [#allocation5], %s9212_s15, %s9212_s15, %s9213_s16  }
  0x43   :  { %9178 = dma.done.wait [#allocation3], 12288  }
  0x44   :  { %9179 = vsyncadd [#allocation3], 4294955008 }
  0x45   :  { %9180 = dma.done.wait [#allocation5], 12288  }
  0x46   :  { %9181 = vsyncadd [#allocation5], 4294955008  ;;  %v9215_v0 = vmov 0   ;;  %vm312_vm0 = vcmask 1042432   ;;  %vm263_vm1 = vcmask 23552   ;;  %v151_v2 = vld [vmem:[%s9231_s9] sm:$0xff] }
  0x47   :  { %8630 = vset.pattern.permute.xlu0 %v9215_v0  ;;  %8631 = vset.pattern.permute.xlu1 %v9215_v0  ;;  %v150_v1 = vld [vmem:[%s9226_s5] sm:$0x7]  ;;  %v152_v3 = vld [vmem:[%s9231_s9 + $0x8] sm:$0xff]  ;;  %v153_v4 = vld [vmem:[%s9231_s9 + $0x10] sm:$0xff]  ;;  %s12986_s5 = sld [smem:[#allocation8_spill]]  ;;  %vm9217_vm14 = vmmov 0  }
  0x48   :  { %7714 = vmatprep.subr.msk.mxu0 %vm312_vm0, %v150_v1  ;;  %7716 = vmatprep.mubr.msk.f32.mxu0 %vm263_vm1, %v151_v2  ;;  %v154_v5 = vld [vmem:[%s9231_s9 + $0x18] sm:$0xff]  ;;  %v155_v6 = vld [vmem:[%s9231_s9 + $0x20] sm:$0xff]  ;;  %v180_v8 = vld [vmem:[%s9236_s13 + $0x68] sm:$0xff] }
  0x49   :  { %7715 = vmatpush3.msk.msra.mxu0 %vm312_vm0, %v150_v1  ;;  %v182_v7 = vld [vmem:[%s9236_s13 + $0x78] sm:$0xff]  ;;  %250 = vperm.xlu1 %8631, %v180_v8   ;;  %v181_v9 = vld [vmem:[%s9236_s13 + $0x70] sm:$0xff]  ;;  %v156_v10 = vld [vmem:[%s9231_s9 + $0x28] sm:$0xff] }
  0x4a   :  { %7717 = vmatmul.mubr.msk.f32.vlgmr.msra.gmra.mxu0 %vm263_vm1, %v152_v3  ;;  %260 = vperm.xlu0 %8630, %v182_v7   ;;  %v179_v11 = vld [vmem:[%s9236_s13 + $0x60] sm:$0xff]  ;;  %v157_v12 = vld [vmem:[%s9231_s9 + $0x30] sm:$0xff]  ;;  %v178_v13 = vld [vmem:[%s9236_s13 + $0x58] sm:$0xff] }
  0x4b   :  { %7719 = vmatprep.mubr.msk.f32.mxu0 %vm263_vm1, %v153_v4  ;;  %v158_v14 = vld [vmem:[%s9231_s9 + $0x38] sm:$0xff]  ;;  %v177_v15 = vld [vmem:[%s9236_s13 + $0x50] sm:$0xff]  ;;  %v159_v16 = vld [vmem:[%s9231_s9 + $0x40] sm:$0xff] }
  0x4c   :  { %v176_v17 = vld [vmem:[%s9236_s13 + $0x48] sm:$0xff]  ;;  %v175_v19 = vld [vmem:[%s9236_s13 + $0x40] sm:$0xff]  ;;  %v161_v20 = vld [vmem:[%s9231_s9 + $0x50] sm:$0xff] }
  0x4d   :  { %245 = vperm.xlu1 %8631, %v179_v11   ;;  %v160_v18 = vld [vmem:[%s9231_s9 + $0x48] sm:$0xff]  ;;  %v174_v21 = vld [vmem:[%s9236_s13 + $0x38] sm:$0xff]  ;;  %v173_v23 = vld [vmem:[%s9236_s13 + $0x30] sm:$0xff] }
  0x4e   :  { %7720 = vmatmul.mubr.msk.f32.gmra.mxu0 %vm263_vm1, %v154_v5  ;;  %255 = vperm.xlu0 %8630, %v181_v9   ;;  %v162_v22 = vld [vmem:[%s9231_s9 + $0x58] sm:$0xff]  ;;  %v163_v24 = vld [vmem:[%s9231_s9 + $0x60] sm:$0xff]  ;;  %v172_v25 = vld [vmem:[%s9236_s13 + $0x28] sm:$0xff] }
  0x4f   :  { %7722 = vmatprep.mubr.msk.f32.mxu0 %vm263_vm1, %v155_v6  ;;  %v164_v26 = vld [vmem:[%s9231_s9 + $0x68] sm:$0xff]  ;;  %v171_v27 = vld [vmem:[%s9236_s13 + $0x20] sm:$0xff]  ;;  %v165_v28 = vld [vmem:[%s9231_s9 + $0x70] sm:$0xff] }
  0x50   :  { %v170_v29 = vld [vmem:[%s9236_s13 + $0x18] sm:$0xff]  ;;  %v169_v31 = vld [vmem:[%s9236_s13 + $0x10] sm:$0xff]  ;;  %v168_v32 = vld [vmem:[%s9236_s13 + $0x8] sm:$0xff] }
  0x51   :  { %235 = vperm.xlu1 %8631, %v177_v15   ;;  %v166_v30 = vld [vmem:[%s9231_s9 + $0x78] sm:$0xff]  ;;  %v167_v33 = vld [vmem:[%s9236_s13] sm:$0xff]  ;;  %s12987_s9 = sld [smem:[#allocation9_spill]] }
  0x52   :  { %7723 = vmatmul.mubr.msk.f32.gmra.mxu0 %vm263_vm1, %v156_v10  ;;  %240 = vperm.xlu0 %8630, %v178_v13   ;;  %s12988_s13 = sld [smem:[#allocation10_spill]] }
  0x53   :  { %7725 = vmatprep.mubr.msk.f32.mxu0 %vm263_vm1, %v157_v12 }
  0x55   :  { %225 = vperm.xlu1 %8631, %v175_v19  }
  0x56   :  { %7726 = vmatmul.mubr.msk.f32.gmra.mxu0 %vm263_vm1, %v158_v14  ;;  %230 = vperm.xlu0 %8630, %v176_v17  }
  0x57   :  { %7728 = vmatprep.mubr.msk.f32.mxu0 %vm263_vm1, %v159_v16 }
  0x59   :  { %215 = vperm.xlu1 %8631, %v173_v23  }
  0x5a   :  { %7729 = vmatmul.mubr.msk.f32.gmra.mxu0 %vm263_vm1, %v160_v18  ;;  %220 = vperm.xlu0 %8630, %v174_v21  }
  0x5b   :  { %7731 = vmatprep.mubr.msk.f32.mxu0 %vm263_vm1, %v161_v20 }
  0x5d   :  { %205 = vperm.xlu1 %8631, %v171_v27  }
  0x5e   :  { %7732 = vmatmul.mubr.msk.f32.gmra.mxu0 %vm263_vm1, %v162_v22  ;;  %210 = vperm.xlu0 %8630, %v172_v25  }
  0x5f   :  { %7734 = vmatprep.mubr.msk.f32.mxu0 %vm263_vm1, %v163_v24 }
  0x61   :  { %195 = vperm.xlu1 %8631, %v169_v31  }
  0x62   :  { %7735 = vmatmul.mubr.msk.f32.gmra.mxu0 %vm263_vm1, %v164_v26  ;;  %200 = vperm.xlu0 %8630, %v170_v29  }
  0x63   :  { %7737 = vmatprep.mubr.msk.f32.mxu0 %vm263_vm1, %v165_v28 }
  0x65   :  { %185 = vperm.xlu1 %8631, %v167_v33  }
  0x66   :  { %7738 = vmatmul.mubr.msk.f32.gmra.mxu0 %vm263_vm1, %v166_v30  ;;  %190 = vperm.xlu0 %8630, %v168_v32  }
  0xc4   :  { %v251_v43 = vpop.permute.xlu1 %250 }
  0xc5   :  { %v261_v39 = vpop.permute.xlu0 %260 }
  0xc8   :  { %v246_v48 = vpop.permute.xlu1 %245 }
  0xc9   :  { %v256_v44 = vpop.permute.xlu0 %255 }
  0xcc   :  { %v236_v53 = vpop.permute.xlu1 %235 }
  0xcd   :  { %v241_v49 = vpop.permute.xlu0 %240 }
  0xd0   :  { %v226_v60 = vpop.permute.xlu1 %225 }
  0xd1   :  { %v231_v54 = vpop.permute.xlu0 %230 }
  0xd4   :  { %v216_v1 = vpop.permute.xlu1 %215 }
  0xd5   :  { %v221_v61 = vpop.permute.xlu0 %220 }
  0xd8   :  { %v206_v6 = vpop.permute.xlu1 %205 }
  0xd9   :  { %v211_v2 = vpop.permute.xlu0 %210 }
  0xdc   :  { %v196_v11 = vpop.permute.xlu1 %195 }
  0xdd   :  { %v201_v7 = vpop.permute.xlu0 %200 }
  0xe0   :  { %v186_v16 = vpop.permute.xlu1 %185 }
  0xe1   :  { %v191_v12 = vpop.permute.xlu0 %190 }
 0x10a   :  { %v7718_v34 = vpop.f32.mrf.mxu0 }
 0x10b   :  { %v9440_v14 = vadd.f32 %v7718_v34, %v191_v12 }
 0x10c   :  { %v382_v35 = vpop.f32.mrf.mxu0 }
 0x10d   :  { %v9447_v17 = vadd.f32 %v382_v35, %v186_v16 }
 0x10e   :  { %v7721_v36 = vpop.f32.mrf.mxu0 }
 0x10f   :  { %v9434_v10 = vadd.f32 %v7721_v36, %v201_v7 }
 0x110   :  { %v392_v37 = vpop.f32.mrf.mxu0 }
 0x111   :  { %v9444_v15 = vadd.f32 %v392_v37, %v196_v11 }
 0x112   :  { %v7724_v38 = vpop.f32.mrf.mxu0 }
 0x113   :  { %v9428_v8 = vadd.f32 %v7724_v38, %v211_v2 }
 0x114   :  { %v402_v40 = vpop.f32.mrf.mxu0 }
 0x115   :  { %v9438_v13 = vadd.f32 %v402_v40, %v206_v6 }
 0x116   :  { %v7727_v41 = vpop.f32.mrf.mxu0 }
 0x117   :  { %v418_v4 = vadd.f32 %v7727_v41, %v221_v61 }
 0x118   :  { %v412_v42 = vpop.f32.mrf.mxu0 }
 0x119   :  { %v9432_v9 = vadd.f32 %v412_v42, %v216_v1 }
 0x11a   :  { %v7730_v45 = vpop.f32.mrf.mxu0 }
 0x11b   :  { %v428_v0 = vadd.f32 %v7730_v45, %v231_v54 }
 0x11c   :  { %v422_v46 = vpop.f32.mrf.mxu0 }
 0x11d   :  { %v9426_v5 = vadd.f32 %v422_v46, %v226_v60 }
 0x11e   :  { %v7733_v47 = vpop.f32.mrf.mxu0 }
 0x11f   :  { %v438_v62 = vadd.f32 %v7733_v47, %v241_v49 }
 0x120   :  { %v432_v50 = vpop.f32.mrf.mxu0 }
 0x121   :  { %v433_v3 = vadd.f32 %v432_v50, %v236_v53 }
 0x122   :  { %v7736_v51 = vpop.f32.mrf.mxu0 }
 0x123   :  { %v448_v59 = vadd.f32 %v7736_v51, %v251_v43 }
 0x124   :  { %v442_v52 = vpop.f32.mrf.mxu0 }
 0x125   :  { %v443_v63 = vadd.f32 %v442_v52, %v246_v48 }
 0x126   :  { %v7739_v55 = vpop.f32.mrf.mxu0 }
 0x127   :  { %v458_v56 = vadd.f32 %v7739_v55, %v261_v39 }
 0x128   :  { %v452_v57 = vpop.f32.mrf.mxu0 }
 0x129   :  { %493 = vadd.xlane.f32.xlu0 %v458_v56  ;;  %v453_v58 = vadd.f32 %v452_v57, %v256_v44 }
 0x12b   :  { %491 = vadd.xlane.f32.xlu1 %v453_v58 }
 0x12d   :  { %489 = vadd.xlane.f32.xlu0 %v448_v59 }
 0x12f   :  { %485 = vadd.xlane.f32.xlu1 %v438_v62 }
 0x131   :  { %487 = vadd.xlane.f32.xlu0 %v443_v63 }
 0x133   :  { %481 = vadd.xlane.f32.xlu1 %v428_v0 }
 0x135   :  { %483 = vadd.xlane.f32.xlu0 %v433_v3 }
 0x137   :  { %477 = vadd.xlane.f32.xlu1 %v418_v4 }
 0x139   :  { %479 = vadd.xlane.f32.xlu0 %v9426_v5 }
 0x13b   :  { %473 = vadd.xlane.f32.xlu1 %v9428_v8 }
 0x13d   :  { %475 = vadd.xlane.f32.xlu0 %v9432_v9 }
 0x13f   :  { %469 = vadd.xlane.f32.xlu1 %v9434_v10 }
 0x141   :  { %471 = vadd.xlane.f32.xlu0 %v9438_v13 }
 0x143   :  { %465 = vadd.xlane.f32.xlu1 %v9440_v14 }
 0x145   :  { %467 = vadd.xlane.f32.xlu0 %v9444_v15 }
 0x149   :  { %463 = vadd.xlane.f32.xlu0 %v9447_v17 }
 0x1b2   :  { %v494_v18 = vpop.xlane.xlu0 %493 }
 0x1b3   :  { %v511_v19 = vmul.f32 0.0078125, %v494_v18 }
 0x1b4   :  { %v492_v20 = vpop.xlane.xlu1 %491 }
 0x1b5   :  { %v510_v21 = vmul.f32 0.0078125, %v492_v20  ;;  %v9450_v22 = vsub.f32 %v458_v56, %v511_v19 }
 0x1b6   :  { %v490_v23 = vpop.xlane.xlu0 %489 }
 0x1b7   :  { %v509_v24 = vmul.f32 0.0078125, %v490_v23  ;;  %v543_v25 = vmul.f32 %v9450_v22, %v9450_v22  ;;  %v9454_v26 = vsub.f32 %v453_v58, %v510_v21 }
 0x1b8   :  { %v486_v27 = vpop.xlane.xlu1 %485 }
 0x1b9   :  { %v507_v28 = vmul.f32 0.0078125, %v486_v27  ;;  %574 = vadd.xlane.f32.xlu1 %v543_v25  ;;  %v542_v29 = vmul.f32 %v9454_v26, %v9454_v26  ;;  %v9458_v30 = vsub.f32 %v448_v59, %v509_v24 }
 0x1ba   :  { %v488_v31 = vpop.xlane.xlu0 %487 }
 0x1bb   :  { %v508_v32 = vmul.f32 0.0078125, %v488_v31  ;;  %572 = vadd.xlane.f32.xlu0 %v542_v29  ;;  %v541_v33 = vmul.f32 %v9458_v30, %v9458_v30  ;;  %v9462_v34 = vsub.f32 %v438_v62, %v507_v28 }
 0x1bc   :  { %v482_v35 = vpop.xlane.xlu1 %481 }
 0x1bd   :  { %v505_v36 = vmul.f32 0.0078125, %v482_v35  ;;  %570 = vadd.xlane.f32.xlu1 %v541_v33  ;;  %v9464_v37 = vsub.f32 %v443_v63, %v508_v32  ;;  %v539_v40 = vmul.f32 %v9462_v34, %v9462_v34 }
 0x1be   :  { %v484_v38 = vpop.xlane.xlu0 %483 }
 0x1bf   :  { %v506_v39 = vmul.f32 0.0078125, %v484_v38  ;;  %v540_v41 = vmul.f32 %v9464_v37, %v9464_v37  ;;  %v9470_v42 = vsub.f32 %v428_v0, %v505_v36 }
 0x1c0   :  { %v478_v43 = vpop.xlane.xlu1 %477 }
 0x1c1   :  { %v503_v44 = vmul.f32 0.0078125, %v478_v43  ;;  %566 = vadd.xlane.f32.xlu1 %v539_v40  ;;  %568 = vadd.xlane.f32.xlu0 %v540_v41  ;;  %v9472_v45 = vsub.f32 %v433_v3, %v506_v39  ;;  %v537_v48 = vmul.f32 %v9470_v42, %v9470_v42 }
 0x1c2   :  { %v480_v46 = vpop.xlane.xlu0 %479 }
 0x1c3   :  { %v504_v47 = vmul.f32 0.0078125, %v480_v46  ;;  %v538_v49 = vmul.f32 %v9472_v45, %v9472_v45  ;;  %v9478_v50 = vsub.f32 %v418_v4, %v503_v44 }
 0x1c4   :  { %v474_v51 = vpop.xlane.xlu1 %473 }
 0x1c5   :  { %v501_v52 = vmul.f32 0.0078125, %v474_v51  ;;  %562 = vadd.xlane.f32.xlu1 %v537_v48  ;;  %564 = vadd.xlane.f32.xlu0 %v538_v49  ;;  %v9481_v53 = vsub.f32 %v9426_v5, %v504_v47  ;;  %v535_v56 = vmul.f32 %v9478_v50, %v9478_v50 }
 0x1c6   :  { %v476_v54 = vpop.xlane.xlu0 %475 }
 0x1c7   :  { %v502_v55 = vmul.f32 0.0078125, %v476_v54  ;;  %v536_v57 = vmul.f32 %v9481_v53, %v9481_v53  ;;  %v9488_v58 = vsub.f32 %v9428_v8, %v501_v52  ;;  %v9523_v52 = vld [vmem:[%s9241_s17] ss:$0 sm:$0xff]  ;;  %s12989_s17 = sld [smem:[#allocation11_spill]] }
 0x1c8   :  { %v470_v59 = vpop.xlane.xlu1 %469 }
 0x1c9   :  { %v499_v60 = vmul.f32 0.0078125, %v470_v59  ;;  %558 = vadd.xlane.f32.xlu1 %v535_v56  ;;  %560 = vadd.xlane.f32.xlu0 %v536_v57  ;;  %v9491_v61 = vsub.f32 %v9432_v9, %v502_v55  ;;  %v533_v0 = vmul.f32 %v9488_v58, %v9488_v58 }
 0x1ca   :  { %v472_v62 = vpop.xlane.xlu0 %471 }
 0x1cb   :  { %v500_v63 = vmul.f32 0.0078125, %v472_v62  ;;  %v534_v1 = vmul.f32 %v9491_v61, %v9491_v61  ;;  %v9498_v2 = vsub.f32 %v9434_v10, %v499_v60  ;;  %v9527_v62 = vld [vmem:[%s9246_s21] ss:$0 sm:$0xff]  ;;  %s12990_s21 = sld [smem:[#allocation12_spill]] }
 0x1cc   :  { %v466_v3 = vpop.xlane.xlu1 %465 }
 0x1cd   :  { %v497_v4 = vmul.f32 0.0078125, %v466_v3  ;;  %554 = vadd.xlane.f32.xlu1 %v533_v0  ;;  %556 = vadd.xlane.f32.xlu0 %v534_v1  ;;  %v9501_v5 = vsub.f32 %v9438_v13, %v500_v63  ;;  %v531_v8 = vmul.f32 %v9498_v2, %v9498_v2 }
 0x1ce   :  { %v468_v6 = vpop.xlane.xlu0 %467 }
 0x1cf   :  { %v498_v7 = vmul.f32 0.0078125, %v468_v6  ;;  %v532_v9 = vmul.f32 %v9501_v5, %v9501_v5  ;;  %v9508_v11 = vsub.f32 %v9440_v14, %v497_v4 }
 0x1d1   :  { %550 = vadd.xlane.f32.xlu1 %v531_v8  ;;  %552 = vadd.xlane.f32.xlu0 %v532_v9  ;;  %v9511_v10 = vsub.f32 %v9444_v15, %v498_v7  ;;  %v529_v13 = vmul.f32 %v9508_v11, %v9508_v11 }
 0x1d2   :  { %v464_v12 = vpop.xlane.xlu0 %463 }
 0x1d3   :  { %v496_v16 = vmul.f32 0.0078125, %v464_v12  ;;  %v530_v18 = vmul.f32 %v9511_v10, %v9511_v10 }
 0x1d5   :  { %546 = vadd.xlane.f32.xlu1 %v529_v13  ;;  %548 = vadd.xlane.f32.xlu0 %v530_v18  ;;  %v9518_v19 = vsub.f32 %v9447_v17, %v496_v16 }
 0x1d7   :  { %v528_v14 = vmul.f32 %v9518_v19, %v9518_v19 }
 0x1d9   :  { %544 = vadd.xlane.f32.xlu0 %v528_v14 }
 0x242   :  { %v575_v20 = vpop.xlane.xlu1 %574 }
 0x243   :  { %v591_v15 = vmul.f32 0.0078125, %v575_v20 }
 0x244   :  { %v573_v21 = vpop.xlane.xlu0 %572 }
 0x245   :  { %v607_v23 = vadd.f32 1e-05, %v591_v15  ;;  %v590_v24 = vmul.f32 0.0078125, %v573_v21 }
 0x246   :  { %v571_v25 = vpop.xlane.xlu1 %570 }
 0x247   :  { %8632 = vrsqrt.f32 %v607_v23  ;;  %v606_v27 = vadd.f32 1e-05, %v590_v24  ;;  %v589_v28 = vmul.f32 0.0078125, %v571_v25 }
 0x249   :  { %8634 = vrsqrt.f32 %v606_v27  ;;  %v605_v29 = vadd.f32 1e-05, %v589_v28 }
 0x24a   :  { %v567_v31 = vpop.xlane.xlu1 %566  ;;  %v569_v32 = vpop.xlane.xlu0 %568 }
 0x24b   :  { %8636 = vrsqrt.f32 %v605_v29  ;;  %v587_v17 = vmul.f32 0.0078125, %v567_v31  ;;  %v588_v33 = vmul.f32 0.0078125, %v569_v32 }
 0x24d   :  { %v603_v35 = vadd.f32 1e-05, %v587_v17  ;;  %v604_v36 = vadd.f32 1e-05, %v588_v33 }
 0x24e   :  { %v563_v38 = vpop.xlane.xlu1 %562  ;;  %v565_v39 = vpop.xlane.xlu0 %564 }
 0x24f   :  { %8638 = vrsqrt.f32 %v603_v35  ;;  %v585_v40 = vmul.f32 0.0078125, %v563_v38  ;;  %v586_v41 = vmul.f32 0.0078125, %v565_v39 }
 0x250   :  { %8640 = vrsqrt.f32 %v604_v36 }
 0x251   :  { %v601_v43 = vadd.f32 1e-05, %v585_v40  ;;  %v602_v44 = vadd.f32 1e-05, %v586_v41 }
 0x252   :  { %v559_v46 = vpop.xlane.xlu1 %558  ;;  %v561_v47 = vpop.xlane.xlu0 %560 }
 0x253   :  { %8642 = vrsqrt.f32 %v601_v43  ;;  %v583_v48 = vmul.f32 0.0078125, %v559_v46  ;;  %v584_v49 = vmul.f32 0.0078125, %v561_v47 }
 0x254   :  { %v8633_v51 = vpop.eup %8632  ;;  %8644 = vrsqrt.f32 %v602_v44 }
 0x255   :  { %v599_v54 = vadd.f32 1e-05, %v583_v48  ;;  %v600_v55 = vadd.f32 1e-05, %v584_v49  ;;  %v639_v56 = vmul.f32 %v8633_v51, %v9450_v22 }
 0x256   :  { %v8635_v57 = vpop.eup %8634  ;;  %v555_v59 = vpop.xlane.xlu1 %554 }
 0x257   :  { %v557_v60 = vpop.xlane.xlu0 %556  ;;  %8646 = vrsqrt.f32 %v599_v54  ;;  %v581_v63 = vmul.f32 0.0078125, %v555_v59  ;;  %v661_v1 = vmul.f32 %v9523_v52, %v639_v56  ;;  %v638_v4 = vmul.f32 %v8635_v57, %v9454_v26 }
 0x258   :  { %v582_v0 = vmul.f32 0.0078125, %v557_v60  ;;  %v8637_v3 = vpop.eup %8636  ;;  %8648 = vrsqrt.f32 %v600_v55 }
 0x259   :  { %v597_v6 = vadd.f32 1e-05, %v581_v63  ;;  %v9532_v8 = vadd.f32 %v9527_v62, %v661_v1  ;;  %v637_v22 = vmul.f32 %v8637_v3, %v9458_v30  ;;  %v660_v16 = vmul.f32 %v9523_v52, %v638_v4 }
 0x25a   :  { %v598_v7 = vadd.f32 1e-05, %v582_v0  ;;  %v551_v9 = vpop.xlane.xlu1 %550 }
 0x25b   :  { %v553_v12 = vpop.xlane.xlu0 %552  ;;  %8650 = vrsqrt.f32 %v597_v6  ;;  %v579_v13 = vmul.f32 0.0078125, %v551_v9  ;;  %716 = vadd.xlane.f32.xlu1 %v9532_v8  ;;  %v659_v14 = vmul.f32 %v9523_v52, %v637_v22  ;;  %v9539_v26 = vadd.f32 %v9527_v62, %v660_v16 }
 0x25c   :  { %v580_v18 = vmul.f32 0.0078125, %v553_v12  ;;  %v8639_v20 = vpop.eup %8638  ;;  %8652 = vrsqrt.f32 %v598_v7 }
 0x25d   :  { %v8641_v15 = vpop.eup %8640  ;;  %v595_v21 = vadd.f32 1e-05, %v579_v13  ;;  %v9542_v30 = vadd.f32 %v9527_v62, %v659_v14  ;;  %v635_v24 = vmul.f32 %v8639_v20, %v9462_v34  ;;  %714 = vadd.xlane.f32.xlu0 %v9539_v26 }
 0x25e   :  { %v596_v23 = vadd.f32 1e-05, %v580_v18  ;;  %v547_v25 = vpop.xlane.xlu1 %546  ;;  %v636_v28 = vmul.f32 %v8641_v15, %v9464_v37 }
 0x25f   :  { %v549_v27 = vpop.xlane.xlu0 %548  ;;  %8654 = vrsqrt.f32 %v595_v21  ;;  %v577_v29 = vmul.f32 0.0078125, %v547_v25  ;;  %712 = vadd.xlane.f32.xlu1 %v9542_v30  ;;  %v657_v32 = vmul.f32 %v9523_v52, %v635_v24 }
 0x260   :  { %v578_v31 = vmul.f32 0.0078125, %v549_v27  ;;  %v8643_v17 = vpop.eup %8642  ;;  %8656 = vrsqrt.f32 %v596_v23  ;;  %v658_v33 = vmul.f32 %v9523_v52, %v636_v28 }
 0x261   :  { %v8645_v35 = vpop.eup %8644  ;;  %v593_v36 = vadd.f32 1e-05, %v577_v29  ;;  %v9551_v38 = vadd.f32 %v9527_v62, %v657_v32  ;;  %v633_v39 = vmul.f32 %v8643_v17, %v9470_v42 }
 0x262   :  { %v594_v34 = vadd.f32 1e-05, %v578_v31  ;;  %v9555_v40 = vadd.f32 %v9527_v62, %v658_v33  ;;  %v634_v41 = vmul.f32 %v8645_v35, %v9472_v45 }
 0x263   :  { %v545_v37 = vpop.xlane.xlu0 %544  ;;  %8658 = vrsqrt.f32 %v593_v36  ;;  %708 = vadd.xlane.f32.xlu1 %v9551_v38  ;;  %v655_v44 = vmul.f32 %v9523_v52, %v633_v39 }
 0x264   :  { %v576_v43 = vmul.f32 0.0078125, %v545_v37  ;;  %v8647_v46 = vpop.eup %8646  ;;  %8660 = vrsqrt.f32 %v594_v34  ;;  %710 = vadd.xlane.f32.xlu0 %v9555_v40  ;;  %v656_v47 = vmul.f32 %v9523_v52, %v634_v41 }
 0x265   :  { %v8649_v48 = vpop.eup %8648  ;;  %v9563_v49 = vadd.f32 %v9527_v62, %v655_v44  ;;  %v631_v51 = vmul.f32 %v8647_v46, %v9478_v50 }
 0x266   :  { %v592_v42 = vadd.f32 1e-05, %v576_v43  ;;  %v9567_v45 = vadd.f32 %v9527_v62, %v656_v47  ;;  %v632_v54 = vmul.f32 %v8649_v48, %v9481_v53 }
 0x267   :  { %704 = vadd.xlane.f32.xlu1 %v9563_v49  ;;  %v653_v55 = vmul.f32 %v9523_v52, %v631_v51 }
 0x268   :  { %8662 = vrsqrt.f32 %v592_v42  ;;  %v8651_v56 = vpop.eup %8650  ;;  %706 = vadd.xlane.f32.xlu0 %v9567_v45  ;;  %v654_v57 = vmul.f32 %v9523_v52, %v632_v54 }
 0x269   :  { %v8653_v59 = vpop.eup %8652  ;;  %v9575_v60 = vadd.f32 %v9527_v62, %v653_v55  ;;  %v629_v50 = vmul.f32 %v8651_v56, %v9488_v58 }
 0x26a   :  { %v9579_v63 = vadd.f32 %v9527_v62, %v654_v57  ;;  %v630_v53 = vmul.f32 %v8653_v59, %v9491_v61 }
 0x26b   :  { %700 = vadd.xlane.f32.xlu1 %v9575_v60  ;;  %v651_v0 = vmul.f32 %v9523_v52, %v629_v50 }
 0x26c   :  { %v8655_v1 = vpop.eup %8654  ;;  %702 = vadd.xlane.f32.xlu0 %v9579_v63  ;;  %v652_v3 = vmul.f32 %v9523_v52, %v630_v53 }
 0x26d   :  { %v8657_v4 = vpop.eup %8656  ;;  %v9587_v6 = vadd.f32 %v9527_v62, %v651_v0  ;;  %v627_v58 = vmul.f32 %v8655_v1, %v9498_v2 }
 0x26e   :  { %v9591_v7 = vadd.f32 %v9527_v62, %v652_v3  ;;  %v628_v61 = vmul.f32 %v8657_v4, %v9501_v5 }
 0x26f   :  { %696 = vadd.xlane.f32.xlu1 %v9587_v6  ;;  %v649_v22 = vmul.f32 %v9523_v52, %v627_v58 }
 0x270   :  { %v8659_v9 = vpop.eup %8658  ;;  %698 = vadd.xlane.f32.xlu0 %v9591_v7  ;;  %v650_v12 = vmul.f32 %v9523_v52, %v628_v61 }
 0x271   :  { %v8661_v16 = vpop.eup %8660  ;;  %v9599_v13 = vadd.f32 %v9527_v62, %v649_v22  ;;  %v625_v2 = vmul.f32 %v8659_v9, %v9508_v11 }
 0x272   :  { %v9603_v18 = vadd.f32 %v9527_v62, %v650_v12  ;;  %v626_v5 = vmul.f32 %v8661_v16, %v9511_v10 }
 0x273   :  { %692 = vadd.xlane.f32.xlu1 %v9599_v13  ;;  %v647_v14 = vmul.f32 %v9523_v52, %v625_v2 }
 0x274   :  { %694 = vadd.xlane.f32.xlu0 %v9603_v18  ;;  %v648_v15 = vmul.f32 %v9523_v52, %v626_v5 }
 0x275   :  { %v8663_v20 = vpop.eup %8662  ;;  %v9611_v21 = vadd.f32 %v9527_v62, %v647_v14 }
 0x276   :  { %v624_v23 = vmul.f32 %v8663_v20, %v9518_v19  ;;  %v9615_v11 = vadd.f32 %v9527_v62, %v648_v15 }
 0x277   :  { %688 = vadd.xlane.f32.xlu1 %v9611_v21 }
 0x278   :  { %v646_v10 = vmul.f32 %v9523_v52, %v624_v23  ;;  %690 = vadd.xlane.f32.xlu0 %v9615_v11 }
 0x27a   :  { %v9621_v24 = vadd.f32 %v9527_v62, %v646_v10 }
 0x27c   :  { %686 = vadd.xlane.f32.xlu0 %v9621_v24 }
 0x2e4   :  { %v717_v25 = vpop.xlane.xlu1 %716 }
 0x2e5   :  { %v733_v27 = vmul.f32 0.0078125, %v717_v25 }
 0x2e6   :  { %v715_v28 = vpop.xlane.xlu0 %714 }
 0x2e7   :  { %v9625_v29 = vsub.f32 %v9532_v8, %v733_v27  ;;  %v732_v19 = vmul.f32 0.0078125, %v715_v28  ;;  %v937_v27 = vld [vmem:[%s9266_s8 + $0x78] sm:$0xff]  ;;  %v935_v28 = vld [vmem:[%s9266_s8 + $0x68] sm:$0xff] }
 0x2e8   :  { %v713_v31 = vpop.xlane.xlu1 %712 }
 0x2e9   :  { %v731_v32 = vmul.f32 0.0078125, %v713_v31  ;;  %v765_v17 = vmul.f32 %v9625_v29, %v9625_v29  ;;  %v9630_v52 = vsub.f32 %v9539_v26, %v732_v19  ;;  %v934_v19 = vld [vmem:[%s9266_s8 + $0x60] sm:$0xff]  ;;  %v936_v31 = vld [vmem:[%s9266_s8 + $0x70] sm:$0xff] }
 0x2eb   :  { %796 = vadd.xlane.f32.xlu1 %v765_v17  ;;  %v9633_v62 = vsub.f32 %v9542_v30, %v731_v32  ;;  %v764_v35 = vmul.f32 %v9630_v52, %v9630_v52  ;;  %v933_v32 = vld [vmem:[%s9266_s8 + $0x58] sm:$0xff]  ;;  %v930_v17 = vld [vmem:[%s9266_s8 + $0x40] sm:$0xff] }
 0x2ec   :  { %v709_v33 = vpop.xlane.xlu1 %708 }
 0x2ed   :  { %v729_v36 = vmul.f32 0.0078125, %v709_v33  ;;  %v711_v8 = vpop.xlane.xlu0 %710  ;;  %v763_v34 = vmul.f32 %v9633_v62, %v9633_v62  ;;  %794 = vadd.xlane.f32.xlu0 %v764_v35  ;;  %v931_v33 = vld [vmem:[%s9266_s8 + $0x48] sm:$0xff]  ;;  %v928_v35 = vld [vmem:[%s9266_s8 + $0x30] sm:$0xff] }
 0x2ee   :  { %v730_v39 = vmul.f32 0.0078125, %v711_v8  ;;  %v926_v8 = vld [vmem:[%s9266_s8 + $0x20] sm:$0xff] }
 0x2ef   :  { %792 = vadd.xlane.f32.xlu1 %v763_v34  ;;  %v9640_v37 = vsub.f32 %v9551_v38, %v729_v36  ;;  %v929_v36 = vld [vmem:[%s9266_s8 + $0x38] sm:$0xff]  ;;  %v906_v34 = vld [vmem:[%s9261_s3] sm:$0xff] }
 0x2f0   :  { %v9643_v26 = vsub.f32 %v9555_v40, %v730_v39  ;;  %v705_v30 = vpop.xlane.xlu1 %704  ;;  %v927_v39 = vld [vmem:[%s9266_s8 + $0x28] sm:$0xff]  ;;  %7772 = vmatprep.mubr.f32.mxu1 %v906_v34 }
 0x2f1   :  { %v727_v41 = vmul.f32 0.0078125, %v705_v30  ;;  %v707_v43 = vpop.xlane.xlu0 %706  ;;  %v761_v44 = vmul.f32 %v9640_v37, %v9640_v37  ;;  %v924_v30 = vld [vmem:[%s9266_s8 + $0x10] sm:$0xff] }
 0x2f2   :  { %v728_v46 = vmul.f32 0.0078125, %v707_v43  ;;  %v762_v47 = vmul.f32 %v9643_v26, %v9643_v26  ;;  %v922_v43 = vld [vmem:[%s9266_s8] sm:$0xff] }
 0x2f3   :  { %788 = vadd.xlane.f32.xlu1 %v761_v44  ;;  %v9650_v48 = vsub.f32 %v9563_v49, %v727_v41  ;;  %v925_v41 = vld [vmem:[%s9266_s8 + $0x18] sm:$0xff]  ;;  %v923_v44 = vld [vmem:[%s9266_s8 + $0x8] sm:$0xff] }
 0x2f4   :  { %v9653_v38 = vsub.f32 %v9567_v45, %v728_v46  ;;  %790 = vadd.xlane.f32.xlu0 %v762_v47  ;;  %v701_v40 = vpop.xlane.xlu1 %700 }
 0x2f5   :  { %v725_v42 = vmul.f32 0.0078125, %v701_v40  ;;  %v703_v51 = vpop.xlane.xlu0 %702  ;;  %v759_v54 = vmul.f32 %v9650_v48, %v9650_v48 }
 0x2f6   :  { %v726_v55 = vmul.f32 0.0078125, %v703_v51  ;;  %v760_v56 = vmul.f32 %v9653_v38, %v9653_v38 }
 0x2f7   :  { %784 = vadd.xlane.f32.xlu1 %v759_v54  ;;  %v9660_v57 = vsub.f32 %v9575_v60, %v725_v42 }
 0x2f8   :  { %v9663_v49 = vsub.f32 %v9579_v63, %v726_v55  ;;  %786 = vadd.xlane.f32.xlu0 %v760_v56  ;;  %v697_v45 = vpop.xlane.xlu1 %696 }
 0x2f9   :  { %v723_v59 = vmul.f32 0.0078125, %v697_v45  ;;  %v699_v50 = vpop.xlane.xlu0 %698  ;;  %v757_v53 = vmul.f32 %v9660_v57, %v9660_v57 }
 0x2fa   :  { %v724_v0 = vmul.f32 0.0078125, %v699_v50  ;;  %v758_v1 = vmul.f32 %v9663_v49, %v9663_v49 }
 0x2fb   :  { %780 = vadd.xlane.f32.xlu1 %v757_v53  ;;  %v9670_v3 = vsub.f32 %v9587_v6, %v723_v59 }
 0x2fc   :  { %v9673_v60 = vsub.f32 %v9591_v7, %v724_v0  ;;  %782 = vadd.xlane.f32.xlu0 %v758_v1  ;;  %v693_v63 = vpop.xlane.xlu1 %692 }
 0x2fd   :  { %v721_v4 = vmul.f32 0.0078125, %v693_v63  ;;  %v695_v58 = vpop.xlane.xlu0 %694  ;;  %v755_v61 = vmul.f32 %v9670_v3, %v9670_v3 }
 0x2fe   :  { %v722_v22 = vmul.f32 0.0078125, %v695_v58  ;;  %v756_v9 = vmul.f32 %v9673_v60, %v9673_v60 }
 0x2ff   :  { %776 = vadd.xlane.f32.xlu1 %v755_v61  ;;  %v9680_v12 = vsub.f32 %v9599_v13, %v721_v4 }
 0x300   :  { %v9683_v6 = vsub.f32 %v9603_v18, %v722_v22  ;;  %778 = vadd.xlane.f32.xlu0 %v756_v9  ;;  %v689_v7 = vpop.xlane.xlu1 %688 }
 0x301   :  { %v719_v16 = vmul.f32 0.0078125, %v689_v7  ;;  %v691_v2 = vpop.xlane.xlu0 %690  ;;  %v753_v5 = vmul.f32 %v9680_v12, %v9680_v12 }
 0x302   :  { %v720_v14 = vmul.f32 0.0078125, %v691_v2  ;;  %v754_v20 = vmul.f32 %v9683_v6, %v9683_v6 }
 0x303   :  { %772 = vadd.xlane.f32.xlu1 %v753_v5  ;;  %v9690_v13 = vsub.f32 %v9611_v21, %v719_v16 }
 0x304   :  { %v9693_v18 = vsub.f32 %v9615_v11, %v720_v14  ;;  %774 = vadd.xlane.f32.xlu0 %v754_v20 }
 0x305   :  { %v687_v15 = vpop.xlane.xlu0 %686  ;;  %v751_v23 = vmul.f32 %v9690_v13, %v9690_v13 }
 0x306   :  { %v718_v10 = vmul.f32 0.0078125, %v687_v15  ;;  %v752_v25 = vmul.f32 %v9693_v18, %v9693_v18  ;;  %v9722_v15 = vld [vmem:[%s9251_s25] ss:$0 sm:$0xff]  ;;  %s12991_s25 = sld [smem:[#allocation13_spill]] }
 0x307   :  { %768 = vadd.xlane.f32.xlu1 %v751_v23 }
 0x308   :  { %v9700_v21 = vsub.f32 %v9621_v24, %v718_v10  ;;  %770 = vadd.xlane.f32.xlu0 %v752_v25  ;;  %v932_v24 = vld [vmem:[%s9266_s8 + $0x50] sm:$0xff]  ;;  %s12994_s8 = sld [smem:[#allocation16_spill]] }
 0x30a   :  { %v750_v11 = vmul.f32 %v9700_v21, %v9700_v21 }
 0x30c   :  { %766 = vadd.xlane.f32.xlu0 %v750_v11 }
 0x318   :  { %1015 = vperm.xlu1 %8631, %v937_v27   ;;  %v9726_v27 = vld [vmem:[%s9256_s29] ss:$0 sm:$0xff]  ;;  %s12992_s29 = sld [smem:[#allocation14_spill]] }
 0x31c   :  { %1005 = vperm.xlu1 %8631, %v935_v28  }
 0x320   :  { %1000 = vperm.xlu1 %8631, %v934_v19  }
 0x322   :  { %1010 = vperm.xlu0 %8630, %v936_v31  }
 0x324   :  { %990 = vperm.xlu1 %8631, %v932_v24  }
 0x326   :  { %995 = vperm.xlu0 %8630, %v933_v32  }
 0x328   :  { %980 = vperm.xlu1 %8631, %v930_v17  }
 0x32a   :  { %985 = vperm.xlu0 %8630, %v931_v33  }
 0x32c   :  { %970 = vperm.xlu1 %8631, %v928_v35  }
 0x32e   :  { %975 = vperm.xlu0 %8630, %v929_v36  }
 0x330   :  { %960 = vperm.xlu1 %8631, %v926_v8  }
 0x332   :  { %965 = vperm.xlu0 %8630, %v927_v39  }
 0x334   :  { %950 = vperm.xlu1 %8631, %v924_v30  }
 0x336   :  { %955 = vperm.xlu0 %8630, %v925_v41  }
 0x338   :  { %940 = vperm.xlu1 %8631, %v922_v43  }
 0x33a   :  { %945 = vperm.xlu0 %8630, %v923_v44  }
 0x374   :  { %v797_v46 = vpop.xlane.xlu1 %796 }
 0x375   :  { %v813_v47 = vmul.f32 0.0078125, %v797_v46 }
 0x376   :  { %v795_v42 = vpop.xlane.xlu0 %794 }
 0x377   :  { %v829_v40 = vadd.f32 1e-05, %v813_v47  ;;  %v812_v51 = vmul.f32 0.0078125, %v795_v42 }
 0x378   :  { %v793_v54 = vpop.xlane.xlu1 %792 }
 0x379   :  { %8664 = vrsqrt.f32 %v829_v40  ;;  %v811_v55 = vmul.f32 0.0078125, %v793_v54  ;;  %v828_v56 = vadd.f32 1e-05, %v812_v51 }
 0x37b   :  { %v827_v45 = vadd.f32 1e-05, %v811_v55  ;;  %8666 = vrsqrt.f32 %v828_v56 }
 0x37c   :  { %v789_v59 = vpop.xlane.xlu1 %788 }
 0x37d   :  { %8668 = vrsqrt.f32 %v827_v45  ;;  %v809_v50 = vmul.f32 0.0078125, %v789_v59  ;;  %v791_v53 = vpop.xlane.xlu0 %790 }
 0x37e   :  { %v810_v0 = vmul.f32 0.0078125, %v791_v53 }
 0x37f   :  { %v825_v1 = vadd.f32 1e-05, %v809_v50 }
 0x380   :  { %v826_v63 = vadd.f32 1e-05, %v810_v0  ;;  %v785_v4 = vpop.xlane.xlu1 %784 }
 0x381   :  { %8670 = vrsqrt.f32 %v825_v1  ;;  %v807_v58 = vmul.f32 0.0078125, %v785_v4  ;;  %v787_v61 = vpop.xlane.xlu0 %786 }
 0x382   :  { %8672 = vrsqrt.f32 %v826_v63  ;;  %v808_v22 = vmul.f32 0.0078125, %v787_v61 }
 0x383   :  { %v823_v9 = vadd.f32 1e-05, %v807_v58 }
 0x384   :  { %v824_v7 = vadd.f32 1e-05, %v808_v22  ;;  %v781_v16 = vpop.xlane.xlu1 %780 }
 0x385   :  { %8674 = vrsqrt.f32 %v823_v9  ;;  %v805_v2 = vmul.f32 0.0078125, %v781_v16  ;;  %v783_v5 = vpop.xlane.xlu0 %782 }
 0x386   :  { %v8665_v14 = vpop.eup %8664  ;;  %8676 = vrsqrt.f32 %v824_v7  ;;  %v806_v20 = vmul.f32 0.0078125, %v783_v5 }
 0x387   :  { %v821_v23 = vadd.f32 1e-05, %v805_v2  ;;  %v861_v10 = vmul.f32 %v8665_v14, %v9625_v29 }
 0x388   :  { %v822_v25 = vadd.f32 1e-05, %v806_v20  ;;  %v777_v11 = vpop.xlane.xlu1 %776  ;;  %v8667_v28 = vpop.eup %8666 }
 0x389   :  { %8678 = vrsqrt.f32 %v821_v23  ;;  %v803_v19 = vmul.f32 0.0078125, %v777_v11  ;;  %v779_v31 = vpop.xlane.xlu0 %778  ;;  %v883_v24 = vmul.f32 %v9722_v15, %v861_v10  ;;  %v860_v33 = vmul.f32 %v8667_v28, %v9630_v52 }
 0x38a   :  { %v8669_v32 = vpop.eup %8668  ;;  %8680 = vrsqrt.f32 %v822_v25  ;;  %v804_v17 = vmul.f32 0.0078125, %v779_v31 }
 0x38b   :  { %v819_v35 = vadd.f32 1e-05, %v803_v19  ;;  %v905_v36 = vadd.f32 %v9726_v27, %v883_v24  ;;  %v859_v29 = vmul.f32 %v8669_v32, %v9633_v62  ;;  %v882_v39 = vmul.f32 %v9722_v15, %v860_v33 }
 0x38c   :  { %v820_v8 = vadd.f32 1e-05, %v804_v17  ;;  %v773_v34 = vpop.xlane.xlu1 %772 }
 0x38d   :  { %8682 = vrsqrt.f32 %v819_v35  ;;  %v801_v30 = vmul.f32 0.0078125, %v773_v34  ;;  %v775_v41 = vpop.xlane.xlu0 %774  ;;  %7740 = vmatprep.subr.mxu1 %v905_v36  ;;  %v881_v43 = vmul.f32 %v9722_v15, %v859_v29  ;;  %v904_v52 = vadd.f32 %v9726_v27, %v882_v39 }
 0x38e   :  { %v8671_v44 = vpop.eup %8670  ;;  %8684 = vrsqrt.f32 %v820_v8  ;;  %v802_v46 = vmul.f32 0.0078125, %v775_v41  ;;  %7741 = vmatpush3.msra.mxu1 %v905_v36 }
 0x38f   :  { %v8673_v47 = vpop.eup %8672  ;;  %v817_v40 = vadd.f32 1e-05, %v801_v30  ;;  %v903_v62 = vadd.f32 %v9726_v27, %v881_v43  ;;  %v857_v42 = vmul.f32 %v8671_v44, %v9640_v37  ;;  %7742 = vmatprep.subr.mxu1 %v904_v52 }
 0x390   :  { %v818_v51 = vadd.f32 1e-05, %v802_v46  ;;  %v769_v54 = vpop.xlane.xlu1 %768  ;;  %v858_v55 = vmul.f32 %v8673_v47, %v9643_v26  ;;  %7743 = vmatpush3.msra.mxu1 %v904_v52 }
 0x391   :  { %8686 = vrsqrt.f32 %v817_v40  ;;  %v799_v56 = vmul.f32 0.0078125, %v769_v54  ;;  %v771_v45 = vpop.xlane.xlu0 %770  ;;  %v879_v59 = vmul.f32 %v9722_v15, %v857_v42  ;;  %7744 = vmatprep.subr.mxu1 %v903_v62  ;;  %v908_v42 = vld [vmem:[%s9261_s3 + $0x10] sm:$0xff]  ;;  %v913_v54 = vld [vmem:[%s9261_s3 + $0x38] sm:$0xff] }
 0x392   :  { %v8675_v50 = vpop.eup %8674  ;;  %8688 = vrsqrt.f32 %v818_v51  ;;  %v800_v53 = vmul.f32 0.0078125, %v771_v45  ;;  %v880_v0 = vmul.f32 %v9722_v15, %v858_v55  ;;  %7745 = vmatpush3.msra.mxu1 %v903_v62  ;;  %v907_v62 = vld [vmem:[%s9261_s3 + $0x8] sm:$0xff]  ;;  %v910_v51 = vld [vmem:[%s9261_s3 + $0x20] sm:$0xff]  ;;  %v916_v45 = vld [vmem:[%s9261_s3 + $0x50] sm:$0xff] }
 0x393   :  { %v8677_v1 = vpop.eup %8676  ;;  %v815_v63 = vadd.f32 1e-05, %v799_v56  ;;  %v855_v37 = vmul.f32 %v8675_v50, %v9650_v48  ;;  %v901_v22 = vadd.f32 %v9726_v27, %v879_v59  ;;  %v914_v55 = vld [vmem:[%s9261_s3 + $0x40] sm:$0xff]  ;;  %v915_v56 = vld [vmem:[%s9261_s3 + $0x48] sm:$0xff]  ;;  %v917_v59 = vld [vmem:[%s9261_s3 + $0x58] sm:$0xff] }
 0x394   :  { %v816_v4 = vadd.f32 1e-05, %v800_v53  ;;  %v902_v26 = vadd.f32 %v9726_v27, %v880_v0  ;;  %v856_v58 = vmul.f32 %v8677_v1, %v9653_v38  ;;  %v918_v50 = vld [vmem:[%s9261_s3 + $0x60] sm:$0xff]  ;;  %v919_v53 = vld [vmem:[%s9261_s3 + $0x68] sm:$0xff]  ;;  %v920_v0 = vld [vmem:[%s9261_s3 + $0x70] sm:$0xff] }
 0x395   :  { %8690 = vrsqrt.f32 %v815_v63  ;;  %v767_v61 = vpop.xlane.xlu0 %766  ;;  %v877_v2 = vmul.f32 %v9722_v15, %v855_v37  ;;  %v921_v1 = vld [vmem:[%s9261_s3 + $0x78] sm:$0xff] }
 0x396   :  { %v8679_v9 = vpop.eup %8678  ;;  %8692 = vrsqrt.f32 %v816_v4  ;;  %v798_v7 = vmul.f32 0.0078125, %v767_v61  ;;  %7746 = vmatprep.subr.mxu1 %v902_v26  ;;  %v878_v16 = vmul.f32 %v9722_v15, %v856_v58 }
 0x397   :  { %v8681_v5 = vpop.eup %8680  ;;  %7747 = vmatpush3.msra.mxu1 %v902_v26  ;;  %v853_v48 = vmul.f32 %v8679_v9, %v9660_v57  ;;  %v899_v10 = vadd.f32 %v9726_v27, %v877_v2 }
 0x398   :  { %v814_v14 = vadd.f32 1e-05, %v798_v7  ;;  %7748 = vmatprep.subr.mxu1 %v901_v22  ;;  %v900_v38 = vadd.f32 %v9726_v27, %v878_v16  ;;  %v854_v20 = vmul.f32 %v8681_v5, %v9663_v49 }
 0x399   :  { %7749 = vmatpush3.msra.mxu1 %v901_v22  ;;  %v875_v11 = vmul.f32 %v9722_v15, %v853_v48  ;;  %v1016_v22 = vpop.permute.xlu1 %1015 }
 0x39a   :  { %v8683_v23 = vpop.eup %8682  ;;  %8694 = vrsqrt.f32 %v814_v14  ;;  %7750 = vmatprep.subr.mxu1 %v900_v38  ;;  %v876_v25 = vmul.f32 %v9722_v15, %v854_v20 }
 0x39b   :  { %v8685_v28 = vpop.eup %8684  ;;  %7751 = vmatpush3.msra.mxu1 %v900_v38  ;;  %v851_v57 = vmul.f32 %v8683_v23, %v9670_v3  ;;  %v897_v24 = vadd.f32 %v9726_v27, %v875_v11 }
 0x39c   :  { %7752 = vmatprep.subr.mxu1 %v899_v10  ;;  %v898_v19 = vadd.f32 %v9726_v27, %v876_v25  ;;  %v852_v31 = vmul.f32 %v8685_v28, %v9673_v60 }
 0x39d   :  { %7753 = vmatpush3.msra.mxu1 %v899_v10  ;;  %v873_v17 = vmul.f32 %v9722_v15, %v851_v57  ;;  %v1006_v2 = vpop.permute.xlu1 %1005  ;;  %v1011_v5 = vpop.permute.xlu0 %1010 }
 0x39e   :  { %v8687_v49 = vpop.eup %8686  ;;  %7754 = vmatprep.subr.mxu1 %v898_v19  ;;  %v874_v32 = vmul.f32 %v9722_v15, %v852_v31 }
 0x39f   :  { %v8689_v33 = vpop.eup %8688  ;;  %7755 = vmatpush3.msra.mxu1 %v898_v19  ;;  %v849_v35 = vmul.f32 %v8687_v49, %v9680_v12  ;;  %v895_v29 = vadd.f32 %v9726_v27, %v873_v17 }
 0x3a0   :  { %7756 = vmatprep.subr.mxu1 %v897_v24  ;;  %v896_v3 = vadd.f32 %v9726_v27, %v874_v32  ;;  %v850_v36 = vmul.f32 %v8689_v33, %v9683_v6 }
 0x3a1   :  { %7757 = vmatpush3.msra.mxu1 %v897_v24  ;;  %v871_v34 = vmul.f32 %v9722_v15, %v849_v35  ;;  %v1001_v20 = vpop.permute.xlu1 %1000  ;;  %v996_v23 = vpop.permute.xlu0 %995 }
 0x3a2   :  { %v8691_v60 = vpop.eup %8690  ;;  %7758 = vmatprep.subr.mxu1 %v896_v3  ;;  %v872_v8 = vmul.f32 %v9722_v15, %v850_v36 }
 0x3a3   :  { %v8693_v39 = vpop.eup %8692  ;;  %7759 = vmatpush3.msra.mxu1 %v896_v3  ;;  %v847_v30 = vmul.f32 %v8691_v60, %v9690_v13  ;;  %v893_v6 = vadd.f32 %v9726_v27, %v871_v34 }
 0x3a4   :  { %7760 = vmatprep.subr.mxu1 %v895_v29  ;;  %v894_v12 = vadd.f32 %v9726_v27, %v872_v8  ;;  %v848_v41 = vmul.f32 %v8693_v39, %v9693_v18 }
 0x3a5   :  { %7761 = vmatpush3.msra.mxu1 %v895_v29  ;;  %v869_v44 = vmul.f32 %v9722_v15, %v847_v30  ;;  %v991_v28 = vpop.permute.xlu1 %990  ;;  %v986_v19 = vpop.permute.xlu0 %985 }
 0x3a6   :  { %7762 = vmatprep.subr.mxu1 %v894_v12  ;;  %v870_v43 = vmul.f32 %v9722_v15, %v848_v41 }
 0x3a7   :  { %v8695_v46 = vpop.eup %8694  ;;  %7763 = vmatpush3.msra.mxu1 %v894_v12  ;;  %v891_v18 = vadd.f32 %v9726_v27, %v869_v44 }
 0x3a8   :  { %7764 = vmatprep.subr.mxu1 %v893_v6  ;;  %v892_v13 = vadd.f32 %v9726_v27, %v870_v43  ;;  %v846_v52 = vmul.f32 %v8695_v46, %v9700_v21  ;;  %v909_v21 = vld [vmem:[%s9261_s3 + $0x18] sm:$0xff] }
 0x3a9   :  { %7765 = vmatpush3.msra.mxu1 %v893_v6  ;;  %v981_v17 = vpop.permute.xlu1 %980  ;;  %v976_v33 = vpop.permute.xlu0 %975 }
 0x3aa   :  { %7766 = vmatprep.subr.mxu1 %v892_v13  ;;  %v868_v47 = vmul.f32 %v9722_v15, %v846_v52  ;;  %v911_v15 = vld [vmem:[%s9261_s3 + $0x28] sm:$0xff] }
 0x3ab   :  { %7767 = vmatpush3.msra.mxu1 %v892_v13 }
 0x3ac   :  { %7768 = vmatprep.subr.mxu1 %v891_v18  ;;  %v890_v40 = vadd.f32 %v9726_v27, %v868_v47  ;;  %v912_v27 = vld [vmem:[%s9261_s3 + $0x30] sm:$0xff]  ;;  %s12993_s3 = sld [smem:[#allocation15_spill]] }
 0x3ad   :  { %7769 = vmatpush3.msra.mxu1 %v891_v18  ;;  %v971_v60 = vpop.permute.xlu1 %970  ;;  %v966_v29 = vpop.permute.xlu0 %965 }
 0x3ae   :  { %7770 = vmatprep.subr.mxu1 %v890_v40 }
 0x3af   :  { %7771 = vmatpush3.msra.mxu1 %v890_v40 }
 0x3b0   :  { %7773 = vmatmul.mubr.f32.vlgmr.msra.gmra.mxu1 %v907_v62 }
 0x3b1   :  { %7775 = vmatprep.mubr.f32.mxu1 %v908_v42  ;;  %v961_v30 = vpop.permute.xlu1 %960  ;;  %v956_v12 = vpop.permute.xlu0 %955 }
 0x3b4   :  { %7776 = vmatmul.mubr.f32.gmra.mxu1 %v909_v21 }
 0x3b5   :  { %7778 = vmatprep.mubr.f32.mxu1 %v910_v51  ;;  %v951_v44 = vpop.permute.xlu1 %950  ;;  %v946_v46 = vpop.permute.xlu0 %945 }
 0x3b8   :  { %7779 = vmatmul.mubr.f32.gmra.mxu1 %v911_v15 }
 0x3b9   :  { %7781 = vmatprep.mubr.f32.mxu1 %v912_v27  ;;  %v941_v18 = vpop.permute.xlu1 %940 }
 0x3bc   :  { %7782 = vmatmul.mubr.f32.gmra.mxu1 %v913_v54 }
 0x3bd   :  { %7784 = vmatprep.mubr.f32.mxu1 %v914_v55 }
 0x3c0   :  { %7785 = vmatmul.mubr.f32.gmra.mxu1 %v915_v56 }
 0x3c1   :  { %7787 = vmatprep.mubr.f32.mxu1 %v916_v45 }
 0x3c4   :  { %7788 = vmatmul.mubr.f32.gmra.mxu1 %v917_v59 }
 0x3c5   :  { %7790 = vmatprep.mubr.f32.mxu1 %v918_v50 }
 0x3c8   :  { %7791 = vmatmul.mubr.f32.gmra.mxu1 %v919_v53 }
 0x3c9   :  { %7793 = vmatprep.mubr.f32.mxu1 %v920_v0 }
 0x3cc   :  { %7794 = vmatmul.mubr.f32.gmra.mxu1 %v921_v1 }
 0x470   :  { %v7774_v63 = vpop.f32.mrf.mxu1 }
 0x471   :  { %v9801_v13 = vadd.f32 %v7774_v63, %v946_v46 }
 0x472   :  { %v1084_v37 = vpop.f32.mrf.mxu1 }
 0x473   :  { %v9808_v47 = vadd.f32 %v1084_v37, %v941_v18 }
 0x474   :  { %v7777_v4 = vpop.f32.mrf.mxu1 }
 0x475   :  { %v9795_v6 = vadd.f32 %v7777_v4, %v956_v12 }
 0x476   :  { %v1094_v26 = vpop.f32.mrf.mxu1 }
 0x477   :  { %v9804_v52 = vadd.f32 %v1094_v26, %v951_v44 }
 0x478   :  { %v7780_v58 = vpop.f32.mrf.mxu1 }
 0x479   :  { %v9790_v39 = vadd.f32 %v7780_v58, %v966_v29 }
 0x47a   :  { %v1104_v61 = vpop.f32.mrf.mxu1 }
 0x47b   :  { %v9798_v43 = vadd.f32 %v1104_v61, %v961_v30 }
 0x47c   :  { %v7783_v9 = vpop.f32.mrf.mxu1 }
 0x47d   :  { %v1120_v8 = vadd.f32 %v7783_v9, %v976_v33 }
 0x47e   :  { %v1114_v7 = vpop.f32.mrf.mxu1 }
 0x47f   :  { %v9792_v41 = vadd.f32 %v1114_v7, %v971_v60 }
 0x480   :  { %v7786_v16 = vpop.f32.mrf.mxu1 }
 0x481   :  { %v1130_v3 = vadd.f32 %v7786_v16, %v986_v19 }
 0x482   :  { %v1124_v48 = vpop.f32.mrf.mxu1 }
 0x483   :  { %v1125_v34 = vadd.f32 %v1124_v48, %v981_v17 }
 0x484   :  { %v7789_v14 = vpop.f32.mrf.mxu1 }
 0x485   :  { %v1140_v32 = vadd.f32 %v7789_v14, %v996_v23 }
 0x486   :  { %v1134_v38 = vpop.f32.mrf.mxu1 }
 0x487   :  { %v1135_v36 = vadd.f32 %v1134_v38, %v991_v28 }
 0x488   :  { %v7792_v10 = vpop.f32.mrf.mxu1 }
 0x489   :  { %v1150_v24 = vadd.f32 %v7792_v10, %v1006_v2 }
 0x48a   :  { %v1144_v25 = vpop.f32.mrf.mxu1 }
 0x48b   :  { %v1145_v35 = vadd.f32 %v1144_v25, %v1001_v20 }
 0x48c   :  { %v7795_v11 = vpop.f32.mrf.mxu1 }
 0x48d   :  { %v1160_v57 = vadd.f32 %v7795_v11, %v1016_v22 }
 0x48e   :  { %v1154_v31 = vpop.f32.mrf.mxu1 }
 0x48f   :  { %v1155_v49 = vadd.f32 %v1154_v31, %v1011_v5  ;;  %1195 = vadd.xlane.f32.xlu0 %v1160_v57 }
 0x491   :  { %1193 = vadd.xlane.f32.xlu1 %v1155_v49 }
 0x493   :  { %1191 = vadd.xlane.f32.xlu0 %v1150_v24 }
 0x495   :  { %1187 = vadd.xlane.f32.xlu1 %v1140_v32 }
 0x497   :  { %1189 = vadd.xlane.f32.xlu0 %v1145_v35 }
 0x499   :  { %1183 = vadd.xlane.f32.xlu1 %v1130_v3 }
 0x49b   :  { %1185 = vadd.xlane.f32.xlu0 %v1135_v36 }
 0x49d   :  { %1179 = vadd.xlane.f32.xlu1 %v1120_v8 }
 0x49f   :  { %1181 = vadd.xlane.f32.xlu0 %v1125_v34 }
 0x4a1   :  { %1175 = vadd.xlane.f32.xlu1 %v9790_v39 }
 0x4a3   :  { %1177 = vadd.xlane.f32.xlu0 %v9792_v41 }
 0x4a5   :  { %1171 = vadd.xlane.f32.xlu1 %v9795_v6 }
 0x4a7   :  { %1173 = vadd.xlane.f32.xlu0 %v9798_v43 }
 0x4a9   :  { %1167 = vadd.xlane.f32.xlu1 %v9801_v13 }
 0x4ab   :  { %1169 = vadd.xlane.f32.xlu0 %v9804_v52 }
 0x4af   :  { %1165 = vadd.xlane.f32.xlu0 %v9808_v47 }
 0x518   :  { %v1196_v40 = vpop.xlane.xlu0 %1195 }
 0x519   :  { %v1212_v62 = vmul.f32 0.0078125, %v1196_v40 }
 0x51a   :  { %v1194_v42 = vpop.xlane.xlu1 %1193 }
 0x51b   :  { %v9811_v21 = vsub.f32 %v1160_v57, %v1212_v62  ;;  %v1211_v51 = vmul.f32 0.0078125, %v1194_v42  ;;  %v1401_v62 = vld [vmem:[%s9286_s30] sm:$0xff]  ;;  %v1403_v42 = vld [vmem:[%s9286_s30 + $0x10] sm:$0xff] }
 0x51c   :  { %v1192_v15 = vpop.xlane.xlu0 %1191 }
 0x51d   :  { %v9813_v27 = vsub.f32 %v1155_v49, %v1211_v51  ;;  %v1210_v54 = vmul.f32 0.0078125, %v1192_v15  ;;  %v1244_v55 = vmul.f32 %v9811_v21, %v9811_v21  ;;  %v1404_v51 = vld [vmem:[%s9286_s30 + $0x18] sm:$0xff]  ;;  %v1402_v15 = vld [vmem:[%s9286_s30 + $0x8] sm:$0xff] }
 0x51e   :  { %v1188_v56 = vpop.xlane.xlu1 %1187 }
 0x51f   :  { %v9817_v45 = vsub.f32 %v1150_v24, %v1210_v54  ;;  %v1208_v59 = vmul.f32 0.0078125, %v1188_v56  ;;  %1275 = vadd.xlane.f32.xlu1 %v1244_v55  ;;  %v1243_v50 = vmul.f32 %v9813_v27, %v9813_v27  ;;  %v1405_v54 = vld [vmem:[%s9286_s30 + $0x20] sm:$0xff]  ;;  %v1408_v55 = vld [vmem:[%s9286_s30 + $0x38] sm:$0xff]  ;;  %v1407_v56 = vld [vmem:[%s9286_s30 + $0x30] sm:$0xff] }
 0x520   :  { %v1190_v53 = vpop.xlane.xlu0 %1189 }
 0x521   :  { %v9821_v0 = vsub.f32 %v1140_v32, %v1208_v59  ;;  %v1209_v1 = vmul.f32 0.0078125, %v1190_v53  ;;  %1273 = vadd.xlane.f32.xlu0 %v1243_v50  ;;  %v1242_v63 = vmul.f32 %v9817_v45, %v9817_v45  ;;  %v1410_v59 = vld [vmem:[%s9286_s30 + $0x48] sm:$0xff]  ;;  %v1409_v50 = vld [vmem:[%s9286_s30 + $0x40] sm:$0xff]  ;;  %v1412_v53 = vld [vmem:[%s9286_s30 + $0x58] sm:$0xff] }
 0x522   :  { %v1184_v37 = vpop.xlane.xlu1 %1183 }
 0x523   :  { %v9825_v4 = vsub.f32 %v1145_v35, %v1209_v1  ;;  %v1206_v26 = vmul.f32 0.0078125, %v1184_v37  ;;  %1271 = vadd.xlane.f32.xlu1 %v1242_v63  ;;  %v1240_v9 = vmul.f32 %v9821_v0, %v9821_v0  ;;  %v1411_v1 = vld [vmem:[%s9286_s30 + $0x50] sm:$0xff]  ;;  %v1385_v63 = vld [vmem:[%s9281_s24] sm:$0xff]  ;;  %v1414_v37 = vld [vmem:[%s9286_s30 + $0x68] sm:$0xff] }
 0x524   :  { %v1186_v58 = vpop.xlane.xlu0 %1185  ;;  %7828 = vmatprep.mubr.f32.mxu0 %v1385_v63 }
 0x525   :  { %v9827_v61 = vsub.f32 %v1130_v3, %v1206_v26  ;;  %v1207_v22 = vmul.f32 0.0078125, %v1186_v58  ;;  %v1241_v7 = vmul.f32 %v9825_v4, %v9825_v4  ;;  %v1413_v26 = vld [vmem:[%s9286_s30 + $0x60] sm:$0xff]  ;;  %v1416_v58 = vld [vmem:[%s9286_s30 + $0x78] sm:$0xff] }
 0x526   :  { %v1180_v16 = vpop.xlane.xlu1 %1179 }
 0x527   :  { %v9833_v2 = vsub.f32 %v1135_v36, %v1207_v22  ;;  %v1204_v5 = vmul.f32 0.0078125, %v1180_v16  ;;  %1267 = vadd.xlane.f32.xlu1 %v1240_v9  ;;  %1269 = vadd.xlane.f32.xlu0 %v1241_v7  ;;  %v1238_v20 = vmul.f32 %v9827_v61, %v9827_v61  ;;  %v1415_v22 = vld [vmem:[%s9286_s30 + $0x70] sm:$0xff] }
 0x528   :  { %v1182_v48 = vpop.xlane.xlu0 %1181 }
 0x529   :  { %v9835_v14 = vsub.f32 %v1120_v8, %v1204_v5  ;;  %v1205_v38 = vmul.f32 0.0078125, %v1182_v48  ;;  %v1239_v23 = vmul.f32 %v9833_v2, %v9833_v2 }
 0x52a   :  { %v1176_v10 = vpop.xlane.xlu1 %1175 }
 0x52b   :  { %v9841_v25 = vsub.f32 %v1125_v34, %v1205_v38  ;;  %v1202_v11 = vmul.f32 0.0078125, %v1176_v10  ;;  %1263 = vadd.xlane.f32.xlu1 %v1238_v20  ;;  %1265 = vadd.xlane.f32.xlu0 %v1239_v23  ;;  %v1236_v31 = vmul.f32 %v9835_v14, %v9835_v14 }
 0x52c   :  { %v1178_v28 = vpop.xlane.xlu0 %1177 }
 0x52d   :  { %v9844_v57 = vsub.f32 %v9790_v39, %v1202_v11  ;;  %v1203_v19 = vmul.f32 0.0078125, %v1178_v28  ;;  %v1237_v49 = vmul.f32 %v9841_v25, %v9841_v25 }
 0x52e   :  { %v1172_v24 = vpop.xlane.xlu1 %1171 }
 0x52f   :  { %v9851_v32 = vsub.f32 %v9792_v41, %v1203_v19  ;;  %v1200_v17 = vmul.f32 0.0078125, %v1172_v24  ;;  %1259 = vadd.xlane.f32.xlu1 %v1236_v31  ;;  %1261 = vadd.xlane.f32.xlu0 %v1237_v49  ;;  %v1234_v36 = vmul.f32 %v9844_v57, %v9844_v57 }
 0x530   :  { %v1174_v33 = vpop.xlane.xlu0 %1173 }
 0x531   :  { %v9854_v35 = vsub.f32 %v9795_v6, %v1200_v17  ;;  %v1201_v3 = vmul.f32 0.0078125, %v1174_v33  ;;  %v1235_v60 = vmul.f32 %v9851_v32, %v9851_v32 }
 0x532   :  { %v1168_v29 = vpop.xlane.xlu1 %1167 }
 0x533   :  { %v9861_v8 = vsub.f32 %v9798_v43, %v1201_v3  ;;  %v1198_v34 = vmul.f32 0.0078125, %v1168_v29  ;;  %1255 = vadd.xlane.f32.xlu1 %v1234_v36  ;;  %1257 = vadd.xlane.f32.xlu0 %v1235_v60  ;;  %v1232_v41 = vmul.f32 %v9854_v35, %v9854_v35 }
 0x534   :  { %v1170_v39 = vpop.xlane.xlu0 %1169 }
 0x535   :  { %v9864_v30 = vsub.f32 %v9801_v13, %v1198_v34  ;;  %v1199_v12 = vmul.f32 0.0078125, %v1170_v39  ;;  %v1233_v6 = vmul.f32 %v9861_v8, %v9861_v8 }
 0x537   :  { %v9871_v44 = vsub.f32 %v9804_v52, %v1199_v12  ;;  %1251 = vadd.xlane.f32.xlu1 %v1232_v41  ;;  %1253 = vadd.xlane.f32.xlu0 %v1233_v6  ;;  %v1230_v13 = vmul.f32 %v9864_v30, %v9864_v30 }
 0x538   :  { %v1166_v43 = vpop.xlane.xlu0 %1165 }
 0x539   :  { %v1197_v46 = vmul.f32 0.0078125, %v1166_v43  ;;  %v1231_v18 = vmul.f32 %v9871_v44, %v9871_v44  ;;  %v9900_v43 = vld [vmem:[%s9271_s14] ss:$0 sm:$0xff]  ;;  %s12995_s14 = sld [smem:[#allocation18_spill]] }
 0x53b   :  { %v9878_v40 = vsub.f32 %v9808_v47, %v1197_v46  ;;  %1247 = vadd.xlane.f32.xlu1 %v1230_v13  ;;  %1249 = vadd.xlane.f32.xlu0 %v1231_v18  ;;  %v1406_v47 = vld [vmem:[%s9286_s30 + $0x28] sm:$0xff]  ;;  %s12997_s30 = sld [smem:[#allocation19_spill]] }
 0x53d   :  { %v1229_v52 = vmul.f32 %v9878_v40, %v9878_v40 }
 0x53f   :  { %1245 = vadd.xlane.f32.xlu0 %v1229_v52 }
 0x54c   :  { %1419 = vperm.xlu1 %8631, %v1401_v62  }
 0x550   :  { %1429 = vperm.xlu1 %8631, %v1403_v42  }
 0x554   :  { %1434 = vperm.xlu1 %8631, %v1404_v51   ;;  %v9904_v51 = vld [vmem:[%s12986_s5] ss:$0 sm:$0xff] }
 0x555   :  { %1424 = vperm.xlu0 %8630, %v1402_v15  }
 0x558   :  { %1444 = vperm.xlu1 %8631, %v1406_v47  }
 0x559   :  { %1439 = vperm.xlu0 %8630, %v1405_v54  }
 0x55c   :  { %1454 = vperm.xlu1 %8631, %v1408_v55  }
 0x55d   :  { %1449 = vperm.xlu0 %8630, %v1407_v56  }
 0x560   :  { %1464 = vperm.xlu1 %8631, %v1410_v59  }
 0x561   :  { %1459 = vperm.xlu0 %8630, %v1409_v50  }
 0x564   :  { %1474 = vperm.xlu1 %8631, %v1412_v53  }
 0x565   :  { %1469 = vperm.xlu0 %8630, %v1411_v1  }
 0x568   :  { %1484 = vperm.xlu1 %8631, %v1414_v37  }
 0x569   :  { %1479 = vperm.xlu0 %8630, %v1413_v26  }
 0x56c   :  { %1494 = vperm.xlu1 %8631, %v1416_v58  }
 0x56d   :  { %1489 = vperm.xlu0 %8630, %v1415_v22  }
 0x5a8   :  { %v1276_v9 = vpop.xlane.xlu1 %1275 }
 0x5a9   :  { %v1292_v7 = vmul.f32 0.0078125, %v1276_v9 }
 0x5aa   :  { %v1274_v16 = vpop.xlane.xlu0 %1273 }
 0x5ab   :  { %v1308_v5 = vadd.f32 1e-05, %v1292_v7  ;;  %v1291_v48 = vmul.f32 0.0078125, %v1274_v16 }
 0x5ac   :  { %v1272_v38 = vpop.xlane.xlu1 %1271 }
 0x5ad   :  { %8696 = vrsqrt.f32 %v1308_v5  ;;  %v1307_v20 = vadd.f32 1e-05, %v1291_v48  ;;  %v1290_v23 = vmul.f32 0.0078125, %v1272_v38 }
 0x5af   :  { %8698 = vrsqrt.f32 %v1307_v20  ;;  %v1306_v10 = vadd.f32 1e-05, %v1290_v23 }
 0x5b0   :  { %v1268_v11 = vpop.xlane.xlu1 %1267  ;;  %v1270_v28 = vpop.xlane.xlu0 %1269 }
 0x5b1   :  { %8700 = vrsqrt.f32 %v1306_v10  ;;  %v1288_v19 = vmul.f32 0.0078125, %v1268_v11  ;;  %v1289_v31 = vmul.f32 0.0078125, %v1270_v28 }
 0x5b3   :  { %v1304_v49 = vadd.f32 1e-05, %v1288_v19  ;;  %v1305_v24 = vadd.f32 1e-05, %v1289_v31 }
 0x5b4   :  { %v1264_v17 = vpop.xlane.xlu1 %1263  ;;  %v1266_v33 = vpop.xlane.xlu0 %1265 }
 0x5b5   :  { %8702 = vrsqrt.f32 %v1304_v49  ;;  %v1286_v3 = vmul.f32 0.0078125, %v1264_v17  ;;  %v1287_v36 = vmul.f32 0.0078125, %v1266_v33 }
 0x5b6   :  { %8704 = vrsqrt.f32 %v1305_v24 }
 0x5b7   :  { %v1302_v60 = vadd.f32 1e-05, %v1286_v3  ;;  %v1303_v29 = vadd.f32 1e-05, %v1287_v36 }
 0x5b8   :  { %v1260_v34 = vpop.xlane.xlu1 %1259  ;;  %v1262_v39 = vpop.xlane.xlu0 %1261 }
 0x5b9   :  { %8706 = vrsqrt.f32 %v1302_v60  ;;  %v1284_v12 = vmul.f32 0.0078125, %v1260_v34  ;;  %v1285_v41 = vmul.f32 0.0078125, %v1262_v39 }
 0x5ba   :  { %v8697_v6 = vpop.eup %8696  ;;  %8708 = vrsqrt.f32 %v1303_v29 }
 0x5bb   :  { %v1300_v46 = vadd.f32 1e-05, %v1284_v12  ;;  %v1301_v13 = vadd.f32 1e-05, %v1285_v41  ;;  %v1340_v18 = vmul.f32 %v8697_v6, %v9811_v21 }
 0x5bc   :  { %v8699_v52 = vpop.eup %8698  ;;  %v1256_v62 = vpop.xlane.xlu1 %1255 }
 0x5bd   :  { %v1258_v42 = vpop.xlane.xlu0 %1257  ;;  %8710 = vrsqrt.f32 %v1300_v46  ;;  %v1282_v15 = vmul.f32 0.0078125, %v1256_v62  ;;  %v1362_v54 = vmul.f32 %v9900_v43, %v1340_v18  ;;  %v1339_v56 = vmul.f32 %v8699_v52, %v9813_v27 }
 0x5be   :  { %v1283_v47 = vmul.f32 0.0078125, %v1258_v42  ;;  %v8701_v55 = vpop.eup %8700  ;;  %8712 = vrsqrt.f32 %v1301_v13 }
 0x5bf   :  { %v1298_v59 = vadd.f32 1e-05, %v1282_v15  ;;  %v1384_v53 = vadd.f32 %v9904_v51, %v1362_v54  ;;  %v1338_v21 = vmul.f32 %v8701_v55, %v9817_v45  ;;  %v1361_v37 = vmul.f32 %v9900_v43, %v1339_v56 }
 0x5c0   :  { %v1299_v50 = vadd.f32 1e-05, %v1283_v47  ;;  %v1252_v1 = vpop.xlane.xlu1 %1251 }
 0x5c1   :  { %v1254_v63 = vpop.xlane.xlu0 %1253  ;;  %8714 = vrsqrt.f32 %v1298_v59  ;;  %v1280_v26 = vmul.f32 0.0078125, %v1252_v1  ;;  %7796 = vmatprep.subr.mxu0 %v1384_v53  ;;  %v1360_v22 = vmul.f32 %v9900_v43, %v1338_v21  ;;  %v1383_v27 = vadd.f32 %v9904_v51, %v1361_v37 }
 0x5c2   :  { %v1281_v58 = vmul.f32 0.0078125, %v1254_v63  ;;  %v8703_v9 = vpop.eup %8702  ;;  %8716 = vrsqrt.f32 %v1299_v50  ;;  %7797 = vmatpush3.msra.mxu0 %v1384_v53 }
 0x5c3   :  { %v8705_v7 = vpop.eup %8704  ;;  %v1296_v16 = vadd.f32 1e-05, %v1280_v26  ;;  %v1382_v45 = vadd.f32 %v9904_v51, %v1360_v22  ;;  %v1336_v48 = vmul.f32 %v8703_v9, %v9821_v0  ;;  %7798 = vmatprep.subr.mxu0 %v1383_v27 }
 0x5c4   :  { %v1297_v5 = vadd.f32 1e-05, %v1281_v58  ;;  %v1248_v38 = vpop.xlane.xlu1 %1247  ;;  %v1337_v23 = vmul.f32 %v8705_v7, %v9825_v4  ;;  %7799 = vmatpush3.msra.mxu0 %v1383_v27 }
 0x5c5   :  { %v1250_v20 = vpop.xlane.xlu0 %1249  ;;  %8718 = vrsqrt.f32 %v1296_v16  ;;  %v1278_v10 = vmul.f32 0.0078125, %v1248_v38  ;;  %7800 = vmatprep.subr.mxu0 %v1382_v45  ;;  %v1358_v31 = vmul.f32 %v9900_v43, %v1336_v48  ;;  %v1390_v48 = vld [vmem:[%s9281_s24 + $0x28] sm:$0xff]  ;;  %v1392_v38 = vld [vmem:[%s9281_s24 + $0x38] sm:$0xff] }
 0x5c6   :  { %v1279_v11 = vmul.f32 0.0078125, %v1250_v20  ;;  %v8707_v28 = vpop.eup %8706  ;;  %8720 = vrsqrt.f32 %v1297_v5  ;;  %v1359_v19 = vmul.f32 %v9900_v43, %v1337_v23  ;;  %7801 = vmatpush3.msra.mxu0 %v1382_v45  ;;  %v1387_v5 = vld [vmem:[%s9281_s24 + $0x10] sm:$0xff]  ;;  %v1389_v45 = vld [vmem:[%s9281_s24 + $0x20] sm:$0xff]  ;;  %v1394_v23 = vld [vmem:[%s9281_s24 + $0x48] sm:$0xff] }
 0x5c7   :  { %v8709_v49 = vpop.eup %8708  ;;  %v1294_v24 = vadd.f32 1e-05, %v1278_v10  ;;  %v1334_v0 = vmul.f32 %v8707_v28, %v9827_v61  ;;  %v1380_v29 = vadd.f32 %v9904_v51, %v1358_v31  ;;  %v1393_v20 = vld [vmem:[%s9281_s24 + $0x40] sm:$0xff]  ;;  %v1395_v10 = vld [vmem:[%s9281_s24 + $0x50] sm:$0xff] }
 0x5c8   :  { %v1295_v17 = vadd.f32 1e-05, %v1279_v11  ;;  %v1381_v4 = vadd.f32 %v9904_v51, %v1359_v19  ;;  %v1335_v3 = vmul.f32 %v8709_v49, %v9833_v2  ;;  %v1396_v11 = vld [vmem:[%s9281_s24 + $0x58] sm:$0xff]  ;;  %v1397_v28 = vld [vmem:[%s9281_s24 + $0x60] sm:$0xff]  ;;  %v1398_v19 = vld [vmem:[%s9281_s24 + $0x68] sm:$0xff] }
 0x5c9   :  { %v1246_v33 = vpop.xlane.xlu0 %1245  ;;  %8722 = vrsqrt.f32 %v1294_v24  ;;  %v1356_v39 = vmul.f32 %v9900_v43, %v1334_v0  ;;  %v1399_v31 = vld [vmem:[%s9281_s24 + $0x70] sm:$0xff]  ;;  %v1400_v49 = vld [vmem:[%s9281_s24 + $0x78] sm:$0xff] }
 0x5ca   :  { %v1277_v36 = vmul.f32 0.0078125, %v1246_v33  ;;  %v8711_v60 = vpop.eup %8710  ;;  %8724 = vrsqrt.f32 %v1295_v17  ;;  %7802 = vmatprep.subr.mxu0 %v1381_v4  ;;  %v1357_v34 = vmul.f32 %v9900_v43, %v1335_v3  ;;  %v1420_v17 = vpop.permute.xlu1 %1419 }
 0x5cb   :  { %v8713_v12 = vpop.eup %8712  ;;  %7803 = vmatpush3.msra.mxu0 %v1381_v4  ;;  %v1332_v61 = vmul.f32 %v8711_v60, %v9835_v14  ;;  %v1378_v13 = vadd.f32 %v9904_v51, %v1356_v39 }
 0x5cc   :  { %v1293_v41 = vadd.f32 1e-05, %v1277_v36  ;;  %7804 = vmatprep.subr.mxu0 %v1380_v29  ;;  %v1379_v6 = vadd.f32 %v9904_v51, %v1357_v34  ;;  %v1333_v2 = vmul.f32 %v8713_v12, %v9841_v25 }
 0x5cd   :  { %7805 = vmatpush3.msra.mxu0 %v1380_v29  ;;  %v1354_v52 = vmul.f32 %v9900_v43, %v1332_v61 }
 0x5ce   :  { %8726 = vrsqrt.f32 %v1293_v41  ;;  %v8715_v46 = vpop.eup %8714  ;;  %7806 = vmatprep.subr.mxu0 %v1379_v6  ;;  %v1355_v18 = vmul.f32 %v9900_v43, %v1333_v2  ;;  %v1430_v60 = vpop.permute.xlu1 %1429 }
 0x5cf   :  { %v8717_v62 = vpop.eup %8716  ;;  %7807 = vmatpush3.msra.mxu0 %v1379_v6  ;;  %v1330_v42 = vmul.f32 %v8715_v46, %v9844_v57  ;;  %v1376_v47 = vadd.f32 %v9904_v51, %v1354_v52 }
 0x5d0   :  { %7808 = vmatprep.subr.mxu0 %v1378_v13  ;;  %v1377_v14 = vadd.f32 %v9904_v51, %v1355_v18  ;;  %v1331_v15 = vmul.f32 %v8717_v62, %v9851_v32  ;;  %v1425_v3 = vpop.permute.xlu0 %1424 }
 0x5d1   :  { %7809 = vmatpush3.msra.mxu0 %v1378_v13  ;;  %v1352_v55 = vmul.f32 %v9900_v43, %v1330_v42 }
 0x5d2   :  { %v8719_v25 = vpop.eup %8718  ;;  %7810 = vmatprep.subr.mxu0 %v1377_v14  ;;  %v1353_v54 = vmul.f32 %v9900_v43, %v1331_v15  ;;  %v1435_v12 = vpop.permute.xlu1 %1434 }
 0x5d3   :  { %v8721_v56 = vpop.eup %8720  ;;  %7811 = vmatpush3.msra.mxu0 %v1377_v14  ;;  %v1328_v59 = vmul.f32 %v8719_v25, %v9854_v35  ;;  %v1374_v53 = vadd.f32 %v9904_v51, %v1352_v55 }
 0x5d4   :  { %7812 = vmatprep.subr.mxu0 %v1376_v47  ;;  %v1375_v57 = vadd.f32 %v9904_v51, %v1353_v54  ;;  %v1329_v50 = vmul.f32 %v8721_v56, %v9861_v8  ;;  %v1440_v6 = vpop.permute.xlu0 %1439 }
 0x5d5   :  { %7813 = vmatpush3.msra.mxu0 %v1376_v47  ;;  %v1350_v1 = vmul.f32 %v9900_v43, %v1328_v59 }
 0x5d6   :  { %v8723_v32 = vpop.eup %8722  ;;  %7814 = vmatprep.subr.mxu0 %v1375_v57  ;;  %v1351_v21 = vmul.f32 %v9900_v43, %v1329_v50  ;;  %v1445_v13 = vpop.permute.xlu1 %1444 }
 0x5d7   :  { %v8725_v63 = vpop.eup %8724  ;;  %7815 = vmatpush3.msra.mxu0 %v1375_v57  ;;  %v1326_v37 = vmul.f32 %v8723_v32, %v9864_v30  ;;  %v1372_v58 = vadd.f32 %v9904_v51, %v1350_v1 }
 0x5d8   :  { %7816 = vmatprep.subr.mxu0 %v1374_v53  ;;  %v1373_v35 = vadd.f32 %v9904_v51, %v1351_v21  ;;  %v1327_v26 = vmul.f32 %v8725_v63, %v9871_v44  ;;  %v1450_v62 = vpop.permute.xlu0 %1449 }
 0x5d9   :  { %7817 = vmatpush3.msra.mxu0 %v1374_v53  ;;  %v1348_v9 = vmul.f32 %v9900_v43, %v1326_v37 }
 0x5da   :  { %7818 = vmatprep.subr.mxu0 %v1373_v35  ;;  %v1349_v22 = vmul.f32 %v9900_v43, %v1327_v26  ;;  %v1455_v15 = vpop.permute.xlu1 %1454 }
 0x5db   :  { %v8727_v8 = vpop.eup %8726  ;;  %7819 = vmatpush3.msra.mxu0 %v1373_v35  ;;  %v1370_v7 = vadd.f32 %v9904_v51, %v1348_v9 }
 0x5dc   :  { %v1325_v27 = vmul.f32 %v8727_v8, %v9878_v40  ;;  %7820 = vmatprep.subr.mxu0 %v1372_v58  ;;  %v1371_v30 = vadd.f32 %v9904_v51, %v1349_v22  ;;  %v1386_v40 = vld [vmem:[%s9281_s24 + $0x8] sm:$0xff]  ;;  %v1460_v54 = vpop.permute.xlu0 %1459 }
 0x5dd   :  { %7821 = vmatpush3.msra.mxu0 %v1372_v58 }
 0x5de   :  { %v1347_v44 = vmul.f32 %v9900_v43, %v1325_v27  ;;  %7822 = vmatprep.subr.mxu0 %v1371_v30  ;;  %v1388_v43 = vld [vmem:[%s9281_s24 + $0x18] sm:$0xff]  ;;  %v1465_v59 = vpop.permute.xlu1 %1464 }
 0x5df   :  { %7823 = vmatpush3.msra.mxu0 %v1371_v30 }
 0x5e0   :  { %v1369_v16 = vadd.f32 %v9904_v51, %v1347_v44  ;;  %7824 = vmatprep.subr.mxu0 %v1370_v7  ;;  %v1391_v51 = vld [vmem:[%s9281_s24 + $0x30] sm:$0xff]  ;;  %v1470_v32 = vpop.permute.xlu0 %1469  ;;  %s12996_s24 = sld [smem:[#allocation17_spill]] }
 0x5e1   :  { %7825 = vmatpush3.msra.mxu0 %v1370_v7 }
 0x5e2   :  { %7826 = vmatprep.subr.mxu0 %v1369_v16  ;;  %v1475_v1 = vpop.permute.xlu1 %1474 }
 0x5e3   :  { %7827 = vmatpush3.msra.mxu0 %v1369_v16  ;;  %v7124_v16 = vld [vmem:[%s12987_s9] ss:$0 sm:$0xff] }
 0x5e4   :  { %7829 = vmatmul.mubr.f32.vlgmr.msra.gmra.mxu0 %v1386_v40  ;;  %v1480_v35 = vpop.permute.xlu0 %1479 }
 0x5e5   :  { %7831 = vmatprep.mubr.f32.mxu0 %v1387_v5  ;;  %v7125_v5 = vld [vmem:[%s12988_s13] ss:$0 sm:$0xff] }
 0x5e6   :  { %v1485_v58 = vpop.permute.xlu1 %1484 }
 0x5e8   :  { %7832 = vmatmul.mubr.f32.gmra.mxu0 %v1388_v43  ;;  %v1490_v27 = vpop.permute.xlu0 %1489 }
 0x5e9   :  { %7834 = vmatprep.mubr.f32.mxu0 %v1389_v45 }
 0x5ea   :  { %v1495_v44 = vpop.permute.xlu1 %1494 }
 0x5ec   :  { %7835 = vmatmul.mubr.f32.gmra.mxu0 %v1390_v48 }
 0x5ed   :  { %7837 = vmatprep.mubr.f32.mxu0 %v1391_v51 }
 0x5f0   :  { %7838 = vmatmul.mubr.f32.gmra.mxu0 %v1392_v38 }
 0x5f1   :  { %7840 = vmatprep.mubr.f32.mxu0 %v1393_v20 }
 0x5f4   :  { %7841 = vmatmul.mubr.f32.gmra.mxu0 %v1394_v23 }
 0x5f5   :  { %7843 = vmatprep.mubr.f32.mxu0 %v1395_v10 }
 0x5f8   :  { %7844 = vmatmul.mubr.f32.gmra.mxu0 %v1396_v11 }
 0x5f9   :  { %7846 = vmatprep.mubr.f32.mxu0 %v1397_v28 }
 0x5fc   :  { %7847 = vmatmul.mubr.f32.gmra.mxu0 %v1398_v19 }
 0x5fd   :  { %7849 = vmatprep.mubr.f32.mxu0 %v1399_v31 }
 0x600   :  { %7850 = vmatmul.mubr.f32.gmra.mxu0 %v1400_v49 }
 0x6a4   :  { %v7830_v24 = vpop.f32.mrf.mxu0 }
 0x6a5   :  { %v1569_v36 = vadd.f32 %v7830_v24, %v1425_v3 }
 0x6a6   :  { %v1563_v0 = vpop.f32.mrf.mxu0 }
 0x6a7   :  { %v1564_v33 = vadd.f32 %v1563_v0, %v1420_v17 }
 0x6a8   :  { %v7833_v4 = vpop.f32.mrf.mxu0 }
 0x6a9   :  { %1642 = vxpose.xlu0.b32.start [1/16] %v1564_v33, 128  ;;  %v1579_v41 = vadd.f32 %v7833_v4, %v1435_v12 }
 0x6aa   :  { %v1573_v29 = vpop.f32.mrf.mxu0 }
 0x6ab   :  { %v1574_v34 = vadd.f32 %v1573_v29, %v1430_v60 }
 0x6ac   :  { %v7836_v39 = vpop.f32.mrf.mxu0 }
 0x6ad   :  { %1643 = vxpose.xlu0.b32.cont [2/16] %v1569_v36, 128  ;;  %v1589_v18 = vadd.f32 %v7836_v39, %v1445_v13 }
 0x6ae   :  { %v1583_v61 = vpop.f32.mrf.mxu0 }
 0x6af   :  { %v1584_v2 = vadd.f32 %v1583_v61, %v1440_v6 }
 0x6b0   :  { %v7839_v46 = vpop.f32.mrf.mxu0 }
 0x6b1   :  { %1644 = vxpose.xlu0.b32.cont [3/16] %v1574_v34, 128  ;;  %v1599_v25 = vadd.f32 %v7839_v46, %v1455_v15 }
 0x6b2   :  { %v1593_v52 = vpop.f32.mrf.mxu0 }
 0x6b3   :  { %v1594_v42 = vadd.f32 %v1593_v52, %v1450_v62 }
 0x6b4   :  { %v7842_v14 = vpop.f32.mrf.mxu0 }
 0x6b5   :  { %1645 = vxpose.xlu0.b32.cont [4/16] %v1579_v41, 128  ;;  %v1609_v57 = vadd.f32 %v7842_v14, %v1465_v59 }
 0x6b6   :  { %v1603_v47 = vpop.f32.mrf.mxu0 }
 0x6b7   :  { %v1604_v55 = vadd.f32 %v1603_v47, %v1460_v54 }
 0x6b8   :  { %v7845_v56 = vpop.f32.mrf.mxu0 }
 0x6b9   :  { %1646 = vxpose.xlu0.b32.cont [5/16] %v1584_v2, 128  ;;  %v1619_v63 = vadd.f32 %v7845_v56, %v1475_v1  ;;  %v1956_v1 = vld [vmem:[#allocation2 + $0x70] sm:$0xff] }
 0x6ba   :  { %v1613_v50 = vpop.f32.mrf.mxu0 }
 0x6bb   :  { %v1614_v53 = vadd.f32 %v1613_v50, %v1470_v32 }
 0x6bc   :  { %v7848_v21 = vpop.f32.mrf.mxu0 }
 0x6bd   :  { %1647 = vxpose.xlu0.b32.cont [6/16] %v1589_v18, 128  ;;  %v1629_v22 = vadd.f32 %v7848_v21, %v1485_v58  ;;  %v1957_v21 = vld [vmem:[#allocation2 + $0x78] sm:$0xff] }
 0x6be   :  { %v1623_v37 = vpop.f32.mrf.mxu0  ;;  %7852 = vmatprep.subr.mxu1 %v1957_v21 }
 0x6bf   :  { %v1624_v26 = vadd.f32 %v1623_v37, %v1480_v35  ;;  %7853 = vmatpush3.msra.mxu1 %v1957_v21 }
 0x6c0   :  { %v7851_v8 = vpop.f32.mrf.mxu0  ;;  %7854 = vmatprep.subr.mxu1 %v1956_v1 }
 0x6c1   :  { %1648 = vxpose.xlu0.b32.cont [7/16] %v1594_v42, 128  ;;  %v1639_v7 = vadd.f32 %v7851_v8, %v1495_v44  ;;  %7855 = vmatpush3.msra.mxu1 %v1956_v1  ;;  %v1948_v1 = vld [vmem:[#allocation2 + $0x30] sm:$0xff] }
 0x6c2   :  { %v1633_v9 = vpop.f32.mrf.mxu0 }
 0x6c3   :  { %v1634_v30 = vadd.f32 %v1633_v9, %v1490_v27 }
 0x6c5   :  { %1649 = vxpose.xlu0.b32.cont [8/16] %v1599_v25, 128 }
 0x6c9   :  { %1650 = vxpose.xlu0.b32.cont [9/16] %v1604_v55, 128 }
 0x6cd   :  { %1651 = vxpose.xlu0.b32.cont [10/16] %v1609_v57, 128 }
 0x6d1   :  { %1652 = vxpose.xlu0.b32.cont [11/16] %v1614_v53, 128 }
 0x6d5   :  { %1653 = vxpose.xlu0.b32.cont [12/16] %v1619_v63, 128 }
 0x6d9   :  { %1654 = vxpose.xlu0.b32.cont [13/16] %v1624_v26, 128 }
 0x6dd   :  { %1655 = vxpose.xlu0.b32.cont [14/16] %v1629_v22, 128 }
 0x6e1   :  { %1656 = vxpose.xlu0.b32.cont [15/16] %v1634_v30, 128 }
 0x6e5   :  { %1657 = vxpose.xlu0.b32.end [16/16] %v1639_v7, 128 }
 0x725   :  { %v9969_v40 = vpop.trf.xlu0 }
 0x726   :  { %v1681_v43 = vmul.f32 %v7124_v16, %v9969_v40 }
 0x728   :  { %v9973_v45 = vadd.f32 %v7125_v5, %v1681_v43 }
 0x729   :  { %v9975_v48 = vpop.trf.xlu0 }
 0x72a   :  { %v1682_v51 = vmul.f32 %v7124_v16, %v9975_v48  ;;  %1722 = vadd.xlane.f32.xlu1 %v9973_v45 }
 0x72c   :  { %v9979_v38 = vadd.f32 %v7125_v5, %v1682_v51  ;;  %v1955_v51 = vld [vmem:[#allocation2 + $0x68] sm:$0xff] }
 0x72d   :  { %v9981_v20 = vpop.trf.xlu0  ;;  %7856 = vmatprep.subr.mxu1 %v1955_v51 }
 0x72e   :  { %v1683_v23 = vmul.f32 %v7124_v16, %v9981_v20  ;;  %1724 = vadd.xlane.f32.xlu1 %v9979_v38  ;;  %7857 = vmatpush3.msra.mxu1 %v1955_v51 }
 0x730   :  { %v9985_v10 = vadd.f32 %v7125_v5, %v1683_v23 }
 0x731   :  { %v9987_v11 = vpop.trf.xlu0 }
 0x732   :  { %v1684_v28 = vmul.f32 %v7124_v16, %v9987_v11  ;;  %1726 = vadd.xlane.f32.xlu1 %v9985_v10 }
 0x734   :  { %v9991_v19 = vadd.f32 %v7125_v5, %v1684_v28 }
 0x735   :  { %v9993_v31 = vpop.trf.xlu0 }
 0x736   :  { %v1685_v49 = vmul.f32 %v7124_v16, %v9993_v31  ;;  %1728 = vadd.xlane.f32.xlu1 %v9991_v19 }
 0x738   :  { %v9997_v24 = vadd.f32 %v7125_v5, %v1685_v49 }
 0x739   :  { %v9999_v17 = vpop.trf.xlu0 }
 0x73a   :  { %v1686_v0 = vmul.f32 %v7124_v16, %v9999_v17  ;;  %1730 = vadd.xlane.f32.xlu1 %v9997_v24 }
 0x73c   :  { %v10003_v33 = vadd.f32 %v7125_v5, %v1686_v0  ;;  %v1953_v0 = vld [vmem:[#allocation2 + $0x58] sm:$0xff] }
 0x73d   :  { %v10005_v4 = vpop.trf.xlu0 }
 0x73e   :  { %v1687_v3 = vmul.f32 %v7124_v16, %v10005_v4  ;;  %1732 = vadd.xlane.f32.xlu1 %v10003_v33 }
 0x740   :  { %v10009_v36 = vadd.f32 %v7125_v5, %v1687_v3 }
 0x741   :  { %v10011_v60 = vpop.trf.xlu0 }
 0x742   :  { %v1688_v29 = vmul.f32 %v7124_v16, %v10011_v60  ;;  %1734 = vadd.xlane.f32.xlu1 %v10009_v36 }
 0x744   :  { %v10015_v34 = vadd.f32 %v7125_v5, %v1688_v29  ;;  %v1952_v29 = vld [vmem:[#allocation2 + $0x50] sm:$0xff] }
 0x745   :  { %v10017_v39 = vpop.trf.xlu0 }
 0x746   :  { %v1689_v12 = vmul.f32 %v7124_v16, %v10017_v39  ;;  %1736 = vadd.xlane.f32.xlu1 %v10015_v34 }
 0x748   :  { %v10021_v41 = vadd.f32 %v7125_v5, %v1689_v12 }
 0x749   :  { %v10023_v61 = vpop.trf.xlu0 }
 0x74a   :  { %v1690_v6 = vmul.f32 %v7124_v16, %v10023_v61  ;;  %1738 = vadd.xlane.f32.xlu1 %v10021_v41 }
 0x74c   :  { %v10027_v2 = vadd.f32 %v7125_v5, %v1690_v6 }
 0x74d   :  { %v10029_v46 = vpop.trf.xlu0 }
 0x74e   :  { %v1691_v13 = vmul.f32 %v7124_v16, %v10029_v46  ;;  %1740 = vadd.xlane.f32.xlu1 %v10027_v2 }
 0x750   :  { %v10033_v18 = vadd.f32 %v7125_v5, %v1691_v13 }
 0x751   :  { %v10035_v52 = vpop.trf.xlu0 }
 0x752   :  { %v1692_v62 = vmul.f32 %v7124_v16, %v10035_v52  ;;  %1742 = vadd.xlane.f32.xlu1 %v10033_v18 }
 0x754   :  { %v10039_v42 = vadd.f32 %v7125_v5, %v1692_v62 }
 0x755   :  { %v10041_v14 = vpop.trf.xlu0 }
 0x756   :  { %v1693_v15 = vmul.f32 %v7124_v16, %v10041_v14  ;;  %1744 = vadd.xlane.f32.xlu1 %v10039_v42 }
 0x758   :  { %v10045_v25 = vadd.f32 %v7125_v5, %v1693_v15  ;;  %v1950_v15 = vld [vmem:[#allocation2 + $0x40] sm:$0xff] }
 0x759   :  { %v10047_v47 = vpop.trf.xlu0 }
 0x75a   :  { %v1694_v54 = vmul.f32 %v7124_v16, %v10047_v47  ;;  %1746 = vadd.xlane.f32.xlu1 %v10045_v25 }
 0x75c   :  { %v10051_v55 = vadd.f32 %v7125_v5, %v1694_v54 }
 0x75d   :  { %v10053_v56 = vpop.trf.xlu0 }
 0x75e   :  { %v1695_v59 = vmul.f32 %v7124_v16, %v10053_v56  ;;  %1748 = vadd.xlane.f32.xlu1 %v10051_v55 }
 0x760   :  { %v10057_v57 = vadd.f32 %v7125_v5, %v1695_v59 }
 0x761   :  { %v10059_v50 = vpop.trf.xlu0 }
 0x762   :  { %v1696_v32 = vmul.f32 %v7124_v16, %v10059_v50  ;;  %1750 = vadd.xlane.f32.xlu1 %v10057_v57 }
 0x764   :  { %v10063_v53 = vadd.f32 %v7125_v5, %v1696_v32 }
 0x766   :  { %1752 = vadd.xlane.f32.xlu0 %v10063_v53 }
 0x7b3   :  { %v1723_v63 = vpop.xlane.xlu1 %1722 }
 0x7b4   :  { %v1754_v37 = vmul.f32 0.0078125, %v1723_v63 }
 0x7b6   :  { %v10067_v35 = vsub.f32 %v9973_v45, %v1754_v37 }
 0x7b7   :  { %v1725_v26 = vpop.xlane.xlu1 %1724 }
 0x7b8   :  { %v1755_v8 = vmul.f32 0.0078125, %v1725_v26  ;;  %v1786_v58 = vmul.f32 %v10067_v35, %v10067_v35 }
 0x7ba   :  { %v10072_v22 = vsub.f32 %v9979_v38, %v1755_v8  ;;  %1802 = vadd.xlane.f32.xlu1 %v1786_v58  ;;  %v1946_v58 = vld [vmem:[#allocation2 + $0x20] sm:$0xff] }
 0x7bb   :  { %v1727_v9 = vpop.xlane.xlu1 %1726 }
 0x7bc   :  { %v1756_v27 = vmul.f32 0.0078125, %v1727_v9  ;;  %v1787_v30 = vmul.f32 %v10072_v22, %v10072_v22 }
 0x7be   :  { %v10077_v44 = vsub.f32 %v9985_v10, %v1756_v27  ;;  %1804 = vadd.xlane.f32.xlu1 %v1787_v30  ;;  %v1954_v10 = vld [vmem:[#allocation2 + $0x60] sm:$0xff] }
 0x7bf   :  { %v1729_v7 = vpop.xlane.xlu1 %1728  ;;  %7858 = vmatprep.subr.mxu1 %v1954_v10 }
 0x7c0   :  { %v1757_v16 = vmul.f32 0.0078125, %v1729_v7  ;;  %v1788_v5 = vmul.f32 %v10077_v44, %v10077_v44  ;;  %7859 = vmatpush3.msra.mxu1 %v1954_v10 }
 0x7c1   :  { %7860 = vmatprep.subr.mxu1 %v1953_v0 }
 0x7c2   :  { %v10082_v43 = vsub.f32 %v9991_v19, %v1757_v16  ;;  %1806 = vadd.xlane.f32.xlu1 %v1788_v5  ;;  %7861 = vmatpush3.msra.mxu1 %v1953_v0  ;;  %v1944_v16 = vld [vmem:[#allocation2 + $0x10] sm:$0xff] }
 0x7c3   :  { %v1731_v45 = vpop.xlane.xlu1 %1730  ;;  %7862 = vmatprep.subr.mxu1 %v1952_v29 }
 0x7c4   :  { %v1758_v38 = vmul.f32 0.0078125, %v1731_v45  ;;  %v1789_v23 = vmul.f32 %v10082_v43, %v10082_v43  ;;  %7863 = vmatpush3.msra.mxu1 %v1952_v29 }
 0x7c6   :  { %v10087_v28 = vsub.f32 %v9997_v24, %v1758_v38  ;;  %1808 = vadd.xlane.f32.xlu1 %v1789_v23  ;;  %v1951_v24 = vld [vmem:[#allocation2 + $0x48] sm:$0xff]  ;;  %v1942_v23 = vld [vmem:[#allocation2] sm:$0xff] }
 0x7c7   :  { %v1733_v49 = vpop.xlane.xlu1 %1732  ;;  %7864 = vmatprep.subr.mxu1 %v1951_v24 }
 0x7c8   :  { %v1759_v19 = vmul.f32 0.0078125, %v1733_v49  ;;  %v1790_v3 = vmul.f32 %v10087_v28, %v10087_v28  ;;  %7865 = vmatpush3.msra.mxu1 %v1951_v24 }
 0x7c9   :  { %7866 = vmatprep.subr.mxu1 %v1950_v15 }
 0x7ca   :  { %v10092_v12 = vsub.f32 %v10003_v33, %v1759_v19  ;;  %1810 = vadd.xlane.f32.xlu1 %v1790_v3  ;;  %7867 = vmatpush3.msra.mxu1 %v1950_v15  ;;  %v1949_v33 = vld [vmem:[#allocation2 + $0x38] sm:$0xff] }
 0x7cb   :  { %v1735_v6 = vpop.xlane.xlu1 %1734  ;;  %7868 = vmatprep.subr.mxu1 %v1949_v33 }
 0x7cc   :  { %v1760_v13 = vmul.f32 0.0078125, %v1735_v6  ;;  %v1791_v62 = vmul.f32 %v10092_v12, %v10092_v12  ;;  %7869 = vmatpush3.msra.mxu1 %v1949_v33 }
 0x7cd   :  { %7870 = vmatprep.subr.mxu1 %v1948_v1 }
 0x7ce   :  { %v10097_v54 = vsub.f32 %v10009_v36, %v1760_v13  ;;  %1812 = vadd.xlane.f32.xlu1 %v1791_v62  ;;  %7871 = vmatpush3.msra.mxu1 %v1948_v1  ;;  %v1947_v36 = vld [vmem:[#allocation2 + $0x28] sm:$0xff] }
 0x7cf   :  { %v1737_v59 = vpop.xlane.xlu1 %1736  ;;  %7872 = vmatprep.subr.mxu1 %v1947_v36 }
 0x7d0   :  { %v1761_v32 = vmul.f32 0.0078125, %v1737_v59  ;;  %v1792_v21 = vmul.f32 %v10097_v54, %v10097_v54  ;;  %7873 = vmatpush3.msra.mxu1 %v1947_v36 }
 0x7d1   :  { %7874 = vmatprep.subr.mxu1 %v1946_v58 }
 0x7d2   :  { %v10102_v63 = vsub.f32 %v10015_v34, %v1761_v32  ;;  %1814 = vadd.xlane.f32.xlu1 %v1792_v21  ;;  %7875 = vmatpush3.msra.mxu1 %v1946_v58  ;;  %v1945_v34 = vld [vmem:[#allocation2 + $0x18] sm:$0xff] }
 0x7d3   :  { %v1739_v37 = vpop.xlane.xlu1 %1738  ;;  %7876 = vmatprep.subr.mxu1 %v1945_v34 }
 0x7d4   :  { %v1762_v26 = vmul.f32 0.0078125, %v1739_v37  ;;  %v1793_v8 = vmul.f32 %v10102_v63, %v10102_v63  ;;  %7877 = vmatpush3.msra.mxu1 %v1945_v34 }
 0x7d5   :  { %7878 = vmatprep.subr.mxu1 %v1944_v16 }
 0x7d6   :  { %v10107_v9 = vsub.f32 %v10021_v41, %v1762_v26  ;;  %1816 = vadd.xlane.f32.xlu1 %v1793_v8  ;;  %7879 = vmatpush3.msra.mxu1 %v1944_v16  ;;  %v1943_v41 = vld [vmem:[#allocation2 + $0x8] sm:$0xff] }
 0x7d7   :  { %v1741_v27 = vpop.xlane.xlu1 %1740  ;;  %7880 = vmatprep.subr.mxu1 %v1943_v41 }
 0x7d8   :  { %v1763_v30 = vmul.f32 0.0078125, %v1741_v27  ;;  %v1794_v7 = vmul.f32 %v10107_v9, %v10107_v9  ;;  %7881 = vmatpush3.msra.mxu1 %v1943_v41 }
 0x7d9   :  { %7882 = vmatprep.subr.mxu1 %v1942_v23 }
 0x7da   :  { %v10112_v5 = vsub.f32 %v10027_v2, %v1763_v30  ;;  %1818 = vadd.xlane.f32.xlu1 %v1794_v7  ;;  %7883 = vmatpush3.msra.mxu1 %v1942_v23  ;;  %v10147_v23 = vld [vmem:[%s12989_s17] ss:$0 sm:$0xff] }
 0x7db   :  { %v1743_v45 = vpop.xlane.xlu1 %1742 }
 0x7dc   :  { %v1764_v51 = vmul.f32 0.0078125, %v1743_v45  ;;  %v1795_v38 = vmul.f32 %v10112_v5, %v10112_v5 }
 0x7de   :  { %v10117_v10 = vsub.f32 %v10033_v18, %v1764_v51  ;;  %1820 = vadd.xlane.f32.xlu1 %v1795_v38 }
 0x7df   :  { %v1745_v49 = vpop.xlane.xlu1 %1744 }
 0x7e0   :  { %v1765_v2 = vmul.f32 0.0078125, %v1745_v49  ;;  %v1796_v0 = vmul.f32 %v10117_v10, %v10117_v10 }
 0x7e2   :  { %v10122_v19 = vsub.f32 %v10039_v42, %v1765_v2  ;;  %1822 = vadd.xlane.f32.xlu1 %v1796_v0 }
 0x7e3   :  { %v1747_v3 = vpop.xlane.xlu1 %1746 }
 0x7e4   :  { %v1766_v29 = vmul.f32 0.0078125, %v1747_v3  ;;  %v1797_v6 = vmul.f32 %v10122_v19, %v10122_v19  ;;  %v10151_v3 = vld [vmem:[%s12990_s21] ss:$0 sm:$0xff] }
 0x7e6   :  { %v10127_v18 = vsub.f32 %v10045_v25, %v1766_v29  ;;  %1824 = vadd.xlane.f32.xlu0 %v1797_v6 }
 0x7e7   :  { %v1749_v24 = vpop.xlane.xlu1 %1748 }
 0x7e8   :  { %v1767_v13 = vmul.f32 0.0078125, %v1749_v24  ;;  %v1798_v62 = vmul.f32 %v10127_v18, %v10127_v18 }
 0x7ea   :  { %v10132_v15 = vsub.f32 %v10051_v55, %v1767_v13  ;;  %1826 = vadd.xlane.f32.xlu1 %v1798_v62 }
 0x7eb   :  { %v1751_v42 = vpop.xlane.xlu1 %1750 }
 0x7ec   :  { %v1768_v59 = vmul.f32 0.0078125, %v1751_v42  ;;  %v1799_v33 = vmul.f32 %v10132_v15, %v10132_v15 }
 0x7ee   :  { %v10137_v32 = vsub.f32 %v10057_v57, %v1768_v59  ;;  %1828 = vadd.xlane.f32.xlu0 %v1799_v33 }
 0x7ef   :  { %v1753_v25 = vpop.xlane.xlu0 %1752 }
 0x7f0   :  { %v1769_v21 = vmul.f32 0.0078125, %v1753_v25  ;;  %v1800_v1 = vmul.f32 %v10137_v32, %v10137_v32 }
 0x7f2   :  { %v10142_v37 = vsub.f32 %v10063_v53, %v1769_v21  ;;  %1830 = vadd.xlane.f32.xlu1 %v1800_v1 }
 0x7f4   :  { %v1801_v55 = vmul.f32 %v10142_v37, %v10142_v37 }
 0x7f6   :  { %1832 = vadd.xlane.f32.xlu0 %v1801_v55 }
 0x843   :  { %v1803_v36 = vpop.xlane.xlu1 %1802 }
 0x844   :  { %v1834_v26 = vmul.f32 0.0078125, %v1803_v36 }
 0x846   :  { %v1850_v8 = vadd.f32 1e-05, %v1834_v26 }
 0x847   :  { %v1805_v58 = vpop.xlane.xlu1 %1804 }
 0x848   :  { %8728 = vrsqrt.f32 %v1850_v8  ;;  %v1835_v57 = vmul.f32 0.0078125, %v1805_v58 }
 0x84a   :  { %v1851_v27 = vadd.f32 1e-05, %v1835_v57 }
 0x84b   :  { %v1807_v34 = vpop.xlane.xlu1 %1806 }
 0x84c   :  { %8730 = vrsqrt.f32 %v1851_v27  ;;  %v1836_v30 = vmul.f32 0.0078125, %v1807_v34 }
 0x84e   :  { %v1852_v7 = vadd.f32 1e-05, %v1836_v30 }
 0x84f   :  { %v1809_v53 = vpop.xlane.xlu1 %1808 }
 0x850   :  { %8732 = vrsqrt.f32 %v1852_v7  ;;  %v1837_v16 = vmul.f32 0.0078125, %v1809_v53 }
 0x852   :  { %v1853_v45 = vadd.f32 1e-05, %v1837_v16 }
 0x853   :  { %v1811_v41 = vpop.xlane.xlu1 %1810 }
 0x854   :  { %8734 = vrsqrt.f32 %v1853_v45  ;;  %v1838_v51 = vmul.f32 0.0078125, %v1811_v41 }
 0x855   :  { %v8729_v38 = vpop.eup %8728 }
 0x856   :  { %v1854_v49 = vadd.f32 1e-05, %v1838_v51  ;;  %v1882_v2 = vmul.f32 %v8729_v38, %v10067_v35 }
 0x857   :  { %v1813_v0 = vpop.xlane.xlu1 %1812 }
 0x858   :  { %8736 = vrsqrt.f32 %v1854_v49  ;;  %v1839_v29 = vmul.f32 0.0078125, %v1813_v0  ;;  %v1904_v6 = vmul.f32 %v10147_v23, %v1882_v2 }
 0x859   :  { %v8731_v24 = vpop.eup %8730 }
 0x85a   :  { %v1855_v13 = vadd.f32 1e-05, %v1839_v29  ;;  %v1926_v62 = vadd.f32 %v10151_v3, %v1904_v6  ;;  %v1883_v42 = vmul.f32 %v8731_v24, %v10072_v22 }
 0x85b   :  { %v1815_v59 = vpop.xlane.xlu1 %1814 }
 0x85c   :  { %8738 = vrsqrt.f32 %v1855_v13  ;;  %v1840_v33 = vmul.f32 0.0078125, %v1815_v59  ;;  %7884 = vmatprep.mubr.f32.mxu1 %v1926_v62  ;;  %v1905_v25 = vmul.f32 %v10147_v23, %v1883_v42 }
 0x85d   :  { %v8733_v35 = vpop.eup %8732 }
 0x85e   :  { %v1856_v21 = vadd.f32 1e-05, %v1840_v33  ;;  %v1927_v1 = vadd.f32 %v10151_v3, %v1905_v25  ;;  %v1884_v55 = vmul.f32 %v8733_v35, %v10077_v44 }
 0x85f   :  { %v1817_v36 = vpop.xlane.xlu1 %1816 }
 0x860   :  { %8740 = vrsqrt.f32 %v1856_v21  ;;  %v1841_v26 = vmul.f32 0.0078125, %v1817_v36  ;;  %7885 = vmatmul.mubr.f32.vlgmr.msra.gmra.mxu1 %v1927_v1  ;;  %v1906_v8 = vmul.f32 %v10147_v23, %v1884_v55 }
 0x861   :  { %v8735_v58 = vpop.eup %8734 }
 0x862   :  { %v1857_v22 = vadd.f32 1e-05, %v1841_v26  ;;  %v1928_v57 = vadd.f32 %v10151_v3, %v1906_v8  ;;  %v1885_v27 = vmul.f32 %v8735_v58, %v10082_v43 }
 0x863   :  { %v1819_v34 = vpop.xlane.xlu1 %1818 }
 0x864   :  { %8742 = vrsqrt.f32 %v1857_v22  ;;  %v1842_v30 = vmul.f32 0.0078125, %v1819_v34  ;;  %7887 = vmatprep.mubr.f32.mxu1 %v1928_v57  ;;  %v1907_v7 = vmul.f32 %v10147_v23, %v1885_v27 }
 0x865   :  { %v8737_v53 = vpop.eup %8736 }
 0x866   :  { %v1858_v44 = vadd.f32 1e-05, %v1842_v30  ;;  %v1929_v16 = vadd.f32 %v10151_v3, %v1907_v7  ;;  %v1886_v45 = vmul.f32 %v8737_v53, %v10087_v28 }
 0x867   :  { %v1821_v41 = vpop.xlane.xlu1 %1820 }
 0x868   :  { %8744 = vrsqrt.f32 %v1858_v44  ;;  %v1843_v51 = vmul.f32 0.0078125, %v1821_v41  ;;  %7888 = vmatmul.mubr.f32.gmra.mxu1 %v1929_v16  ;;  %v1908_v38 = vmul.f32 %v10147_v23, %v1886_v45 }
 0x869   :  { %v8739_v49 = vpop.eup %8738 }
 0x86a   :  { %v1859_v43 = vadd.f32 1e-05, %v1843_v51  ;;  %v1930_v2 = vadd.f32 %v10151_v3, %v1908_v38  ;;  %v1887_v0 = vmul.f32 %v8739_v49, %v10092_v12 }
 0x86b   :  { %v1823_v29 = vpop.xlane.xlu1 %1822 }
 0x86c   :  { %8746 = vrsqrt.f32 %v1859_v43  ;;  %v1844_v6 = vmul.f32 0.0078125, %v1823_v29  ;;  %7890 = vmatprep.mubr.f32.mxu1 %v1930_v2  ;;  %v1909_v24 = vmul.f32 %v10147_v23, %v1887_v0 }
 0x86d   :  { %v8741_v13 = vpop.eup %8740 }
 0x86e   :  { %v1860_v28 = vadd.f32 1e-05, %v1844_v6  ;;  %v1931_v62 = vadd.f32 %v10151_v3, %v1909_v24  ;;  %v1888_v42 = vmul.f32 %v8741_v13, %v10097_v54 }
 0x86f   :  { %v1825_v59 = vpop.xlane.xlu0 %1824 }
 0x870   :  { %8748 = vrsqrt.f32 %v1860_v28  ;;  %v1845_v33 = vmul.f32 0.0078125, %v1825_v59  ;;  %7891 = vmatmul.mubr.f32.gmra.mxu1 %v1931_v62  ;;  %v1910_v25 = vmul.f32 %v10147_v23, %v1888_v42 }
 0x871   :  { %v8743_v35 = vpop.eup %8742 }
 0x872   :  { %v1861_v12 = vadd.f32 1e-05, %v1845_v33  ;;  %v1932_v21 = vadd.f32 %v10151_v3, %v1910_v25  ;;  %v1889_v1 = vmul.f32 %v8743_v35, %v10102_v63 }
 0x873   :  { %v1827_v55 = vpop.xlane.xlu1 %1826 }
 0x874   :  { %8750 = vrsqrt.f32 %v1861_v12  ;;  %v1846_v36 = vmul.f32 0.0078125, %v1827_v55  ;;  %7893 = vmatprep.mubr.f32.mxu1 %v1932_v21  ;;  %v1911_v26 = vmul.f32 %v10147_v23, %v1889_v1 }
 0x875   :  { %v8745_v8 = vpop.eup %8744 }
 0x876   :  { %v1862_v54 = vadd.f32 1e-05, %v1846_v36  ;;  %v1933_v58 = vadd.f32 %v10151_v3, %v1911_v26  ;;  %v1890_v22 = vmul.f32 %v8745_v8, %v10107_v9  ;;  %v10201_v26 = vld [vmem:[%s12991_s25] ss:$0 sm:$0xff] }
 0x877   :  { %v1829_v57 = vpop.xlane.xlu0 %1828 }
 0x878   :  { %8752 = vrsqrt.f32 %v1862_v54  ;;  %v1847_v27 = vmul.f32 0.0078125, %v1829_v57  ;;  %7894 = vmatmul.mubr.f32.gmra.mxu1 %v1933_v58  ;;  %v1912_v34 = vmul.f32 %v10147_v23, %v1890_v22 }
 0x879   :  { %v8747_v30 = vpop.eup %8746 }
 0x87a   :  { %v1863_v63 = vadd.f32 1e-05, %v1847_v27  ;;  %v1934_v7 = vadd.f32 %v10151_v3, %v1912_v34  ;;  %v1891_v53 = vmul.f32 %v8747_v30, %v10112_v5 }
 0x87b   :  { %v1831_v44 = vpop.xlane.xlu1 %1830 }
 0x87c   :  { %8754 = vrsqrt.f32 %v1863_v63  ;;  %v1848_v16 = vmul.f32 0.0078125, %v1831_v44  ;;  %7896 = vmatprep.mubr.f32.mxu1 %v1934_v7  ;;  %v1913_v45 = vmul.f32 %v10147_v23, %v1891_v53 }
 0x87d   :  { %v8749_v41 = vpop.eup %8748 }
 0x87e   :  { %v1864_v9 = vadd.f32 1e-05, %v1848_v16  ;;  %v1935_v51 = vadd.f32 %v10151_v3, %v1913_v45  ;;  %v1892_v38 = vmul.f32 %v8749_v41, %v10117_v10 }
 0x87f   :  { %v1833_v49 = vpop.xlane.xlu0 %1832 }
 0x880   :  { %8756 = vrsqrt.f32 %v1864_v9  ;;  %v1849_v43 = vmul.f32 0.0078125, %v1833_v49  ;;  %7897 = vmatmul.mubr.f32.gmra.mxu1 %v1935_v51  ;;  %v1914_v2 = vmul.f32 %v10147_v23, %v1892_v38 }
 0x881   :  { %v8751_v0 = vpop.eup %8750 }
 0x882   :  { %v1865_v5 = vadd.f32 1e-05, %v1849_v43  ;;  %v1936_v29 = vadd.f32 %v10151_v3, %v1914_v2  ;;  %v1893_v6 = vmul.f32 %v8751_v0, %v10122_v19 }
 0x884   :  { %8758 = vrsqrt.f32 %v1865_v5  ;;  %7899 = vmatprep.mubr.f32.mxu1 %v1936_v29  ;;  %v1915_v24 = vmul.f32 %v10147_v23, %v1893_v6 }
 0x885   :  { %v8753_v13 = vpop.eup %8752 }
 0x886   :  { %v1937_v28 = vadd.f32 %v10151_v3, %v1915_v24  ;;  %v1894_v10 = vmul.f32 %v8753_v13, %v10127_v18 }
 0x888   :  { %7900 = vmatmul.mubr.f32.gmra.mxu1 %v1937_v28  ;;  %v1916_v62 = vmul.f32 %v10147_v23, %v1894_v10 }
 0x889   :  { %v8755_v42 = vpop.eup %8754 }
 0x88a   :  { %v1938_v59 = vadd.f32 %v10151_v3, %v1916_v62  ;;  %v1895_v33 = vmul.f32 %v8755_v42, %v10132_v15 }
 0x88c   :  { %7902 = vmatprep.mubr.f32.mxu1 %v1938_v59  ;;  %v1917_v19 = vmul.f32 %v10147_v23, %v1895_v33 }
 0x88d   :  { %v8757_v25 = vpop.eup %8756 }
 0x88e   :  { %v1939_v35 = vadd.f32 %v10151_v3, %v1917_v19  ;;  %v1896_v12 = vmul.f32 %v8757_v25, %v10137_v32 }
 0x890   :  { %7903 = vmatmul.mubr.f32.gmra.mxu1 %v1939_v35  ;;  %v1918_v18 = vmul.f32 %v10147_v23, %v1896_v12 }
 0x891   :  { %v8759_v21 = vpop.eup %8758 }
 0x892   :  { %v1940_v1 = vadd.f32 %v10151_v3, %v1918_v18  ;;  %v1897_v55 = vmul.f32 %v8759_v21, %v10142_v37 }
 0x894   :  { %7905 = vmatprep.mubr.f32.mxu1 %v1940_v1  ;;  %v1919_v36 = vmul.f32 %v10147_v23, %v1897_v55 }
 0x896   :  { %v1941_v15 = vadd.f32 %v10151_v3, %v1919_v36 }
 0x898   :  { %7906 = vmatmul.mubr.f32.gmra.mxu1 %v1941_v15 }
 0x920   :  { %v7886_v8 = vpop.f32.mrf.mxu1 }
 0x921   :  { %v2037_v54 = vadd.f32 %v7886_v8, %v10201_v26 }
 0x922   :  { %v2031_v32 = vpop.f32.mrf.mxu1 }
 0x923   :  { %v2127_v58 = vmul.f32 0.70710677, %v2037_v54  ;;  %v2032_v22 = vadd.f32 %v10201_v26, %v2031_v32  ;;  %v2111_v16 = vmul.f32 0.5, %v2037_v54 }
 0x925   :  { %8760 = verf.f32 %v2127_v58  ;;  %v2126_v57 = vmul.f32 0.70710677, %v2032_v22  ;;  %v2110_v49 = vmul.f32 0.5, %v2032_v22 }
 0x927   :  { %8762 = verf.f32 %v2126_v57 }
 0x928   :  { %v7889_v27 = vpop.f32.mrf.mxu1 }
 0x929   :  { %v2047_v37 = vadd.f32 %v7889_v27, %v10201_v26 }
 0x92a   :  { %v2041_v34 = vpop.f32.mrf.mxu1 }
 0x92b   :  { %v2129_v23 = vmul.f32 0.70710677, %v2047_v37  ;;  %v2042_v3 = vadd.f32 %v10201_v26, %v2041_v34  ;;  %v2113_v10 = vmul.f32 0.5, %v2047_v37 }
 0x92d   :  { %8764 = verf.f32 %v2129_v23  ;;  %v2128_v30 = vmul.f32 0.70710677, %v2042_v3  ;;  %v2112_v25 = vmul.f32 0.5, %v2042_v3 }
 0x92f   :  { %8766 = verf.f32 %v2128_v30 }
 0x930   :  { %v7892_v63 = vpop.f32.mrf.mxu1 }
 0x931   :  { %v2057_v7 = vadd.f32 %v7892_v63, %v10201_v26 }
 0x932   :  { %v8761_v53 = vpop.eup %8760  ;;  %v2051_v44 = vpop.f32.mrf.mxu1 }
 0x933   :  { %v2159_v45 = vadd.f32 1.0, %v8761_v53  ;;  %v2131_v41 = vmul.f32 0.70710677, %v2057_v7  ;;  %v2052_v9 = vadd.f32 %v10201_v26, %v2051_v44  ;;  %v2115_v54 = vmul.f32 0.5, %v2057_v7 }
 0x934   :  { %v8763_v51 = vpop.eup %8762 }
 0x935   :  { %v10209_v38 = vmul.f32 %v2159_v45, %v2111_v16  ;;  %v2158_v43 = vadd.f32 1.0, %v8763_v51  ;;  %8768 = verf.f32 %v2131_v41  ;;  %v2130_v2 = vmul.f32 0.70710677, %v2052_v9 }
 0x936   :  { %v2114_v34 = vmul.f32 0.5, %v2052_v9 }
 0x937   :  { %v10211_v0 = vmul.f32 %v2158_v43, %v2110_v49  ;;  %v2191_v5 = vmul.f32 %v10209_v38, %v10209_v38  ;;  %8770 = verf.f32 %v2130_v2 }
 0x938   :  { %v7895_v29 = vpop.f32.mrf.mxu1 }
 0x939   :  { %v2067_v6 = vadd.f32 %v7895_v29, %v10201_v26  ;;  %2208 = vadd.xlane.f32.xlu0 %v2191_v5  ;;  %v2190_v24 = vmul.f32 %v10211_v0, %v10211_v0 }
 0x93a   :  { %v8765_v13 = vpop.eup %8764  ;;  %v2061_v28 = vpop.f32.mrf.mxu1 }
 0x93b   :  { %v2161_v62 = vadd.f32 1.0, %v8765_v13  ;;  %v2133_v42 = vmul.f32 0.70710677, %v2067_v6  ;;  %v2062_v59 = vadd.f32 %v10201_v26, %v2061_v28  ;;  %2206 = vadd.xlane.f32.xlu1 %v2190_v24  ;;  %v2117_v45 = vmul.f32 0.5, %v2067_v6 }
 0x93c   :  { %v8767_v33 = vpop.eup %8766 }
 0x93d   :  { %v10219_v19 = vmul.f32 %v2161_v62, %v2113_v10  ;;  %v2160_v35 = vadd.f32 1.0, %v8767_v33  ;;  %8772 = verf.f32 %v2133_v42  ;;  %v2132_v12 = vmul.f32 0.70710677, %v2062_v59 }
 0x93e   :  { %v2116_v5 = vmul.f32 0.5, %v2062_v59 }
 0x93f   :  { %v10221_v18 = vmul.f32 %v2160_v35, %v2112_v25  ;;  %v2193_v21 = vmul.f32 %v10219_v19, %v10219_v19  ;;  %8774 = verf.f32 %v2132_v12 }
 0x940   :  { %v7898_v1 = vpop.f32.mrf.mxu1 }
 0x941   :  { %v2077_v55 = vadd.f32 %v7898_v1, %v10201_v26  ;;  %2212 = vadd.xlane.f32.xlu0 %v2193_v21  ;;  %v2192_v36 = vmul.f32 %v10221_v18, %v10221_v18 }
 0x942   :  { %v8769_v15 = vpop.eup %8768  ;;  %v2071_v8 = vpop.f32.mrf.mxu1 }
 0x943   :  { %v2163_v32 = vadd.f32 1.0, %v8769_v15  ;;  %v2135_v58 = vmul.f32 0.70710677, %v2077_v55  ;;  %v2072_v22 = vadd.f32 %v10201_v26, %v2071_v8  ;;  %2210 = vadd.xlane.f32.xlu1 %v2192_v36  ;;  %v2119_v33 = vmul.f32 0.5, %v2077_v55 }
 0x944   :  { %v8771_v57 = vpop.eup %8770 }
 0x945   :  { %v10229_v27 = vmul.f32 %v2163_v32, %v2115_v54  ;;  %8776 = verf.f32 %v2135_v58  ;;  %v2134_v37 = vmul.f32 0.70710677, %v2072_v22  ;;  %v2162_v23 = vadd.f32 1.0, %v8771_v57 }
 0x946   :  { %v2118_v1 = vmul.f32 0.5, %v2072_v22 }
 0x947   :  { %8778 = verf.f32 %v2134_v37  ;;  %v2195_v3 = vmul.f32 %v10229_v27, %v10229_v27  ;;  %v10233_v30 = vmul.f32 %v2162_v23, %v2114_v34 }
 0x948   :  { %v7901_v63 = vpop.f32.mrf.mxu1 }
 0x949   :  { %v2087_v7 = vadd.f32 %v7901_v63, %v10201_v26  ;;  %2216 = vadd.xlane.f32.xlu0 %v2195_v3  ;;  %v2194_v16 = vmul.f32 %v10233_v30, %v10233_v30 }
 0x94a   :  { %v8773_v53 = vpop.eup %8772  ;;  %v2081_v44 = vpop.f32.mrf.mxu1 }
 0x94b   :  { %v2165_v41 = vadd.f32 1.0, %v8773_v53  ;;  %v2137_v51 = vmul.f32 0.70710677, %v2087_v7  ;;  %v2082_v9 = vadd.f32 %v10201_v26, %v2081_v44  ;;  %2214 = vadd.xlane.f32.xlu1 %v2194_v16  ;;  %v2121_v34 = vmul.f32 0.5, %v2087_v7 }
 0x94c   :  { %v8775_v49 = vpop.eup %8774 }
 0x94d   :  { %v10239_v43 = vmul.f32 %v2165_v41, %v2117_v45  ;;  %8780 = verf.f32 %v2137_v51  ;;  %v2136_v2 = vmul.f32 0.70710677, %v2082_v9  ;;  %v2164_v29 = vadd.f32 1.0, %v8775_v49 }
 0x94e   :  { %v2120_v44 = vmul.f32 0.5, %v2082_v9 }
 0x94f   :  { %8782 = verf.f32 %v2136_v2  ;;  %v2197_v24 = vmul.f32 %v10239_v43, %v10239_v43  ;;  %v10243_v13 = vmul.f32 %v2164_v29, %v2116_v5 }
 0x950   :  { %v7904_v28 = vpop.f32.mrf.mxu1 }
 0x951   :  { %v2097_v6 = vadd.f32 %v7904_v28, %v10201_v26  ;;  %2220 = vadd.xlane.f32.xlu0 %v2197_v24  ;;  %v2196_v42 = vmul.f32 %v10243_v13, %v10243_v13 }
 0x952   :  { %v8777_v10 = vpop.eup %8776  ;;  %v2091_v62 = vpop.f32.mrf.mxu1 }
 0x953   :  { %v2167_v25 = vadd.f32 1.0, %v8777_v10  ;;  %v2139_v35 = vmul.f32 0.70710677, %v2097_v6  ;;  %v2092_v59 = vadd.f32 %v10201_v26, %v2091_v62  ;;  %2218 = vadd.xlane.f32.xlu1 %v2196_v42 }
 0x954   :  { %v8779_v12 = vpop.eup %8778 }
 0x955   :  { %v10249_v21 = vmul.f32 %v2167_v25, %v2119_v33  ;;  %v2166_v36 = vadd.f32 1.0, %v8779_v12  ;;  %8784 = verf.f32 %v2139_v35  ;;  %v2138_v15 = vmul.f32 0.70710677, %v2092_v59 }
 0x956   :  { %v2122_v9 = vmul.f32 0.5, %v2092_v59 }
 0x957   :  { %v10251_v8 = vmul.f32 %v2166_v36, %v2118_v1  ;;  %v2199_v54 = vmul.f32 %v10249_v21, %v10249_v21  ;;  %8786 = verf.f32 %v2138_v15 }
 0x958   :  { %v7907_v32 = vpop.f32.mrf.mxu1 }
 0x959   :  { %v2107_v55 = vadd.f32 %v7907_v32, %v10201_v26  ;;  %2224 = vadd.xlane.f32.xlu0 %v2199_v54  ;;  %v2198_v58 = vmul.f32 %v10251_v8, %v10251_v8  ;;  %v2362_v54 = vld [vmem:[#allocation4 + $0x78] sm:$0xff]  ;;  %v2361_v32 = vld [vmem:[#allocation4 + $0x70] sm:$0xff] }
 0x95a   :  { %v8781_v57 = vpop.eup %8780  ;;  %v2101_v37 = vpop.f32.mrf.mxu1  ;;  %7908 = vmatprep.subr.mxu0 %v2362_v54 }
 0x95b   :  { %v2169_v22 = vadd.f32 1.0, %v8781_v57  ;;  %v2141_v23 = vmul.f32 0.70710677, %v2107_v55  ;;  %v2102_v3 = vadd.f32 %v10201_v26, %v2101_v37  ;;  %2222 = vadd.xlane.f32.xlu1 %v2198_v58  ;;  %v2123_v26 = vmul.f32 0.5, %v2097_v6  ;;  %7909 = vmatpush3.msra.mxu0 %v2362_v54  ;;  %v2359_v58 = vld [vmem:[#allocation4 + $0x60] sm:$0xff]  ;;  %v2358_v57 = vld [vmem:[#allocation4 + $0x58] sm:$0xff] }
 0x95c   :  { %v8783_v63 = vpop.eup %8782  ;;  %v2125_v33 = vmul.f32 0.5, %v2107_v55  ;;  %7910 = vmatprep.subr.mxu0 %v2361_v32  ;;  %v2360_v55 = vld [vmem:[#allocation4 + $0x68] sm:$0xff]  ;;  %v2357_v37 = vld [vmem:[#allocation4 + $0x50] sm:$0xff] }
 0x95d   :  { %v10259_v53 = vmul.f32 %v2169_v22, %v2121_v34  ;;  %v2168_v16 = vadd.f32 1.0, %v8783_v63  ;;  %8788 = verf.f32 %v2141_v23  ;;  %v2140_v45 = vmul.f32 0.70710677, %v2102_v3  ;;  %7911 = vmatpush3.msra.mxu0 %v2361_v32  ;;  %v2356_v34 = vld [vmem:[#allocation4 + $0x48] sm:$0xff]  ;;  %v2355_v22 = vld [vmem:[#allocation4 + $0x40] sm:$0xff]  ;;  %v2354_v23 = vld [vmem:[#allocation4 + $0x38] sm:$0xff] }
 0x95e   :  { %v2124_v12 = vmul.f32 0.5, %v2102_v3  ;;  %7912 = vmatprep.subr.mxu0 %v2360_v55  ;;  %v2353_v3 = vld [vmem:[#allocation4 + $0x30] sm:$0xff]  ;;  %v2352_v63 = vld [vmem:[#allocation4 + $0x28] sm:$0xff] }
 0x95f   :  { %v10261_v41 = vmul.f32 %v2168_v16, %v2120_v44  ;;  %v2201_v51 = vmul.f32 %v10259_v53, %v10259_v53  ;;  %8790 = verf.f32 %v2140_v45  ;;  %7913 = vmatpush3.msra.mxu0 %v2360_v55  ;;  %v2351_v44 = vld [vmem:[#allocation4 + $0x20] sm:$0xff]  ;;  %v2350_v16 = vld [vmem:[#allocation4 + $0x18] sm:$0xff]  ;;  %v2349_v45 = vld [vmem:[#allocation4 + $0x10] sm:$0xff] }
 0x960   :  { %7914 = vmatprep.subr.mxu0 %v2359_v58 }
 0x961   :  { %2228 = vadd.xlane.f32.xlu0 %v2201_v51  ;;  %v2200_v7 = vmul.f32 %v10261_v41, %v10261_v41  ;;  %7915 = vmatpush3.msra.mxu0 %v2359_v58  ;;  %v2348_v51 = vld [vmem:[#allocation4 + $0x8] sm:$0xff] }
 0x962   :  { %v8785_v49 = vpop.eup %8784  ;;  %7916 = vmatprep.subr.mxu0 %v2358_v57 }
 0x963   :  { %v2171_v2 = vadd.f32 1.0, %v8785_v49  ;;  %2226 = vadd.xlane.f32.xlu1 %v2200_v7  ;;  %7917 = vmatpush3.msra.mxu0 %v2358_v57  ;;  %v2347_v7 = vld [vmem:[#allocation4] sm:$0xff] }
 0x964   :  { %v8787_v5 = vpop.eup %8786  ;;  %7918 = vmatprep.subr.mxu0 %v2357_v37 }
 0x965   :  { %v10267_v29 = vmul.f32 %v2171_v2, %v2123_v26  ;;  %v2170_v24 = vadd.f32 1.0, %v8787_v5  ;;  %7919 = vmatpush3.msra.mxu0 %v2357_v37 }
 0x966   :  { %7920 = vmatprep.subr.mxu0 %v2356_v34 }
 0x967   :  { %v2203_v28 = vmul.f32 %v10267_v29, %v10267_v29  ;;  %v10271_v10 = vmul.f32 %v2170_v24, %v2122_v9  ;;  %7921 = vmatpush3.msra.mxu0 %v2356_v34 }
 0x968   :  { %7922 = vmatprep.subr.mxu0 %v2355_v22 }
 0x969   :  { %2232 = vadd.xlane.f32.xlu0 %v2203_v28  ;;  %v2202_v42 = vmul.f32 %v10271_v10, %v10271_v10  ;;  %7923 = vmatpush3.msra.mxu0 %v2355_v22 }
 0x96a   :  { %v8789_v62 = vpop.eup %8788  ;;  %7924 = vmatprep.subr.mxu0 %v2354_v23 }
 0x96b   :  { %v2173_v25 = vadd.f32 1.0, %v8789_v62  ;;  %2230 = vadd.xlane.f32.xlu1 %v2202_v42  ;;  %7925 = vmatpush3.msra.mxu0 %v2354_v23 }
 0x96c   :  { %v8791_v6 = vpop.eup %8790  ;;  %7926 = vmatprep.subr.mxu0 %v2353_v3 }
 0x96d   :  { %v10275_v35 = vmul.f32 %v2173_v25, %v2125_v33  ;;  %v2172_v1 = vadd.f32 1.0, %v8791_v6  ;;  %7927 = vmatpush3.msra.mxu0 %v2353_v3 }
 0x96e   :  { %7928 = vmatprep.subr.mxu0 %v2352_v63 }
 0x96f   :  { %v2205_v59 = vmul.f32 %v10275_v35, %v10275_v35  ;;  %v10279_v36 = vmul.f32 %v2172_v1, %v2124_v12  ;;  %7929 = vmatpush3.msra.mxu0 %v2352_v63 }
 0x970   :  { %7930 = vmatprep.subr.mxu0 %v2351_v44 }
 0x971   :  { %2236 = vadd.xlane.f32.xlu0 %v2205_v59  ;;  %v2204_v15 = vmul.f32 %v10279_v36, %v10279_v36  ;;  %7931 = vmatpush3.msra.mxu0 %v2351_v44 }
 0x972   :  { %7932 = vmatprep.subr.mxu0 %v2350_v16 }
 0x973   :  { %2234 = vadd.xlane.f32.xlu1 %v2204_v15  ;;  %7933 = vmatpush3.msra.mxu0 %v2350_v16 }
 0x974   :  { %7934 = vmatprep.subr.mxu0 %v2349_v45 }
 0x975   :  { %7935 = vmatpush3.msra.mxu0 %v2349_v45 }
 0x976   :  { %7936 = vmatprep.subr.mxu0 %v2348_v51 }
 0x977   :  { %7937 = vmatpush3.msra.mxu0 %v2348_v51 }
 0x978   :  { %7938 = vmatprep.subr.mxu0 %v2347_v7 }
 0x979   :  { %7939 = vmatpush3.msra.mxu0 %v2347_v7 }
 0x9c2   :  { %v2209_v26 = vpop.xlane.xlu0 %2208 }
 0x9c4   :  { %v2207_v49 = vpop.xlane.xlu1 %2206 }
 0x9c5   :  { %v2238_v5 = vadd.f32 %v2209_v26, %v2207_v49 }
 0x9ca   :  { %v2213_v24 = vpop.xlane.xlu0 %2212 }
 0x9cc   :  { %v2211_v2 = vpop.xlane.xlu1 %2210 }
 0x9cd   :  { %v2239_v9 = vadd.f32 %v2238_v5, %v2211_v2 }
 0x9cf   :  { %v2240_v62 = vadd.f32 %v2239_v9, %v2213_v24 }
 0x9d2   :  { %v2217_v33 = vpop.xlane.xlu0 %2216 }
 0x9d4   :  { %v2215_v28 = vpop.xlane.xlu1 %2214 }
 0x9d5   :  { %v2241_v42 = vadd.f32 %v2240_v62, %v2215_v28 }
 0x9d7   :  { %v2242_v6 = vadd.f32 %v2241_v42, %v2217_v33 }
 0x9da   :  { %v2221_v1 = vpop.xlane.xlu0 %2220 }
 0x9dc   :  { %v2219_v25 = vpop.xlane.xlu1 %2218 }
 0x9dd   :  { %v2243_v12 = vadd.f32 %v2242_v6, %v2219_v25 }
 0x9df   :  { %v2244_v15 = vadd.f32 %v2243_v12, %v2221_v1  ;;  %v10286_v1 = vld [vmem:[%s12992_s29] ss:$0 sm:$0xff] }
 0x9e2   :  { %v2225_v32 = vpop.xlane.xlu0 %2224 }
 0x9e4   :  { %v2223_v59 = vpop.xlane.xlu1 %2222 }
 0x9e5   :  { %v2245_v54 = vadd.f32 %v2244_v15, %v2223_v59 }
 0x9e7   :  { %v2246_v58 = vadd.f32 %v2245_v54, %v2225_v32 }
 0x9ea   :  { %v2229_v37 = vpop.xlane.xlu0 %2228 }
 0x9ec   :  { %v2227_v55 = vpop.xlane.xlu1 %2226 }
 0x9ed   :  { %v2247_v57 = vadd.f32 %v2246_v58, %v2227_v55  ;;  %v10297_v55 = vld [vmem:[%s12993_s3] ss:$0 sm:$0xff] }
 0x9ef   :  { %v2248_v22 = vadd.f32 %v2247_v57, %v2229_v37 }
 0x9f2   :  { %v2233_v3 = vpop.xlane.xlu0 %2232 }
 0x9f4   :  { %v2231_v34 = vpop.xlane.xlu1 %2230 }
 0x9f5   :  { %v2249_v23 = vadd.f32 %v2248_v22, %v2231_v34 }
 0x9f7   :  { %v2250_v63 = vadd.f32 %v2249_v23, %v2233_v3 }
 0x9fa   :  { %v2237_v45 = vpop.xlane.xlu0 %2236 }
 0x9fc   :  { %v2235_v44 = vpop.xlane.xlu1 %2234 }
 0x9fd   :  { %v2251_v16 = vadd.f32 %v2250_v63, %v2235_v44 }
 0x9ff   :  { %v2252_v51 = vadd.f32 %v2251_v16, %v2237_v45 }
 0xa01   :  { %v2253_v7 = vrot.slane %v2252_v51, 4 }
 0xa03   :  { %v2254_v49 = vadd.f32 %v2253_v7, %v2252_v51 }
 0xa05   :  { %v2255_v26 = vrot.slane %v2254_v49, 2 }
 0xa07   :  { %v2256_v2 = vadd.f32 %v2255_v26, %v2254_v49 }
 0xa09   :  { %v2257_v5 = vrot.slane %v2256_v2, 1 }
 0xa0b   :  { %v2258_v9 = vadd.f32 %v2257_v5, %v2256_v2 }
 0xa0d   :  { %8792 = vrsqrt.f32 %v2258_v9  ;;  %vm2261_vm2 = vcmp.eq.f32.partialorder %v2258_v9, inf  ;;  %v2264_v62 = vand.u32 2147483648, %v2258_v9  ;;  %vm2263_vm3 = vcmp.eq.f32.partialorder %v2258_v9, 0.0 }
 0xa1a   :  { %v8793_v24 = vpop.eup %8792 }
 0xa1b   :  { %v2260_v28 = vmul.f32 %v8793_v24, %v2258_v9 }
 0xa1d   :  { %v2262_v42 = vsel %vm2261_vm2, %v2258_v9, %v2260_v28 }
 0xa1e   :  { %v2265_v33 = vsel %vm2263_vm3, %v2264_v62, %v2262_v42 }
 0xa1f   :  { %v2266_v25 = vadd.f32 1e-06, %v2265_v33 }
 0xa21   :  { %8794 = vrcp.f32 %v2266_v25 }
 0xa2e   :  { %v8795_v6 = vpop.eup %8794 }
 0xa2f   :  { %v10283_v12 = vmul.f32 %v8795_v6, %v2265_v33 }
 0xa31   :  { %v2270_v59 = vmul.f32 %v10283_v12, %v10211_v0  ;;  %v2271_v15 = vmul.f32 %v10283_v12, %v10209_v38  ;;  %v2272_v54 = vmul.f32 %v10283_v12, %v10221_v18  ;;  %v2273_v32 = vmul.f32 %v10283_v12, %v10219_v19 }
 0xa32   :  { %v2274_v58 = vmul.f32 %v10283_v12, %v10233_v30  ;;  %v2275_v23 = vmul.f32 %v10283_v12, %v10229_v27  ;;  %v2276_v3 = vmul.f32 %v10283_v12, %v10243_v13  ;;  %v2277_v2 = vmul.f32 %v10283_v12, %v10239_v43 }
 0xa33   :  { %v2292_v57 = vmul.f32 %v10286_v1, %v2270_v59  ;;  %v2293_v37 = vmul.f32 %v10286_v1, %v2271_v15  ;;  %v2294_v34 = vmul.f32 %v10286_v1, %v2272_v54  ;;  %v2295_v22 = vmul.f32 %v10286_v1, %v2273_v32 }
 0xa34   :  { %v2296_v45 = vmul.f32 %v10286_v1, %v2274_v58  ;;  %v2297_v26 = vmul.f32 %v10286_v1, %v2275_v23  ;;  %v2298_v24 = vmul.f32 %v10286_v1, %v2276_v3  ;;  %v2278_v28 = vmul.f32 %v10283_v12, %v10251_v8 }
 0xa35   :  { %v2315_v63 = vadd.f32 %v10297_v55, %v2292_v57  ;;  %v2316_v44 = vadd.f32 %v10297_v55, %v2293_v37  ;;  %v2317_v16 = vadd.f32 %v10297_v55, %v2294_v34  ;;  %v2318_v49 = vadd.f32 %v10297_v55, %v2295_v22 }
 0xa36   :  { %v2319_v9 = vadd.f32 %v10297_v55, %v2296_v45  ;;  %v2299_v62 = vmul.f32 %v10286_v1, %v2277_v2  ;;  %v2279_v42 = vmul.f32 %v10283_v12, %v10249_v21  ;;  %v2321_v33 = vadd.f32 %v10297_v55, %v2298_v24  ;;  %v10372_v24 = vld [vmem:[%s12994_s8] ss:$0 sm:$0xff] }
 0xa37   :  { %v2331_v51 = vadd.f32 %v2315_v63, %v10211_v0  ;;  %v2332_v7 = vadd.f32 %v2316_v44, %v10209_v38  ;;  %v2333_v5 = vadd.f32 %v2317_v16, %v10221_v18  ;;  %v2334_v38 = vadd.f32 %v2318_v49, %v10219_v19 }
 0xa38   :  { %v2320_v0 = vadd.f32 %v10297_v55, %v2297_v26  ;;  %v2335_v18 = vadd.f32 %v2319_v9, %v10233_v30  ;;  %v2300_v25 = vmul.f32 %v10286_v1, %v2278_v28  ;;  %v2280_v6 = vmul.f32 %v10283_v12, %v10261_v41  ;;  %v10376_v28 = vld [vmem:[%s12987_s9 + $0x1] ss:$0 sm:$0xff] }
 0xa39   :  { %7940 = vmatprep.mubr.f32.mxu0 %v2331_v51  ;;  %v2322_v59 = vadd.f32 %v10297_v55, %v2299_v62  ;;  %v2301_v15 = vmul.f32 %v10286_v1, %v2279_v42  ;;  %v2281_v54 = vmul.f32 %v10283_v12, %v10259_v53  ;;  %v2337_v30 = vadd.f32 %v2321_v33, %v10243_v13 }
 0xa3a   :  { %7941 = vmatmul.mubr.f32.vlgmr.msra.gmra.mxu0 %v2332_v7  ;;  %v2336_v19 = vadd.f32 %v2320_v0, %v10229_v27  ;;  %v2323_v32 = vadd.f32 %v10297_v55, %v2300_v25  ;;  %v2302_v58 = vmul.f32 %v10286_v1, %v2280_v6  ;;  %v2282_v57 = vmul.f32 %v10283_v12, %v10271_v10 }
 0xa3b   :  { %7943 = vmatprep.mubr.f32.mxu0 %v2333_v5  ;;  %v2338_v27 = vadd.f32 %v2322_v59, %v10239_v43  ;;  %v2324_v37 = vadd.f32 %v10297_v55, %v2301_v15  ;;  %v2303_v34 = vmul.f32 %v10286_v1, %v2281_v54  ;;  %v2283_v22 = vmul.f32 %v10283_v12, %v10267_v29 }
 0xa3c   :  { %v2339_v13 = vadd.f32 %v2323_v32, %v10251_v8  ;;  %v2325_v23 = vadd.f32 %v10297_v55, %v2302_v58  ;;  %v2304_v3 = vmul.f32 %v10286_v1, %v2282_v57  ;;  %v2284_v63 = vmul.f32 %v10283_v12, %v10279_v36 }
 0xa3d   :  { %v2340_v43 = vadd.f32 %v2324_v37, %v10249_v21  ;;  %v2326_v44 = vadd.f32 %v10297_v55, %v2303_v34  ;;  %v2305_v16 = vmul.f32 %v10286_v1, %v2283_v22  ;;  %v2285_v45 = vmul.f32 %v10283_v12, %v10275_v35 }
 0xa3e   :  { %7944 = vmatmul.mubr.f32.gmra.mxu0 %v2334_v38  ;;  %v2341_v8 = vadd.f32 %v2325_v23, %v10261_v41  ;;  %v2327_v51 = vadd.f32 %v10297_v55, %v2304_v3  ;;  %v2306_v7 = vmul.f32 %v10286_v1, %v2284_v63 }
 0xa3f   :  { %7946 = vmatprep.mubr.f32.mxu0 %v2335_v18  ;;  %v2342_v49 = vadd.f32 %v2326_v44, %v10259_v53  ;;  %v2328_v21 = vadd.f32 %v10297_v55, %v2305_v16  ;;  %v2307_v26 = vmul.f32 %v10286_v1, %v2285_v45 }
 0xa40   :  { %v2343_v2 = vadd.f32 %v2327_v51, %v10271_v10  ;;  %v2329_v12 = vadd.f32 %v10297_v55, %v2306_v7 }
 0xa41   :  { %v2344_v41 = vadd.f32 %v2328_v21, %v10267_v29  ;;  %v2330_v5 = vadd.f32 %v10297_v55, %v2307_v26 }
 0xa42   :  { %7947 = vmatmul.mubr.f32.gmra.mxu0 %v2336_v19  ;;  %v2345_v9 = vadd.f32 %v2329_v12, %v10279_v36  ;;  %v10383_v36 = vld [vmem:[%s12988_s13 + $0x1] ss:$0 sm:$0xff] }
 0xa43   :  { %7949 = vmatprep.mubr.f32.mxu0 %v2337_v30  ;;  %v2346_v53 = vadd.f32 %v2330_v5, %v10275_v35 }
 0xa46   :  { %7950 = vmatmul.mubr.f32.gmra.mxu0 %v2338_v27 }
 0xa47   :  { %7952 = vmatprep.mubr.f32.mxu0 %v2339_v13 }
 0xa4a   :  { %7953 = vmatmul.mubr.f32.gmra.mxu0 %v2340_v43 }
 0xa4b   :  { %7955 = vmatprep.mubr.f32.mxu0 %v2341_v8 }
 0xa4e   :  { %7956 = vmatmul.mubr.f32.gmra.mxu0 %v2342_v49 }
 0xa4f   :  { %7958 = vmatprep.mubr.f32.mxu0 %v2343_v2 }
 0xa52   :  { %7959 = vmatmul.mubr.f32.gmra.mxu0 %v2344_v41 }
 0xa53   :  { %7961 = vmatprep.mubr.f32.mxu0 %v2345_v9 }
 0xa56   :  { %7962 = vmatmul.mubr.f32.gmra.mxu0 %v2346_v53 }
 0xafa   :  { %v7942_v1 = vpop.f32.mrf.mxu0 }
 0xafb   :  { %v2442_v10 = vadd.f32 %v7942_v1, %v10372_v24 }
 0xafc   :  { %v2436_v38 = vpop.f32.mrf.mxu0 }
 0xafd   :  { %v10379_v0 = vadd.f32 %v2442_v10, %v9975_v48  ;;  %v2437_v29 = vadd.f32 %v10372_v24, %v2436_v38 }
 0xafe   :  { %v7945_v55 = vpop.f32.mrf.mxu0 }
 0xaff   :  { %v2540_v35 = vmul.f32 %v10376_v28, %v10379_v0  ;;  %v10388_v62 = vadd.f32 %v2437_v29, %v9969_v40  ;;  %v2452_v42 = vadd.f32 %v7945_v55, %v10372_v24 }
 0xb00   :  { %v2446_v18 = vpop.f32.mrf.mxu0 }
 0xb01   :  { %v2539_v33 = vmul.f32 %v10376_v28, %v10388_v62  ;;  %v10394_v48 = vadd.f32 %v2452_v42, %v9987_v11  ;;  %v2447_v25 = vadd.f32 %v10372_v24, %v2446_v18  ;;  %v10398_v6 = vadd.f32 %v10383_v36, %v2540_v35 }
 0xb02   :  { %v7948_v19 = vpop.f32.mrf.mxu0 }
 0xb03   :  { %v2542_v59 = vmul.f32 %v10376_v28, %v10394_v48  ;;  %v10403_v40 = vadd.f32 %v2447_v25, %v9981_v20  ;;  %v2462_v15 = vadd.f32 %v7948_v19, %v10372_v24  ;;  %2585 = vadd.xlane.f32.xlu0 %v10398_v6  ;;  %v10408_v54 = vadd.f32 %v10383_v36, %v2539_v33 }
 0xb04   :  { %v2456_v11 = vpop.f32.mrf.mxu0 }
 0xb05   :  { %v2541_v30 = vmul.f32 %v10376_v28, %v10403_v40  ;;  %v10413_v32 = vadd.f32 %v2462_v15, %v9999_v17  ;;  %v2457_v58 = vadd.f32 %v10372_v24, %v2456_v11  ;;  %2583 = vadd.xlane.f32.xlu1 %v10408_v54  ;;  %v10418_v20 = vadd.f32 %v10383_v36, %v2542_v59 }
 0xb06   :  { %v7951_v57 = vpop.f32.mrf.mxu0 }
 0xb07   :  { %v2544_v27 = vmul.f32 %v10376_v28, %v10413_v32  ;;  %v10423_v37 = vadd.f32 %v2457_v58, %v9993_v31  ;;  %v2472_v34 = vadd.f32 %v7951_v57, %v10372_v24  ;;  %2589 = vadd.xlane.f32.xlu0 %v10418_v20  ;;  %v10428_v17 = vadd.f32 %v10383_v36, %v2541_v30 }
 0xb08   :  { %v2466_v22 = vpop.f32.mrf.mxu0 }
 0xb09   :  { %v2543_v13 = vmul.f32 %v10376_v28, %v10423_v37  ;;  %v10433_v23 = vadd.f32 %v2472_v34, %v10011_v60  ;;  %v2467_v3 = vadd.f32 %v10372_v24, %v2466_v22  ;;  %2587 = vadd.xlane.f32.xlu1 %v10428_v17  ;;  %v10438_v31 = vadd.f32 %v10383_v36, %v2544_v27  ;;  %v2818_v22 = vld [vmem:[#allocation2 + $0xf0] sm:$0xff] }
 0xb0a   :  { %v7954_v63 = vpop.f32.mrf.mxu0 }
 0xb0b   :  { %v2546_v43 = vmul.f32 %v10376_v28, %v10433_v23  ;;  %v10443_v44 = vadd.f32 %v2467_v3, %v10005_v4  ;;  %v2482_v16 = vadd.f32 %v7954_v63, %v10372_v24  ;;  %2593 = vadd.xlane.f32.xlu0 %v10438_v31  ;;  %v10448_v60 = vadd.f32 %v10383_v36, %v2543_v13  ;;  %v2817_v13 = vld [vmem:[#allocation2 + $0xe8] sm:$0xff] }
 0xb0c   :  { %v2476_v45 = vpop.f32.mrf.mxu0 }
 0xb0d   :  { %v2545_v8 = vmul.f32 %v10376_v28, %v10443_v44  ;;  %v10453_v51 = vadd.f32 %v2482_v16, %v10023_v61  ;;  %v2477_v7 = vadd.f32 %v10372_v24, %v2476_v45  ;;  %2591 = vadd.xlane.f32.xlu1 %v10448_v60  ;;  %v10458_v4 = vadd.f32 %v10383_v36, %v2546_v43 }
 0xb0e   :  { %v7957_v49 = vpop.f32.mrf.mxu0 }
 0xb0f   :  { %v2548_v21 = vmul.f32 %v10376_v28, %v10453_v51  ;;  %v10463_v26 = vadd.f32 %v2477_v7, %v10017_v39  ;;  %v2492_v2 = vadd.f32 %v7957_v49, %v10372_v24  ;;  %2597 = vadd.xlane.f32.xlu0 %v10458_v4  ;;  %v10468_v61 = vadd.f32 %v10383_v36, %v2545_v8 }
 0xb10   :  { %v2486_v12 = vpop.f32.mrf.mxu0 }
 0xb11   :  { %v2547_v41 = vmul.f32 %v10376_v28, %v10463_v26  ;;  %v10473_v5 = vadd.f32 %v2492_v2, %v10035_v52  ;;  %v2487_v9 = vadd.f32 %v10372_v24, %v2486_v12  ;;  %2595 = vadd.xlane.f32.xlu1 %v10468_v61  ;;  %v10478_v39 = vadd.f32 %v10383_v36, %v2548_v21 }
 0xb12   :  { %v7960_v53 = vpop.f32.mrf.mxu0 }
 0xb13   :  { %v2550_v1 = vmul.f32 %v10376_v28, %v10473_v5  ;;  %v10483_v10 = vadd.f32 %v2487_v9, %v10029_v46  ;;  %v2502_v38 = vadd.f32 %v7960_v53, %v10372_v24  ;;  %2601 = vadd.xlane.f32.xlu0 %v10478_v39  ;;  %v10488_v52 = vadd.f32 %v10383_v36, %v2547_v41 }
 0xb14   :  { %v2496_v29 = vpop.f32.mrf.mxu0 }
 0xb15   :  { %v2549_v55 = vmul.f32 %v10376_v28, %v10483_v10  ;;  %v10493_v35 = vadd.f32 %v2502_v38, %v10047_v47  ;;  %v2497_v42 = vadd.f32 %v10372_v24, %v2496_v29  ;;  %2599 = vadd.xlane.f32.xlu1 %v10488_v52  ;;  %v10498_v46 = vadd.f32 %v10383_v36, %v2550_v1 }
 0xb16   :  { %v7963_v18 = vpop.f32.mrf.mxu0 }
 0xb17   :  { %v2552_v33 = vmul.f32 %v10376_v28, %v10493_v35  ;;  %v10503_v25 = vadd.f32 %v2497_v42, %v10041_v14  ;;  %v2512_v19 = vadd.f32 %v7963_v18, %v10372_v24  ;;  %2605 = vadd.xlane.f32.xlu0 %v10498_v46  ;;  %v10508_v47 = vadd.f32 %v10383_v36, %v2549_v55 }
 0xb18   :  { %v2506_v59 = vpop.f32.mrf.mxu0 }
 0xb19   :  { %v2551_v15 = vmul.f32 %v10376_v28, %v10503_v25  ;;  %v10513_v11 = vadd.f32 %v2512_v19, %v10059_v50  ;;  %v2507_v30 = vadd.f32 %v10372_v24, %v2506_v59  ;;  %2603 = vadd.xlane.f32.xlu1 %v10508_v47  ;;  %v10518_v14 = vadd.f32 %v10383_v36, %v2552_v33 }
 0xb1b   :  { %v2554_v58 = vmul.f32 %v10376_v28, %v10513_v11  ;;  %v10523_v57 = vadd.f32 %v2507_v30, %v10053_v56  ;;  %2609 = vadd.xlane.f32.xlu0 %v10518_v14  ;;  %v10527_v27 = vadd.f32 %v10383_v36, %v2551_v15  ;;  %v2819_v56 = vld [vmem:[#allocation2 + $0xf8] sm:$0xff] }
 0xb1c   :  { %7964 = vmatprep.subr.mxu1 %v2819_v56 }
 0xb1d   :  { %v2553_v50 = vmul.f32 %v10376_v28, %v10523_v57  ;;  %2607 = vadd.xlane.f32.xlu1 %v10527_v27  ;;  %v10533_v24 = vadd.f32 %v10383_v36, %v2554_v58  ;;  %7965 = vmatpush3.msra.mxu1 %v2819_v56 }
 0xb1e   :  { %7966 = vmatprep.subr.mxu1 %v2818_v22 }
 0xb1f   :  { %2613 = vadd.xlane.f32.xlu0 %v10533_v24  ;;  %v10537_v34 = vadd.f32 %v10383_v36, %v2553_v50  ;;  %7967 = vmatpush3.msra.mxu1 %v2818_v22 }
 0xb20   :  { %7968 = vmatprep.subr.mxu1 %v2817_v13 }
 0xb21   :  { %2611 = vadd.xlane.f32.xlu1 %v10537_v34  ;;  %7969 = vmatpush3.msra.mxu1 %v2817_v13 }
 0xb8c   :  { %v2586_v28 = vpop.xlane.xlu0 %2585 }
 0xb8d   :  { %v2616_v3 = vmul.f32 0.0078125, %v2586_v28 }
 0xb8e   :  { %v2584_v63 = vpop.xlane.xlu1 %2583 }
 0xb8f   :  { %v10541_v43 = vsub.f32 %v10398_v6, %v2616_v3  ;;  %v2615_v16 = vmul.f32 0.0078125, %v2584_v63  ;;  %v2816_v3 = vld [vmem:[#allocation2 + $0xe0] sm:$0xff] }
 0xb90   :  { %v2590_v36 = vpop.xlane.xlu0 %2589  ;;  %7970 = vmatprep.subr.mxu1 %v2816_v3 }
 0xb91   :  { %v10544_v45 = vsub.f32 %v10408_v54, %v2615_v16  ;;  %v2618_v8 = vmul.f32 0.0078125, %v2590_v36  ;;  %v2648_v7 = vmul.f32 %v10541_v43, %v10541_v43  ;;  %7971 = vmatpush3.msra.mxu1 %v2816_v3 }
 0xb92   :  { %v2588_v49 = vpop.xlane.xlu1 %2587 }
 0xb93   :  { %v10549_v21 = vsub.f32 %v10418_v20, %v2618_v8  ;;  %v2617_v2 = vmul.f32 0.0078125, %v2588_v49  ;;  %2665 = vadd.xlane.f32.xlu0 %v2648_v7  ;;  %v2647_v12 = vmul.f32 %v10544_v45, %v10544_v45  ;;  %v2815_v8 = vld [vmem:[#allocation2 + $0xd8] sm:$0xff] }
 0xb94   :  { %v2594_v6 = vpop.xlane.xlu0 %2593  ;;  %7972 = vmatprep.subr.mxu1 %v2815_v8 }
 0xb95   :  { %v10554_v41 = vsub.f32 %v10428_v17, %v2617_v2  ;;  %v2620_v9 = vmul.f32 0.0078125, %v2594_v6  ;;  %2663 = vadd.xlane.f32.xlu1 %v2647_v12  ;;  %v2650_v54 = vmul.f32 %v10549_v21, %v10549_v21  ;;  %7973 = vmatpush3.msra.mxu1 %v2815_v8 }
 0xb96   :  { %v2592_v53 = vpop.xlane.xlu1 %2591 }
 0xb97   :  { %v10559_v1 = vsub.f32 %v10438_v31, %v2620_v9  ;;  %v2619_v20 = vmul.f32 0.0078125, %v2592_v53  ;;  %2669 = vadd.xlane.f32.xlu0 %v2650_v54  ;;  %v2649_v38 = vmul.f32 %v10554_v41, %v10554_v41 }
 0xb98   :  { %v2598_v29 = vpop.xlane.xlu0 %2597 }
 0xb99   :  { %v10564_v55 = vsub.f32 %v10448_v60, %v2619_v20  ;;  %v2622_v17 = vmul.f32 0.0078125, %v2598_v29  ;;  %2667 = vadd.xlane.f32.xlu1 %v2649_v38  ;;  %v2652_v42 = vmul.f32 %v10559_v1, %v10559_v1 }
 0xb9a   :  { %v2596_v18 = vpop.xlane.xlu1 %2595 }
 0xb9b   :  { %v10569_v33 = vsub.f32 %v10458_v4, %v2622_v17  ;;  %v2621_v31 = vmul.f32 0.0078125, %v2596_v18  ;;  %2673 = vadd.xlane.f32.xlu0 %v2652_v42  ;;  %v2651_v19 = vmul.f32 %v10564_v55, %v10564_v55 }
 0xb9c   :  { %v2602_v59 = vpop.xlane.xlu0 %2601 }
 0xb9d   :  { %v10574_v15 = vsub.f32 %v10468_v61, %v2621_v31  ;;  %v2624_v60 = vmul.f32 0.0078125, %v2602_v59  ;;  %2671 = vadd.xlane.f32.xlu1 %v2651_v19  ;;  %v2654_v30 = vmul.f32 %v10569_v33, %v10569_v33 }
 0xb9e   :  { %v2600_v58 = vpop.xlane.xlu1 %2599 }
 0xb9f   :  { %v10579_v50 = vsub.f32 %v10478_v39, %v2624_v60  ;;  %v2623_v4 = vmul.f32 0.0078125, %v2600_v58  ;;  %2677 = vadd.xlane.f32.xlu0 %v2654_v30  ;;  %v2653_v56 = vmul.f32 %v10574_v15, %v10574_v15  ;;  %v2810_v60 = vld [vmem:[#allocation2 + $0xb0] sm:$0xff]  ;;  %v2809_v30 = vld [vmem:[#allocation2 + $0xa8] sm:$0xff]  ;;  %v2808_v58 = vld [vmem:[#allocation2 + $0xa0] sm:$0xff] }
 0xba0   :  { %v2606_v22 = vpop.xlane.xlu0 %2605 }
 0xba1   :  { %v10584_v13 = vsub.f32 %v10488_v52, %v2623_v4  ;;  %v2626_v61 = vmul.f32 0.0078125, %v2606_v22  ;;  %2675 = vadd.xlane.f32.xlu1 %v2653_v56  ;;  %v2656_v28 = vmul.f32 %v10579_v50, %v10579_v50  ;;  %v2806_v4 = vld [vmem:[#allocation2 + $0x90] sm:$0xff]  ;;  %v2805_v56 = vld [vmem:[#allocation2 + $0x88] sm:$0xff]  ;;  %v2804_v22 = vld [vmem:[#allocation2 + $0x80] sm:$0xff] }
 0xba2   :  { %v2604_v63 = vpop.xlane.xlu1 %2603 }
 0xba3   :  { %v10589_v39 = vsub.f32 %v10498_v46, %v2626_v61  ;;  %v2625_v16 = vmul.f32 0.0078125, %v2604_v63  ;;  %2681 = vadd.xlane.f32.xlu0 %v2656_v28  ;;  %v2655_v36 = vmul.f32 %v10584_v13, %v10584_v13  ;;  %v2814_v46 = vld [vmem:[#allocation2 + $0xd0] sm:$0xff] }
 0xba4   :  { %v2610_v52 = vpop.xlane.xlu0 %2609  ;;  %7974 = vmatprep.subr.mxu1 %v2814_v46 }
 0xba5   :  { %v10594_v7 = vsub.f32 %v10508_v47, %v2625_v16  ;;  %v2628_v49 = vmul.f32 0.0078125, %v2610_v52  ;;  %2679 = vadd.xlane.f32.xlu1 %v2655_v36  ;;  %v2658_v2 = vmul.f32 %v10589_v39, %v10589_v39  ;;  %7975 = vmatpush3.msra.mxu1 %v2814_v46  ;;  %v2813_v47 = vld [vmem:[#allocation2 + $0xc8] sm:$0xff] }
 0xba6   :  { %v2608_v12 = vpop.xlane.xlu1 %2607  ;;  %7976 = vmatprep.subr.mxu1 %v2813_v47 }
 0xba7   :  { %v10599_v6 = vsub.f32 %v10518_v14, %v2628_v49  ;;  %v2627_v9 = vmul.f32 0.0078125, %v2608_v12  ;;  %2685 = vadd.xlane.f32.xlu0 %v2658_v2  ;;  %v2657_v54 = vmul.f32 %v10594_v7, %v10594_v7  ;;  %7977 = vmatpush3.msra.mxu1 %v2813_v47  ;;  %v2812_v14 = vld [vmem:[#allocation2 + $0xc0] sm:$0xff] }
 0xba8   :  { %v2614_v53 = vpop.xlane.xlu0 %2613  ;;  %7978 = vmatprep.subr.mxu1 %v2812_v14 }
 0xba9   :  { %v10604_v20 = vsub.f32 %v10527_v27, %v2627_v9  ;;  %v2630_v38 = vmul.f32 0.0078125, %v2614_v53  ;;  %2683 = vadd.xlane.f32.xlu1 %v2657_v54  ;;  %v2660_v29 = vmul.f32 %v10599_v6, %v10599_v6  ;;  %7979 = vmatpush3.msra.mxu1 %v2812_v14  ;;  %v2811_v27 = vld [vmem:[#allocation2 + $0xb8] sm:$0xff] }
 0xbaa   :  { %v2612_v17 = vpop.xlane.xlu1 %2611  ;;  %7980 = vmatprep.subr.mxu1 %v2811_v27 }
 0xbab   :  { %v10609_v42 = vsub.f32 %v10533_v24, %v2630_v38  ;;  %v2629_v18 = vmul.f32 0.0078125, %v2612_v17  ;;  %2689 = vadd.xlane.f32.xlu0 %v2660_v29  ;;  %v2659_v31 = vmul.f32 %v10604_v20, %v10604_v20  ;;  %7981 = vmatpush3.msra.mxu1 %v2811_v27 }
 0xbac   :  { %7982 = vmatprep.subr.mxu1 %v2810_v60 }
 0xbad   :  { %v10614_v19 = vsub.f32 %v10537_v34, %v2629_v18  ;;  %2687 = vadd.xlane.f32.xlu1 %v2659_v31  ;;  %v2662_v59 = vmul.f32 %v10609_v42, %v10609_v42  ;;  %7983 = vmatpush3.msra.mxu1 %v2810_v60  ;;  %v2807_v34 = vld [vmem:[#allocation2 + $0x98] sm:$0xff] }
 0xbae   :  { %7984 = vmatprep.subr.mxu1 %v2809_v30 }
 0xbaf   :  { %2693 = vadd.xlane.f32.xlu0 %v2662_v59  ;;  %v2661_v24 = vmul.f32 %v10614_v19, %v10614_v19  ;;  %7985 = vmatpush3.msra.mxu1 %v2809_v30 }
 0xbb0   :  { %7986 = vmatprep.subr.mxu1 %v2808_v58 }
 0xbb1   :  { %2691 = vadd.xlane.f32.xlu1 %v2661_v24  ;;  %7987 = vmatpush3.msra.mxu1 %v2808_v58 }
 0xbb2   :  { %7988 = vmatprep.subr.mxu1 %v2807_v34 }
 0xbb3   :  { %7989 = vmatpush3.msra.mxu1 %v2807_v34 }
 0xbb4   :  { %7990 = vmatprep.subr.mxu1 %v2806_v4 }
 0xbb5   :  { %7991 = vmatpush3.msra.mxu1 %v2806_v4 }
 0xbb6   :  { %7992 = vmatprep.subr.mxu1 %v2805_v56 }
 0xbb7   :  { %7993 = vmatpush3.msra.mxu1 %v2805_v56  ;;  %v10621_v56 = vld [vmem:[%s12989_s17 + $0x1] ss:$0 sm:$0xff] }
 0xbb8   :  { %7994 = vmatprep.subr.mxu1 %v2804_v22 }
 0xbb9   :  { %7995 = vmatpush3.msra.mxu1 %v2804_v22 }
 0xc1c   :  { %v2666_v61 = vpop.xlane.xlu0 %2665 }
 0xc1d   :  { %v2696_v28 = vmul.f32 0.0078125, %v2666_v61 }
 0xc1e   :  { %v2664_v3 = vpop.xlane.xlu1 %2663 }
 0xc1f   :  { %v2712_v63 = vadd.f32 1e-05, %v2696_v28  ;;  %v2695_v16 = vmul.f32 0.0078125, %v2664_v3 }
 0xc20   :  { %v2670_v36 = vpop.xlane.xlu0 %2669 }
 0xc21   :  { %8796 = vrsqrt.f32 %v2712_v63  ;;  %v2711_v8 = vadd.f32 1e-05, %v2695_v16  ;;  %v2698_v52 = vmul.f32 0.0078125, %v2670_v36 }
 0xc22   :  { %v2668_v49 = vpop.xlane.xlu1 %2667 }
 0xc23   :  { %8798 = vrsqrt.f32 %v2711_v8  ;;  %v2714_v2 = vadd.f32 1e-05, %v2698_v52  ;;  %v2697_v46 = vmul.f32 0.0078125, %v2668_v49 }
 0xc24   :  { %v2674_v12 = vpop.xlane.xlu0 %2673 }
 0xc25   :  { %8800 = vrsqrt.f32 %v2714_v2  ;;  %v2713_v9 = vadd.f32 1e-05, %v2697_v46  ;;  %v2700_v54 = vmul.f32 0.0078125, %v2674_v12  ;;  %v10627_v46 = vld [vmem:[%s12990_s21 + $0x1] ss:$0 sm:$0xff] }
 0xc26   :  { %v2672_v47 = vpop.xlane.xlu1 %2671 }
 0xc27   :  { %8802 = vrsqrt.f32 %v2713_v9  ;;  %v2716_v53 = vadd.f32 1e-05, %v2700_v54  ;;  %v2699_v38 = vmul.f32 0.0078125, %v2672_v47 }
 0xc28   :  { %v2678_v29 = vpop.xlane.xlu0 %2677 }
 0xc29   :  { %8804 = vrsqrt.f32 %v2716_v53  ;;  %v2715_v14 = vadd.f32 1e-05, %v2699_v38  ;;  %v2702_v17 = vmul.f32 0.0078125, %v2678_v29 }
 0xc2a   :  { %v2676_v18 = vpop.xlane.xlu1 %2675 }
 0xc2b   :  { %8806 = vrsqrt.f32 %v2715_v14  ;;  %v2718_v31 = vadd.f32 1e-05, %v2702_v17  ;;  %v2701_v27 = vmul.f32 0.0078125, %v2676_v18 }
 0xc2c   :  { %v2682_v59 = vpop.xlane.xlu0 %2681 }
 0xc2d   :  { %8808 = vrsqrt.f32 %v2718_v31  ;;  %v2717_v60 = vadd.f32 1e-05, %v2701_v27  ;;  %v2704_v24 = vmul.f32 0.0078125, %v2682_v59 }
 0xc2e   :  { %v8797_v30 = vpop.eup %8796  ;;  %v2680_v58 = vpop.xlane.xlu1 %2679 }
 0xc2f   :  { %8810 = vrsqrt.f32 %v2717_v60  ;;  %v2720_v34 = vadd.f32 1e-05, %v2704_v24  ;;  %v2703_v4 = vmul.f32 0.0078125, %v2680_v58  ;;  %v2744_v22 = vmul.f32 %v8797_v30, %v10541_v43 }
 0xc30   :  { %v8799_v61 = vpop.eup %8798  ;;  %v2686_v28 = vpop.xlane.xlu0 %2685 }
 0xc31   :  { %8812 = vrsqrt.f32 %v2720_v34  ;;  %v2719_v3 = vadd.f32 1e-05, %v2703_v4  ;;  %v2706_v63 = vmul.f32 0.0078125, %v2686_v28  ;;  %v2743_v16 = vmul.f32 %v8799_v61, %v10544_v45 }
 0xc32   :  { %v8801_v36 = vpop.eup %8800  ;;  %v2684_v8 = vpop.xlane.xlu1 %2683  ;;  %v2766_v52 = vmul.f32 %v10621_v56, %v2744_v22 }
 0xc33   :  { %8814 = vrsqrt.f32 %v2719_v3  ;;  %v2722_v49 = vadd.f32 1e-05, %v2706_v63  ;;  %v2705_v2 = vmul.f32 0.0078125, %v2684_v8  ;;  %v2765_v12 = vmul.f32 %v10621_v56, %v2743_v16 }
 0xc34   :  { %v8803_v9 = vpop.eup %8802  ;;  %v2690_v43 = vpop.xlane.xlu0 %2689  ;;  %v2746_v54 = vmul.f32 %v8801_v36, %v10549_v21  ;;  %v2788_v14 = vadd.f32 %v10627_v46, %v2766_v52 }
 0xc35   :  { %8816 = vrsqrt.f32 %v2722_v49  ;;  %v2721_v47 = vadd.f32 1e-05, %v2705_v2  ;;  %v2708_v53 = vmul.f32 0.0078125, %v2690_v43  ;;  %v2787_v45 = vadd.f32 %v10627_v46, %v2765_v12 }
 0xc36   :  { %v8805_v38 = vpop.eup %8804  ;;  %v2688_v29 = vpop.xlane.xlu1 %2687  ;;  %v2745_v17 = vmul.f32 %v8803_v9, %v10554_v41  ;;  %v2768_v18 = vmul.f32 %v10621_v56, %v2746_v54 }
 0xc37   :  { %8818 = vrsqrt.f32 %v2721_v47  ;;  %v2724_v31 = vadd.f32 1e-05, %v2708_v53  ;;  %v2707_v27 = vmul.f32 0.0078125, %v2688_v29  ;;  %7996 = vmatprep.mubr.f32.mxu1 %v2787_v45  ;;  %v2748_v59 = vmul.f32 %v8805_v38, %v10559_v1 }
 0xc38   :  { %v8807_v21 = vpop.eup %8806  ;;  %v2694_v60 = vpop.xlane.xlu0 %2693  ;;  %7997 = vmatmul.mubr.f32.vlgmr.msra.gmra.mxu1 %v2788_v14  ;;  %v2767_v24 = vmul.f32 %v10621_v56, %v2745_v17  ;;  %v2790_v61 = vadd.f32 %v10627_v46, %v2768_v18 }
 0xc39   :  { %8820 = vrsqrt.f32 %v2724_v31  ;;  %v2723_v30 = vadd.f32 1e-05, %v2707_v27  ;;  %v2710_v58 = vmul.f32 0.0078125, %v2694_v60  ;;  %v2747_v34 = vmul.f32 %v8807_v21, %v10564_v55 }
 0xc3a   :  { %v8809_v4 = vpop.eup %8808  ;;  %v2692_v41 = vpop.xlane.xlu1 %2691  ;;  %v2789_v22 = vadd.f32 %v10627_v46, %v2767_v24  ;;  %v2770_v28 = vmul.f32 %v10621_v56, %v2748_v59 }
 0xc3b   :  { %8822 = vrsqrt.f32 %v2723_v30  ;;  %v2726_v1 = vadd.f32 1e-05, %v2710_v58  ;;  %v2709_v3 = vmul.f32 0.0078125, %v2692_v41  ;;  %v2769_v63 = vmul.f32 %v10621_v56, %v2747_v34 }
 0xc3c   :  { %v8811_v16 = vpop.eup %8810  ;;  %7999 = vmatprep.mubr.f32.mxu1 %v2789_v22  ;;  %v2750_v36 = vmul.f32 %v8809_v4, %v10569_v33  ;;  %v2792_v2 = vadd.f32 %v10627_v46, %v2770_v28 }
 0xc3d   :  { %8824 = vrsqrt.f32 %v2726_v1  ;;  %v2725_v8 = vadd.f32 1e-05, %v2709_v3  ;;  %8000 = vmatmul.mubr.f32.gmra.mxu1 %v2790_v61  ;;  %v2791_v55 = vadd.f32 %v10627_v46, %v2769_v63  ;;  %v2749_v52 = vmul.f32 %v8811_v16, %v10574_v15 }
 0xc3e   :  { %v8813_v49 = vpop.eup %8812  ;;  %v2772_v9 = vmul.f32 %v10621_v56, %v2750_v36 }
 0xc3f   :  { %8826 = vrsqrt.f32 %v2725_v8  ;;  %8002 = vmatprep.mubr.f32.mxu1 %v2791_v55  ;;  %v2771_v12 = vmul.f32 %v10621_v56, %v2749_v52  ;;  %v2752_v43 = vmul.f32 %v8813_v49, %v10579_v50 }
 0xc40   :  { %v8815_v54 = vpop.eup %8814  ;;  %v2794_v15 = vadd.f32 %v10627_v46, %v2772_v9 }
 0xc41   :  { %8003 = vmatmul.mubr.f32.gmra.mxu1 %v2792_v2  ;;  %v2793_v33 = vadd.f32 %v10627_v46, %v2771_v12  ;;  %v2751_v47 = vmul.f32 %v8815_v54, %v10584_v13  ;;  %v2774_v38 = vmul.f32 %v10621_v56, %v2752_v43 }
 0xc42   :  { %v8817_v53 = vpop.eup %8816 }
 0xc43   :  { %8005 = vmatprep.mubr.f32.mxu1 %v2793_v33  ;;  %v2773_v45 = vmul.f32 %v10621_v56, %v2751_v47  ;;  %v2754_v29 = vmul.f32 %v8817_v53, %v10589_v39  ;;  %v2796_v13 = vadd.f32 %v10627_v46, %v2774_v38 }
 0xc44   :  { %v8819_v14 = vpop.eup %8818 }
 0xc45   :  { %8006 = vmatmul.mubr.f32.gmra.mxu1 %v2794_v15  ;;  %v2795_v50 = vadd.f32 %v10627_v46, %v2773_v45  ;;  %v2753_v17 = vmul.f32 %v8819_v14, %v10594_v7  ;;  %v2776_v27 = vmul.f32 %v10621_v56, %v2754_v29 }
 0xc46   :  { %v8821_v18 = vpop.eup %8820 }
 0xc47   :  { %8008 = vmatprep.mubr.f32.mxu1 %v2795_v50  ;;  %v2775_v31 = vmul.f32 %v10621_v56, %v2753_v17  ;;  %v2756_v59 = vmul.f32 %v8821_v18, %v10599_v6  ;;  %v2798_v7 = vadd.f32 %v10627_v46, %v2776_v27 }
 0xc48   :  { %v8823_v21 = vpop.eup %8822 }
 0xc49   :  { %8009 = vmatmul.mubr.f32.gmra.mxu1 %v2796_v13  ;;  %v2797_v39 = vadd.f32 %v10627_v46, %v2775_v31  ;;  %v2755_v60 = vmul.f32 %v8823_v21, %v10604_v20  ;;  %v2778_v58 = vmul.f32 %v10621_v56, %v2756_v59 }
 0xc4a   :  { %v8825_v24 = vpop.eup %8824 }
 0xc4b   :  { %8011 = vmatprep.mubr.f32.mxu1 %v2797_v39  ;;  %v2777_v30 = vmul.f32 %v10621_v56, %v2755_v60  ;;  %v2758_v34 = vmul.f32 %v8825_v24, %v10609_v42  ;;  %v2800_v20 = vadd.f32 %v10627_v46, %v2778_v58  ;;  %v10675_v42 = vld [vmem:[%s12991_s25 + $0x1] ss:$0 sm:$0xff] }
 0xc4c   :  { %v8827_v4 = vpop.eup %8826 }
 0xc4d   :  { %8012 = vmatmul.mubr.f32.gmra.mxu1 %v2798_v7  ;;  %v2799_v6 = vadd.f32 %v10627_v46, %v2777_v30  ;;  %v2757_v41 = vmul.f32 %v8827_v4, %v10614_v19  ;;  %v2780_v61 = vmul.f32 %v10621_v56, %v2758_v34 }
 0xc4f   :  { %8014 = vmatprep.mubr.f32.mxu1 %v2799_v6  ;;  %v2779_v22 = vmul.f32 %v10621_v56, %v2757_v41  ;;  %v2802_v1 = vadd.f32 %v10627_v46, %v2780_v61 }
 0xc51   :  { %8015 = vmatmul.mubr.f32.gmra.mxu1 %v2800_v20  ;;  %v2801_v28 = vadd.f32 %v10627_v46, %v2779_v22 }
 0xc53   :  { %8017 = vmatprep.mubr.f32.mxu1 %v2801_v28 }
 0xc55   :  { %8018 = vmatmul.mubr.f32.gmra.mxu1 %v2802_v1 }
 0xcf8   :  { %v7998_v3 = vpop.f32.mrf.mxu1 }
 0xcf9   :  { %v2900_v63 = vadd.f32 %v7998_v3, %v10675_v42 }
 0xcfa   :  { %v2894_v19 = vpop.f32.mrf.mxu1 }
 0xcfb   :  { %v2990_v16 = vmul.f32 0.70710677, %v2900_v63  ;;  %v2895_v36 = vadd.f32 %v10675_v42, %v2894_v19  ;;  %v2974_v13 = vmul.f32 0.5, %v2900_v63 }
 0xcfd   :  { %8828 = verf.f32 %v2990_v16  ;;  %v2989_v8 = vmul.f32 0.70710677, %v2895_v36  ;;  %v8001_v55 = vpop.f32.mrf.mxu1  ;;  %v2973_v24 = vmul.f32 0.5, %v2895_v36 }
 0xcfe   :  { %v2910_v56 = vadd.f32 %v8001_v55, %v10675_v42 }
 0xcff   :  { %8830 = verf.f32 %v2989_v8  ;;  %v2904_v52 = vpop.f32.mrf.mxu1 }
 0xd00   :  { %v2992_v49 = vmul.f32 0.70710677, %v2910_v56  ;;  %v2905_v46 = vadd.f32 %v10675_v42, %v2904_v52  ;;  %v2976_v22 = vmul.f32 0.5, %v2910_v56 }
 0xd01   :  { %v8004_v2 = vpop.f32.mrf.mxu1 }
 0xd02   :  { %8832 = verf.f32 %v2992_v49  ;;  %v2991_v12 = vmul.f32 0.70710677, %v2905_v46  ;;  %v2920_v9 = vadd.f32 %v8004_v2, %v10675_v42  ;;  %v2975_v3 = vmul.f32 0.5, %v2905_v46 }
 0xd03   :  { %v2914_v43 = vpop.f32.mrf.mxu1 }
 0xd04   :  { %8834 = verf.f32 %v2991_v12  ;;  %v2994_v54 = vmul.f32 0.70710677, %v2920_v9  ;;  %v2915_v33 = vadd.f32 %v10675_v42, %v2914_v43  ;;  %v2978_v2 = vmul.f32 0.5, %v2920_v9 }
 0xd05   :  { %v8007_v47 = vpop.f32.mrf.mxu1 }
 0xd06   :  { %8836 = verf.f32 %v2994_v54  ;;  %v2993_v53 = vmul.f32 0.70710677, %v2915_v33  ;;  %v10684_v15 = vadd.f32 %v8007_v47, %v10675_v42  ;;  %v2977_v47 = vmul.f32 0.5, %v2915_v33 }
 0xd07   :  { %v2924_v45 = vpop.f32.mrf.mxu1 }
 0xd08   :  { %8838 = verf.f32 %v2993_v53  ;;  %v2996_v38 = vmul.f32 0.70710677, %v10684_v15  ;;  %v10688_v29 = vadd.f32 %v10675_v42, %v2924_v45 }
 0xd09   :  { %v8010_v14 = vpop.f32.mrf.mxu1 }
 0xd0a   :  { %v8829_v50 = vpop.eup %8828  ;;  %8840 = verf.f32 %v2996_v38  ;;  %v2995_v17 = vmul.f32 0.70710677, %v10688_v29  ;;  %v10692_v18 = vadd.f32 %v8010_v14, %v10675_v42 }
 0xd0b   :  { %v3022_v31 = vadd.f32 1.0, %v8829_v50  ;;  %v2934_v27 = vpop.f32.mrf.mxu1 }
 0xd0c   :  { %v8831_v59 = vpop.eup %8830  ;;  %8842 = verf.f32 %v2995_v17  ;;  %v2998_v21 = vmul.f32 0.70710677, %v10692_v18  ;;  %v10696_v39 = vadd.f32 %v10675_v42, %v2934_v27 }
 0xd0d   :  { %v10698_v60 = vmul.f32 %v3022_v31, %v2974_v13  ;;  %v3021_v7 = vadd.f32 1.0, %v8831_v59  ;;  %v8013_v30 = vpop.f32.mrf.mxu1  ;;  %v2980_v59 = vmul.f32 0.5, %v10684_v15 }
 0xd0e   :  { %8844 = verf.f32 %v2998_v21  ;;  %v2997_v58 = vmul.f32 0.70710677, %v10696_v39  ;;  %v10702_v34 = vadd.f32 %v8013_v30, %v10675_v42  ;;  %v2979_v30 = vmul.f32 0.5, %v10688_v29 }
 0xd0f   :  { %v8833_v4 = vpop.eup %8832  ;;  %v10704_v6 = vmul.f32 %v3021_v7, %v2973_v24  ;;  %v2944_v41 = vpop.f32.mrf.mxu1  ;;  %v3054_v20 = vmul.f32 %v10698_v60, %v10698_v60  ;;  %v2982_v29 = vmul.f32 0.5, %v10692_v18 }
 0xd10   :  { %v3024_v61 = vadd.f32 1.0, %v8833_v4  ;;  %8846 = verf.f32 %v2997_v58  ;;  %v3000_v28 = vmul.f32 0.70710677, %v10702_v34  ;;  %v10710_v63 = vadd.f32 %v10675_v42, %v2944_v41 }
 0xd11   :  { %v8835_v1 = vpop.eup %8834  ;;  %v8016_v19 = vpop.f32.mrf.mxu1  ;;  %3071 = vadd.xlane.f32.xlu0 %v3054_v20  ;;  %v3053_v16 = vmul.f32 %v10704_v6, %v10704_v6  ;;  %v2984_v18 = vmul.f32 0.5, %v10702_v34 }
 0xd12   :  { %v10714_v36 = vmul.f32 %v3024_v61, %v2976_v22  ;;  %v3023_v8 = vadd.f32 1.0, %v8835_v1  ;;  %8848 = verf.f32 %v3000_v28  ;;  %v10717_v55 = vadd.f32 %v8016_v19, %v10675_v42 }
 0xd13   :  { %v8837_v56 = vpop.eup %8836  ;;  %v2999_v52 = vmul.f32 0.70710677, %v10710_v63  ;;  %v2954_v49 = vpop.f32.mrf.mxu1  ;;  %3069 = vadd.xlane.f32.xlu1 %v3053_v16  ;;  %v2981_v16 = vmul.f32 0.5, %v10696_v39 }
 0xd14   :  { %v10720_v46 = vmul.f32 %v3023_v8, %v2975_v3  ;;  %v3026_v12 = vadd.f32 1.0, %v8837_v56  ;;  %v3002_v43 = vmul.f32 0.70710677, %v10717_v55  ;;  %v2955_v53 = vadd.f32 %v10675_v42, %v2954_v49 }
 0xd15   :  { %v8839_v54 = vpop.eup %8838  ;;  %8850 = verf.f32 %v2999_v52  ;;  %v8019_v45 = vpop.f32.mrf.mxu1  ;;  %v3056_v38 = vmul.f32 %v10714_v36, %v10714_v36 }
 0xd16   :  { %v10726_v14 = vmul.f32 %v3026_v12, %v2978_v2  ;;  %v3025_v50 = vadd.f32 1.0, %v8839_v54  ;;  %8852 = verf.f32 %v3002_v43  ;;  %v2970_v17 = vadd.f32 %v8019_v45, %v10675_v42 }
 0xd17   :  { %v8841_v13 = vpop.eup %8840  ;;  %v3001_v9 = vmul.f32 0.70710677, %v2955_v53  ;;  %3075 = vadd.xlane.f32.xlu0 %v3056_v38  ;;  %v2964_v31 = vpop.f32.mrf.mxu1  ;;  %v3055_v33 = vmul.f32 %v10720_v46, %v10720_v46  ;;  %v2983_v45 = vmul.f32 0.5, %v10710_v63 }
 0xd18   :  { %v10731_v27 = vmul.f32 %v3025_v50, %v2977_v47  ;;  %v3028_v21 = vadd.f32 1.0, %v8841_v13  ;;  %v3004_v24 = vmul.f32 0.70710677, %v2970_v17  ;;  %v2965_v58 = vadd.f32 %v10675_v42, %v2964_v31 }
 0xd19   :  { %v8843_v7 = vpop.eup %8842  ;;  %8854 = verf.f32 %v3001_v9  ;;  %3073 = vadd.xlane.f32.xlu1 %v3055_v33  ;;  %v3058_v4 = vmul.f32 %v10726_v14, %v10726_v14  ;;  %v2986_v50 = vmul.f32 0.5, %v10717_v55 }
 0xd1a   :  { %v10738_v41 = vmul.f32 %v3028_v21, %v2980_v59  ;;  %v3027_v20 = vadd.f32 1.0, %v8843_v7  ;;  %8856 = verf.f32 %v3004_v24  ;;  %v3057_v22 = vmul.f32 %v10731_v27, %v10731_v27 }
 0xd1b   :  { %v8845_v15 = vpop.eup %8844  ;;  %v3003_v61 = vmul.f32 0.70710677, %v2965_v58  ;;  %3079 = vadd.xlane.f32.xlu0 %v3058_v4  ;;  %v2985_v21 = vmul.f32 0.5, %v2955_v53  ;;  %v2988_v7 = vmul.f32 0.5, %v2970_v17 }
 0xd1c   :  { %v10742_v28 = vmul.f32 %v3027_v20, %v2979_v30  ;;  %v3030_v1 = vadd.f32 1.0, %v8845_v15  ;;  %v3060_v42 = vmul.f32 %v10738_v41, %v10738_v41  ;;  %v2987_v15 = vmul.f32 0.5, %v2965_v58  ;;  %v3227_v58 = vld [vmem:[#allocation4 + $0xf0] sm:$0xff] }
 0xd1d   :  { %v8847_v3 = vpop.eup %8846  ;;  %8858 = verf.f32 %v3003_v61  ;;  %3077 = vadd.xlane.f32.xlu1 %v3057_v22 }
 0xd1e   :  { %v10747_v19 = vmul.f32 %v3030_v1, %v2982_v29  ;;  %v3029_v8 = vadd.f32 1.0, %v8847_v3  ;;  %v3059_v56 = vmul.f32 %v10742_v28, %v10742_v28  ;;  %v3226_v3 = vld [vmem:[#allocation4 + $0xe8] sm:$0xff] }
 0xd1f   :  { %v8849_v52 = vpop.eup %8848  ;;  %3083 = vadd.xlane.f32.xlu0 %v3060_v42  ;;  %v3228_v42 = vld [vmem:[#allocation4 + $0xf8] sm:$0xff] }
 0xd20   :  { %v10752_v49 = vmul.f32 %v3029_v8, %v2981_v16  ;;  %v3032_v2 = vadd.f32 1.0, %v8849_v52  ;;  %v3062_v12 = vmul.f32 %v10747_v19, %v10747_v19  ;;  %8020 = vmatprep.subr.mxu0 %v3228_v42  ;;  %v3225_v16 = vld [vmem:[#allocation4 + $0xe0] sm:$0xff]  ;;  %v3224_v8 = vld [vmem:[#allocation4 + $0xd8] sm:$0xff]  ;;  %v3222_v52 = vld [vmem:[#allocation4 + $0xc8] sm:$0xff] }
 0xd21   :  { %3081 = vadd.xlane.f32.xlu1 %v3059_v56  ;;  %8021 = vmatpush3.msra.mxu0 %v3228_v42  ;;  %v3223_v56 = vld [vmem:[#allocation4 + $0xd0] sm:$0xff] }
 0xd22   :  { %v8851_v43 = vpop.eup %8850  ;;  %v10757_v54 = vmul.f32 %v3032_v2, %v2984_v18  ;;  %v3061_v39 = vmul.f32 %v10752_v49, %v10752_v49  ;;  %8022 = vmatprep.subr.mxu0 %v3227_v58  ;;  %v3221_v18 = vld [vmem:[#allocation4 + $0xc0] sm:$0xff]  ;;  %v3220_v2 = vld [vmem:[#allocation4 + $0xb8] sm:$0xff] }
 0xd23   :  { %v8853_v47 = vpop.eup %8852  ;;  %v3031_v38 = vadd.f32 1.0, %v8851_v43  ;;  %3087 = vadd.xlane.f32.xlu0 %v3062_v12  ;;  %8023 = vmatpush3.msra.mxu0 %v3227_v58  ;;  %v3219_v12 = vld [vmem:[#allocation4 + $0xb0] sm:$0xff]  ;;  %v3218_v43 = vld [vmem:[#allocation4 + $0xa8] sm:$0xff] }
 0xd24   :  { %v3034_v13 = vadd.f32 1.0, %v8853_v47  ;;  %v3064_v34 = vmul.f32 %v10757_v54, %v10757_v54  ;;  %8024 = vmatprep.subr.mxu0 %v3226_v3  ;;  %v3216_v47 = vld [vmem:[#allocation4 + $0x98] sm:$0xff] }
 0xd25   :  { %v10765_v9 = vmul.f32 %v3031_v38, %v2983_v45  ;;  %3085 = vadd.xlane.f32.xlu1 %v3061_v39  ;;  %8025 = vmatpush3.msra.mxu0 %v3226_v3  ;;  %v3217_v39 = vld [vmem:[#allocation4 + $0xa0] sm:$0xff]  ;;  %v3215_v45 = vld [vmem:[#allocation4 + $0x90] sm:$0xff]  ;;  %v3214_v38 = vld [vmem:[#allocation4 + $0x88] sm:$0xff] }
 0xd26   :  { %v8855_v31 = vpop.eup %8854  ;;  %v10767_v33 = vmul.f32 %v3034_v13, %v2986_v50  ;;  %8026 = vmatprep.subr.mxu0 %v3225_v16  ;;  %v3213_v50 = vld [vmem:[#allocation4 + $0x80] sm:$0xff] }
 0xd27   :  { %v8857_v59 = vpop.eup %8856  ;;  %v3033_v24 = vadd.f32 1.0, %v8855_v31  ;;  %3091 = vadd.xlane.f32.xlu0 %v3064_v34  ;;  %v3063_v63 = vmul.f32 %v10765_v9, %v10765_v9  ;;  %8027 = vmatpush3.msra.mxu0 %v3225_v16 }
 0xd28   :  { %v3036_v30 = vadd.f32 1.0, %v8857_v59  ;;  %v3066_v55 = vmul.f32 %v10767_v33, %v10767_v33  ;;  %8028 = vmatprep.subr.mxu0 %v3224_v8 }
 0xd29   :  { %v10773_v4 = vmul.f32 %v3033_v24, %v2985_v21  ;;  %3089 = vadd.xlane.f32.xlu1 %v3063_v63  ;;  %8029 = vmatpush3.msra.mxu0 %v3224_v8 }
 0xd2a   :  { %v8859_v20 = vpop.eup %8858  ;;  %v10775_v22 = vmul.f32 %v3036_v30, %v2988_v7  ;;  %8030 = vmatprep.subr.mxu0 %v3223_v56 }
 0xd2b   :  { %v3035_v61 = vadd.f32 1.0, %v8859_v20  ;;  %3095 = vadd.xlane.f32.xlu0 %v3066_v55  ;;  %v3065_v53 = vmul.f32 %v10773_v4, %v10773_v4  ;;  %8031 = vmatpush3.msra.mxu0 %v3223_v56 }
 0xd2c   :  { %v3068_v29 = vmul.f32 %v10775_v22, %v10775_v22  ;;  %8032 = vmatprep.subr.mxu0 %v3222_v52 }
 0xd2d   :  { %v10781_v17 = vmul.f32 %v3035_v61, %v2987_v15  ;;  %3093 = vadd.xlane.f32.xlu1 %v3065_v53  ;;  %8033 = vmatpush3.msra.mxu0 %v3222_v52 }
 0xd2e   :  { %8034 = vmatprep.subr.mxu0 %v3221_v18 }
 0xd2f   :  { %3099 = vadd.xlane.f32.xlu0 %v3068_v29  ;;  %v3067_v1 = vmul.f32 %v10781_v17, %v10781_v17  ;;  %8035 = vmatpush3.msra.mxu0 %v3221_v18 }
 0xd30   :  { %8036 = vmatprep.subr.mxu0 %v3220_v2 }
 0xd31   :  { %3097 = vadd.xlane.f32.xlu1 %v3067_v1  ;;  %8037 = vmatpush3.msra.mxu0 %v3220_v2 }
 0xd32   :  { %8038 = vmatprep.subr.mxu0 %v3219_v12 }
 0xd33   :  { %8039 = vmatpush3.msra.mxu0 %v3219_v12 }
 0xd34   :  { %8040 = vmatprep.subr.mxu0 %v3218_v43 }
 0xd35   :  { %8041 = vmatpush3.msra.mxu0 %v3218_v43 }
 0xd36   :  { %8042 = vmatprep.subr.mxu0 %v3217_v39 }
 0xd37   :  { %8043 = vmatpush3.msra.mxu0 %v3217_v39 }
 0xd38   :  { %8044 = vmatprep.subr.mxu0 %v3216_v47 }
 0xd39   :  { %8045 = vmatpush3.msra.mxu0 %v3216_v47 }
 0xd3a   :  { %8046 = vmatprep.subr.mxu0 %v3215_v45 }
 0xd3b   :  { %8047 = vmatpush3.msra.mxu0 %v3215_v45 }
 0xd3c   :  { %8048 = vmatprep.subr.mxu0 %v3214_v38 }
 0xd3d   :  { %8049 = vmatpush3.msra.mxu0 %v3214_v38 }
 0xd3e   :  { %8050 = vmatprep.subr.mxu0 %v3213_v50 }
 0xd3f   :  { %8051 = vmatpush3.msra.mxu0 %v3213_v50 }
 0xd9a   :  { %v3072_v13 = vpop.xlane.xlu0 %3071 }
 0xd9c   :  { %v3070_v34 = vpop.xlane.xlu1 %3069 }
 0xd9d   :  { %v3101_v59 = vadd.f32 %v3072_v13, %v3070_v34 }
 0xda0   :  { %v3076_v31 = vpop.xlane.xlu0 %3075 }
 0xda2   :  { %v3074_v21 = vpop.xlane.xlu1 %3073 }
 0xda3   :  { %v3102_v24 = vadd.f32 %v3101_v59, %v3074_v21 }
 0xda4   :  { %v3080_v63 = vpop.xlane.xlu0 %3079 }
 0xda5   :  { %v3103_v7 = vadd.f32 %v3102_v24, %v3076_v31 }
 0xda6   :  { %v3078_v30 = vpop.xlane.xlu1 %3077 }
 0xda7   :  { %v3104_v55 = vadd.f32 %v3103_v7, %v3078_v30 }
 0xda8   :  { %v3084_v20 = vpop.xlane.xlu0 %3083 }
 0xda9   :  { %v3105_v15 = vadd.f32 %v3104_v55, %v3080_v63 }
 0xdaa   :  { %v3082_v61 = vpop.xlane.xlu1 %3081 }
 0xdab   :  { %v3106_v53 = vadd.f32 %v3105_v15, %v3082_v61 }
 0xdac   :  { %v3088_v29 = vpop.xlane.xlu0 %3087 }
 0xdad   :  { %v3107_v1 = vadd.f32 %v3106_v53, %v3084_v20  ;;  %v10788_v53 = vld [vmem:[%s12992_s29 + $0x1] ss:$0 sm:$0xff] }
 0xdae   :  { %v3086_v42 = vpop.xlane.xlu1 %3085 }
 0xdaf   :  { %v3108_v58 = vadd.f32 %v3107_v1, %v3086_v42 }
 0xdb0   :  { %v3092_v3 = vpop.xlane.xlu0 %3091 }
 0xdb1   :  { %v3109_v16 = vadd.f32 %v3108_v58, %v3088_v29 }
 0xdb2   :  { %v3090_v8 = vpop.xlane.xlu1 %3089 }
 0xdb3   :  { %v3110_v56 = vadd.f32 %v3109_v16, %v3090_v8 }
 0xdb4   :  { %v3096_v18 = vpop.xlane.xlu0 %3095 }
 0xdb5   :  { %v3111_v52 = vadd.f32 %v3110_v56, %v3092_v3  ;;  %v10799_v3 = vld [vmem:[%s12993_s3 + $0x1] ss:$0 sm:$0xff] }
 0xdb6   :  { %v3094_v2 = vpop.xlane.xlu1 %3093 }
 0xdb7   :  { %v3112_v12 = vadd.f32 %v3111_v52, %v3094_v2 }
 0xdb8   :  { %v3100_v45 = vpop.xlane.xlu0 %3099 }
 0xdb9   :  { %v3113_v43 = vadd.f32 %v3112_v12, %v3096_v18 }
 0xdba   :  { %v3098_v39 = vpop.xlane.xlu1 %3097 }
 0xdbb   :  { %v3114_v47 = vadd.f32 %v3113_v43, %v3098_v39 }
 0xdbd   :  { %v3115_v38 = vadd.f32 %v3114_v47, %v3100_v45 }
 0xdbf   :  { %v3116_v50 = vrot.slane %v3115_v38, 4 }
 0xdc1   :  { %v3117_v13 = vadd.f32 %v3116_v50, %v3115_v38 }
 0xdc3   :  { %v3118_v34 = vrot.slane %v3117_v13, 2 }
 0xdc5   :  { %v3119_v31 = vadd.f32 %v3118_v34, %v3117_v13 }
 0xdc7   :  { %v3120_v59 = vrot.slane %v3119_v31, 1 }
 0xdc9   :  { %v3121_v21 = vadd.f32 %v3120_v59, %v3119_v31 }
 0xdcb   :  { %8860 = vrsqrt.f32 %v3121_v21  ;;  %vm3124_vm4 = vcmp.eq.f32.partialorder %v3121_v21, inf  ;;  %v3127_v7 = vand.u32 2147483648, %v3121_v21  ;;  %vm3126_vm5 = vcmp.eq.f32.partialorder %v3121_v21, 0.0 }
 0xdd8   :  { %v8861_v24 = vpop.eup %8860 }
 0xdd9   :  { %v3123_v63 = vmul.f32 %v8861_v24, %v3121_v21 }
 0xddb   :  { %v3125_v30 = vsel %vm3124_vm4, %v3121_v21, %v3123_v63 }
 0xddc   :  { %v3128_v55 = vsel %vm3126_vm5, %v3127_v7, %v3125_v30 }
 0xddd   :  { %v3129_v20 = vadd.f32 1e-06, %v3128_v55 }
 0xddf   :  { %8862 = vrcp.f32 %v3129_v20 }
 0xdec   :  { %v8863_v15 = vpop.eup %8862 }
 0xded   :  { %v10785_v61 = vmul.f32 %v8863_v15, %v3128_v55 }
 0xdef   :  { %v3134_v29 = vmul.f32 %v10785_v61, %v10704_v6  ;;  %v3135_v1 = vmul.f32 %v10785_v61, %v10698_v60  ;;  %v3136_v42 = vmul.f32 %v10785_v61, %v10720_v46  ;;  %v3137_v58 = vmul.f32 %v10785_v61, %v10714_v36 }
 0xdf0   :  { %v3138_v16 = vmul.f32 %v10785_v61, %v10731_v27  ;;  %v3139_v2 = vmul.f32 %v10785_v61, %v10726_v14  ;;  %v3140_v12 = vmul.f32 %v10785_v61, %v10742_v28  ;;  %v3141_v31 = vmul.f32 %v10785_v61, %v10738_v41 }
 0xdf1   :  { %v3156_v8 = vmul.f32 %v10788_v53, %v3134_v29  ;;  %v3157_v56 = vmul.f32 %v10788_v53, %v3135_v1  ;;  %v3158_v52 = vmul.f32 %v10788_v53, %v3136_v42  ;;  %v3159_v18 = vmul.f32 %v10788_v53, %v3137_v58 }
 0xdf2   :  { %v3160_v45 = vmul.f32 %v10788_v53, %v3138_v16  ;;  %v3161_v34 = vmul.f32 %v10788_v53, %v3139_v2  ;;  %v3162_v24 = vmul.f32 %v10788_v53, %v3140_v12  ;;  %v3142_v63 = vmul.f32 %v10785_v61, %v10752_v49 }
 0xdf3   :  { %v3180_v43 = vadd.f32 %v10799_v3, %v3156_v8  ;;  %v3181_v39 = vadd.f32 %v10799_v3, %v3157_v56  ;;  %v3182_v47 = vadd.f32 %v10799_v3, %v3158_v52  ;;  %v3183_v13 = vadd.f32 %v10799_v3, %v3159_v18 }
 0xdf4   :  { %v3184_v21 = vadd.f32 %v10799_v3, %v3160_v45  ;;  %v3163_v7 = vmul.f32 %v10788_v53, %v3141_v31  ;;  %v3143_v30 = vmul.f32 %v10785_v61, %v10747_v19  ;;  %v3186_v55 = vadd.f32 %v10799_v3, %v3162_v24  ;;  %v10874_v24 = vld [vmem:[%s12994_s8 + $0x1] ss:$0 sm:$0xff] }
 0xdf5   :  { %v3196_v38 = vadd.f32 %v3180_v43, %v10704_v6  ;;  %v3197_v50 = vadd.f32 %v3181_v39, %v10698_v60  ;;  %v3198_v59 = vadd.f32 %v3182_v47, %v10720_v46  ;;  %v3199_v60 = vadd.f32 %v3183_v13, %v10714_v36 }
 0xdf6   :  { %v3185_v6 = vadd.f32 %v10799_v3, %v3161_v34  ;;  %v3200_v46 = vadd.f32 %v3184_v21, %v10731_v27  ;;  %v3164_v20 = vmul.f32 %v10788_v53, %v3142_v63  ;;  %v3144_v15 = vmul.f32 %v10785_v61, %v10765_v9  ;;  %v10878_v63 = vld [vmem:[%s12987_s9 + $0x2] ss:$0 sm:$0xff] }
 0xdf7   :  { %8052 = vmatprep.mubr.f32.mxu0 %v3196_v38  ;;  %v3187_v29 = vadd.f32 %v10799_v3, %v3163_v7  ;;  %v3165_v1 = vmul.f32 %v10788_v53, %v3143_v30  ;;  %v3145_v42 = vmul.f32 %v10785_v61, %v10757_v54  ;;  %v3202_v27 = vadd.f32 %v3186_v55, %v10742_v28 }
 0xdf8   :  { %8053 = vmatmul.mubr.f32.vlgmr.msra.gmra.mxu0 %v3197_v50  ;;  %v3201_v36 = vadd.f32 %v3185_v6, %v10726_v14  ;;  %v3188_v58 = vadd.f32 %v10799_v3, %v3164_v20  ;;  %v3166_v16 = vmul.f32 %v10788_v53, %v3144_v15  ;;  %v3146_v8 = vmul.f32 %v10785_v61, %v10773_v4 }
 0xdf9   :  { %8055 = vmatprep.mubr.f32.mxu0 %v3198_v59  ;;  %v3203_v14 = vadd.f32 %v3187_v29, %v10738_v41  ;;  %v3189_v56 = vadd.f32 %v10799_v3, %v3165_v1  ;;  %v3167_v52 = vmul.f32 %v10788_v53, %v3145_v42  ;;  %v3147_v18 = vmul.f32 %v10785_v61, %v10767_v33 }
 0xdfa   :  { %v3204_v28 = vadd.f32 %v3188_v58, %v10752_v49  ;;  %v3190_v2 = vadd.f32 %v10799_v3, %v3166_v16  ;;  %v3168_v12 = vmul.f32 %v10788_v53, %v3146_v8  ;;  %v3148_v43 = vmul.f32 %v10785_v61, %v10781_v17 }
 0xdfb   :  { %v3205_v41 = vadd.f32 %v3189_v56, %v10747_v19  ;;  %v3191_v39 = vadd.f32 %v10799_v3, %v3167_v52  ;;  %v3169_v47 = vmul.f32 %v10788_v53, %v3147_v18  ;;  %v3149_v45 = vmul.f32 %v10785_v61, %v10775_v22 }
 0xdfc   :  { %8056 = vmatmul.mubr.f32.gmra.mxu0 %v3199_v60  ;;  %v3206_v49 = vadd.f32 %v3190_v2, %v10765_v9  ;;  %v3192_v38 = vadd.f32 %v10799_v3, %v3168_v12  ;;  %v3170_v50 = vmul.f32 %v10788_v53, %v3148_v43 }
 0xdfd   :  { %8058 = vmatprep.mubr.f32.mxu0 %v3200_v46  ;;  %v3207_v13 = vadd.f32 %v3191_v39, %v10757_v54  ;;  %v3193_v19 = vadd.f32 %v10799_v3, %v3169_v47  ;;  %v3171_v34 = vmul.f32 %v10788_v53, %v3149_v45 }
 0xdfe   :  { %v3208_v31 = vadd.f32 %v3192_v38, %v10773_v4  ;;  %v3194_v61 = vadd.f32 %v10799_v3, %v3170_v50 }
 0xdff   :  { %v3209_v9 = vadd.f32 %v3193_v19, %v10767_v33  ;;  %v3195_v59 = vadd.f32 %v10799_v3, %v3171_v34 }
 0xe00   :  { %8059 = vmatmul.mubr.f32.gmra.mxu0 %v3201_v36  ;;  %v3210_v21 = vadd.f32 %v3194_v61, %v10781_v17  ;;  %v10885_v17 = vld [vmem:[%s12988_s13 + $0x2] ss:$0 sm:$0xff] }
 0xe01   :  { %8061 = vmatprep.mubr.f32.mxu0 %v3202_v27  ;;  %v3211_v54 = vadd.f32 %v3195_v59, %v10775_v22 }
 0xe04   :  { %8062 = vmatmul.mubr.f32.gmra.mxu0 %v3203_v14 }
 0xe05   :  { %8064 = vmatprep.mubr.f32.mxu0 %v3204_v28 }
 0xe08   :  { %8065 = vmatmul.mubr.f32.gmra.mxu0 %v3205_v41 }
 0xe09   :  { %8067 = vmatprep.mubr.f32.mxu0 %v3206_v49 }
 0xe0c   :  { %8068 = vmatmul.mubr.f32.gmra.mxu0 %v3207_v13 }
 0xe0d   :  { %8070 = vmatprep.mubr.f32.mxu0 %v3208_v31 }
 0xe10   :  { %8071 = vmatmul.mubr.f32.gmra.mxu0 %v3209_v9 }
 0xe11   :  { %8073 = vmatprep.mubr.f32.mxu0 %v3210_v21 }
 0xe14   :  { %8074 = vmatmul.mubr.f32.gmra.mxu0 %v3211_v54 }
 0xeb8   :  { %v8054_v53 = vpop.f32.mrf.mxu0 }
 0xeb9   :  { %v3309_v4 = vadd.f32 %v8054_v53, %v10874_v24 }
 0xeba   :  { %v3303_v60 = vpop.f32.mrf.mxu0 }
 0xebb   :  { %v10881_v6 = vadd.f32 %v3309_v4, %v10379_v0  ;;  %v3304_v33 = vadd.f32 %v10874_v24, %v3303_v60 }
 0xebc   :  { %v8057_v3 = vpop.f32.mrf.mxu0 }
 0xebd   :  { %v3407_v22 = vmul.f32 %v10878_v63, %v10881_v6  ;;  %v10890_v7 = vadd.f32 %v3304_v33, %v10388_v62  ;;  %v3319_v30 = vadd.f32 %v8057_v3, %v10874_v24 }
 0xebe   :  { %v3313_v46 = vpop.f32.mrf.mxu0 }
 0xebf   :  { %v3406_v55 = vmul.f32 %v10878_v63, %v10890_v7  ;;  %v10896_v0 = vadd.f32 %v3319_v30, %v10394_v48  ;;  %v3314_v20 = vadd.f32 %v10874_v24, %v3313_v46  ;;  %v10900_v15 = vadd.f32 %v10885_v17, %v3407_v22 }
 0xec0   :  { %v8060_v36 = vpop.f32.mrf.mxu0 }
 0xec1   :  { %v3409_v29 = vmul.f32 %v10878_v63, %v10896_v0  ;;  %v10905_v62 = vadd.f32 %v3314_v20, %v10403_v40  ;;  %v3329_v1 = vadd.f32 %v8060_v36, %v10874_v24  ;;  %3452 = vadd.xlane.f32.xlu0 %v10900_v15  ;;  %v10910_v42 = vadd.f32 %v10885_v17, %v3406_v55 }
 0xec2   :  { %v3323_v48 = vpop.f32.mrf.mxu0 }
 0xec3   :  { %v3408_v27 = vmul.f32 %v10878_v63, %v10905_v62  ;;  %v10915_v58 = vadd.f32 %v3329_v1, %v10413_v32  ;;  %v3324_v16 = vadd.f32 %v10874_v24, %v3323_v48  ;;  %3450 = vadd.xlane.f32.xlu1 %v10910_v42  ;;  %v10920_v40 = vadd.f32 %v10885_v17, %v3409_v29 }
 0xec4   :  { %v8063_v8 = vpop.f32.mrf.mxu0 }
 0xec5   :  { %v3411_v14 = vmul.f32 %v10878_v63, %v10915_v58  ;;  %v10925_v56 = vadd.f32 %v3324_v16, %v10423_v37  ;;  %v3339_v52 = vadd.f32 %v8063_v8, %v10874_v24  ;;  %3456 = vadd.xlane.f32.xlu0 %v10920_v40  ;;  %v10930_v32 = vadd.f32 %v10885_v17, %v3408_v27 }
 0xec6   :  { %v3333_v18 = vpop.f32.mrf.mxu0 }
 0xec7   :  { %v3410_v28 = vmul.f32 %v10878_v63, %v10925_v56  ;;  %v10935_v2 = vadd.f32 %v3339_v52, %v10433_v23  ;;  %v3334_v12 = vadd.f32 %v10874_v24, %v3333_v18  ;;  %3454 = vadd.xlane.f32.xlu1 %v10930_v32  ;;  %v10940_v37 = vadd.f32 %v10885_v17, %v3411_v14  ;;  %v3685_v18 = vld [vmem:[#allocation2 + $0x170] sm:$0xff] }
 0xec8   :  { %v8066_v43 = vpop.f32.mrf.mxu0 }
 0xec9   :  { %v3413_v41 = vmul.f32 %v10878_v63, %v10935_v2  ;;  %v10945_v39 = vadd.f32 %v3334_v12, %v10443_v44  ;;  %v3349_v47 = vadd.f32 %v8066_v43, %v10874_v24  ;;  %3460 = vadd.xlane.f32.xlu0 %v10940_v37  ;;  %v10950_v23 = vadd.f32 %v10885_v17, %v3410_v28  ;;  %v3684_v28 = vld [vmem:[#allocation2 + $0x168] sm:$0xff] }
 0xeca   :  { %v3343_v45 = vpop.f32.mrf.mxu0 }
 0xecb   :  { %v3412_v49 = vmul.f32 %v10878_v63, %v10945_v39  ;;  %v10955_v38 = vadd.f32 %v3349_v47, %v10453_v51  ;;  %v3344_v50 = vadd.f32 %v10874_v24, %v3343_v45  ;;  %3458 = vadd.xlane.f32.xlu1 %v10950_v23  ;;  %v10960_v44 = vadd.f32 %v10885_v17, %v3413_v41 }
 0xecc   :  { %v8069_v13 = vpop.f32.mrf.mxu0 }
 0xecd   :  { %v3415_v19 = vmul.f32 %v10878_v63, %v10955_v38  ;;  %v10965_v34 = vadd.f32 %v3344_v50, %v10463_v26  ;;  %v3359_v31 = vadd.f32 %v8069_v13, %v10874_v24  ;;  %3464 = vadd.xlane.f32.xlu0 %v10960_v44  ;;  %v10970_v51 = vadd.f32 %v10885_v17, %v3412_v49 }
 0xece   :  { %v3353_v61 = vpop.f32.mrf.mxu0 }
 0xecf   :  { %v3414_v9 = vmul.f32 %v10878_v63, %v10965_v34  ;;  %v10975_v59 = vadd.f32 %v3359_v31, %v10473_v5  ;;  %v3354_v21 = vadd.f32 %v10874_v24, %v3353_v61  ;;  %3462 = vadd.xlane.f32.xlu1 %v10970_v51  ;;  %v10980_v26 = vadd.f32 %v10885_v17, %v3415_v19 }
 0xed0   :  { %v8072_v54 = vpop.f32.mrf.mxu0 }
 0xed1   :  { %v3417_v53 = vmul.f32 %v10878_v63, %v10975_v59  ;;  %v10985_v4 = vadd.f32 %v3354_v21, %v10483_v10  ;;  %v3369_v60 = vadd.f32 %v8072_v54, %v10874_v24  ;;  %3468 = vadd.xlane.f32.xlu0 %v10980_v26  ;;  %v10990_v5 = vadd.f32 %v10885_v17, %v3414_v9 }
 0xed2   :  { %v3363_v33 = vpop.f32.mrf.mxu0 }
 0xed3   :  { %v3416_v3 = vmul.f32 %v10878_v63, %v10985_v4  ;;  %v10995_v22 = vadd.f32 %v3369_v60, %v10493_v35  ;;  %v3364_v30 = vadd.f32 %v10874_v24, %v3363_v33  ;;  %3466 = vadd.xlane.f32.xlu1 %v10990_v5  ;;  %v11000_v10 = vadd.f32 %v10885_v17, %v3417_v53 }
 0xed4   :  { %v8075_v46 = vpop.f32.mrf.mxu0 }
 0xed5   :  { %v3419_v55 = vmul.f32 %v10878_v63, %v10995_v22  ;;  %v11005_v20 = vadd.f32 %v3364_v30, %v10503_v25  ;;  %v3379_v36 = vadd.f32 %v8075_v46, %v10874_v24  ;;  %3472 = vadd.xlane.f32.xlu0 %v11000_v10  ;;  %v11010_v35 = vadd.f32 %v10885_v17, %v3416_v3 }
 0xed6   :  { %v3373_v29 = vpop.f32.mrf.mxu0 }
 0xed7   :  { %v3418_v1 = vmul.f32 %v10878_v63, %v11005_v20  ;;  %v11015_v48 = vadd.f32 %v3379_v36, %v10513_v11  ;;  %v3374_v27 = vadd.f32 %v10874_v24, %v3373_v29  ;;  %3470 = vadd.xlane.f32.xlu1 %v11010_v35  ;;  %v11020_v25 = vadd.f32 %v10885_v17, %v3419_v55 }
 0xed9   :  { %v3421_v16 = vmul.f32 %v10878_v63, %v11015_v48  ;;  %v11025_v8 = vadd.f32 %v3374_v27, %v10523_v57  ;;  %3476 = vadd.xlane.f32.xlu0 %v11020_v25  ;;  %v11029_v14 = vadd.f32 %v10885_v17, %v3418_v1  ;;  %v3686_v57 = vld [vmem:[#allocation2 + $0x178] sm:$0xff] }
 0xeda   :  { %8076 = vmatprep.subr.mxu1 %v3686_v57 }
 0xedb   :  { %v3420_v11 = vmul.f32 %v10878_v63, %v11025_v8  ;;  %3474 = vadd.xlane.f32.xlu1 %v11029_v14  ;;  %v11035_v24 = vadd.f32 %v10885_v17, %v3421_v16  ;;  %8077 = vmatpush3.msra.mxu1 %v3686_v57 }
 0xedc   :  { %8078 = vmatprep.subr.mxu1 %v3685_v18 }
 0xedd   :  { %3480 = vadd.xlane.f32.xlu0 %v11035_v24  ;;  %v11039_v52 = vadd.f32 %v10885_v17, %v3420_v11  ;;  %8079 = vmatpush3.msra.mxu1 %v3685_v18 }
 0xede   :  { %8080 = vmatprep.subr.mxu1 %v3684_v28 }
 0xedf   :  { %3478 = vadd.xlane.f32.xlu1 %v11039_v52  ;;  %8081 = vmatpush3.msra.mxu1 %v3684_v28 }
 0xf4a   :  { %v3453_v63 = vpop.xlane.xlu0 %3452 }
 0xf4b   :  { %v3483_v12 = vmul.f32 0.0078125, %v3453_v63 }
 0xf4c   :  { %v3451_v43 = vpop.xlane.xlu1 %3450 }
 0xf4d   :  { %v11043_v41 = vsub.f32 %v10900_v15, %v3483_v12  ;;  %v3482_v47 = vmul.f32 0.0078125, %v3451_v43  ;;  %v3683_v12 = vld [vmem:[#allocation2 + $0x160] sm:$0xff] }
 0xf4e   :  { %v3457_v17 = vpop.xlane.xlu0 %3456  ;;  %8082 = vmatprep.subr.mxu1 %v3683_v12 }
 0xf4f   :  { %v11046_v45 = vsub.f32 %v10910_v42, %v3482_v47  ;;  %v3485_v49 = vmul.f32 0.0078125, %v3457_v17  ;;  %v3515_v50 = vmul.f32 %v11043_v41, %v11043_v41  ;;  %8083 = vmatpush3.msra.mxu1 %v3683_v12 }
 0xf50   :  { %v3455_v13 = vpop.xlane.xlu1 %3454 }
 0xf51   :  { %v11051_v19 = vsub.f32 %v10920_v40, %v3485_v49  ;;  %v3484_v31 = vmul.f32 0.0078125, %v3455_v13  ;;  %3532 = vadd.xlane.f32.xlu0 %v3515_v50  ;;  %v3514_v61 = vmul.f32 %v11046_v45, %v11046_v45  ;;  %v3682_v49 = vld [vmem:[#allocation2 + $0x158] sm:$0xff] }
 0xf52   :  { %v3461_v15 = vpop.xlane.xlu0 %3460  ;;  %8084 = vmatprep.subr.mxu1 %v3682_v49 }
 0xf53   :  { %v11056_v9 = vsub.f32 %v10930_v32, %v3484_v31  ;;  %v3487_v21 = vmul.f32 0.0078125, %v3461_v15  ;;  %3530 = vadd.xlane.f32.xlu1 %v3514_v61  ;;  %v3517_v42 = vmul.f32 %v11051_v19, %v11051_v19  ;;  %8085 = vmatpush3.msra.mxu1 %v3682_v49 }
 0xf54   :  { %v3459_v54 = vpop.xlane.xlu1 %3458 }
 0xf55   :  { %v11061_v53 = vsub.f32 %v10940_v37, %v3487_v21  ;;  %v3486_v40 = vmul.f32 0.0078125, %v3459_v54  ;;  %3536 = vadd.xlane.f32.xlu0 %v3517_v42  ;;  %v3516_v60 = vmul.f32 %v11056_v9, %v11056_v9 }
 0xf56   :  { %v3465_v33 = vpop.xlane.xlu0 %3464 }
 0xf57   :  { %v11066_v3 = vsub.f32 %v10950_v23, %v3486_v40  ;;  %v3489_v32 = vmul.f32 0.0078125, %v3465_v33  ;;  %3534 = vadd.xlane.f32.xlu1 %v3516_v60  ;;  %v3519_v30 = vmul.f32 %v11061_v53, %v11061_v53 }
 0xf58   :  { %v3463_v46 = vpop.xlane.xlu1 %3462 }
 0xf59   :  { %v11071_v55 = vsub.f32 %v10960_v44, %v3489_v32  ;;  %v3488_v37 = vmul.f32 0.0078125, %v3463_v46  ;;  %3540 = vadd.xlane.f32.xlu0 %v3519_v30  ;;  %v3518_v36 = vmul.f32 %v11066_v3, %v11066_v3 }
 0xf5a   :  { %v3469_v29 = vpop.xlane.xlu0 %3468 }
 0xf5b   :  { %v11076_v1 = vsub.f32 %v10970_v51, %v3488_v37  ;;  %v3491_v23 = vmul.f32 0.0078125, %v3469_v29  ;;  %3538 = vadd.xlane.f32.xlu1 %v3518_v36  ;;  %v3521_v27 = vmul.f32 %v11071_v55, %v11071_v55 }
 0xf5c   :  { %v3467_v16 = vpop.xlane.xlu1 %3466 }
 0xf5d   :  { %v11081_v11 = vsub.f32 %v10980_v26, %v3491_v23  ;;  %v3490_v44 = vmul.f32 0.0078125, %v3467_v16  ;;  %3544 = vadd.xlane.f32.xlu0 %v3521_v27  ;;  %v3520_v57 = vmul.f32 %v11076_v1, %v11076_v1  ;;  %v3677_v23 = vld [vmem:[#allocation2 + $0x130] sm:$0xff]  ;;  %v3676_v27 = vld [vmem:[#allocation2 + $0x128] sm:$0xff]  ;;  %v3675_v16 = vld [vmem:[#allocation2 + $0x120] sm:$0xff] }
 0xf5e   :  { %v3473_v18 = vpop.xlane.xlu0 %3472 }
 0xf5f   :  { %v11086_v28 = vsub.f32 %v10990_v5, %v3490_v44  ;;  %v3493_v51 = vmul.f32 0.0078125, %v3473_v18  ;;  %3542 = vadd.xlane.f32.xlu1 %v3520_v57  ;;  %v3523_v63 = vmul.f32 %v11081_v11, %v11081_v11  ;;  %v3673_v44 = vld [vmem:[#allocation2 + $0x110] sm:$0xff]  ;;  %v3672_v57 = vld [vmem:[#allocation2 + $0x108] sm:$0xff]  ;;  %v3671_v18 = vld [vmem:[#allocation2 + $0x100] sm:$0xff] }
 0xf60   :  { %v3471_v43 = vpop.xlane.xlu1 %3470 }
 0xf61   :  { %v11091_v26 = vsub.f32 %v11000_v10, %v3493_v51  ;;  %v3492_v47 = vmul.f32 0.0078125, %v3471_v43  ;;  %3548 = vadd.xlane.f32.xlu0 %v3523_v63  ;;  %v3522_v17 = vmul.f32 %v11086_v28, %v11086_v28  ;;  %v3681_v10 = vld [vmem:[#allocation2 + $0x150] sm:$0xff] }
 0xf62   :  { %v3477_v5 = vpop.xlane.xlu0 %3476  ;;  %8086 = vmatprep.subr.mxu1 %v3681_v10 }
 0xf63   :  { %v11096_v50 = vsub.f32 %v11010_v35, %v3492_v47  ;;  %v3495_v13 = vmul.f32 0.0078125, %v3477_v5  ;;  %3546 = vadd.xlane.f32.xlu1 %v3522_v17  ;;  %v3525_v31 = vmul.f32 %v11091_v26, %v11091_v26  ;;  %8087 = vmatpush3.msra.mxu1 %v3681_v10  ;;  %v3680_v35 = vld [vmem:[#allocation2 + $0x148] sm:$0xff] }
 0xf64   :  { %v3475_v61 = vpop.xlane.xlu1 %3474  ;;  %8088 = vmatprep.subr.mxu1 %v3680_v35 }
 0xf65   :  { %v11101_v15 = vsub.f32 %v11020_v25, %v3495_v13  ;;  %v3494_v21 = vmul.f32 0.0078125, %v3475_v61  ;;  %3552 = vadd.xlane.f32.xlu0 %v3525_v31  ;;  %v3524_v42 = vmul.f32 %v11096_v50, %v11096_v50  ;;  %8089 = vmatpush3.msra.mxu1 %v3680_v35  ;;  %v3679_v25 = vld [vmem:[#allocation2 + $0x140] sm:$0xff] }
 0xf66   :  { %v3481_v54 = vpop.xlane.xlu0 %3480  ;;  %8090 = vmatprep.subr.mxu1 %v3679_v25 }
 0xf67   :  { %v11106_v40 = vsub.f32 %v11029_v14, %v3494_v21  ;;  %v3497_v60 = vmul.f32 0.0078125, %v3481_v54  ;;  %3550 = vadd.xlane.f32.xlu1 %v3524_v42  ;;  %v3527_v33 = vmul.f32 %v11101_v15, %v11101_v15  ;;  %8091 = vmatpush3.msra.mxu1 %v3679_v25  ;;  %v3678_v14 = vld [vmem:[#allocation2 + $0x138] sm:$0xff] }
 0xf68   :  { %v3479_v32 = vpop.xlane.xlu1 %3478  ;;  %8092 = vmatprep.subr.mxu1 %v3678_v14 }
 0xf69   :  { %v11111_v30 = vsub.f32 %v11035_v24, %v3497_v60  ;;  %v3496_v46 = vmul.f32 0.0078125, %v3479_v32  ;;  %3556 = vadd.xlane.f32.xlu0 %v3527_v33  ;;  %v3526_v37 = vmul.f32 %v11106_v40, %v11106_v40  ;;  %8093 = vmatpush3.msra.mxu1 %v3678_v14 }
 0xf6a   :  { %8094 = vmatprep.subr.mxu1 %v3677_v23 }
 0xf6b   :  { %v11116_v36 = vsub.f32 %v11039_v52, %v3496_v46  ;;  %3554 = vadd.xlane.f32.xlu1 %v3526_v37  ;;  %v3529_v29 = vmul.f32 %v11111_v30, %v11111_v30  ;;  %8095 = vmatpush3.msra.mxu1 %v3677_v23  ;;  %v3674_v52 = vld [vmem:[#allocation2 + $0x118] sm:$0xff] }
 0xf6c   :  { %8096 = vmatprep.subr.mxu1 %v3676_v27 }
 0xf6d   :  { %3560 = vadd.xlane.f32.xlu0 %v3529_v29  ;;  %v3528_v24 = vmul.f32 %v11116_v36, %v11116_v36  ;;  %8097 = vmatpush3.msra.mxu1 %v3676_v27 }
 0xf6e   :  { %8098 = vmatprep.subr.mxu1 %v3675_v16 }
 0xf6f   :  { %3558 = vadd.xlane.f32.xlu1 %v3528_v24  ;;  %8099 = vmatpush3.msra.mxu1 %v3675_v16 }
 0xf70   :  { %8100 = vmatprep.subr.mxu1 %v3674_v52 }
 0xf71   :  { %8101 = vmatpush3.msra.mxu1 %v3674_v52 }
 0xf72   :  { %8102 = vmatprep.subr.mxu1 %v3673_v44 }
 0xf73   :  { %8103 = vmatpush3.msra.mxu1 %v3673_v44 }
 0xf74   :  { %8104 = vmatprep.subr.mxu1 %v3672_v57 }
 0xf75   :  { %8105 = vmatpush3.msra.mxu1 %v3672_v57  ;;  %v11123_v57 = vld [vmem:[%s12989_s17 + $0x2] ss:$0 sm:$0xff] }
 0xf76   :  { %8106 = vmatprep.subr.mxu1 %v3671_v18 }
 0xf77   :  { %8107 = vmatpush3.msra.mxu1 %v3671_v18 }
 0xfda   :  { %v3533_v51 = vpop.xlane.xlu0 %3532 }
 0xfdb   :  { %v3563_v63 = vmul.f32 0.0078125, %v3533_v51 }
 0xfdc   :  { %v3531_v12 = vpop.xlane.xlu1 %3530 }
 0xfdd   :  { %v3579_v43 = vadd.f32 1e-05, %v3563_v63  ;;  %v3562_v47 = vmul.f32 0.0078125, %v3531_v12 }
 0xfde   :  { %v3537_v17 = vpop.xlane.xlu0 %3536 }
 0xfdf   :  { %8864 = vrsqrt.f32 %v3579_v43  ;;  %v3578_v49 = vadd.f32 1e-05, %v3562_v47  ;;  %v3565_v5 = vmul.f32 0.0078125, %v3537_v17 }
 0xfe0   :  { %v3535_v13 = vpop.xlane.xlu1 %3534 }
 0xfe1   :  { %8866 = vrsqrt.f32 %v3578_v49  ;;  %v3581_v31 = vadd.f32 1e-05, %v3565_v5  ;;  %v3564_v10 = vmul.f32 0.0078125, %v3535_v13 }
 0xfe2   :  { %v3541_v61 = vpop.xlane.xlu0 %3540 }
 0xfe3   :  { %8868 = vrsqrt.f32 %v3581_v31  ;;  %v3580_v21 = vadd.f32 1e-05, %v3564_v10  ;;  %v3567_v42 = vmul.f32 0.0078125, %v3541_v61  ;;  %v11129_v10 = vld [vmem:[%s12990_s21 + $0x2] ss:$0 sm:$0xff] }
 0xfe4   :  { %v3539_v35 = vpop.xlane.xlu1 %3538 }
 0xfe5   :  { %8870 = vrsqrt.f32 %v3580_v21  ;;  %v3583_v54 = vadd.f32 1e-05, %v3567_v42  ;;  %v3566_v60 = vmul.f32 0.0078125, %v3539_v35 }
 0xfe6   :  { %v3545_v33 = vpop.xlane.xlu0 %3544 }
 0xfe7   :  { %8872 = vrsqrt.f32 %v3583_v54  ;;  %v3582_v25 = vadd.f32 1e-05, %v3566_v60  ;;  %v3569_v32 = vmul.f32 0.0078125, %v3545_v33 }
 0xfe8   :  { %v3543_v46 = vpop.xlane.xlu1 %3542 }
 0xfe9   :  { %8874 = vrsqrt.f32 %v3582_v25  ;;  %v3585_v37 = vadd.f32 1e-05, %v3569_v32  ;;  %v3568_v14 = vmul.f32 0.0078125, %v3543_v46 }
 0xfea   :  { %v3549_v29 = vpop.xlane.xlu0 %3548 }
 0xfeb   :  { %8876 = vrsqrt.f32 %v3585_v37  ;;  %v3584_v23 = vadd.f32 1e-05, %v3568_v14  ;;  %v3571_v24 = vmul.f32 0.0078125, %v3549_v29 }
 0xfec   :  { %v8865_v27 = vpop.eup %8864  ;;  %v3547_v16 = vpop.xlane.xlu1 %3546 }
 0xfed   :  { %8878 = vrsqrt.f32 %v3584_v23  ;;  %v3587_v52 = vadd.f32 1e-05, %v3571_v24  ;;  %v3570_v44 = vmul.f32 0.0078125, %v3547_v16  ;;  %v3611_v18 = vmul.f32 %v8865_v27, %v11043_v41 }
 0xfee   :  { %v8867_v51 = vpop.eup %8866  ;;  %v3553_v63 = vpop.xlane.xlu0 %3552 }
 0xfef   :  { %8880 = vrsqrt.f32 %v3587_v52  ;;  %v3586_v12 = vadd.f32 1e-05, %v3570_v44  ;;  %v3573_v43 = vmul.f32 0.0078125, %v3553_v63  ;;  %v3610_v47 = vmul.f32 %v8867_v51, %v11046_v45 }
 0xff0   :  { %v8869_v17 = vpop.eup %8868  ;;  %v3551_v49 = vpop.xlane.xlu1 %3550  ;;  %v3633_v5 = vmul.f32 %v11123_v57, %v3611_v18 }
 0xff1   :  { %8882 = vrsqrt.f32 %v3586_v12  ;;  %v3589_v13 = vadd.f32 1e-05, %v3573_v43  ;;  %v3572_v31 = vmul.f32 0.0078125, %v3551_v49  ;;  %v3632_v61 = vmul.f32 %v11123_v57, %v3610_v47 }
 0xff2   :  { %v8871_v21 = vpop.eup %8870  ;;  %v3557_v41 = vpop.xlane.xlu0 %3556  ;;  %v3613_v42 = vmul.f32 %v8869_v17, %v11051_v19  ;;  %v3655_v25 = vadd.f32 %v11129_v10, %v3633_v5 }
 0xff3   :  { %8884 = vrsqrt.f32 %v3589_v13  ;;  %v3588_v35 = vadd.f32 1e-05, %v3572_v31  ;;  %v3575_v54 = vmul.f32 0.0078125, %v3557_v41  ;;  %v3654_v45 = vadd.f32 %v11129_v10, %v3632_v61 }
 0xff4   :  { %v8873_v60 = vpop.eup %8872  ;;  %v3555_v33 = vpop.xlane.xlu1 %3554  ;;  %v3612_v32 = vmul.f32 %v8871_v21, %v11056_v9  ;;  %v3635_v46 = vmul.f32 %v11123_v57, %v3613_v42 }
 0xff5   :  { %8886 = vrsqrt.f32 %v3588_v35  ;;  %v3591_v37 = vadd.f32 1e-05, %v3575_v54  ;;  %v3574_v14 = vmul.f32 0.0078125, %v3555_v33  ;;  %8108 = vmatprep.mubr.f32.mxu1 %v3654_v45  ;;  %v3615_v29 = vmul.f32 %v8873_v60, %v11061_v53 }
 0xff6   :  { %v8875_v19 = vpop.eup %8874  ;;  %v3561_v23 = vpop.xlane.xlu0 %3560  ;;  %8109 = vmatmul.mubr.f32.vlgmr.msra.gmra.mxu1 %v3655_v25  ;;  %v3634_v24 = vmul.f32 %v11123_v57, %v3612_v32  ;;  %v3657_v51 = vadd.f32 %v11129_v10, %v3635_v46 }
 0xff7   :  { %8888 = vrsqrt.f32 %v3591_v37  ;;  %v3590_v27 = vadd.f32 1e-05, %v3574_v14  ;;  %v3577_v16 = vmul.f32 0.0078125, %v3561_v23  ;;  %v3614_v52 = vmul.f32 %v8875_v19, %v11066_v3 }
 0xff8   :  { %v8877_v44 = vpop.eup %8876  ;;  %v3559_v9 = vpop.xlane.xlu1 %3558  ;;  %v3656_v18 = vadd.f32 %v11129_v10, %v3634_v24  ;;  %v3637_v63 = vmul.f32 %v11123_v57, %v3615_v29 }
 0xff9   :  { %8890 = vrsqrt.f32 %v3590_v27  ;;  %v3593_v53 = vadd.f32 1e-05, %v3577_v16  ;;  %v3576_v12 = vmul.f32 0.0078125, %v3559_v9  ;;  %v3636_v43 = vmul.f32 %v11123_v57, %v3614_v52 }
 0xffa   :  { %v8879_v47 = vpop.eup %8878  ;;  %8111 = vmatprep.mubr.f32.mxu1 %v3656_v18  ;;  %v3617_v17 = vmul.f32 %v8877_v44, %v11071_v55  ;;  %v3659_v31 = vadd.f32 %v11129_v10, %v3637_v63 }
 0xffb   :  { %8892 = vrsqrt.f32 %v3593_v53  ;;  %v3592_v49 = vadd.f32 1e-05, %v3576_v12  ;;  %8112 = vmatmul.mubr.f32.gmra.mxu1 %v3657_v51  ;;  %v3658_v3 = vadd.f32 %v11129_v10, %v3636_v43  ;;  %v3616_v5 = vmul.f32 %v8879_v47, %v11076_v1 }
 0xffc   :  { %v8881_v13 = vpop.eup %8880  ;;  %v3639_v21 = vmul.f32 %v11123_v57, %v3617_v17 }
 0xffd   :  { %8894 = vrsqrt.f32 %v3592_v49  ;;  %8114 = vmatprep.mubr.f32.mxu1 %v3658_v3  ;;  %v3638_v61 = vmul.f32 %v11123_v57, %v3616_v5  ;;  %v3619_v41 = vmul.f32 %v8881_v13, %v11081_v11 }
 0xffe   :  { %v8883_v42 = vpop.eup %8882  ;;  %v3661_v1 = vadd.f32 %v11129_v10, %v3639_v21 }
 0xfff   :  { %8115 = vmatmul.mubr.f32.gmra.mxu1 %v3659_v31  ;;  %v3660_v55 = vadd.f32 %v11129_v10, %v3638_v61  ;;  %v3618_v35 = vmul.f32 %v8883_v42, %v11086_v28  ;;  %v3641_v60 = vmul.f32 %v11123_v57, %v3619_v41 }
0x1000   :  { %v8885_v54 = vpop.eup %8884 }
0x1001   :  { %8117 = vmatprep.mubr.f32.mxu1 %v3660_v55  ;;  %v3640_v45 = vmul.f32 %v11123_v57, %v3618_v35  ;;  %v3621_v33 = vmul.f32 %v8885_v54, %v11091_v26  ;;  %v3663_v28 = vadd.f32 %v11129_v10, %v3641_v60 }
0x1002   :  { %v8887_v25 = vpop.eup %8886 }
0x1003   :  { %8118 = vmatmul.mubr.f32.gmra.mxu1 %v3661_v1  ;;  %v3662_v11 = vadd.f32 %v11129_v10, %v3640_v45  ;;  %v3620_v32 = vmul.f32 %v8887_v25, %v11096_v50  ;;  %v3643_v14 = vmul.f32 %v11123_v57, %v3621_v33 }
0x1004   :  { %v8889_v46 = vpop.eup %8888 }
0x1005   :  { %8120 = vmatprep.mubr.f32.mxu1 %v3662_v11  ;;  %v3642_v37 = vmul.f32 %v11123_v57, %v3620_v32  ;;  %v3623_v29 = vmul.f32 %v8889_v46, %v11101_v15  ;;  %v3665_v50 = vadd.f32 %v11129_v10, %v3643_v14 }
0x1006   :  { %v8891_v19 = vpop.eup %8890 }
0x1007   :  { %8121 = vmatmul.mubr.f32.gmra.mxu1 %v3663_v28  ;;  %v3664_v26 = vadd.f32 %v11129_v10, %v3642_v37  ;;  %v3622_v23 = vmul.f32 %v8891_v19, %v11106_v40  ;;  %v3645_v16 = vmul.f32 %v11123_v57, %v3623_v29 }
0x1008   :  { %v8893_v24 = vpop.eup %8892 }
0x1009   :  { %8123 = vmatprep.mubr.f32.mxu1 %v3664_v26  ;;  %v3644_v27 = vmul.f32 %v11123_v57, %v3622_v23  ;;  %v3625_v52 = vmul.f32 %v8893_v24, %v11111_v30  ;;  %v3667_v40 = vadd.f32 %v11129_v10, %v3645_v16  ;;  %v11177_v30 = vld [vmem:[%s12991_s25 + $0x2] ss:$0 sm:$0xff] }
0x100a   :  { %v8895_v44 = vpop.eup %8894 }
0x100b   :  { %8124 = vmatmul.mubr.f32.gmra.mxu1 %v3665_v50  ;;  %v3666_v15 = vadd.f32 %v11129_v10, %v3644_v27  ;;  %v3624_v9 = vmul.f32 %v8895_v44, %v11116_v36  ;;  %v3647_v51 = vmul.f32 %v11123_v57, %v3625_v52 }
0x100d   :  { %8126 = vmatprep.mubr.f32.mxu1 %v3666_v15  ;;  %v3646_v18 = vmul.f32 %v11123_v57, %v3624_v9  ;;  %v3669_v53 = vadd.f32 %v11129_v10, %v3647_v51 }
0x100f   :  { %8127 = vmatmul.mubr.f32.gmra.mxu1 %v3667_v40  ;;  %v3668_v63 = vadd.f32 %v11129_v10, %v3646_v18 }
0x1011   :  { %8129 = vmatprep.mubr.f32.mxu1 %v3668_v63 }
0x1013   :  { %8130 = vmatmul.mubr.f32.gmra.mxu1 %v3669_v53 }
0x10b6   :  { %v8110_v12 = vpop.f32.mrf.mxu1 }
0x10b7   :  { %v3767_v43 = vadd.f32 %v8110_v12, %v11177_v30 }
0x10b8   :  { %v3761_v36 = vpop.f32.mrf.mxu1 }
0x10b9   :  { %v3857_v47 = vmul.f32 0.70710677, %v3767_v43  ;;  %v3762_v17 = vadd.f32 %v11177_v30, %v3761_v36  ;;  %v3841_v28 = vmul.f32 0.5, %v3767_v43 }
0x10bb   :  { %8896 = verf.f32 %v3857_v47  ;;  %v3856_v49 = vmul.f32 0.70710677, %v3762_v17  ;;  %v8113_v3 = vpop.f32.mrf.mxu1  ;;  %v3840_v24 = vmul.f32 0.5, %v3762_v17 }
0x10bc   :  { %v3777_v57 = vadd.f32 %v8113_v3, %v11177_v30 }
0x10bd   :  { %8898 = verf.f32 %v3856_v49  ;;  %v3771_v5 = vpop.f32.mrf.mxu1 }
0x10be   :  { %v3859_v13 = vmul.f32 0.70710677, %v3777_v57  ;;  %v3772_v10 = vadd.f32 %v11177_v30, %v3771_v5  ;;  %v3843_v18 = vmul.f32 0.5, %v3777_v57 }
0x10bf   :  { %v8116_v31 = vpop.f32.mrf.mxu1 }
0x10c0   :  { %8900 = verf.f32 %v3859_v13  ;;  %v3858_v61 = vmul.f32 0.70710677, %v3772_v10  ;;  %v3787_v21 = vadd.f32 %v8116_v31, %v11177_v30  ;;  %v3842_v12 = vmul.f32 0.5, %v3772_v10 }
0x10c1   :  { %v3781_v41 = vpop.f32.mrf.mxu1 }
0x10c2   :  { %8902 = verf.f32 %v3858_v61  ;;  %v3861_v42 = vmul.f32 0.70710677, %v3787_v21  ;;  %v3782_v55 = vadd.f32 %v11177_v30, %v3781_v41  ;;  %v3845_v31 = vmul.f32 0.5, %v3787_v21 }
0x10c3   :  { %v8119_v35 = vpop.f32.mrf.mxu1 }
0x10c4   :  { %8904 = verf.f32 %v3861_v42  ;;  %v3860_v54 = vmul.f32 0.70710677, %v3782_v55  ;;  %v11186_v1 = vadd.f32 %v8119_v35, %v11177_v30  ;;  %v3844_v35 = vmul.f32 0.5, %v3782_v55 }
0x10c5   :  { %v3791_v45 = vpop.f32.mrf.mxu1 }
0x10c6   :  { %8906 = verf.f32 %v3860_v54  ;;  %v3863_v60 = vmul.f32 0.70710677, %v11186_v1  ;;  %v11190_v33 = vadd.f32 %v11177_v30, %v3791_v45 }
0x10c7   :  { %v8122_v25 = vpop.f32.mrf.mxu1 }
0x10c8   :  { %v8897_v11 = vpop.eup %8896  ;;  %8908 = verf.f32 %v3863_v60  ;;  %v3862_v32 = vmul.f32 0.70710677, %v11190_v33  ;;  %v11194_v46 = vadd.f32 %v8122_v25, %v11177_v30 }
0x10c9   :  { %v3889_v37 = vadd.f32 1.0, %v8897_v11  ;;  %v3801_v14 = vpop.f32.mrf.mxu1 }
0x10ca   :  { %v8899_v29 = vpop.eup %8898  ;;  %8910 = verf.f32 %v3862_v32  ;;  %v3865_v19 = vmul.f32 0.70710677, %v11194_v46  ;;  %v11198_v26 = vadd.f32 %v11177_v30, %v3801_v14 }
0x10cb   :  { %v11200_v23 = vmul.f32 %v3889_v37, %v3841_v28  ;;  %v3888_v50 = vadd.f32 1.0, %v8899_v29  ;;  %v8125_v27 = vpop.f32.mrf.mxu1  ;;  %v3847_v29 = vmul.f32 0.5, %v11186_v1 }
0x10cc   :  { %8912 = verf.f32 %v3865_v19  ;;  %v3864_v16 = vmul.f32 0.70710677, %v11198_v26  ;;  %v11204_v52 = vadd.f32 %v8125_v27, %v11177_v30  ;;  %v3846_v27 = vmul.f32 0.5, %v11190_v33 }
0x10cd   :  { %v8901_v44 = vpop.eup %8900  ;;  %v11206_v15 = vmul.f32 %v3888_v50, %v3840_v24  ;;  %v3811_v9 = vpop.f32.mrf.mxu1  ;;  %v3921_v40 = vmul.f32 %v11200_v23, %v11200_v23  ;;  %v3849_v33 = vmul.f32 0.5, %v11194_v46 }
0x10ce   :  { %v3891_v51 = vadd.f32 1.0, %v8901_v44  ;;  %8914 = verf.f32 %v3864_v16  ;;  %v3867_v63 = vmul.f32 0.70710677, %v11204_v52  ;;  %v11212_v43 = vadd.f32 %v11177_v30, %v3811_v9 }
0x10cf   :  { %v8903_v53 = vpop.eup %8902  ;;  %v8128_v36 = vpop.f32.mrf.mxu1  ;;  %3938 = vadd.xlane.f32.xlu0 %v3921_v40  ;;  %v3920_v47 = vmul.f32 %v11206_v15, %v11206_v15  ;;  %v3851_v46 = vmul.f32 0.5, %v11204_v52 }
0x10d0   :  { %v11216_v17 = vmul.f32 %v3891_v51, %v3843_v18  ;;  %v3890_v49 = vadd.f32 1.0, %v8903_v53  ;;  %8916 = verf.f32 %v3867_v63  ;;  %v11219_v3 = vadd.f32 %v8128_v36, %v11177_v30 }
0x10d1   :  { %v8905_v57 = vpop.eup %8904  ;;  %v3866_v5 = vmul.f32 0.70710677, %v11212_v43  ;;  %v3821_v13 = vpop.f32.mrf.mxu1  ;;  %3936 = vadd.xlane.f32.xlu1 %v3920_v47  ;;  %v3848_v47 = vmul.f32 0.5, %v11198_v26 }
0x10d2   :  { %v11222_v10 = vmul.f32 %v3890_v49, %v3842_v12  ;;  %v3893_v61 = vadd.f32 1.0, %v8905_v57  ;;  %v3869_v41 = vmul.f32 0.70710677, %v11219_v3  ;;  %v3822_v54 = vadd.f32 %v11177_v30, %v3821_v13 }
0x10d3   :  { %v8907_v42 = vpop.eup %8906  ;;  %8918 = verf.f32 %v3866_v5  ;;  %v8131_v45 = vpop.f32.mrf.mxu1  ;;  %v3923_v60 = vmul.f32 %v11216_v17, %v11216_v17 }
0x10d4   :  { %v11228_v25 = vmul.f32 %v3893_v61, %v3845_v31  ;;  %v3892_v11 = vadd.f32 1.0, %v8907_v42  ;;  %8920 = verf.f32 %v3869_v41  ;;  %v3837_v32 = vadd.f32 %v8131_v45, %v11177_v30 }
0x10d5   :  { %v8909_v28 = vpop.eup %8908  ;;  %v3868_v21 = vmul.f32 0.70710677, %v3822_v54  ;;  %3942 = vadd.xlane.f32.xlu0 %v3923_v60  ;;  %v3831_v37 = vpop.f32.mrf.mxu1  ;;  %v3922_v55 = vmul.f32 %v11222_v10, %v11222_v10  ;;  %v3850_v45 = vmul.f32 0.5, %v11212_v43 }
0x10d6   :  { %v11233_v14 = vmul.f32 %v3892_v11, %v3844_v35  ;;  %v3895_v19 = vadd.f32 1.0, %v8909_v28  ;;  %v3871_v24 = vmul.f32 0.70710677, %v3837_v32  ;;  %v3832_v16 = vadd.f32 %v11177_v30, %v3831_v37 }
0x10d7   :  { %v8911_v50 = vpop.eup %8910  ;;  %8922 = verf.f32 %v3868_v21  ;;  %3940 = vadd.xlane.f32.xlu1 %v3922_v55  ;;  %v3925_v44 = vmul.f32 %v11228_v25, %v11228_v25  ;;  %v3853_v11 = vmul.f32 0.5, %v11219_v3 }
0x10d8   :  { %v11240_v9 = vmul.f32 %v3895_v19, %v3847_v29  ;;  %v3894_v40 = vadd.f32 1.0, %v8911_v50  ;;  %8924 = verf.f32 %v3871_v24  ;;  %v3924_v18 = vmul.f32 %v11233_v14, %v11233_v14 }
0x10d9   :  { %v8913_v1 = vpop.eup %8912  ;;  %v3870_v51 = vmul.f32 0.70710677, %v3832_v16  ;;  %3946 = vadd.xlane.f32.xlu0 %v3925_v44  ;;  %v3852_v19 = vmul.f32 0.5, %v3822_v54  ;;  %v3855_v50 = vmul.f32 0.5, %v3837_v32 }
0x10da   :  { %v11244_v63 = vmul.f32 %v3894_v40, %v3846_v27  ;;  %v3897_v53 = vadd.f32 1.0, %v8913_v1  ;;  %v3927_v30 = vmul.f32 %v11240_v9, %v11240_v9  ;;  %v3854_v1 = vmul.f32 0.5, %v3832_v16  ;;  %v4094_v16 = vld [vmem:[#allocation4 + $0x170] sm:$0xff] }
0x10db   :  { %v8915_v12 = vpop.eup %8914  ;;  %8926 = verf.f32 %v3870_v51  ;;  %3944 = vadd.xlane.f32.xlu1 %v3924_v18 }
0x10dc   :  { %v11249_v36 = vmul.f32 %v3897_v53, %v3849_v33  ;;  %v3896_v49 = vadd.f32 1.0, %v8915_v12  ;;  %v3926_v57 = vmul.f32 %v11244_v63, %v11244_v63  ;;  %v4093_v12 = vld [vmem:[#allocation4 + $0x168] sm:$0xff] }
0x10dd   :  { %v8917_v5 = vpop.eup %8916  ;;  %3950 = vadd.xlane.f32.xlu0 %v3927_v30  ;;  %v4095_v30 = vld [vmem:[#allocation4 + $0x178] sm:$0xff] }
0x10de   :  { %v11254_v13 = vmul.f32 %v3896_v49, %v3848_v47  ;;  %v3899_v31 = vadd.f32 1.0, %v8917_v5  ;;  %v3929_v61 = vmul.f32 %v11249_v36, %v11249_v36  ;;  %8132 = vmatprep.subr.mxu0 %v4095_v30  ;;  %v4092_v47 = vld [vmem:[#allocation4 + $0x160] sm:$0xff]  ;;  %v4091_v49 = vld [vmem:[#allocation4 + $0x158] sm:$0xff]  ;;  %v4089_v5 = vld [vmem:[#allocation4 + $0x148] sm:$0xff] }
0x10df   :  { %3948 = vadd.xlane.f32.xlu1 %v3926_v57  ;;  %8133 = vmatpush3.msra.mxu0 %v4095_v30  ;;  %v4090_v57 = vld [vmem:[#allocation4 + $0x150] sm:$0xff] }
0x10e0   :  { %v8919_v41 = vpop.eup %8918  ;;  %v11259_v42 = vmul.f32 %v3899_v31, %v3851_v46  ;;  %v3928_v26 = vmul.f32 %v11254_v13, %v11254_v13  ;;  %8134 = vmatprep.subr.mxu0 %v4094_v16  ;;  %v4088_v46 = vld [vmem:[#allocation4 + $0x140] sm:$0xff]  ;;  %v4087_v31 = vld [vmem:[#allocation4 + $0x138] sm:$0xff] }
0x10e1   :  { %v8921_v35 = vpop.eup %8920  ;;  %v3898_v60 = vadd.f32 1.0, %v8919_v41  ;;  %3954 = vadd.xlane.f32.xlu0 %v3929_v61  ;;  %8135 = vmatpush3.msra.mxu0 %v4094_v16  ;;  %v4086_v61 = vld [vmem:[#allocation4 + $0x130] sm:$0xff]  ;;  %v4085_v41 = vld [vmem:[#allocation4 + $0x128] sm:$0xff] }
0x10e2   :  { %v3901_v28 = vadd.f32 1.0, %v8921_v35  ;;  %v3931_v52 = vmul.f32 %v11259_v42, %v11259_v42  ;;  %8136 = vmatprep.subr.mxu0 %v4093_v12  ;;  %v4083_v35 = vld [vmem:[#allocation4 + $0x118] sm:$0xff] }
0x10e3   :  { %v11267_v21 = vmul.f32 %v3898_v60, %v3850_v45  ;;  %3952 = vadd.xlane.f32.xlu1 %v3928_v26  ;;  %8137 = vmatpush3.msra.mxu0 %v4093_v12  ;;  %v4084_v26 = vld [vmem:[#allocation4 + $0x120] sm:$0xff]  ;;  %v4082_v45 = vld [vmem:[#allocation4 + $0x110] sm:$0xff]  ;;  %v4081_v60 = vld [vmem:[#allocation4 + $0x108] sm:$0xff] }
0x10e4   :  { %v8923_v37 = vpop.eup %8922  ;;  %v11269_v55 = vmul.f32 %v3901_v28, %v3853_v11  ;;  %8138 = vmatprep.subr.mxu0 %v4092_v47  ;;  %v4080_v11 = vld [vmem:[#allocation4 + $0x100] sm:$0xff] }
0x10e5   :  { %v8925_v29 = vpop.eup %8924  ;;  %v3900_v24 = vadd.f32 1.0, %v8923_v37  ;;  %3958 = vadd.xlane.f32.xlu0 %v3931_v52  ;;  %v3930_v43 = vmul.f32 %v11267_v21, %v11267_v21  ;;  %8139 = vmatpush3.msra.mxu0 %v4092_v47 }
0x10e6   :  { %v3903_v27 = vadd.f32 1.0, %v8925_v29  ;;  %v3933_v3 = vmul.f32 %v11269_v55, %v11269_v55  ;;  %8140 = vmatprep.subr.mxu0 %v4091_v49 }
0x10e7   :  { %v11275_v44 = vmul.f32 %v3900_v24, %v3852_v19  ;;  %3956 = vadd.xlane.f32.xlu1 %v3930_v43  ;;  %8141 = vmatpush3.msra.mxu0 %v4091_v49 }
0x10e8   :  { %v8927_v40 = vpop.eup %8926  ;;  %v11277_v18 = vmul.f32 %v3903_v27, %v3855_v50  ;;  %8142 = vmatprep.subr.mxu0 %v4090_v57 }
0x10e9   :  { %v3902_v51 = vadd.f32 1.0, %v8927_v40  ;;  %3962 = vadd.xlane.f32.xlu0 %v3933_v3  ;;  %v3932_v54 = vmul.f32 %v11275_v44, %v11275_v44  ;;  %8143 = vmatpush3.msra.mxu0 %v4090_v57 }
0x10ea   :  { %v3935_v33 = vmul.f32 %v11277_v18, %v11277_v18  ;;  %8144 = vmatprep.subr.mxu0 %v4089_v5 }
0x10eb   :  { %v11283_v32 = vmul.f32 %v3902_v51, %v3854_v1  ;;  %3960 = vadd.xlane.f32.xlu1 %v3932_v54  ;;  %8145 = vmatpush3.msra.mxu0 %v4089_v5 }
0x10ec   :  { %8146 = vmatprep.subr.mxu0 %v4088_v46 }
0x10ed   :  { %3966 = vadd.xlane.f32.xlu0 %v3935_v33  ;;  %v3934_v53 = vmul.f32 %v11283_v32, %v11283_v32  ;;  %8147 = vmatpush3.msra.mxu0 %v4088_v46 }
0x10ee   :  { %8148 = vmatprep.subr.mxu0 %v4087_v31 }
0x10ef   :  { %3964 = vadd.xlane.f32.xlu1 %v3934_v53  ;;  %8149 = vmatpush3.msra.mxu0 %v4087_v31 }
0x10f0   :  { %8150 = vmatprep.subr.mxu0 %v4086_v61 }
0x10f1   :  { %8151 = vmatpush3.msra.mxu0 %v4086_v61 }
0x10f2   :  { %8152 = vmatprep.subr.mxu0 %v4085_v41 }
0x10f3   :  { %8153 = vmatpush3.msra.mxu0 %v4085_v41 }
0x10f4   :  { %8154 = vmatprep.subr.mxu0 %v4084_v26 }
0x10f5   :  { %8155 = vmatpush3.msra.mxu0 %v4084_v26 }
0x10f6   :  { %8156 = vmatprep.subr.mxu0 %v4083_v35 }
0x10f7   :  { %8157 = vmatpush3.msra.mxu0 %v4083_v35 }
0x10f8   :  { %8158 = vmatprep.subr.mxu0 %v4082_v45 }
0x10f9   :  { %8159 = vmatpush3.msra.mxu0 %v4082_v45 }
0x10fa   :  { %8160 = vmatprep.subr.mxu0 %v4081_v60 }
0x10fb   :  { %8161 = vmatpush3.msra.mxu0 %v4081_v60 }
0x10fc   :  { %8162 = vmatprep.subr.mxu0 %v4080_v11 }
0x10fd   :  { %8163 = vmatpush3.msra.mxu0 %v4080_v11 }
0x1158   :  { %v3939_v28 = vpop.xlane.xlu0 %3938 }
0x115a   :  { %v3937_v52 = vpop.xlane.xlu1 %3936 }
0x115b   :  { %v3968_v29 = vadd.f32 %v3939_v28, %v3937_v52 }
0x115e   :  { %v3943_v37 = vpop.xlane.xlu0 %3942 }
0x1160   :  { %v3941_v19 = vpop.xlane.xlu1 %3940 }
0x1161   :  { %v3969_v24 = vadd.f32 %v3968_v29, %v3941_v19 }
0x1162   :  { %v3947_v43 = vpop.xlane.xlu0 %3946 }
0x1163   :  { %v3970_v50 = vadd.f32 %v3969_v24, %v3943_v37 }
0x1164   :  { %v3945_v27 = vpop.xlane.xlu1 %3944 }
0x1165   :  { %v3971_v3 = vadd.f32 %v3970_v50, %v3945_v27 }
0x1166   :  { %v3951_v40 = vpop.xlane.xlu0 %3950 }
0x1167   :  { %v3972_v1 = vadd.f32 %v3971_v3, %v3947_v43 }
0x1168   :  { %v3949_v51 = vpop.xlane.xlu1 %3948 }
0x1169   :  { %v3973_v54 = vadd.f32 %v3972_v1, %v3949_v51 }
0x116a   :  { %v3955_v33 = vpop.xlane.xlu0 %3954 }
0x116b   :  { %v3974_v53 = vadd.f32 %v3973_v54, %v3951_v40  ;;  %v11290_v54 = vld [vmem:[%s12992_s29 + $0x2] ss:$0 sm:$0xff] }
0x116c   :  { %v3953_v30 = vpop.xlane.xlu1 %3952 }
0x116d   :  { %v3975_v16 = vadd.f32 %v3974_v53, %v3953_v30 }
0x116e   :  { %v3959_v12 = vpop.xlane.xlu0 %3958 }
0x116f   :  { %v3976_v47 = vadd.f32 %v3975_v16, %v3955_v33 }
0x1170   :  { %v3957_v49 = vpop.xlane.xlu1 %3956 }
0x1171   :  { %v3977_v57 = vadd.f32 %v3976_v47, %v3957_v49 }
0x1172   :  { %v3963_v46 = vpop.xlane.xlu0 %3962 }
0x1173   :  { %v3978_v5 = vadd.f32 %v3977_v57, %v3959_v12  ;;  %v11301_v12 = vld [vmem:[%s12993_s3 + $0x2] ss:$0 sm:$0xff] }
0x1174   :  { %v3961_v31 = vpop.xlane.xlu1 %3960 }
0x1175   :  { %v3979_v61 = vadd.f32 %v3978_v5, %v3961_v31 }
0x1176   :  { %v3967_v45 = vpop.xlane.xlu0 %3966 }
0x1177   :  { %v3980_v41 = vadd.f32 %v3979_v61, %v3963_v46 }
0x1178   :  { %v3965_v26 = vpop.xlane.xlu1 %3964 }
0x1179   :  { %v3981_v35 = vadd.f32 %v3980_v41, %v3965_v26 }
0x117b   :  { %v3982_v60 = vadd.f32 %v3981_v35, %v3967_v45 }
0x117d   :  { %v3983_v11 = vrot.slane %v3982_v60, 4 }
0x117f   :  { %v3984_v28 = vadd.f32 %v3983_v11, %v3982_v60 }
0x1181   :  { %v3985_v52 = vrot.slane %v3984_v28, 2 }
0x1183   :  { %v3986_v37 = vadd.f32 %v3985_v52, %v3984_v28 }
0x1185   :  { %v3987_v29 = vrot.slane %v3986_v37, 1 }
0x1187   :  { %v3988_v19 = vadd.f32 %v3987_v29, %v3986_v37 }
0x1189   :  { %8928 = vrsqrt.f32 %v3988_v19  ;;  %vm3991_vm6 = vcmp.eq.f32.partialorder %v3988_v19, inf  ;;  %v3994_v50 = vand.u32 2147483648, %v3988_v19  ;;  %vm3993_vm7 = vcmp.eq.f32.partialorder %v3988_v19, 0.0 }
0x1196   :  { %v8929_v24 = vpop.eup %8928 }
0x1197   :  { %v3990_v43 = vmul.f32 %v8929_v24, %v3988_v19 }
0x1199   :  { %v3992_v27 = vsel %vm3991_vm6, %v3988_v19, %v3990_v43 }
0x119a   :  { %v3995_v3 = vsel %vm3993_vm7, %v3994_v50, %v3992_v27 }
0x119b   :  { %v3996_v40 = vadd.f32 1e-06, %v3995_v3 }
0x119d   :  { %8930 = vrcp.f32 %v3996_v40 }
0x11aa   :  { %v8931_v1 = vpop.eup %8930 }
0x11ab   :  { %v11287_v51 = vmul.f32 %v8931_v1, %v3995_v3 }
0x11ad   :  { %v4001_v33 = vmul.f32 %v11287_v51, %v11206_v15  ;;  %v4002_v53 = vmul.f32 %v11287_v51, %v11200_v23  ;;  %v4003_v30 = vmul.f32 %v11287_v51, %v11222_v10  ;;  %v4004_v16 = vmul.f32 %v11287_v51, %v11216_v17 }
0x11ae   :  { %v4005_v47 = vmul.f32 %v11287_v51, %v11233_v14  ;;  %v4006_v31 = vmul.f32 %v11287_v51, %v11228_v25  ;;  %v4007_v61 = vmul.f32 %v11287_v51, %v11244_v63  ;;  %v4008_v37 = vmul.f32 %v11287_v51, %v11240_v9 }
0x11af   :  { %v4023_v49 = vmul.f32 %v11290_v54, %v4001_v33  ;;  %v4024_v57 = vmul.f32 %v11290_v54, %v4002_v53  ;;  %v4025_v5 = vmul.f32 %v11290_v54, %v4003_v30  ;;  %v4026_v46 = vmul.f32 %v11290_v54, %v4004_v16 }
0x11b0   :  { %v4027_v45 = vmul.f32 %v11290_v54, %v4005_v47  ;;  %v4028_v52 = vmul.f32 %v11290_v54, %v4006_v31  ;;  %v4029_v24 = vmul.f32 %v11290_v54, %v4007_v61  ;;  %v4009_v43 = vmul.f32 %v11287_v51, %v11254_v13 }
0x11b1   :  { %v4047_v41 = vadd.f32 %v11301_v12, %v4023_v49  ;;  %v4048_v26 = vadd.f32 %v11301_v12, %v4024_v57  ;;  %v4049_v35 = vadd.f32 %v11301_v12, %v4025_v5  ;;  %v4050_v28 = vadd.f32 %v11301_v12, %v4026_v46 }
0x11b2   :  { %v4051_v19 = vadd.f32 %v11301_v12, %v4027_v45  ;;  %v4030_v50 = vmul.f32 %v11290_v54, %v4008_v37  ;;  %v4010_v27 = vmul.f32 %v11287_v51, %v11249_v36  ;;  %v4053_v3 = vadd.f32 %v11301_v12, %v4029_v24  ;;  %v11376_v24 = vld [vmem:[%s12994_s8 + $0x2] ss:$0 sm:$0xff] }
0x11b3   :  { %v4063_v60 = vadd.f32 %v4047_v41, %v11206_v15  ;;  %v4064_v11 = vadd.f32 %v4048_v26, %v11200_v23  ;;  %v4065_v29 = vadd.f32 %v4049_v35, %v11222_v10  ;;  %v4066_v23 = vadd.f32 %v4050_v28, %v11216_v17 }
0x11b4   :  { %v4052_v15 = vadd.f32 %v11301_v12, %v4028_v52  ;;  %v4067_v10 = vadd.f32 %v4051_v19, %v11233_v14  ;;  %v4031_v40 = vmul.f32 %v11290_v54, %v4009_v43  ;;  %v4011_v1 = vmul.f32 %v11287_v51, %v11267_v21  ;;  %v11380_v43 = vld [vmem:[%s12987_s9 + $0x3] ss:$0 sm:$0xff] }
0x11b5   :  { %8164 = vmatprep.mubr.f32.mxu0 %v4063_v60  ;;  %v4054_v33 = vadd.f32 %v11301_v12, %v4030_v50  ;;  %v4032_v53 = vmul.f32 %v11290_v54, %v4010_v27  ;;  %v4012_v30 = vmul.f32 %v11287_v51, %v11259_v42  ;;  %v4069_v14 = vadd.f32 %v4053_v3, %v11244_v63 }
0x11b6   :  { %8165 = vmatmul.mubr.f32.vlgmr.msra.gmra.mxu0 %v4064_v11  ;;  %v4068_v17 = vadd.f32 %v4052_v15, %v11228_v25  ;;  %v4055_v16 = vadd.f32 %v11301_v12, %v4031_v40  ;;  %v4033_v47 = vmul.f32 %v11290_v54, %v4011_v1  ;;  %v4013_v49 = vmul.f32 %v11287_v51, %v11275_v44 }
0x11b7   :  { %8167 = vmatprep.mubr.f32.mxu0 %v4065_v29  ;;  %v4070_v25 = vadd.f32 %v4054_v33, %v11240_v9  ;;  %v4056_v57 = vadd.f32 %v11301_v12, %v4032_v53  ;;  %v4034_v5 = vmul.f32 %v11290_v54, %v4012_v30  ;;  %v4014_v46 = vmul.f32 %v11287_v51, %v11269_v55 }
0x11b8   :  { %v4071_v63 = vadd.f32 %v4055_v16, %v11254_v13  ;;  %v4057_v31 = vadd.f32 %v11301_v12, %v4033_v47  ;;  %v4035_v61 = vmul.f32 %v11290_v54, %v4013_v49  ;;  %v4015_v41 = vmul.f32 %v11287_v51, %v11283_v32 }
0x11b9   :  { %v4072_v9 = vadd.f32 %v4056_v57, %v11249_v36  ;;  %v4058_v26 = vadd.f32 %v11301_v12, %v4034_v5  ;;  %v4036_v35 = vmul.f32 %v11290_v54, %v4014_v46  ;;  %v4016_v45 = vmul.f32 %v11287_v51, %v11277_v18 }
0x11ba   :  { %8168 = vmatmul.mubr.f32.gmra.mxu0 %v4066_v23  ;;  %v4073_v13 = vadd.f32 %v4057_v31, %v11267_v21  ;;  %v4059_v60 = vadd.f32 %v11301_v12, %v4035_v61  ;;  %v4037_v11 = vmul.f32 %v11290_v54, %v4015_v41 }
0x11bb   :  { %8170 = vmatprep.mubr.f32.mxu0 %v4067_v10  ;;  %v4074_v28 = vadd.f32 %v4058_v26, %v11259_v42  ;;  %v4060_v36 = vadd.f32 %v11301_v12, %v4036_v35  ;;  %v4038_v52 = vmul.f32 %v11290_v54, %v4016_v45 }
0x11bc   :  { %v4075_v37 = vadd.f32 %v4059_v60, %v11275_v44  ;;  %v4061_v51 = vadd.f32 %v11301_v12, %v4037_v11 }
0x11bd   :  { %v4076_v21 = vadd.f32 %v4060_v36, %v11269_v55  ;;  %v4062_v29 = vadd.f32 %v11301_v12, %v4038_v52 }
0x11be   :  { %8171 = vmatmul.mubr.f32.gmra.mxu0 %v4068_v17  ;;  %v4077_v19 = vadd.f32 %v4061_v51, %v11283_v32  ;;  %v11387_v32 = vld [vmem:[%s12988_s13 + $0x3] ss:$0 sm:$0xff] }
0x11bf   :  { %8173 = vmatprep.mubr.f32.mxu0 %v4069_v14  ;;  %v4078_v42 = vadd.f32 %v4062_v29, %v11277_v18 }
0x11c2   :  { %8174 = vmatmul.mubr.f32.gmra.mxu0 %v4070_v25 }
0x11c3   :  { %8176 = vmatprep.mubr.f32.mxu0 %v4071_v63 }
0x11c6   :  { %8177 = vmatmul.mubr.f32.gmra.mxu0 %v4072_v9 }
0x11c7   :  { %8179 = vmatprep.mubr.f32.mxu0 %v4073_v13 }
0x11ca   :  { %8180 = vmatmul.mubr.f32.gmra.mxu0 %v4074_v28 }
0x11cb   :  { %8182 = vmatprep.mubr.f32.mxu0 %v4075_v37 }
0x11ce   :  { %8183 = vmatmul.mubr.f32.gmra.mxu0 %v4076_v21 }
0x11cf   :  { %8185 = vmatprep.mubr.f32.mxu0 %v4077_v19 }
0x11d2   :  { %8186 = vmatmul.mubr.f32.gmra.mxu0 %v4078_v42 }
0x1276   :  { %v8166_v54 = vpop.f32.mrf.mxu0 }
0x1277   :  { %v4176_v44 = vadd.f32 %v8166_v54, %v11376_v24 }
0x1278   :  { %v4170_v23 = vpop.f32.mrf.mxu0 }
0x1279   :  { %v11383_v15 = vadd.f32 %v4176_v44, %v10881_v6  ;;  %v4171_v55 = vadd.f32 %v11376_v24, %v4170_v23 }
0x127a   :  { %v8169_v12 = vpop.f32.mrf.mxu0 }
0x127b   :  { %v4274_v18 = vmul.f32 %v11380_v43, %v11383_v15  ;;  %v11392_v50 = vadd.f32 %v4171_v55, %v10890_v7  ;;  %v4186_v27 = vadd.f32 %v8169_v12, %v11376_v24 }
0x127c   :  { %v4180_v10 = vpop.f32.mrf.mxu0 }
0x127d   :  { %v4273_v3 = vmul.f32 %v11380_v43, %v11392_v50  ;;  %v11398_v6 = vadd.f32 %v4186_v27, %v10896_v0  ;;  %v4181_v40 = vadd.f32 %v11376_v24, %v4180_v10  ;;  %v11402_v1 = vadd.f32 %v11387_v32, %v4274_v18 }
0x127e   :  { %v8172_v17 = vpop.f32.mrf.mxu0 }
0x127f   :  { %v4276_v33 = vmul.f32 %v11380_v43, %v11398_v6  ;;  %v11407_v7 = vadd.f32 %v4181_v40, %v10905_v62  ;;  %v4196_v53 = vadd.f32 %v8172_v17, %v11376_v24  ;;  %4319 = vadd.xlane.f32.xlu0 %v11402_v1  ;;  %v11412_v30 = vadd.f32 %v11387_v32, %v4273_v3 }
0x1280   :  { %v4190_v0 = vpop.f32.mrf.mxu0 }
0x1281   :  { %v4275_v14 = vmul.f32 %v11380_v43, %v11407_v7  ;;  %v11417_v16 = vadd.f32 %v4196_v53, %v10915_v58  ;;  %v4191_v47 = vadd.f32 %v11376_v24, %v4190_v0  ;;  %4317 = vadd.xlane.f32.xlu1 %v11412_v30  ;;  %v11422_v62 = vadd.f32 %v11387_v32, %v4276_v33 }
0x1282   :  { %v8175_v49 = vpop.f32.mrf.mxu0 }
0x1283   :  { %v4278_v25 = vmul.f32 %v11380_v43, %v11417_v16  ;;  %v11427_v57 = vadd.f32 %v4191_v47, %v10925_v56  ;;  %v4206_v5 = vadd.f32 %v8175_v49, %v11376_v24  ;;  %4323 = vadd.xlane.f32.xlu0 %v11422_v62  ;;  %v11432_v58 = vadd.f32 %v11387_v32, %v4275_v14 }
0x1284   :  { %v4200_v46 = vpop.f32.mrf.mxu0 }
0x1285   :  { %v4277_v63 = vmul.f32 %v11380_v43, %v11427_v57  ;;  %v11437_v31 = vadd.f32 %v4206_v5, %v10935_v2  ;;  %v4201_v61 = vadd.f32 %v11376_v24, %v4200_v46  ;;  %4321 = vadd.xlane.f32.xlu1 %v11432_v58  ;;  %v11442_v56 = vadd.f32 %v11387_v32, %v4278_v25  ;;  %v4552_v46 = vld [vmem:[#allocation2 + $0x1f0] sm:$0xff] }
0x1286   :  { %v8178_v41 = vpop.f32.mrf.mxu0 }
0x1287   :  { %v4280_v9 = vmul.f32 %v11380_v43, %v11437_v31  ;;  %v11447_v26 = vadd.f32 %v4201_v61, %v10945_v39  ;;  %v4216_v35 = vadd.f32 %v8178_v41, %v11376_v24  ;;  %4327 = vadd.xlane.f32.xlu0 %v11442_v56  ;;  %v11452_v2 = vadd.f32 %v11387_v32, %v4277_v63  ;;  %v4551_v63 = vld [vmem:[#allocation2 + $0x1e8] sm:$0xff] }
0x1288   :  { %v4210_v45 = vpop.f32.mrf.mxu0 }
0x1289   :  { %v4279_v13 = vmul.f32 %v11380_v43, %v11447_v26  ;;  %v11457_v60 = vadd.f32 %v4216_v35, %v10955_v38  ;;  %v4211_v11 = vadd.f32 %v11376_v24, %v4210_v45  ;;  %4325 = vadd.xlane.f32.xlu1 %v11452_v2  ;;  %v11462_v39 = vadd.f32 %v11387_v32, %v4280_v9 }
0x128a   :  { %v8181_v28 = vpop.f32.mrf.mxu0 }
0x128b   :  { %v4282_v36 = vmul.f32 %v11380_v43, %v11457_v60  ;;  %v11467_v52 = vadd.f32 %v4211_v11, %v10965_v34  ;;  %v4226_v37 = vadd.f32 %v8181_v28, %v11376_v24  ;;  %4331 = vadd.xlane.f32.xlu0 %v11462_v39  ;;  %v11472_v38 = vadd.f32 %v11387_v32, %v4279_v13 }
0x128c   :  { %v4220_v51 = vpop.f32.mrf.mxu0 }
0x128d   :  { %v4281_v21 = vmul.f32 %v11380_v43, %v11467_v52  ;;  %v11477_v29 = vadd.f32 %v4226_v37, %v10975_v59  ;;  %v4221_v19 = vadd.f32 %v11376_v24, %v4220_v51  ;;  %4329 = vadd.xlane.f32.xlu1 %v11472_v38  ;;  %v11482_v34 = vadd.f32 %v11387_v32, %v4282_v36 }
0x128e   :  { %v8184_v42 = vpop.f32.mrf.mxu0 }
0x128f   :  { %v4284_v54 = vmul.f32 %v11380_v43, %v11477_v29  ;;  %v11487_v44 = vadd.f32 %v4221_v19, %v10985_v4  ;;  %v4236_v23 = vadd.f32 %v8184_v42, %v11376_v24  ;;  %4335 = vadd.xlane.f32.xlu0 %v11482_v34  ;;  %v11492_v59 = vadd.f32 %v11387_v32, %v4281_v21 }
0x1290   :  { %v4230_v55 = vpop.f32.mrf.mxu0 }
0x1291   :  { %v4283_v12 = vmul.f32 %v11380_v43, %v11487_v44  ;;  %v11497_v18 = vadd.f32 %v4236_v23, %v10995_v22  ;;  %v4231_v27 = vadd.f32 %v11376_v24, %v4230_v55  ;;  %4333 = vadd.xlane.f32.xlu1 %v11492_v59  ;;  %v11502_v4 = vadd.f32 %v11387_v32, %v4284_v54 }
0x1292   :  { %v8187_v10 = vpop.f32.mrf.mxu0 }
0x1293   :  { %v4286_v3 = vmul.f32 %v11380_v43, %v11497_v18  ;;  %v11507_v40 = vadd.f32 %v4231_v27, %v11005_v20  ;;  %v4246_v17 = vadd.f32 %v8187_v10, %v11376_v24  ;;  %4339 = vadd.xlane.f32.xlu0 %v11502_v4  ;;  %v11512_v22 = vadd.f32 %v11387_v32, %v4283_v12 }
0x1294   :  { %v4240_v33 = vpop.f32.mrf.mxu0 }
0x1295   :  { %v4285_v53 = vmul.f32 %v11380_v43, %v11507_v40  ;;  %v11517_v0 = vadd.f32 %v4246_v17, %v11015_v48  ;;  %v4241_v14 = vadd.f32 %v11376_v24, %v4240_v33  ;;  %4337 = vadd.xlane.f32.xlu1 %v11512_v22  ;;  %v11522_v20 = vadd.f32 %v11387_v32, %v4286_v3 }
0x1297   :  { %v4288_v47 = vmul.f32 %v11380_v43, %v11517_v0  ;;  %v11527_v49 = vadd.f32 %v4241_v14, %v11025_v8  ;;  %4343 = vadd.xlane.f32.xlu0 %v11522_v20  ;;  %v11531_v25 = vadd.f32 %v11387_v32, %v4285_v53  ;;  %v4553_v8 = vld [vmem:[#allocation2 + $0x1f8] sm:$0xff] }
0x1298   :  { %8188 = vmatprep.subr.mxu1 %v4553_v8 }
0x1299   :  { %v4287_v48 = vmul.f32 %v11380_v43, %v11527_v49  ;;  %4341 = vadd.xlane.f32.xlu1 %v11531_v25  ;;  %v11537_v24 = vadd.f32 %v11387_v32, %v4288_v47  ;;  %8189 = vmatpush3.msra.mxu1 %v4553_v8 }
0x129a   :  { %8190 = vmatprep.subr.mxu1 %v4552_v46 }
0x129b   :  { %4347 = vadd.xlane.f32.xlu0 %v11537_v24  ;;  %v11541_v5 = vadd.f32 %v11387_v32, %v4287_v48  ;;  %8191 = vmatpush3.msra.mxu1 %v4552_v46 }
0x129c   :  { %8192 = vmatprep.subr.mxu1 %v4551_v63 }
0x129d   :  { %4345 = vadd.xlane.f32.xlu1 %v11541_v5  ;;  %8193 = vmatpush3.msra.mxu1 %v4551_v63 }
0x1308   :  { %v4320_v43 = vpop.xlane.xlu0 %4319 }
0x1309   :  { %v4350_v61 = vmul.f32 0.0078125, %v4320_v43 }
0x130a   :  { %v4318_v41 = vpop.xlane.xlu1 %4317 }
0x130b   :  { %v11545_v9 = vsub.f32 %v11402_v1, %v4350_v61  ;;  %v4349_v35 = vmul.f32 0.0078125, %v4318_v41  ;;  %v4550_v61 = vld [vmem:[#allocation2 + $0x1e0] sm:$0xff] }
0x130c   :  { %v4324_v32 = vpop.xlane.xlu0 %4323  ;;  %8194 = vmatprep.subr.mxu1 %v4550_v61 }
0x130d   :  { %v11548_v45 = vsub.f32 %v11412_v30, %v4349_v35  ;;  %v4352_v13 = vmul.f32 0.0078125, %v4324_v32  ;;  %v4382_v11 = vmul.f32 %v11545_v9, %v11545_v9  ;;  %8195 = vmatpush3.msra.mxu1 %v4550_v61 }
0x130e   :  { %v4322_v28 = vpop.xlane.xlu1 %4321 }
0x130f   :  { %v11553_v36 = vsub.f32 %v11422_v62, %v4352_v13  ;;  %v4351_v37 = vmul.f32 0.0078125, %v4322_v28  ;;  %4399 = vadd.xlane.f32.xlu0 %v4382_v11  ;;  %v4381_v51 = vmul.f32 %v11548_v45, %v11548_v45  ;;  %v4549_v13 = vld [vmem:[#allocation2 + $0x1d8] sm:$0xff] }
0x1310   :  { %v4328_v1 = vpop.xlane.xlu0 %4327  ;;  %8196 = vmatprep.subr.mxu1 %v4549_v13 }
0x1311   :  { %v11558_v21 = vsub.f32 %v11432_v58, %v4351_v37  ;;  %v4354_v19 = vmul.f32 0.0078125, %v4328_v1  ;;  %4397 = vadd.xlane.f32.xlu1 %v4381_v51  ;;  %v4384_v30 = vmul.f32 %v11553_v36, %v11553_v36  ;;  %8197 = vmatpush3.msra.mxu1 %v4549_v13 }
0x1312   :  { %v4326_v42 = vpop.xlane.xlu1 %4325 }
0x1313   :  { %v11563_v54 = vsub.f32 %v11442_v56, %v4354_v19  ;;  %v4353_v62 = vmul.f32 0.0078125, %v4326_v42  ;;  %4403 = vadd.xlane.f32.xlu0 %v4384_v30  ;;  %v4383_v23 = vmul.f32 %v11558_v21, %v11558_v21 }
0x1314   :  { %v4332_v55 = vpop.xlane.xlu0 %4331 }
0x1315   :  { %v11568_v12 = vsub.f32 %v11452_v2, %v4353_v62  ;;  %v4356_v58 = vmul.f32 0.0078125, %v4332_v55  ;;  %4401 = vadd.xlane.f32.xlu1 %v4383_v23  ;;  %v4386_v27 = vmul.f32 %v11563_v54, %v11563_v54 }
0x1316   :  { %v4330_v10 = vpop.xlane.xlu1 %4329 }
0x1317   :  { %v11573_v3 = vsub.f32 %v11462_v39, %v4356_v58  ;;  %v4355_v56 = vmul.f32 0.0078125, %v4330_v10  ;;  %4407 = vadd.xlane.f32.xlu0 %v4386_v27  ;;  %v4385_v17 = vmul.f32 %v11568_v12, %v11568_v12 }
0x1318   :  { %v4336_v33 = vpop.xlane.xlu0 %4335 }
0x1319   :  { %v11578_v53 = vsub.f32 %v11472_v38, %v4355_v56  ;;  %v4358_v2 = vmul.f32 0.0078125, %v4336_v33  ;;  %4405 = vadd.xlane.f32.xlu1 %v4385_v17  ;;  %v4388_v14 = vmul.f32 %v11573_v3, %v11573_v3 }
0x131a   :  { %v4334_v47 = vpop.xlane.xlu1 %4333 }
0x131b   :  { %v11583_v48 = vsub.f32 %v11482_v34, %v4358_v2  ;;  %v4357_v39 = vmul.f32 0.0078125, %v4334_v47  ;;  %4411 = vadd.xlane.f32.xlu0 %v4388_v14  ;;  %v4387_v8 = vmul.f32 %v11578_v53, %v11578_v53  ;;  %v4544_v2 = vld [vmem:[#allocation2 + $0x1b0] sm:$0xff]  ;;  %v4543_v14 = vld [vmem:[#allocation2 + $0x1a8] sm:$0xff]  ;;  %v4542_v47 = vld [vmem:[#allocation2 + $0x1a0] sm:$0xff] }
0x131c   :  { %v4340_v46 = vpop.xlane.xlu0 %4339 }
0x131d   :  { %v11588_v63 = vsub.f32 %v11492_v59, %v4357_v39  ;;  %v4360_v38 = vmul.f32 0.0078125, %v4340_v46  ;;  %4409 = vadd.xlane.f32.xlu1 %v4387_v8  ;;  %v4390_v43 = vmul.f32 %v11583_v48, %v11583_v48  ;;  %v4540_v39 = vld [vmem:[#allocation2 + $0x190] sm:$0xff]  ;;  %v4539_v8 = vld [vmem:[#allocation2 + $0x188] sm:$0xff]  ;;  %v4538_v46 = vld [vmem:[#allocation2 + $0x180] sm:$0xff] }
0x131e   :  { %v4338_v41 = vpop.xlane.xlu1 %4337 }
0x131f   :  { %v11593_v34 = vsub.f32 %v11502_v4, %v4360_v38  ;;  %v4359_v35 = vmul.f32 0.0078125, %v4338_v41  ;;  %4415 = vadd.xlane.f32.xlu0 %v4390_v43  ;;  %v4389_v32 = vmul.f32 %v11588_v63, %v11588_v63  ;;  %v4548_v4 = vld [vmem:[#allocation2 + $0x1d0] sm:$0xff] }
0x1320   :  { %v4344_v59 = vpop.xlane.xlu0 %4343  ;;  %8198 = vmatprep.subr.mxu1 %v4548_v4 }
0x1321   :  { %v11598_v11 = vsub.f32 %v11512_v22, %v4359_v35  ;;  %v4362_v28 = vmul.f32 0.0078125, %v4344_v59  ;;  %4413 = vadd.xlane.f32.xlu1 %v4389_v32  ;;  %v4392_v37 = vmul.f32 %v11593_v34, %v11593_v34  ;;  %8199 = vmatpush3.msra.mxu1 %v4548_v4  ;;  %v4547_v22 = vld [vmem:[#allocation2 + $0x1c8] sm:$0xff] }
0x1322   :  { %v4342_v51 = vpop.xlane.xlu1 %4341  ;;  %8200 = vmatprep.subr.mxu1 %v4547_v22 }
0x1323   :  { %v11603_v1 = vsub.f32 %v11522_v20, %v4362_v28  ;;  %v4361_v19 = vmul.f32 0.0078125, %v4342_v51  ;;  %4419 = vadd.xlane.f32.xlu0 %v4392_v37  ;;  %v4391_v30 = vmul.f32 %v11598_v11, %v11598_v11  ;;  %8201 = vmatpush3.msra.mxu1 %v4547_v22  ;;  %v4546_v20 = vld [vmem:[#allocation2 + $0x1c0] sm:$0xff] }
0x1324   :  { %v4348_v42 = vpop.xlane.xlu0 %4347  ;;  %8202 = vmatprep.subr.mxu1 %v4546_v20 }
0x1325   :  { %v11608_v62 = vsub.f32 %v11531_v25, %v4361_v19  ;;  %v4364_v23 = vmul.f32 0.0078125, %v4348_v42  ;;  %4417 = vadd.xlane.f32.xlu1 %v4391_v30  ;;  %v4394_v55 = vmul.f32 %v11603_v1, %v11603_v1  ;;  %8203 = vmatpush3.msra.mxu1 %v4546_v20  ;;  %v4545_v25 = vld [vmem:[#allocation2 + $0x1b8] sm:$0xff] }
0x1326   :  { %v4346_v58 = vpop.xlane.xlu1 %4345  ;;  %8204 = vmatprep.subr.mxu1 %v4545_v25 }
0x1327   :  { %v11613_v27 = vsub.f32 %v11537_v24, %v4364_v23  ;;  %v4363_v10 = vmul.f32 0.0078125, %v4346_v58  ;;  %4423 = vadd.xlane.f32.xlu0 %v4394_v55  ;;  %v4393_v56 = vmul.f32 %v11608_v62, %v11608_v62  ;;  %8205 = vmatpush3.msra.mxu1 %v4545_v25 }
0x1328   :  { %8206 = vmatprep.subr.mxu1 %v4544_v2 }
0x1329   :  { %v11618_v17 = vsub.f32 %v11541_v5, %v4363_v10  ;;  %4421 = vadd.xlane.f32.xlu1 %v4393_v56  ;;  %v4396_v33 = vmul.f32 %v11613_v27, %v11613_v27  ;;  %8207 = vmatpush3.msra.mxu1 %v4544_v2  ;;  %v4541_v5 = vld [vmem:[#allocation2 + $0x198] sm:$0xff] }
0x132a   :  { %8208 = vmatprep.subr.mxu1 %v4543_v14 }
0x132b   :  { %4427 = vadd.xlane.f32.xlu0 %v4396_v33  ;;  %v4395_v24 = vmul.f32 %v11618_v17, %v11618_v17  ;;  %8209 = vmatpush3.msra.mxu1 %v4543_v14 }
0x132c   :  { %8210 = vmatprep.subr.mxu1 %v4542_v47 }
0x132d   :  { %4425 = vadd.xlane.f32.xlu1 %v4395_v24  ;;  %8211 = vmatpush3.msra.mxu1 %v4542_v47 }
0x132e   :  { %8212 = vmatprep.subr.mxu1 %v4541_v5 }
0x132f   :  { %8213 = vmatpush3.msra.mxu1 %v4541_v5 }
0x1330   :  { %8214 = vmatprep.subr.mxu1 %v4540_v39 }
0x1331   :  { %8215 = vmatpush3.msra.mxu1 %v4540_v39 }
0x1332   :  { %8216 = vmatprep.subr.mxu1 %v4539_v8 }
0x1333   :  { %8217 = vmatpush3.msra.mxu1 %v4539_v8  ;;  %v11625_v8 = vld [vmem:[%s12989_s17 + $0x3] ss:$0 sm:$0xff] }
0x1334   :  { %8218 = vmatprep.subr.mxu1 %v4538_v46 }
0x1335   :  { %8219 = vmatpush3.msra.mxu1 %v4538_v46 }
0x1398   :  { %v4400_v38 = vpop.xlane.xlu0 %4399 }
0x1399   :  { %v4430_v43 = vmul.f32 0.0078125, %v4400_v38 }
0x139a   :  { %v4398_v61 = vpop.xlane.xlu1 %4397 }
0x139b   :  { %v4446_v41 = vadd.f32 1e-05, %v4430_v43  ;;  %v4429_v35 = vmul.f32 0.0078125, %v4398_v61 }
0x139c   :  { %v4404_v32 = vpop.xlane.xlu0 %4403 }
0x139d   :  { %8932 = vrsqrt.f32 %v4446_v41  ;;  %v4445_v13 = vadd.f32 1e-05, %v4429_v35  ;;  %v4432_v59 = vmul.f32 0.0078125, %v4404_v32 }
0x139e   :  { %v4402_v28 = vpop.xlane.xlu1 %4401 }
0x139f   :  { %8934 = vrsqrt.f32 %v4445_v13  ;;  %v4448_v37 = vadd.f32 1e-05, %v4432_v59  ;;  %v4431_v4 = vmul.f32 0.0078125, %v4402_v28 }
0x13a0   :  { %v4408_v51 = vpop.xlane.xlu0 %4407 }
0x13a1   :  { %8936 = vrsqrt.f32 %v4448_v37  ;;  %v4447_v19 = vadd.f32 1e-05, %v4431_v4  ;;  %v4434_v30 = vmul.f32 0.0078125, %v4408_v51  ;;  %v11631_v4 = vld [vmem:[%s12990_s21 + $0x3] ss:$0 sm:$0xff] }
0x13a2   :  { %v4406_v22 = vpop.xlane.xlu1 %4405 }
0x13a3   :  { %8938 = vrsqrt.f32 %v4447_v19  ;;  %v4450_v42 = vadd.f32 1e-05, %v4434_v30  ;;  %v4433_v23 = vmul.f32 0.0078125, %v4406_v22 }
0x13a4   :  { %v4412_v55 = vpop.xlane.xlu0 %4411 }
0x13a5   :  { %8940 = vrsqrt.f32 %v4450_v42  ;;  %v4449_v20 = vadd.f32 1e-05, %v4433_v23  ;;  %v4436_v58 = vmul.f32 0.0078125, %v4412_v55 }
0x13a6   :  { %v4410_v10 = vpop.xlane.xlu1 %4409 }
0x13a7   :  { %8942 = vrsqrt.f32 %v4449_v20  ;;  %v4452_v56 = vadd.f32 1e-05, %v4436_v58  ;;  %v4435_v25 = vmul.f32 0.0078125, %v4410_v10 }
0x13a8   :  { %v4416_v33 = vpop.xlane.xlu0 %4415 }
0x13a9   :  { %8944 = vrsqrt.f32 %v4452_v56  ;;  %v4451_v2 = vadd.f32 1e-05, %v4435_v25  ;;  %v4438_v24 = vmul.f32 0.0078125, %v4416_v33 }
0x13aa   :  { %v8933_v14 = vpop.eup %8932  ;;  %v4414_v47 = vpop.xlane.xlu1 %4413 }
0x13ab   :  { %8946 = vrsqrt.f32 %v4451_v2  ;;  %v4454_v5 = vadd.f32 1e-05, %v4438_v24  ;;  %v4437_v39 = vmul.f32 0.0078125, %v4414_v47  ;;  %v4478_v46 = vmul.f32 %v8933_v14, %v11545_v9 }
0x13ac   :  { %v8935_v38 = vpop.eup %8934  ;;  %v4420_v43 = vpop.xlane.xlu0 %4419 }
0x13ad   :  { %8948 = vrsqrt.f32 %v4454_v5  ;;  %v4453_v61 = vadd.f32 1e-05, %v4437_v39  ;;  %v4440_v41 = vmul.f32 0.0078125, %v4420_v43  ;;  %v4477_v35 = vmul.f32 %v8935_v38, %v11548_v45 }
0x13ae   :  { %v8937_v32 = vpop.eup %8936  ;;  %v4418_v13 = vpop.xlane.xlu1 %4417  ;;  %v4500_v59 = vmul.f32 %v11625_v8, %v4478_v46 }
0x13af   :  { %8950 = vrsqrt.f32 %v4453_v61  ;;  %v4456_v28 = vadd.f32 1e-05, %v4440_v41  ;;  %v4439_v37 = vmul.f32 0.0078125, %v4418_v13  ;;  %v4499_v51 = vmul.f32 %v11625_v8, %v4477_v35 }
0x13b0   :  { %v8939_v19 = vpop.eup %8938  ;;  %v4424_v9 = vpop.xlane.xlu0 %4423  ;;  %v4480_v30 = vmul.f32 %v8937_v32, %v11553_v36  ;;  %v4522_v20 = vadd.f32 %v11631_v4, %v4500_v59 }
0x13b1   :  { %8952 = vrsqrt.f32 %v4456_v28  ;;  %v4455_v22 = vadd.f32 1e-05, %v4439_v37  ;;  %v4442_v42 = vmul.f32 0.0078125, %v4424_v9  ;;  %v4521_v45 = vadd.f32 %v11631_v4, %v4499_v51 }
0x13b2   :  { %v8941_v23 = vpop.eup %8940  ;;  %v4422_v55 = vpop.xlane.xlu1 %4421  ;;  %v4479_v58 = vmul.f32 %v8939_v19, %v11558_v21  ;;  %v4502_v10 = vmul.f32 %v11625_v8, %v4480_v30 }
0x13b3   :  { %8954 = vrsqrt.f32 %v4455_v22  ;;  %v4458_v56 = vadd.f32 1e-05, %v4442_v42  ;;  %v4441_v25 = vmul.f32 0.0078125, %v4422_v55  ;;  %8220 = vmatprep.mubr.f32.mxu1 %v4521_v45  ;;  %v4482_v33 = vmul.f32 %v8941_v23, %v11563_v54 }
0x13b4   :  { %v8943_v36 = vpop.eup %8942  ;;  %v4428_v2 = vpop.xlane.xlu0 %4427  ;;  %8221 = vmatmul.mubr.f32.vlgmr.msra.gmra.mxu1 %v4522_v20  ;;  %v4501_v24 = vmul.f32 %v11625_v8, %v4479_v58  ;;  %v4524_v38 = vadd.f32 %v11631_v4, %v4502_v10 }
0x13b5   :  { %8956 = vrsqrt.f32 %v4458_v56  ;;  %v4457_v14 = vadd.f32 1e-05, %v4441_v25  ;;  %v4444_v47 = vmul.f32 0.0078125, %v4428_v2  ;;  %v4481_v5 = vmul.f32 %v8943_v36, %v11568_v12 }
0x13b6   :  { %v8945_v39 = vpop.eup %8944  ;;  %v4426_v21 = vpop.xlane.xlu1 %4425  ;;  %v4523_v46 = vadd.f32 %v11631_v4, %v4501_v24  ;;  %v4504_v43 = vmul.f32 %v11625_v8, %v4482_v33 }
0x13b7   :  { %8958 = vrsqrt.f32 %v4457_v14  ;;  %v4460_v54 = vadd.f32 1e-05, %v4444_v47  ;;  %v4443_v61 = vmul.f32 0.0078125, %v4426_v21  ;;  %v4503_v41 = vmul.f32 %v11625_v8, %v4481_v5 }
0x13b8   :  { %v8947_v35 = vpop.eup %8946  ;;  %8223 = vmatprep.mubr.f32.mxu1 %v4523_v46  ;;  %v4484_v32 = vmul.f32 %v8945_v39, %v11573_v3  ;;  %v4526_v37 = vadd.f32 %v11631_v4, %v4504_v43 }
0x13b9   :  { %8960 = vrsqrt.f32 %v4460_v54  ;;  %v4459_v13 = vadd.f32 1e-05, %v4443_v61  ;;  %8224 = vmatmul.mubr.f32.gmra.mxu1 %v4524_v38  ;;  %v4525_v12 = vadd.f32 %v11631_v4, %v4503_v41  ;;  %v4483_v59 = vmul.f32 %v8947_v35, %v11578_v53 }
0x13ba   :  { %v8949_v28 = vpop.eup %8948  ;;  %v4506_v19 = vmul.f32 %v11625_v8, %v4484_v32 }
0x13bb   :  { %8962 = vrsqrt.f32 %v4459_v13  ;;  %8226 = vmatprep.mubr.f32.mxu1 %v4525_v12  ;;  %v4505_v51 = vmul.f32 %v11625_v8, %v4483_v59  ;;  %v4486_v9 = vmul.f32 %v8949_v28, %v11583_v48 }
0x13bc   :  { %v8951_v30 = vpop.eup %8950  ;;  %v4528_v53 = vadd.f32 %v11631_v4, %v4506_v19 }
0x13bd   :  { %8227 = vmatmul.mubr.f32.gmra.mxu1 %v4526_v37  ;;  %v4527_v3 = vadd.f32 %v11631_v4, %v4505_v51  ;;  %v4485_v22 = vmul.f32 %v8951_v30, %v11588_v63  ;;  %v4508_v23 = vmul.f32 %v11625_v8, %v4486_v9 }
0x13be   :  { %v8953_v42 = vpop.eup %8952 }
0x13bf   :  { %8229 = vmatprep.mubr.f32.mxu1 %v4527_v3  ;;  %v4507_v45 = vmul.f32 %v11625_v8, %v4485_v22  ;;  %v4488_v55 = vmul.f32 %v8953_v42, %v11593_v34  ;;  %v4530_v63 = vadd.f32 %v11631_v4, %v4508_v23 }
0x13c0   :  { %v8955_v20 = vpop.eup %8954 }
0x13c1   :  { %8230 = vmatmul.mubr.f32.gmra.mxu1 %v4528_v53  ;;  %v4529_v48 = vadd.f32 %v11631_v4, %v4507_v45  ;;  %v4487_v58 = vmul.f32 %v8955_v20, %v11598_v11  ;;  %v4510_v25 = vmul.f32 %v11625_v8, %v4488_v55 }
0x13c2   :  { %v8957_v10 = vpop.eup %8956 }
0x13c3   :  { %8232 = vmatprep.mubr.f32.mxu1 %v4529_v48  ;;  %v4509_v56 = vmul.f32 %v11625_v8, %v4487_v58  ;;  %v4490_v33 = vmul.f32 %v8957_v10, %v11603_v1  ;;  %v4532_v11 = vadd.f32 %v11631_v4, %v4510_v25 }
0x13c4   :  { %v8959_v36 = vpop.eup %8958 }
0x13c5   :  { %8233 = vmatmul.mubr.f32.gmra.mxu1 %v4530_v63  ;;  %v4531_v34 = vadd.f32 %v11631_v4, %v4509_v56  ;;  %v4489_v2 = vmul.f32 %v8959_v36, %v11608_v62  ;;  %v4512_v47 = vmul.f32 %v11625_v8, %v4490_v33 }
0x13c6   :  { %v8961_v24 = vpop.eup %8960 }
0x13c7   :  { %8235 = vmatprep.mubr.f32.mxu1 %v4531_v34  ;;  %v4511_v14 = vmul.f32 %v11625_v8, %v4489_v2  ;;  %v4492_v5 = vmul.f32 %v8961_v24, %v11613_v27  ;;  %v4534_v62 = vadd.f32 %v11631_v4, %v4512_v47  ;;  %v11679_v27 = vld [vmem:[%s12991_s25 + $0x3] ss:$0 sm:$0xff] }
0x13c8   :  { %v8963_v39 = vpop.eup %8962 }
0x13c9   :  { %8236 = vmatmul.mubr.f32.gmra.mxu1 %v4532_v11  ;;  %v4533_v1 = vadd.f32 %v11631_v4, %v4511_v14  ;;  %v4491_v21 = vmul.f32 %v8963_v39, %v11618_v17  ;;  %v4514_v38 = vmul.f32 %v11625_v8, %v4492_v5 }
0x13cb   :  { %8238 = vmatprep.mubr.f32.mxu1 %v4533_v1  ;;  %v4513_v46 = vmul.f32 %v11625_v8, %v4491_v21  ;;  %v4536_v54 = vadd.f32 %v11631_v4, %v4514_v38 }
0x13cd   :  { %8239 = vmatmul.mubr.f32.gmra.mxu1 %v4534_v62  ;;  %v4535_v43 = vadd.f32 %v11631_v4, %v4513_v46 }
0x13cf   :  { %8241 = vmatprep.mubr.f32.mxu1 %v4535_v43 }
0x13d1   :  { %8242 = vmatmul.mubr.f32.gmra.mxu1 %v4536_v54 }
0x1474   :  { %v8222_v61 = vpop.f32.mrf.mxu1 }
0x1475   :  { %v4634_v41 = vadd.f32 %v8222_v61, %v11679_v27 }
0x1476   :  { %v4628_v17 = vpop.f32.mrf.mxu1 }
0x1477   :  { %v4724_v35 = vmul.f32 0.70710677, %v4634_v41  ;;  %v4629_v32 = vadd.f32 %v11679_v27, %v4628_v17  ;;  %v4708_v63 = vmul.f32 0.5, %v4634_v41 }
0x1479   :  { %8964 = verf.f32 %v4724_v35  ;;  %v4723_v13 = vmul.f32 0.70710677, %v4629_v32  ;;  %v8225_v12 = vpop.f32.mrf.mxu1  ;;  %v4707_v24 = vmul.f32 0.5, %v4629_v32 }
0x147a   :  { %v4644_v8 = vadd.f32 %v8225_v12, %v11679_v27 }
0x147b   :  { %8966 = verf.f32 %v4723_v13  ;;  %v4638_v59 = vpop.f32.mrf.mxu1 }
0x147c   :  { %v4726_v28 = vmul.f32 0.70710677, %v4644_v8  ;;  %v4639_v4 = vadd.f32 %v11679_v27, %v4638_v59  ;;  %v4710_v46 = vmul.f32 0.5, %v4644_v8 }
0x147d   :  { %v8228_v37 = vpop.f32.mrf.mxu1 }
0x147e   :  { %8968 = verf.f32 %v4726_v28  ;;  %v4725_v51 = vmul.f32 0.70710677, %v4639_v4  ;;  %v4654_v19 = vadd.f32 %v8228_v37, %v11679_v27  ;;  %v4709_v61 = vmul.f32 0.5, %v4639_v4 }
0x147f   :  { %v4648_v9 = vpop.f32.mrf.mxu1 }
0x1480   :  { %8970 = verf.f32 %v4725_v51  ;;  %v4728_v30 = vmul.f32 0.70710677, %v4654_v19  ;;  %v4649_v3 = vadd.f32 %v11679_v27, %v4648_v9  ;;  %v4712_v37 = vmul.f32 0.5, %v4654_v19 }
0x1481   :  { %v8231_v22 = vpop.f32.mrf.mxu1 }
0x1482   :  { %8972 = verf.f32 %v4728_v30  ;;  %v4727_v42 = vmul.f32 0.70710677, %v4649_v3  ;;  %v11688_v53 = vadd.f32 %v8231_v22, %v11679_v27  ;;  %v4711_v22 = vmul.f32 0.5, %v4649_v3 }
0x1483   :  { %v4658_v45 = vpop.f32.mrf.mxu1 }
0x1484   :  { %8974 = verf.f32 %v4727_v42  ;;  %v4730_v23 = vmul.f32 0.70710677, %v11688_v53  ;;  %v11692_v55 = vadd.f32 %v11679_v27, %v4658_v45 }
0x1485   :  { %v8234_v20 = vpop.f32.mrf.mxu1 }
0x1486   :  { %v8965_v48 = vpop.eup %8964  ;;  %8976 = verf.f32 %v4730_v23  ;;  %v4729_v58 = vmul.f32 0.70710677, %v11692_v55  ;;  %v11696_v10 = vadd.f32 %v8234_v20, %v11679_v27 }
0x1487   :  { %v4756_v56 = vadd.f32 1.0, %v8965_v48  ;;  %v4668_v25 = vpop.f32.mrf.mxu1 }
0x1488   :  { %v8967_v33 = vpop.eup %8966  ;;  %8978 = verf.f32 %v4729_v58  ;;  %v4732_v36 = vmul.f32 0.70710677, %v11696_v10  ;;  %v11700_v34 = vadd.f32 %v11679_v27, %v4668_v25 }
0x1489   :  { %v11702_v2 = vmul.f32 %v4756_v56, %v4708_v63  ;;  %v4755_v11 = vadd.f32 1.0, %v8967_v33  ;;  %v8237_v14 = vpop.f32.mrf.mxu1  ;;  %v4714_v33 = vmul.f32 0.5, %v11688_v53 }
0x148a   :  { %8980 = verf.f32 %v4732_v36  ;;  %v4731_v47 = vmul.f32 0.70710677, %v11700_v34  ;;  %v11706_v5 = vadd.f32 %v8237_v14, %v11679_v27  ;;  %v4713_v14 = vmul.f32 0.5, %v11692_v55 }
0x148b   :  { %v8969_v39 = vpop.eup %8968  ;;  %v11708_v1 = vmul.f32 %v4755_v11, %v4707_v24  ;;  %v4678_v21 = vpop.f32.mrf.mxu1  ;;  %v4788_v62 = vmul.f32 %v11702_v2, %v11702_v2  ;;  %v4716_v55 = vmul.f32 0.5, %v11696_v10 }
0x148c   :  { %v4758_v38 = vadd.f32 1.0, %v8969_v39  ;;  %8982 = verf.f32 %v4731_v47  ;;  %v4734_v43 = vmul.f32 0.70710677, %v11706_v5  ;;  %v11714_v41 = vadd.f32 %v11679_v27, %v4678_v21 }
0x148d   :  { %v8971_v54 = vpop.eup %8970  ;;  %v8240_v17 = vpop.f32.mrf.mxu1  ;;  %4805 = vadd.xlane.f32.xlu0 %v4788_v62  ;;  %v4787_v35 = vmul.f32 %v11708_v1, %v11708_v1  ;;  %v4718_v10 = vmul.f32 0.5, %v11706_v5 }
0x148e   :  { %v11718_v32 = vmul.f32 %v4758_v38, %v4710_v46  ;;  %v4757_v13 = vadd.f32 1.0, %v8971_v54  ;;  %8984 = verf.f32 %v4734_v43  ;;  %v11721_v12 = vadd.f32 %v8240_v17, %v11679_v27 }
0x148f   :  { %v8973_v8 = vpop.eup %8972  ;;  %v4733_v59 = vmul.f32 0.70710677, %v11714_v41  ;;  %v4688_v28 = vpop.f32.mrf.mxu1  ;;  %4803 = vadd.xlane.f32.xlu1 %v4787_v35  ;;  %v4715_v35 = vmul.f32 0.5, %v11700_v34 }
0x1490   :  { %v11724_v4 = vmul.f32 %v4757_v13, %v4709_v61  ;;  %v4760_v51 = vadd.f32 1.0, %v8973_v8  ;;  %v4736_v9 = vmul.f32 0.70710677, %v11721_v12  ;;  %v4689_v42 = vadd.f32 %v11679_v27, %v4688_v28 }
0x1491   :  { %v8975_v30 = vpop.eup %8974  ;;  %8986 = verf.f32 %v4733_v59  ;;  %v8243_v45 = vpop.f32.mrf.mxu1  ;;  %v4790_v23 = vmul.f32 %v11718_v32, %v11718_v32 }
0x1492   :  { %v11730_v20 = vmul.f32 %v4760_v51, %v4712_v37  ;;  %v4759_v48 = vadd.f32 1.0, %v8975_v30  ;;  %8988 = verf.f32 %v4736_v9  ;;  %v4704_v58 = vadd.f32 %v8243_v45, %v11679_v27 }
0x1493   :  { %v8977_v63 = vpop.eup %8976  ;;  %v4735_v19 = vmul.f32 0.70710677, %v4689_v42  ;;  %4809 = vadd.xlane.f32.xlu0 %v4790_v23  ;;  %v4698_v56 = vpop.f32.mrf.mxu1  ;;  %v4789_v3 = vmul.f32 %v11724_v4, %v11724_v4  ;;  %v4717_v45 = vmul.f32 0.5, %v11714_v41 }
0x1494   :  { %v11735_v25 = vmul.f32 %v4759_v48, %v4711_v22  ;;  %v4762_v36 = vadd.f32 1.0, %v8977_v63  ;;  %v4738_v24 = vmul.f32 0.70710677, %v4704_v58  ;;  %v4699_v47 = vadd.f32 %v11679_v27, %v4698_v56 }
0x1495   :  { %v8979_v11 = vpop.eup %8978  ;;  %8990 = verf.f32 %v4735_v19  ;;  %4807 = vadd.xlane.f32.xlu1 %v4789_v3  ;;  %v4792_v39 = vmul.f32 %v11730_v20, %v11730_v20  ;;  %v4720_v48 = vmul.f32 0.5, %v11721_v12 }
0x1496   :  { %v11742_v21 = vmul.f32 %v4762_v36, %v4714_v33  ;;  %v4761_v62 = vadd.f32 1.0, %v8979_v11  ;;  %8992 = verf.f32 %v4738_v24  ;;  %v4791_v46 = vmul.f32 %v11735_v25, %v11735_v25 }
0x1497   :  { %v8981_v53 = vpop.eup %8980  ;;  %v4737_v38 = vmul.f32 0.70710677, %v4699_v47  ;;  %4813 = vadd.xlane.f32.xlu0 %v4792_v39  ;;  %v4719_v36 = vmul.f32 0.5, %v4689_v42  ;;  %v4722_v11 = vmul.f32 0.5, %v4704_v58 }
0x1498   :  { %v11746_v43 = vmul.f32 %v4761_v62, %v4713_v14  ;;  %v4764_v54 = vadd.f32 1.0, %v8981_v53  ;;  %v4794_v27 = vmul.f32 %v11742_v21, %v11742_v21  ;;  %v4721_v53 = vmul.f32 0.5, %v4699_v47  ;;  %v4961_v47 = vld [vmem:[#allocation4 + $0x1f0] sm:$0xff] }
0x1499   :  { %v8983_v61 = vpop.eup %8982  ;;  %8994 = verf.f32 %v4737_v38  ;;  %4811 = vadd.xlane.f32.xlu1 %v4791_v46 }
0x149a   :  { %v11751_v17 = vmul.f32 %v4764_v54, %v4716_v55  ;;  %v4763_v13 = vadd.f32 1.0, %v8983_v61  ;;  %v4793_v8 = vmul.f32 %v11746_v43, %v11746_v43  ;;  %v4960_v61 = vld [vmem:[#allocation4 + $0x1e8] sm:$0xff] }
0x149b   :  { %v8985_v59 = vpop.eup %8984  ;;  %4817 = vadd.xlane.f32.xlu0 %v4794_v27  ;;  %v4962_v27 = vld [vmem:[#allocation4 + $0x1f8] sm:$0xff] }
0x149c   :  { %v11756_v28 = vmul.f32 %v4763_v13, %v4715_v35  ;;  %v4766_v37 = vadd.f32 1.0, %v8985_v59  ;;  %v4796_v51 = vmul.f32 %v11751_v17, %v11751_v17  ;;  %8244 = vmatprep.subr.mxu0 %v4962_v27  ;;  %v4959_v35 = vld [vmem:[#allocation4 + $0x1e0] sm:$0xff]  ;;  %v4958_v13 = vld [vmem:[#allocation4 + $0x1d8] sm:$0xff]  ;;  %v4956_v59 = vld [vmem:[#allocation4 + $0x1c8] sm:$0xff] }
0x149d   :  { %4815 = vadd.xlane.f32.xlu1 %v4793_v8  ;;  %8245 = vmatpush3.msra.mxu0 %v4962_v27  ;;  %v4957_v8 = vld [vmem:[#allocation4 + $0x1d0] sm:$0xff] }
0x149e   :  { %v8987_v9 = vpop.eup %8986  ;;  %v11761_v30 = vmul.f32 %v4766_v37, %v4718_v10  ;;  %v4795_v34 = vmul.f32 %v11756_v28, %v11756_v28  ;;  %8246 = vmatprep.subr.mxu0 %v4961_v47  ;;  %v4955_v10 = vld [vmem:[#allocation4 + $0x1c0] sm:$0xff]  ;;  %v4954_v37 = vld [vmem:[#allocation4 + $0x1b8] sm:$0xff] }
0x149f   :  { %v8989_v22 = vpop.eup %8988  ;;  %v4765_v23 = vadd.f32 1.0, %v8987_v9  ;;  %4821 = vadd.xlane.f32.xlu0 %v4796_v51  ;;  %8247 = vmatpush3.msra.mxu0 %v4961_v47  ;;  %v4953_v51 = vld [vmem:[#allocation4 + $0x1b0] sm:$0xff]  ;;  %v4952_v9 = vld [vmem:[#allocation4 + $0x1a8] sm:$0xff] }
0x14a0   :  { %v4768_v63 = vadd.f32 1.0, %v8989_v22  ;;  %v4798_v5 = vmul.f32 %v11761_v30, %v11761_v30  ;;  %8248 = vmatprep.subr.mxu0 %v4960_v61  ;;  %v4950_v22 = vld [vmem:[#allocation4 + $0x198] sm:$0xff] }
0x14a1   :  { %v11769_v19 = vmul.f32 %v4765_v23, %v4717_v45  ;;  %4819 = vadd.xlane.f32.xlu1 %v4795_v34  ;;  %8249 = vmatpush3.msra.mxu0 %v4960_v61  ;;  %v4951_v34 = vld [vmem:[#allocation4 + $0x1a0] sm:$0xff]  ;;  %v4949_v45 = vld [vmem:[#allocation4 + $0x190] sm:$0xff]  ;;  %v4948_v23 = vld [vmem:[#allocation4 + $0x188] sm:$0xff] }
0x14a2   :  { %v8991_v56 = vpop.eup %8990  ;;  %v11771_v3 = vmul.f32 %v4768_v63, %v4720_v48  ;;  %8250 = vmatprep.subr.mxu0 %v4959_v35  ;;  %v4947_v48 = vld [vmem:[#allocation4 + $0x180] sm:$0xff] }
0x14a3   :  { %v8993_v33 = vpop.eup %8992  ;;  %v4767_v24 = vadd.f32 1.0, %v8991_v56  ;;  %4825 = vadd.xlane.f32.xlu0 %v4798_v5  ;;  %v4797_v41 = vmul.f32 %v11769_v19, %v11769_v19  ;;  %8251 = vmatpush3.msra.mxu0 %v4959_v35 }
0x14a4   :  { %v4770_v14 = vadd.f32 1.0, %v8993_v33  ;;  %v4800_v12 = vmul.f32 %v11771_v3, %v11771_v3  ;;  %8252 = vmatprep.subr.mxu0 %v4958_v13 }
0x14a5   :  { %v11777_v39 = vmul.f32 %v4767_v24, %v4719_v36  ;;  %4823 = vadd.xlane.f32.xlu1 %v4797_v41  ;;  %8253 = vmatpush3.msra.mxu0 %v4958_v13 }
0x14a6   :  { %v8995_v62 = vpop.eup %8994  ;;  %v11779_v46 = vmul.f32 %v4770_v14, %v4722_v11  ;;  %8254 = vmatprep.subr.mxu0 %v4957_v8 }
0x14a7   :  { %v4769_v38 = vadd.f32 1.0, %v8995_v62  ;;  %4829 = vadd.xlane.f32.xlu0 %v4800_v12  ;;  %v4799_v42 = vmul.f32 %v11777_v39, %v11777_v39  ;;  %8255 = vmatpush3.msra.mxu0 %v4957_v8 }
0x14a8   :  { %v4802_v55 = vmul.f32 %v11779_v46, %v11779_v46  ;;  %8256 = vmatprep.subr.mxu0 %v4956_v59 }
0x14a9   :  { %v11785_v58 = vmul.f32 %v4769_v38, %v4721_v53  ;;  %4827 = vadd.xlane.f32.xlu1 %v4799_v42  ;;  %8257 = vmatpush3.msra.mxu0 %v4956_v59 }
0x14aa   :  { %8258 = vmatprep.subr.mxu0 %v4955_v10 }
0x14ab   :  { %4833 = vadd.xlane.f32.xlu0 %v4802_v55  ;;  %v4801_v54 = vmul.f32 %v11785_v58, %v11785_v58  ;;  %8259 = vmatpush3.msra.mxu0 %v4955_v10 }
0x14ac   :  { %8260 = vmatprep.subr.mxu0 %v4954_v37 }
0x14ad   :  { %4831 = vadd.xlane.f32.xlu1 %v4801_v54  ;;  %8261 = vmatpush3.msra.mxu0 %v4954_v37 }
0x14ae   :  { %8262 = vmatprep.subr.mxu0 %v4953_v51 }
0x14af   :  { %8263 = vmatpush3.msra.mxu0 %v4953_v51 }
0x14b0   :  { %8264 = vmatprep.subr.mxu0 %v4952_v9 }
0x14b1   :  { %8265 = vmatpush3.msra.mxu0 %v4952_v9 }
0x14b2   :  { %8266 = vmatprep.subr.mxu0 %v4951_v34 }
0x14b3   :  { %8267 = vmatpush3.msra.mxu0 %v4951_v34 }
0x14b4   :  { %8268 = vmatprep.subr.mxu0 %v4950_v22 }
0x14b5   :  { %8269 = vmatpush3.msra.mxu0 %v4950_v22 }
0x14b6   :  { %8270 = vmatprep.subr.mxu0 %v4949_v45 }
0x14b7   :  { %8271 = vmatpush3.msra.mxu0 %v4949_v45 }
0x14b8   :  { %8272 = vmatprep.subr.mxu0 %v4948_v23 }
0x14b9   :  { %8273 = vmatpush3.msra.mxu0 %v4948_v23 }
0x14ba   :  { %8274 = vmatprep.subr.mxu0 %v4947_v48 }
0x14bb   :  { %8275 = vmatpush3.msra.mxu0 %v4947_v48 }
0x1516   :  { %v4806_v63 = vpop.xlane.xlu0 %4805 }
0x1518   :  { %v4804_v5 = vpop.xlane.xlu1 %4803 }
0x1519   :  { %v4835_v33 = vadd.f32 %v4806_v63, %v4804_v5 }
0x151c   :  { %v4810_v56 = vpop.xlane.xlu0 %4809 }
0x151e   :  { %v4808_v36 = vpop.xlane.xlu1 %4807 }
0x151f   :  { %v4836_v24 = vadd.f32 %v4835_v33, %v4808_v36 }
0x1520   :  { %v4814_v41 = vpop.xlane.xlu0 %4813 }
0x1521   :  { %v4837_v11 = vadd.f32 %v4836_v24, %v4810_v56 }
0x1522   :  { %v4812_v14 = vpop.xlane.xlu1 %4811 }
0x1523   :  { %v4838_v12 = vadd.f32 %v4837_v11, %v4812_v14 }
0x1524   :  { %v4818_v62 = vpop.xlane.xlu0 %4817 }
0x1525   :  { %v4839_v53 = vadd.f32 %v4838_v12, %v4814_v41 }
0x1526   :  { %v4816_v38 = vpop.xlane.xlu1 %4815 }
0x1527   :  { %v4840_v42 = vadd.f32 %v4839_v53, %v4816_v38 }
0x1528   :  { %v4822_v55 = vpop.xlane.xlu0 %4821 }
0x1529   :  { %v4841_v54 = vadd.f32 %v4840_v42, %v4818_v62  ;;  %v11792_v42 = vld [vmem:[%s12992_s29 + $0x3] ss:$0 sm:$0xff] }
0x152a   :  { %v4820_v27 = vpop.xlane.xlu1 %4819 }
0x152b   :  { %v4842_v47 = vadd.f32 %v4841_v54, %v4820_v27 }
0x152c   :  { %v4826_v61 = vpop.xlane.xlu0 %4825 }
0x152d   :  { %v4843_v35 = vadd.f32 %v4842_v47, %v4822_v55 }
0x152e   :  { %v4824_v13 = vpop.xlane.xlu1 %4823 }
0x152f   :  { %v4844_v8 = vadd.f32 %v4843_v35, %v4824_v13 }
0x1530   :  { %v4830_v10 = vpop.xlane.xlu0 %4829 }
0x1531   :  { %v4845_v59 = vadd.f32 %v4844_v8, %v4826_v61  ;;  %v11803_v61 = vld [vmem:[%s12993_s3 + $0x3] ss:$0 sm:$0xff] }
0x1532   :  { %v4828_v37 = vpop.xlane.xlu1 %4827 }
0x1533   :  { %v4846_v51 = vadd.f32 %v4845_v59, %v4828_v37 }
0x1534   :  { %v4834_v45 = vpop.xlane.xlu0 %4833 }
0x1535   :  { %v4847_v9 = vadd.f32 %v4846_v51, %v4830_v10 }
0x1536   :  { %v4832_v34 = vpop.xlane.xlu1 %4831 }
0x1537   :  { %v4848_v22 = vadd.f32 %v4847_v9, %v4832_v34 }
0x1539   :  { %v4849_v23 = vadd.f32 %v4848_v22, %v4834_v45 }
0x153b   :  { %v4850_v48 = vrot.slane %v4849_v23, 4 }
0x153d   :  { %v4851_v63 = vadd.f32 %v4850_v48, %v4849_v23 }
0x153f   :  { %v4852_v5 = vrot.slane %v4851_v63, 2 }
0x1541   :  { %v4853_v56 = vadd.f32 %v4852_v5, %v4851_v63 }
0x1543   :  { %v4854_v33 = vrot.slane %v4853_v56, 1 }
0x1545   :  { %v4855_v36 = vadd.f32 %v4854_v33, %v4853_v56 }
0x1547   :  { %8996 = vrsqrt.f32 %v4855_v36  ;;  %vm4858_vm8 = vcmp.eq.f32.partialorder %v4855_v36, inf  ;;  %v4861_v11 = vand.u32 2147483648, %v4855_v36  ;;  %vm4860_vm9 = vcmp.eq.f32.partialorder %v4855_v36, 0.0 }
0x1554   :  { %v8997_v24 = vpop.eup %8996 }
0x1555   :  { %v4857_v41 = vmul.f32 %v8997_v24, %v4855_v36 }
0x1557   :  { %v4859_v14 = vsel %vm4858_vm8, %v4855_v36, %v4857_v41 }
0x1558   :  { %v4862_v12 = vsel %vm4860_vm9, %v4861_v11, %v4859_v14 }
0x1559   :  { %v4863_v62 = vadd.f32 1e-06, %v4862_v12 }
0x155b   :  { %8998 = vrcp.f32 %v4863_v62 }
0x1568   :  { %v8999_v53 = vpop.eup %8998 }
0x1569   :  { %v11789_v38 = vmul.f32 %v8999_v53, %v4862_v12 }
0x156b   :  { %v4868_v55 = vmul.f32 %v11789_v38, %v11708_v1  ;;  %v4869_v54 = vmul.f32 %v11789_v38, %v11702_v2  ;;  %v4870_v27 = vmul.f32 %v11789_v38, %v11724_v4  ;;  %v4871_v47 = vmul.f32 %v11789_v38, %v11718_v32 }
0x156c   :  { %v4872_v35 = vmul.f32 %v11789_v38, %v11735_v25  ;;  %v4873_v37 = vmul.f32 %v11789_v38, %v11730_v20  ;;  %v4874_v51 = vmul.f32 %v11789_v38, %v11746_v43  ;;  %v4875_v56 = vmul.f32 %v11789_v38, %v11742_v21 }
0x156d   :  { %v4890_v13 = vmul.f32 %v11792_v42, %v4868_v55  ;;  %v4891_v8 = vmul.f32 %v11792_v42, %v4869_v54  ;;  %v4892_v59 = vmul.f32 %v11792_v42, %v4870_v27  ;;  %v4893_v10 = vmul.f32 %v11792_v42, %v4871_v47 }
0x156e   :  { %v4894_v45 = vmul.f32 %v11792_v42, %v4872_v35  ;;  %v4895_v5 = vmul.f32 %v11792_v42, %v4873_v37  ;;  %v4896_v24 = vmul.f32 %v11792_v42, %v4874_v51  ;;  %v4876_v41 = vmul.f32 %v11789_v38, %v11756_v28 }
0x156f   :  { %v4914_v9 = vadd.f32 %v11803_v61, %v4890_v13  ;;  %v4915_v34 = vadd.f32 %v11803_v61, %v4891_v8  ;;  %v4916_v22 = vadd.f32 %v11803_v61, %v4892_v59  ;;  %v4917_v63 = vadd.f32 %v11803_v61, %v4893_v10 }
0x1570   :  { %v4918_v36 = vadd.f32 %v11803_v61, %v4894_v45  ;;  %v4897_v11 = vmul.f32 %v11792_v42, %v4875_v56  ;;  %v4877_v14 = vmul.f32 %v11789_v38, %v11751_v17  ;;  %v4920_v12 = vadd.f32 %v11803_v61, %v4896_v24  ;;  %v11878_v24 = vld [vmem:[%s12994_s8 + $0x3] ss:$0 sm:$0xff] }
0x1571   :  { %v4930_v23 = vadd.f32 %v4914_v9, %v11708_v1  ;;  %v4931_v48 = vadd.f32 %v4915_v34, %v11702_v2  ;;  %v4932_v33 = vadd.f32 %v4916_v22, %v11724_v4  ;;  %v4933_v2 = vadd.f32 %v4917_v63, %v11718_v32 }
0x1572   :  { %v4919_v1 = vadd.f32 %v11803_v61, %v4895_v5  ;;  %v4934_v4 = vadd.f32 %v4918_v36, %v11735_v25  ;;  %v4898_v62 = vmul.f32 %v11792_v42, %v4876_v41  ;;  %v4878_v53 = vmul.f32 %v11789_v38, %v11769_v19  ;;  %v11882_v41 = vld [vmem:[%s12987_s9 + $0x4] ss:$0 sm:$0xff] }
0x1573   :  { %8276 = vmatprep.mubr.f32.mxu0 %v4930_v23  ;;  %v4921_v55 = vadd.f32 %v11803_v61, %v4897_v11  ;;  %v4899_v54 = vmul.f32 %v11792_v42, %v4877_v14  ;;  %v4879_v27 = vmul.f32 %v11789_v38, %v11761_v30  ;;  %v4936_v25 = vadd.f32 %v4920_v12, %v11746_v43 }
0x1574   :  { %8277 = vmatmul.mubr.f32.vlgmr.msra.gmra.mxu0 %v4931_v48  ;;  %v4935_v32 = vadd.f32 %v4919_v1, %v11730_v20  ;;  %v4922_v47 = vadd.f32 %v11803_v61, %v4898_v62  ;;  %v4900_v35 = vmul.f32 %v11792_v42, %v4878_v53  ;;  %v4880_v13 = vmul.f32 %v11789_v38, %v11777_v39 }
0x1575   :  { %8279 = vmatprep.mubr.f32.mxu0 %v4932_v33  ;;  %v4937_v20 = vadd.f32 %v4921_v55, %v11742_v21  ;;  %v4923_v8 = vadd.f32 %v11803_v61, %v4899_v54  ;;  %v4901_v59 = vmul.f32 %v11792_v42, %v4879_v27  ;;  %v4881_v10 = vmul.f32 %v11789_v38, %v11771_v3 }
0x1576   :  { %v4938_v43 = vadd.f32 %v4922_v47, %v11756_v28  ;;  %v4924_v37 = vadd.f32 %v11803_v61, %v4900_v35  ;;  %v4902_v51 = vmul.f32 %v11792_v42, %v4880_v13  ;;  %v4882_v9 = vmul.f32 %v11789_v38, %v11785_v58 }
0x1577   :  { %v4939_v21 = vadd.f32 %v4923_v8, %v11751_v17  ;;  %v4925_v34 = vadd.f32 %v11803_v61, %v4901_v59  ;;  %v4903_v22 = vmul.f32 %v11792_v42, %v4881_v10  ;;  %v4883_v45 = vmul.f32 %v11789_v38, %v11779_v46 }
0x1578   :  { %8280 = vmatmul.mubr.f32.gmra.mxu0 %v4933_v2  ;;  %v4940_v28 = vadd.f32 %v4924_v37, %v11769_v19  ;;  %v4926_v23 = vadd.f32 %v11803_v61, %v4902_v51  ;;  %v4904_v48 = vmul.f32 %v11792_v42, %v4882_v9 }
0x1579   :  { %8282 = vmatprep.mubr.f32.mxu0 %v4934_v4  ;;  %v4941_v63 = vadd.f32 %v4925_v34, %v11761_v30  ;;  %v4927_v17 = vadd.f32 %v11803_v61, %v4903_v22  ;;  %v4905_v5 = vmul.f32 %v11792_v42, %v4883_v45 }
0x157a   :  { %v4942_v56 = vadd.f32 %v4926_v23, %v11777_v39  ;;  %v4928_v38 = vadd.f32 %v11803_v61, %v4904_v48 }
0x157b   :  { %v4943_v19 = vadd.f32 %v4927_v17, %v11771_v3  ;;  %v4929_v33 = vadd.f32 %v11803_v61, %v4905_v5 }
0x157c   :  { %8283 = vmatmul.mubr.f32.gmra.mxu0 %v4935_v32  ;;  %v4944_v36 = vadd.f32 %v4928_v38, %v11785_v58  ;;  %v11889_v58 = vld [vmem:[%s12988_s13 + $0x4] ss:$0 sm:$0xff] }
0x157d   :  { %8285 = vmatprep.mubr.f32.mxu0 %v4936_v25  ;;  %v4945_v30 = vadd.f32 %v4929_v33, %v11779_v46 }
0x1580   :  { %8286 = vmatmul.mubr.f32.gmra.mxu0 %v4937_v20 }
0x1581   :  { %8288 = vmatprep.mubr.f32.mxu0 %v4938_v43 }
0x1584   :  { %8289 = vmatmul.mubr.f32.gmra.mxu0 %v4939_v21 }
0x1585   :  { %8291 = vmatprep.mubr.f32.mxu0 %v4940_v28 }
0x1588   :  { %8292 = vmatmul.mubr.f32.gmra.mxu0 %v4941_v63 }
0x1589   :  { %8294 = vmatprep.mubr.f32.mxu0 %v4942_v56 }
0x158c   :  { %8295 = vmatmul.mubr.f32.gmra.mxu0 %v4943_v19 }
0x158d   :  { %8297 = vmatprep.mubr.f32.mxu0 %v4944_v36 }
0x1590   :  { %8298 = vmatmul.mubr.f32.gmra.mxu0 %v4945_v30 }
0x1634   :  { %v8278_v42 = vpop.f32.mrf.mxu0 }
0x1635   :  { %v5043_v39 = vadd.f32 %v8278_v42, %v11878_v24 }
0x1636   :  { %v5037_v2 = vpop.f32.mrf.mxu0 }
0x1637   :  { %v11885_v1 = vadd.f32 %v5043_v39, %v11383_v15  ;;  %v5038_v3 = vadd.f32 %v11878_v24, %v5037_v2 }
0x1638   :  { %v8281_v61 = vpop.f32.mrf.mxu0 }
0x1639   :  { %v5141_v46 = vmul.f32 %v11882_v41, %v11885_v1  ;;  %v11894_v11 = vadd.f32 %v5038_v3, %v11392_v50  ;;  %v5053_v14 = vadd.f32 %v8281_v61, %v11878_v24 }
0x163a   :  { %v5047_v4 = vpop.f32.mrf.mxu0 }
0x163b   :  { %v5140_v12 = vmul.f32 %v11882_v41, %v11894_v11  ;;  %v11900_v15 = vadd.f32 %v5053_v14, %v11398_v6  ;;  %v5048_v62 = vadd.f32 %v11878_v24, %v5047_v4  ;;  %v11904_v53 = vadd.f32 %v11889_v58, %v5141_v46 }
0x163c   :  { %v8284_v32 = vpop.f32.mrf.mxu0 }
0x163d   :  { %v5143_v55 = vmul.f32 %v11882_v41, %v11900_v15  ;;  %v11909_v50 = vadd.f32 %v5048_v62, %v11407_v7  ;;  %v5063_v54 = vadd.f32 %v8284_v32, %v11878_v24  ;;  %5186 = vadd.xlane.f32.xlu0 %v11904_v53  ;;  %v11914_v27 = vadd.f32 %v11889_v58, %v5140_v12 }
0x163e   :  { %v5057_v6 = vpop.f32.mrf.mxu0 }
0x163f   :  { %v5142_v25 = vmul.f32 %v11882_v41, %v11909_v50  ;;  %v11919_v47 = vadd.f32 %v5063_v54, %v11417_v16  ;;  %v5058_v35 = vadd.f32 %v11878_v24, %v5057_v6  ;;  %5184 = vadd.xlane.f32.xlu1 %v11914_v27  ;;  %v11924_v7 = vadd.f32 %v11889_v58, %v5143_v55 }
0x1640   :  { %v8287_v13 = vpop.f32.mrf.mxu0 }
0x1641   :  { %v5145_v20 = vmul.f32 %v11882_v41, %v11919_v47  ;;  %v11929_v8 = vadd.f32 %v5058_v35, %v11427_v57  ;;  %v5073_v59 = vadd.f32 %v8287_v13, %v11878_v24  ;;  %5190 = vadd.xlane.f32.xlu0 %v11924_v7  ;;  %v11934_v16 = vadd.f32 %v11889_v58, %v5142_v25 }
0x1642   :  { %v5067_v10 = vpop.f32.mrf.mxu0 }
0x1643   :  { %v5144_v43 = vmul.f32 %v11882_v41, %v11929_v8  ;;  %v11939_v37 = vadd.f32 %v5073_v59, %v11437_v31  ;;  %v5068_v51 = vadd.f32 %v11878_v24, %v5067_v10  ;;  %5188 = vadd.xlane.f32.xlu1 %v11934_v16  ;;  %v11944_v57 = vadd.f32 %v11889_v58, %v5145_v20  ;;  %v5419_v10 = vld [vmem:[#allocation2 + $0x270] sm:$0xff] }
0x1644   :  { %v8290_v9 = vpop.f32.mrf.mxu0 }
0x1645   :  { %v5147_v21 = vmul.f32 %v11882_v41, %v11939_v37  ;;  %v11949_v34 = vadd.f32 %v5068_v51, %v11447_v26  ;;  %v5083_v22 = vadd.f32 %v8290_v9, %v11878_v24  ;;  %5194 = vadd.xlane.f32.xlu0 %v11944_v57  ;;  %v11954_v31 = vadd.f32 %v11889_v58, %v5144_v43  ;;  %v5418_v43 = vld [vmem:[#allocation2 + $0x268] sm:$0xff] }
0x1646   :  { %v5077_v45 = vpop.f32.mrf.mxu0 }
0x1647   :  { %v5146_v28 = vmul.f32 %v11882_v41, %v11949_v34  ;;  %v11959_v23 = vadd.f32 %v5083_v22, %v11457_v60  ;;  %v5078_v48 = vadd.f32 %v11878_v24, %v5077_v45  ;;  %5192 = vadd.xlane.f32.xlu1 %v11954_v31  ;;  %v11964_v26 = vadd.f32 %v11889_v58, %v5147_v21 }
0x1648   :  { %v8293_v63 = vpop.f32.mrf.mxu0 }
0x1649   :  { %v5149_v17 = vmul.f32 %v11882_v41, %v11959_v23  ;;  %v11969_v5 = vadd.f32 %v5078_v48, %v11467_v52  ;;  %v5093_v56 = vadd.f32 %v8293_v63, %v11878_v24  ;;  %5198 = vadd.xlane.f32.xlu0 %v11964_v26  ;;  %v11974_v60 = vadd.f32 %v11889_v58, %v5146_v28 }
0x164a   :  { %v5087_v38 = vpop.f32.mrf.mxu0 }
0x164b   :  { %v5148_v19 = vmul.f32 %v11882_v41, %v11969_v5  ;;  %v11979_v33 = vadd.f32 %v5093_v56, %v11477_v29  ;;  %v5088_v36 = vadd.f32 %v11878_v24, %v5087_v38  ;;  %5196 = vadd.xlane.f32.xlu1 %v11974_v60  ;;  %v11984_v52 = vadd.f32 %v11889_v58, %v5149_v17 }
0x164c   :  { %v8296_v30 = vpop.f32.mrf.mxu0 }
0x164d   :  { %v5151_v42 = vmul.f32 %v11882_v41, %v11979_v33  ;;  %v11989_v39 = vadd.f32 %v5088_v36, %v11487_v44  ;;  %v5103_v2 = vadd.f32 %v8296_v30, %v11878_v24  ;;  %5202 = vadd.xlane.f32.xlu0 %v11984_v52  ;;  %v11994_v29 = vadd.f32 %v11889_v58, %v5148_v19 }
0x164e   :  { %v5097_v3 = vpop.f32.mrf.mxu0 }
0x164f   :  { %v5150_v61 = vmul.f32 %v11882_v41, %v11989_v39  ;;  %v11999_v46 = vadd.f32 %v5103_v2, %v11497_v18  ;;  %v5098_v14 = vadd.f32 %v11878_v24, %v5097_v3  ;;  %5200 = vadd.xlane.f32.xlu1 %v11994_v29  ;;  %v12004_v44 = vadd.f32 %v11889_v58, %v5151_v42 }
0x1650   :  { %v8299_v4 = vpop.f32.mrf.mxu0 }
0x1651   :  { %v5153_v12 = vmul.f32 %v11882_v41, %v11999_v46  ;;  %v12009_v62 = vadd.f32 %v5098_v14, %v11507_v40  ;;  %v5113_v32 = vadd.f32 %v8299_v4, %v11878_v24  ;;  %5206 = vadd.xlane.f32.xlu0 %v12004_v44  ;;  %v12014_v18 = vadd.f32 %v11889_v58, %v5150_v61 }
0x1652   :  { %v5107_v55 = vpop.f32.mrf.mxu0 }
0x1653   :  { %v5152_v54 = vmul.f32 %v11882_v41, %v12009_v62  ;;  %v12019_v6 = vadd.f32 %v5113_v32, %v11517_v0  ;;  %v5108_v25 = vadd.f32 %v11878_v24, %v5107_v55  ;;  %5204 = vadd.xlane.f32.xlu1 %v12014_v18  ;;  %v12024_v40 = vadd.f32 %v11889_v58, %v5153_v12 }
0x1655   :  { %v5155_v35 = vmul.f32 %v11882_v41, %v12019_v6  ;;  %v12029_v13 = vadd.f32 %v5108_v25, %v11527_v49  ;;  %5210 = vadd.xlane.f32.xlu0 %v12024_v40  ;;  %v12033_v20 = vadd.f32 %v11889_v58, %v5152_v54  ;;  %v5420_v49 = vld [vmem:[#allocation2 + $0x278] sm:$0xff] }
0x1656   :  { %8300 = vmatprep.subr.mxu1 %v5420_v49 }
0x1657   :  { %v5154_v0 = vmul.f32 %v11882_v41, %v12029_v13  ;;  %5208 = vadd.xlane.f32.xlu1 %v12033_v20  ;;  %v12039_v24 = vadd.f32 %v11889_v58, %v5155_v35  ;;  %8301 = vmatpush3.msra.mxu1 %v5420_v49 }
0x1658   :  { %8302 = vmatprep.subr.mxu1 %v5419_v10 }
0x1659   :  { %5214 = vadd.xlane.f32.xlu0 %v12039_v24  ;;  %v12043_v59 = vadd.f32 %v11889_v58, %v5154_v0  ;;  %8303 = vmatpush3.msra.mxu1 %v5419_v10 }
0x165a   :  { %8304 = vmatprep.subr.mxu1 %v5418_v43 }
0x165b   :  { %5212 = vadd.xlane.f32.xlu1 %v12043_v59  ;;  %8305 = vmatpush3.msra.mxu1 %v5418_v43 }
0x16c6   :  { %v5187_v41 = vpop.xlane.xlu0 %5186 }
0x16c7   :  { %v5217_v51 = vmul.f32 0.0078125, %v5187_v41 }
0x16c8   :  { %v5185_v9 = vpop.xlane.xlu1 %5184 }
0x16c9   :  { %v12047_v21 = vsub.f32 %v11904_v53, %v5217_v51  ;;  %v5216_v22 = vmul.f32 0.0078125, %v5185_v9 }
0x16ca   :  { %v5191_v58 = vpop.xlane.xlu0 %5190 }
0x16cb   :  { %v12050_v45 = vsub.f32 %v11914_v27, %v5216_v22  ;;  %v5219_v28 = vmul.f32 0.0078125, %v5191_v58  ;;  %v5249_v48 = vmul.f32 %v12047_v21, %v12047_v21 }
0x16cc   :  { %v5189_v63 = vpop.xlane.xlu1 %5188 }
0x16cd   :  { %v12055_v17 = vsub.f32 %v11924_v7, %v5219_v28  ;;  %v5218_v56 = vmul.f32 0.0078125, %v5189_v63  ;;  %5266 = vadd.xlane.f32.xlu0 %v5249_v48  ;;  %v5248_v38 = vmul.f32 %v12050_v45, %v12050_v45 }
0x16ce   :  { %v5195_v53 = vpop.xlane.xlu0 %5194 }
0x16cf   :  { %v12060_v19 = vsub.f32 %v11934_v16, %v5218_v56  ;;  %v5221_v36 = vmul.f32 0.0078125, %v5195_v53  ;;  %5264 = vadd.xlane.f32.xlu1 %v5248_v38  ;;  %v5251_v27 = vmul.f32 %v12055_v17, %v12055_v17  ;;  %v5417_v56 = vld [vmem:[#allocation2 + $0x260] sm:$0xff] }
0x16d0   :  { %v5193_v30 = vpop.xlane.xlu1 %5192  ;;  %8306 = vmatprep.subr.mxu1 %v5417_v56 }
0x16d1   :  { %v12065_v42 = vsub.f32 %v11944_v57, %v5221_v36  ;;  %v5220_v7 = vmul.f32 0.0078125, %v5193_v30  ;;  %5270 = vadd.xlane.f32.xlu0 %v5251_v27  ;;  %v5250_v2 = vmul.f32 %v12060_v19, %v12060_v19  ;;  %8307 = vmatpush3.msra.mxu1 %v5417_v56 }
0x16d2   :  { %v5199_v3 = vpop.xlane.xlu0 %5198 }
0x16d3   :  { %v12070_v61 = vsub.f32 %v11954_v31, %v5220_v7  ;;  %v5223_v16 = vmul.f32 0.0078125, %v5199_v3  ;;  %5268 = vadd.xlane.f32.xlu1 %v5250_v2  ;;  %v5253_v14 = vmul.f32 %v12065_v42, %v12065_v42  ;;  %v5415_v2 = vld [vmem:[#allocation2 + $0x250] sm:$0xff] }
0x16d4   :  { %v5197_v4 = vpop.xlane.xlu1 %5196 }
0x16d5   :  { %v12075_v12 = vsub.f32 %v11964_v26, %v5223_v16  ;;  %v5222_v57 = vmul.f32 0.0078125, %v5197_v4  ;;  %5274 = vadd.xlane.f32.xlu0 %v5253_v14  ;;  %v5252_v32 = vmul.f32 %v12070_v61, %v12070_v61 }
0x16d6   :  { %v5203_v55 = vpop.xlane.xlu0 %5202 }
0x16d7   :  { %v12080_v54 = vsub.f32 %v11974_v60, %v5222_v57  ;;  %v5225_v31 = vmul.f32 0.0078125, %v5203_v55  ;;  %5272 = vadd.xlane.f32.xlu1 %v5252_v32  ;;  %v5255_v25 = vmul.f32 %v12075_v12, %v12075_v12  ;;  %v5413_v32 = vld [vmem:[#allocation2 + $0x240] sm:$0xff]  ;;  %v5412_v55 = vld [vmem:[#allocation2 + $0x238] sm:$0xff] }
0x16d8   :  { %v5201_v35 = vpop.xlane.xlu1 %5200 }
0x16d9   :  { %v12085_v0 = vsub.f32 %v11984_v52, %v5225_v31  ;;  %v5224_v26 = vmul.f32 0.0078125, %v5201_v35  ;;  %5278 = vadd.xlane.f32.xlu0 %v5255_v25  ;;  %v5254_v49 = vmul.f32 %v12080_v54, %v12080_v54  ;;  %v5411_v31 = vld [vmem:[#allocation2 + $0x230] sm:$0xff]  ;;  %v5409_v25 = vld [vmem:[#allocation2 + $0x220] sm:$0xff]  ;;  %v5408_v35 = vld [vmem:[#allocation2 + $0x218] sm:$0xff] }
0x16da   :  { %v5207_v10 = vpop.xlane.xlu0 %5206 }
0x16db   :  { %v12090_v43 = vsub.f32 %v11994_v29, %v5224_v26  ;;  %v5227_v60 = vmul.f32 0.0078125, %v5207_v10  ;;  %5276 = vadd.xlane.f32.xlu1 %v5254_v49  ;;  %v5257_v41 = vmul.f32 %v12085_v0, %v12085_v0  ;;  %v5407_v26 = vld [vmem:[#allocation2 + $0x210] sm:$0xff]  ;;  %v5406_v49 = vld [vmem:[#allocation2 + $0x208] sm:$0xff]  ;;  %v5405_v10 = vld [vmem:[#allocation2 + $0x200] sm:$0xff] }
0x16dc   :  { %v5205_v51 = vpop.xlane.xlu1 %5204 }
0x16dd   :  { %v12095_v9 = vsub.f32 %v12004_v44, %v5227_v60  ;;  %v5226_v52 = vmul.f32 0.0078125, %v5205_v51  ;;  %5282 = vadd.xlane.f32.xlu0 %v5257_v41  ;;  %v5256_v22 = vmul.f32 %v12090_v43, %v12090_v43 }
0x16de   :  { %v5211_v58 = vpop.xlane.xlu0 %5210 }
0x16df   :  { %v12100_v28 = vsub.f32 %v12014_v18, %v5226_v52  ;;  %v5229_v29 = vmul.f32 0.0078125, %v5211_v58  ;;  %5280 = vadd.xlane.f32.xlu1 %v5256_v22  ;;  %v5259_v48 = vmul.f32 %v12095_v9, %v12095_v9  ;;  %v5416_v18 = vld [vmem:[#allocation2 + $0x258] sm:$0xff] }
0x16e0   :  { %v5209_v63 = vpop.xlane.xlu1 %5208  ;;  %8308 = vmatprep.subr.mxu1 %v5416_v18 }
0x16e1   :  { %v12105_v38 = vsub.f32 %v12024_v40, %v5229_v29  ;;  %v5228_v44 = vmul.f32 0.0078125, %v5209_v63  ;;  %5286 = vadd.xlane.f32.xlu0 %v5259_v48  ;;  %v5258_v53 = vmul.f32 %v12100_v28, %v12100_v28  ;;  %8309 = vmatpush3.msra.mxu1 %v5416_v18 }
0x16e2   :  { %v5215_v36 = vpop.xlane.xlu0 %5214  ;;  %8310 = vmatprep.subr.mxu1 %v5415_v2 }
0x16e3   :  { %v12110_v27 = vsub.f32 %v12033_v20, %v5228_v44  ;;  %v5231_v30 = vmul.f32 0.0078125, %v5215_v36  ;;  %5284 = vadd.xlane.f32.xlu1 %v5258_v53  ;;  %v5261_v7 = vmul.f32 %v12105_v38, %v12105_v38  ;;  %8311 = vmatpush3.msra.mxu1 %v5415_v2  ;;  %v5414_v20 = vld [vmem:[#allocation2 + $0x248] sm:$0xff] }
0x16e4   :  { %v5213_v40 = vpop.xlane.xlu1 %5212  ;;  %8312 = vmatprep.subr.mxu1 %v5414_v20 }
0x16e5   :  { %v12115_v3 = vsub.f32 %v12039_v24, %v5231_v30  ;;  %v5230_v16 = vmul.f32 0.0078125, %v5213_v40  ;;  %5290 = vadd.xlane.f32.xlu0 %v5261_v7  ;;  %v5260_v14 = vmul.f32 %v12110_v27, %v12110_v27  ;;  %8313 = vmatpush3.msra.mxu1 %v5414_v20 }
0x16e6   :  { %8314 = vmatprep.subr.mxu1 %v5413_v32 }
0x16e7   :  { %v12120_v4 = vsub.f32 %v12043_v59, %v5230_v16  ;;  %5288 = vadd.xlane.f32.xlu1 %v5260_v14  ;;  %v5263_v57 = vmul.f32 %v12115_v3, %v12115_v3  ;;  %8315 = vmatpush3.msra.mxu1 %v5413_v32  ;;  %v5410_v59 = vld [vmem:[#allocation2 + $0x228] sm:$0xff] }
0x16e8   :  { %8316 = vmatprep.subr.mxu1 %v5412_v55 }
0x16e9   :  { %5294 = vadd.xlane.f32.xlu0 %v5263_v57  ;;  %v5262_v24 = vmul.f32 %v12120_v4, %v12120_v4  ;;  %8317 = vmatpush3.msra.mxu1 %v5412_v55 }
0x16ea   :  { %8318 = vmatprep.subr.mxu1 %v5411_v31 }
0x16eb   :  { %5292 = vadd.xlane.f32.xlu1 %v5262_v24  ;;  %8319 = vmatpush3.msra.mxu1 %v5411_v31 }
0x16ec   :  { %8320 = vmatprep.subr.mxu1 %v5410_v59 }
0x16ed   :  { %8321 = vmatpush3.msra.mxu1 %v5410_v59 }
0x16ee   :  { %8322 = vmatprep.subr.mxu1 %v5409_v25 }
0x16ef   :  { %8323 = vmatpush3.msra.mxu1 %v5409_v25 }
0x16f0   :  { %8324 = vmatprep.subr.mxu1 %v5408_v35 }
0x16f1   :  { %8325 = vmatpush3.msra.mxu1 %v5408_v35 }
0x16f2   :  { %8326 = vmatprep.subr.mxu1 %v5407_v26 }
0x16f3   :  { %8327 = vmatpush3.msra.mxu1 %v5407_v26 }
0x16f4   :  { %8328 = vmatprep.subr.mxu1 %v5406_v49 }
0x16f5   :  { %8329 = vmatpush3.msra.mxu1 %v5406_v49 }
0x16f6   :  { %8330 = vmatprep.subr.mxu1 %v5405_v10 }
0x16f7   :  { %8331 = vmatpush3.msra.mxu1 %v5405_v10  ;;  %v12128_v10 = vld [vmem:[%s12989_s17 + $0x4] ss:$0 sm:$0xff] }
0x1756   :  { %v5267_v60 = vpop.xlane.xlu0 %5266 }
0x1757   :  { %v5297_v41 = vmul.f32 0.0078125, %v5267_v60 }
0x1758   :  { %v5265_v51 = vpop.xlane.xlu1 %5264 }
0x1759   :  { %v5313_v52 = vadd.f32 1e-05, %v5297_v41  ;;  %v5296_v22 = vmul.f32 0.0078125, %v5265_v51 }
0x175a   :  { %v5271_v58 = vpop.xlane.xlu0 %5270 }
0x175b   :  { %9000 = vrsqrt.f32 %v5313_v52  ;;  %v5312_v29 = vadd.f32 1e-05, %v5296_v22  ;;  %v5299_v48 = vmul.f32 0.0078125, %v5271_v58 }
0x175c   :  { %v5269_v63 = vpop.xlane.xlu1 %5268 }
0x175d   :  { %9002 = vrsqrt.f32 %v5312_v29  ;;  %v5315_v56 = vadd.f32 1e-05, %v5299_v48  ;;  %v5298_v44 = vmul.f32 0.0078125, %v5269_v63 }
0x175e   :  { %v5275_v53 = vpop.xlane.xlu0 %5274 }
0x175f   :  { %9004 = vrsqrt.f32 %v5315_v56  ;;  %v5314_v36 = vadd.f32 1e-05, %v5298_v44  ;;  %v5301_v18 = vmul.f32 0.0078125, %v5275_v53  ;;  %v12133_v56 = vld [vmem:[%s12990_s21 + $0x4] ss:$0 sm:$0xff] }
0x1760   :  { %v5273_v30 = vpop.xlane.xlu1 %5272 }
0x1761   :  { %9006 = vrsqrt.f32 %v5314_v36  ;;  %v5317_v7 = vadd.f32 1e-05, %v5301_v18  ;;  %v5300_v40 = vmul.f32 0.0078125, %v5273_v30 }
0x1762   :  { %v5279_v2 = vpop.xlane.xlu0 %5278 }
0x1763   :  { %9008 = vrsqrt.f32 %v5317_v7  ;;  %v5316_v16 = vadd.f32 1e-05, %v5300_v40  ;;  %v5303_v14 = vmul.f32 0.0078125, %v5279_v2 }
0x1764   :  { %v5277_v20 = vpop.xlane.xlu1 %5276 }
0x1765   :  { %9010 = vrsqrt.f32 %v5316_v16  ;;  %v5319_v57 = vadd.f32 1e-05, %v5303_v14  ;;  %v5302_v32 = vmul.f32 0.0078125, %v5277_v20 }
0x1766   :  { %v5283_v24 = vpop.xlane.xlu0 %5282 }
0x1767   :  { %9012 = vrsqrt.f32 %v5319_v57  ;;  %v5318_v55 = vadd.f32 1e-05, %v5302_v32  ;;  %v5305_v31 = vmul.f32 0.0078125, %v5283_v24 }
0x1768   :  { %v9001_v59 = vpop.eup %9000  ;;  %v5281_v25 = vpop.xlane.xlu1 %5280 }
0x1769   :  { %v5345_v35 = vmul.f32 %v9001_v59, %v12047_v21  ;;  %9014 = vrsqrt.f32 %v5318_v55  ;;  %v5321_v26 = vadd.f32 1e-05, %v5305_v31  ;;  %v5304_v49 = vmul.f32 0.0078125, %v5281_v25 }
0x176a   :  { %v9003_v60 = vpop.eup %9002  ;;  %v5287_v41 = vpop.xlane.xlu0 %5286 }
0x176b   :  { %9016 = vrsqrt.f32 %v5321_v26  ;;  %v5320_v51 = vadd.f32 1e-05, %v5304_v49  ;;  %v5307_v52 = vmul.f32 0.0078125, %v5287_v41  ;;  %v5344_v22 = vmul.f32 %v9003_v60, %v12050_v45 }
0x176c   :  { %v9005_v58 = vpop.eup %9004  ;;  %v5285_v29 = vpop.xlane.xlu1 %5284  ;;  %v5367_v48 = vmul.f32 %v12128_v10, %v5345_v35 }
0x176d   :  { %9018 = vrsqrt.f32 %v5320_v51  ;;  %v5323_v63 = vadd.f32 1e-05, %v5307_v52  ;;  %v5306_v21 = vmul.f32 0.0078125, %v5285_v29  ;;  %v5366_v44 = vmul.f32 %v12128_v10, %v5344_v22 }
0x176e   :  { %v9007_v53 = vpop.eup %9006  ;;  %v5291_v36 = vpop.xlane.xlu0 %5290  ;;  %v5347_v18 = vmul.f32 %v9005_v58, %v12055_v17  ;;  %v5389_v16 = vadd.f32 %v12133_v56, %v5367_v48 }
0x176f   :  { %9020 = vrsqrt.f32 %v5323_v63  ;;  %v5322_v30 = vadd.f32 1e-05, %v5306_v21  ;;  %v5309_v7 = vmul.f32 0.0078125, %v5291_v36  ;;  %v5388_v45 = vadd.f32 %v12133_v56, %v5366_v44 }
0x1770   :  { %v9009_v40 = vpop.eup %9008  ;;  %v5289_v2 = vpop.xlane.xlu1 %5288  ;;  %v5346_v14 = vmul.f32 %v9007_v53, %v12060_v19  ;;  %v5369_v20 = vmul.f32 %v12128_v10, %v5347_v18 }
0x1771   :  { %9022 = vrsqrt.f32 %v5322_v30  ;;  %v5325_v57 = vadd.f32 1e-05, %v5309_v7  ;;  %v5308_v32 = vmul.f32 0.0078125, %v5289_v2  ;;  %8332 = vmatprep.mubr.f32.mxu1 %v5388_v45  ;;  %v5349_v24 = vmul.f32 %v9009_v40, %v12065_v42 }
0x1772   :  { %v9011_v17 = vpop.eup %9010  ;;  %v5295_v55 = vpop.xlane.xlu0 %5294  ;;  %8333 = vmatmul.mubr.f32.vlgmr.msra.gmra.mxu1 %v5389_v16  ;;  %v5368_v31 = vmul.f32 %v12128_v10, %v5346_v14  ;;  %v5391_v60 = vadd.f32 %v12133_v56, %v5369_v20 }
0x1773   :  { %9024 = vrsqrt.f32 %v5325_v57  ;;  %v5324_v59 = vadd.f32 1e-05, %v5308_v32  ;;  %v5311_v25 = vmul.f32 0.0078125, %v5295_v55  ;;  %v5348_v35 = vmul.f32 %v9011_v17, %v12070_v61 }
0x1774   :  { %v9013_v26 = vpop.eup %9012  ;;  %v5293_v19 = vpop.xlane.xlu1 %5292  ;;  %v5390_v49 = vadd.f32 %v12133_v56, %v5368_v31  ;;  %v5371_v41 = vmul.f32 %v12128_v10, %v5349_v24 }
0x1775   :  { %9026 = vrsqrt.f32 %v5324_v59  ;;  %v5327_v42 = vadd.f32 1e-05, %v5311_v25  ;;  %v5310_v51 = vmul.f32 0.0078125, %v5293_v19  ;;  %v5370_v52 = vmul.f32 %v12128_v10, %v5348_v35 }
0x1776   :  { %v9015_v22 = vpop.eup %9014  ;;  %8335 = vmatprep.mubr.f32.mxu1 %v5390_v49  ;;  %v5351_v58 = vmul.f32 %v9013_v26, %v12075_v12  ;;  %v5393_v21 = vadd.f32 %v12133_v56, %v5371_v41 }
0x1777   :  { %9028 = vrsqrt.f32 %v5327_v42  ;;  %v5326_v29 = vadd.f32 1e-05, %v5310_v51  ;;  %8336 = vmatmul.mubr.f32.gmra.mxu1 %v5391_v60  ;;  %v5392_v61 = vadd.f32 %v12133_v56, %v5370_v52  ;;  %v5350_v48 = vmul.f32 %v9015_v22, %v12080_v54 }
0x1778   :  { %v9017_v63 = vpop.eup %9016  ;;  %v5373_v53 = vmul.f32 %v12128_v10, %v5351_v58 }
0x1779   :  { %9030 = vrsqrt.f32 %v5326_v29  ;;  %8338 = vmatprep.mubr.f32.mxu1 %v5392_v61  ;;  %v5372_v44 = vmul.f32 %v12128_v10, %v5350_v48  ;;  %v5353_v36 = vmul.f32 %v9017_v63, %v12085_v0 }
0x177a   :  { %v9019_v18 = vpop.eup %9018  ;;  %v5395_v54 = vadd.f32 %v12133_v56, %v5373_v53 }
0x177b   :  { %8339 = vmatmul.mubr.f32.gmra.mxu1 %v5393_v21  ;;  %v5394_v12 = vadd.f32 %v12133_v56, %v5372_v44  ;;  %v5352_v30 = vmul.f32 %v9019_v18, %v12090_v43  ;;  %v5375_v40 = vmul.f32 %v12128_v10, %v5353_v36 }
0x177c   :  { %v9021_v7 = vpop.eup %9020 }
0x177d   :  { %8341 = vmatprep.mubr.f32.mxu1 %v5394_v12  ;;  %v5374_v45 = vmul.f32 %v12128_v10, %v5352_v30  ;;  %v5355_v2 = vmul.f32 %v9021_v7, %v12095_v9  ;;  %v5397_v43 = vadd.f32 %v12133_v56, %v5375_v40 }
0x177e   :  { %v9023_v16 = vpop.eup %9022 }
0x177f   :  { %8342 = vmatmul.mubr.f32.gmra.mxu1 %v5395_v54  ;;  %v5396_v0 = vadd.f32 %v12133_v56, %v5374_v45  ;;  %v5354_v14 = vmul.f32 %v9023_v16, %v12100_v28  ;;  %v5377_v32 = vmul.f32 %v12128_v10, %v5355_v2 }
0x1780   :  { %v9025_v20 = vpop.eup %9024 }
0x1781   :  { %8344 = vmatprep.mubr.f32.mxu1 %v5396_v0  ;;  %v5376_v57 = vmul.f32 %v12128_v10, %v5354_v14  ;;  %v5357_v24 = vmul.f32 %v9025_v20, %v12105_v38  ;;  %v5399_v28 = vadd.f32 %v12133_v56, %v5377_v32 }
0x1782   :  { %v9027_v17 = vpop.eup %9026 }
0x1783   :  { %8345 = vmatmul.mubr.f32.gmra.mxu1 %v5397_v43  ;;  %v5398_v9 = vadd.f32 %v12133_v56, %v5376_v57  ;;  %v5356_v55 = vmul.f32 %v9027_v17, %v12110_v27  ;;  %v5379_v25 = vmul.f32 %v12128_v10, %v5357_v24 }
0x1784   :  { %v9029_v31 = vpop.eup %9028 }
0x1785   :  { %8347 = vmatprep.mubr.f32.mxu1 %v5398_v9  ;;  %v5378_v59 = vmul.f32 %v12128_v10, %v5356_v55  ;;  %v5359_v35 = vmul.f32 %v9029_v31, %v12115_v3  ;;  %v5401_v27 = vadd.f32 %v12133_v56, %v5379_v25  ;;  %v12181_v3 = vld [vmem:[%s12991_s25 + $0x4] ss:$0 sm:$0xff] }
0x1786   :  { %v9031_v26 = vpop.eup %9030 }
0x1787   :  { %8348 = vmatmul.mubr.f32.gmra.mxu1 %v5399_v28  ;;  %v5400_v38 = vadd.f32 %v12133_v56, %v5378_v59  ;;  %v5358_v19 = vmul.f32 %v9031_v26, %v12120_v4  ;;  %v5381_v60 = vmul.f32 %v12128_v10, %v5359_v35 }
0x1789   :  { %8350 = vmatprep.mubr.f32.mxu1 %v5400_v38  ;;  %v5380_v49 = vmul.f32 %v12128_v10, %v5358_v19  ;;  %v5403_v42 = vadd.f32 %v12133_v56, %v5381_v60 }
0x178b   :  { %8351 = vmatmul.mubr.f32.gmra.mxu1 %v5401_v27  ;;  %v5402_v41 = vadd.f32 %v12133_v56, %v5380_v49 }
0x178d   :  { %8353 = vmatprep.mubr.f32.mxu1 %v5402_v41 }
0x178f   :  { %8354 = vmatmul.mubr.f32.gmra.mxu1 %v5403_v42 }
0x1832   :  { %v8334_v51 = vpop.f32.mrf.mxu1 }
0x1833   :  { %v5501_v52 = vadd.f32 %v8334_v51, %v12181_v3 }
0x1834   :  { %v5495_v4 = vpop.f32.mrf.mxu1 }
0x1835   :  { %v5591_v22 = vmul.f32 0.70710677, %v5501_v52  ;;  %v5496_v58 = vadd.f32 %v12181_v3, %v5495_v4  ;;  %v5575_v43 = vmul.f32 0.5, %v5501_v52 }
0x1837   :  { %9032 = verf.f32 %v5591_v22  ;;  %v5590_v29 = vmul.f32 0.70710677, %v5496_v58  ;;  %v8337_v61 = vpop.f32.mrf.mxu1  ;;  %v5574_v31 = vmul.f32 0.5, %v5496_v58 }
0x1838   :  { %v5511_v10 = vadd.f32 %v8337_v61, %v12181_v3 }
0x1839   :  { %9034 = verf.f32 %v5590_v29  ;;  %v5505_v48 = vpop.f32.mrf.mxu1 }
0x183a   :  { %v5593_v63 = vmul.f32 0.70710677, %v5511_v10  ;;  %v5506_v56 = vadd.f32 %v12181_v3, %v5505_v48  ;;  %v5577_v49 = vmul.f32 0.5, %v5511_v10 }
0x183b   :  { %v8340_v21 = vpop.f32.mrf.mxu1 }
0x183c   :  { %9036 = verf.f32 %v5593_v63  ;;  %v5592_v44 = vmul.f32 0.70710677, %v5506_v56  ;;  %v5521_v53 = vadd.f32 %v8340_v21, %v12181_v3  ;;  %v5576_v51 = vmul.f32 0.5, %v5506_v56 }
0x183d   :  { %v5515_v36 = vpop.f32.mrf.mxu1 }
0x183e   :  { %9038 = verf.f32 %v5592_v44  ;;  %v5595_v18 = vmul.f32 0.70710677, %v5521_v53  ;;  %v5516_v12 = vadd.f32 %v12181_v3, %v5515_v36  ;;  %v5579_v21 = vmul.f32 0.5, %v5521_v53 }
0x183f   :  { %v8343_v30 = vpop.f32.mrf.mxu1 }
0x1840   :  { %9040 = verf.f32 %v5595_v18  ;;  %v5594_v7 = vmul.f32 0.70710677, %v5516_v12  ;;  %v12190_v54 = vadd.f32 %v8343_v30, %v12181_v3  ;;  %v5578_v30 = vmul.f32 0.5, %v5516_v12 }
0x1841   :  { %v5525_v45 = vpop.f32.mrf.mxu1 }
0x1842   :  { %9042 = verf.f32 %v5594_v7  ;;  %v5597_v40 = vmul.f32 0.70710677, %v12190_v54  ;;  %v12194_v2 = vadd.f32 %v12181_v3, %v5525_v45 }
0x1843   :  { %v8346_v16 = vpop.f32.mrf.mxu1 }
0x1844   :  { %v9033_v0 = vpop.eup %9032  ;;  %9044 = verf.f32 %v5597_v40  ;;  %v5596_v14 = vmul.f32 0.70710677, %v12194_v2  ;;  %v12198_v20 = vadd.f32 %v8346_v16, %v12181_v3 }
0x1845   :  { %v5623_v57 = vadd.f32 1.0, %v9033_v0  ;;  %v5535_v32 = vpop.f32.mrf.mxu1 }
0x1846   :  { %v9035_v24 = vpop.eup %9034  ;;  %9046 = verf.f32 %v5596_v14  ;;  %v5599_v17 = vmul.f32 0.70710677, %v12198_v20  ;;  %v12202_v9 = vadd.f32 %v12181_v3, %v5535_v32 }
0x1847   :  { %v12204_v55 = vmul.f32 %v5623_v57, %v5575_v43  ;;  %v5622_v28 = vadd.f32 1.0, %v9035_v24  ;;  %v8349_v59 = vpop.f32.mrf.mxu1  ;;  %v5581_v24 = vmul.f32 0.5, %v12190_v54 }
0x1848   :  { %9048 = verf.f32 %v5599_v17  ;;  %v5598_v25 = vmul.f32 0.70710677, %v12202_v9  ;;  %v12208_v35 = vadd.f32 %v8349_v59, %v12181_v3  ;;  %v5580_v59 = vmul.f32 0.5, %v12194_v2 }
0x1849   :  { %v9037_v26 = vpop.eup %9036  ;;  %v12210_v38 = vmul.f32 %v5622_v28, %v5574_v31  ;;  %v5545_v19 = vpop.f32.mrf.mxu1  ;;  %v5655_v27 = vmul.f32 %v12204_v55, %v12204_v55  ;;  %v5583_v2 = vmul.f32 0.5, %v12198_v20 }
0x184a   :  { %v5625_v60 = vadd.f32 1.0, %v9037_v26  ;;  %9050 = verf.f32 %v5598_v25  ;;  %v5601_v41 = vmul.f32 0.70710677, %v12208_v35  ;;  %v12216_v52 = vadd.f32 %v12181_v3, %v5545_v19 }
0x184b   :  { %v9039_v42 = vpop.eup %9038  ;;  %v8352_v4 = vpop.f32.mrf.mxu1  ;;  %5672 = vadd.xlane.f32.xlu0 %v5655_v27  ;;  %v5654_v22 = vmul.f32 %v12210_v38, %v12210_v38  ;;  %v5585_v20 = vmul.f32 0.5, %v12208_v35 }
0x184c   :  { %v12220_v58 = vmul.f32 %v5625_v60, %v5577_v49  ;;  %v5624_v29 = vadd.f32 1.0, %v9039_v42  ;;  %9052 = verf.f32 %v5601_v41  ;;  %v12223_v61 = vadd.f32 %v8352_v4, %v12181_v3 }
0x184d   :  { %v9041_v10 = vpop.eup %9040  ;;  %v5600_v48 = vmul.f32 0.70710677, %v12216_v52  ;;  %v5555_v63 = vpop.f32.mrf.mxu1  ;;  %5670 = vadd.xlane.f32.xlu1 %v5654_v22  ;;  %v5582_v22 = vmul.f32 0.5, %v12202_v9 }
0x184e   :  { %v12226_v56 = vmul.f32 %v5624_v29, %v5576_v51  ;;  %v5627_v44 = vadd.f32 1.0, %v9041_v10  ;;  %v5603_v36 = vmul.f32 0.70710677, %v12223_v61  ;;  %v5556_v7 = vadd.f32 %v12181_v3, %v5555_v63 }
0x184f   :  { %v9043_v18 = vpop.eup %9042  ;;  %9054 = verf.f32 %v5600_v48  ;;  %v8355_v45 = vpop.f32.mrf.mxu1  ;;  %v5657_v40 = vmul.f32 %v12220_v58, %v12220_v58 }
0x1850   :  { %v12232_v16 = vmul.f32 %v5627_v44, %v5579_v21  ;;  %v5626_v0 = vadd.f32 1.0, %v9043_v18  ;;  %9056 = verf.f32 %v5603_v36  ;;  %v5571_v14 = vadd.f32 %v8355_v45, %v12181_v3 }
0x1851   :  { %v9045_v43 = vpop.eup %9044  ;;  %v5602_v53 = vmul.f32 0.70710677, %v5556_v7  ;;  %5676 = vadd.xlane.f32.xlu0 %v5657_v40  ;;  %v5565_v57 = vpop.f32.mrf.mxu1  ;;  %v5656_v12 = vmul.f32 %v12226_v56, %v12226_v56  ;;  %v5584_v45 = vmul.f32 0.5, %v12216_v52 }
0x1852   :  { %v12237_v32 = vmul.f32 %v5626_v0, %v5578_v30  ;;  %v5629_v17 = vadd.f32 1.0, %v9045_v43  ;;  %v5605_v31 = vmul.f32 0.70710677, %v5571_v14  ;;  %v5566_v25 = vadd.f32 %v12181_v3, %v5565_v57 }
0x1853   :  { %v9047_v28 = vpop.eup %9046  ;;  %9058 = verf.f32 %v5602_v53  ;;  %5674 = vadd.xlane.f32.xlu1 %v5656_v12  ;;  %v5659_v26 = vmul.f32 %v12232_v16, %v12232_v16  ;;  %v5587_v0 = vmul.f32 0.5, %v12223_v61 }
0x1854   :  { %v12244_v19 = vmul.f32 %v5629_v17, %v5581_v24  ;;  %v5628_v27 = vadd.f32 1.0, %v9047_v28  ;;  %9060 = verf.f32 %v5605_v31  ;;  %v5658_v49 = vmul.f32 %v12237_v32, %v12237_v32 }
0x1855   :  { %v9049_v54 = vpop.eup %9048  ;;  %v5604_v60 = vmul.f32 0.70710677, %v5566_v25  ;;  %5680 = vadd.xlane.f32.xlu0 %v5659_v26  ;;  %v5586_v17 = vmul.f32 0.5, %v5556_v7  ;;  %v5589_v28 = vmul.f32 0.5, %v5571_v14 }
0x1856   :  { %v12248_v41 = vmul.f32 %v5628_v27, %v5580_v59  ;;  %v5631_v42 = vadd.f32 1.0, %v9049_v54  ;;  %v5661_v3 = vmul.f32 %v12244_v19, %v12244_v19  ;;  %v5588_v54 = vmul.f32 0.5, %v5566_v25  ;;  %v5828_v25 = vld [vmem:[#allocation4 + $0x270] sm:$0xff] }
0x1857   :  { %v9051_v51 = vpop.eup %9050  ;;  %9062 = verf.f32 %v5604_v60  ;;  %5678 = vadd.xlane.f32.xlu1 %v5658_v49 }
0x1858   :  { %v12253_v4 = vmul.f32 %v5631_v42, %v5583_v2  ;;  %v5630_v29 = vadd.f32 1.0, %v9051_v51  ;;  %v5660_v10 = vmul.f32 %v12248_v41, %v12248_v41  ;;  %v5827_v51 = vld [vmem:[#allocation4 + $0x268] sm:$0xff] }
0x1859   :  { %v9053_v48 = vpop.eup %9052  ;;  %5684 = vadd.xlane.f32.xlu0 %v5661_v3  ;;  %v5829_v3 = vld [vmem:[#allocation4 + $0x278] sm:$0xff] }
0x185a   :  { %v12258_v63 = vmul.f32 %v5630_v29, %v5582_v22  ;;  %v5633_v21 = vadd.f32 1.0, %v9053_v48  ;;  %v5663_v44 = vmul.f32 %v12253_v4, %v12253_v4  ;;  %8356 = vmatprep.subr.mxu0 %v5829_v3  ;;  %v5826_v22 = vld [vmem:[#allocation4 + $0x260] sm:$0xff]  ;;  %v5825_v29 = vld [vmem:[#allocation4 + $0x258] sm:$0xff]  ;;  %v5823_v48 = vld [vmem:[#allocation4 + $0x248] sm:$0xff] }
0x185b   :  { %5682 = vadd.xlane.f32.xlu1 %v5660_v10  ;;  %8357 = vmatpush3.msra.mxu0 %v5829_v3  ;;  %v5824_v10 = vld [vmem:[#allocation4 + $0x250] sm:$0xff] }
0x185c   :  { %v9055_v36 = vpop.eup %9054  ;;  %v12263_v18 = vmul.f32 %v5633_v21, %v5585_v20  ;;  %v5662_v9 = vmul.f32 %v12258_v63, %v12258_v63  ;;  %8358 = vmatprep.subr.mxu0 %v5828_v25  ;;  %v5822_v20 = vld [vmem:[#allocation4 + $0x240] sm:$0xff]  ;;  %v5821_v21 = vld [vmem:[#allocation4 + $0x238] sm:$0xff] }
0x185d   :  { %v9057_v30 = vpop.eup %9056  ;;  %v5632_v40 = vadd.f32 1.0, %v9055_v36  ;;  %5688 = vadd.xlane.f32.xlu0 %v5663_v44  ;;  %8359 = vmatpush3.msra.mxu0 %v5828_v25  ;;  %v5820_v44 = vld [vmem:[#allocation4 + $0x230] sm:$0xff]  ;;  %v5819_v36 = vld [vmem:[#allocation4 + $0x228] sm:$0xff] }
0x185e   :  { %v5635_v43 = vadd.f32 1.0, %v9057_v30  ;;  %v5665_v35 = vmul.f32 %v12263_v18, %v12263_v18  ;;  %8360 = vmatprep.subr.mxu0 %v5827_v51  ;;  %v5817_v30 = vld [vmem:[#allocation4 + $0x218] sm:$0xff] }
0x185f   :  { %v12271_v53 = vmul.f32 %v5632_v40, %v5584_v45  ;;  %5686 = vadd.xlane.f32.xlu1 %v5662_v9  ;;  %8361 = vmatpush3.msra.mxu0 %v5827_v51  ;;  %v5818_v9 = vld [vmem:[#allocation4 + $0x220] sm:$0xff]  ;;  %v5816_v45 = vld [vmem:[#allocation4 + $0x210] sm:$0xff]  ;;  %v5815_v40 = vld [vmem:[#allocation4 + $0x208] sm:$0xff] }
0x1860   :  { %v9059_v57 = vpop.eup %9058  ;;  %v12273_v12 = vmul.f32 %v5635_v43, %v5587_v0  ;;  %8362 = vmatprep.subr.mxu0 %v5826_v22  ;;  %v5814_v0 = vld [vmem:[#allocation4 + $0x200] sm:$0xff] }
0x1861   :  { %v9061_v24 = vpop.eup %9060  ;;  %v5634_v31 = vadd.f32 1.0, %v9059_v57  ;;  %5692 = vadd.xlane.f32.xlu0 %v5665_v35  ;;  %v5664_v52 = vmul.f32 %v12271_v53, %v12271_v53  ;;  %8363 = vmatpush3.msra.mxu0 %v5826_v22 }
0x1862   :  { %v5637_v59 = vadd.f32 1.0, %v9061_v24  ;;  %v5667_v61 = vmul.f32 %v12273_v12, %v12273_v12  ;;  %8364 = vmatprep.subr.mxu0 %v5825_v29 }
0x1863   :  { %v12279_v26 = vmul.f32 %v5634_v31, %v5586_v17  ;;  %5690 = vadd.xlane.f32.xlu1 %v5664_v52  ;;  %8365 = vmatpush3.msra.mxu0 %v5825_v29 }
0x1864   :  { %v9063_v27 = vpop.eup %9062  ;;  %v12281_v49 = vmul.f32 %v5637_v59, %v5589_v28  ;;  %8366 = vmatprep.subr.mxu0 %v5824_v10 }
0x1865   :  { %v5636_v60 = vadd.f32 1.0, %v9063_v27  ;;  %5696 = vadd.xlane.f32.xlu0 %v5667_v61  ;;  %v5666_v7 = vmul.f32 %v12279_v26, %v12279_v26  ;;  %8367 = vmatpush3.msra.mxu0 %v5824_v10 }
0x1866   :  { %v5669_v2 = vmul.f32 %v12281_v49, %v12281_v49  ;;  %8368 = vmatprep.subr.mxu0 %v5823_v48 }
0x1867   :  { %v12287_v14 = vmul.f32 %v5636_v60, %v5588_v54  ;;  %5694 = vadd.xlane.f32.xlu1 %v5666_v7  ;;  %8369 = vmatpush3.msra.mxu0 %v5823_v48 }
0x1868   :  { %8370 = vmatprep.subr.mxu0 %v5822_v20 }
0x1869   :  { %5700 = vadd.xlane.f32.xlu0 %v5669_v2  ;;  %v5668_v42 = vmul.f32 %v12287_v14, %v12287_v14  ;;  %8371 = vmatpush3.msra.mxu0 %v5822_v20 }
0x186a   :  { %8372 = vmatprep.subr.mxu0 %v5821_v21 }
0x186b   :  { %5698 = vadd.xlane.f32.xlu1 %v5668_v42  ;;  %8373 = vmatpush3.msra.mxu0 %v5821_v21 }
0x186c   :  { %8374 = vmatprep.subr.mxu0 %v5820_v44 }
0x186d   :  { %8375 = vmatpush3.msra.mxu0 %v5820_v44 }
0x186e   :  { %8376 = vmatprep.subr.mxu0 %v5819_v36 }
0x186f   :  { %8377 = vmatpush3.msra.mxu0 %v5819_v36 }
0x1870   :  { %8378 = vmatprep.subr.mxu0 %v5818_v9 }
0x1871   :  { %8379 = vmatpush3.msra.mxu0 %v5818_v9 }
0x1872   :  { %8380 = vmatprep.subr.mxu0 %v5817_v30 }
0x1873   :  { %8381 = vmatpush3.msra.mxu0 %v5817_v30 }
0x1874   :  { %8382 = vmatprep.subr.mxu0 %v5816_v45 }
0x1875   :  { %8383 = vmatpush3.msra.mxu0 %v5816_v45 }
0x1876   :  { %8384 = vmatprep.subr.mxu0 %v5815_v40 }
0x1877   :  { %8385 = vmatpush3.msra.mxu0 %v5815_v40 }
0x1878   :  { %8386 = vmatprep.subr.mxu0 %v5814_v0 }
0x1879   :  { %8387 = vmatpush3.msra.mxu0 %v5814_v0 }
0x18d4   :  { %v5673_v43 = vpop.xlane.xlu0 %5672 }
0x18d6   :  { %v5671_v35 = vpop.xlane.xlu1 %5670 }
0x18d7   :  { %v5702_v24 = vadd.f32 %v5673_v43, %v5671_v35 }
0x18da   :  { %v5677_v57 = vpop.xlane.xlu0 %5676 }
0x18dc   :  { %v5675_v17 = vpop.xlane.xlu1 %5674 }
0x18dd   :  { %v5703_v31 = vadd.f32 %v5702_v24, %v5675_v17 }
0x18de   :  { %v5681_v52 = vpop.xlane.xlu0 %5680 }
0x18df   :  { %v5704_v28 = vadd.f32 %v5703_v31, %v5677_v57 }
0x18e0   :  { %v5679_v59 = vpop.xlane.xlu1 %5678 }
0x18e1   :  { %v5705_v61 = vadd.f32 %v5704_v28, %v5679_v59 }
0x18e2   :  { %v5685_v27 = vpop.xlane.xlu0 %5684 }
0x18e3   :  { %v5706_v54 = vadd.f32 %v5705_v61, %v5681_v52 }
0x18e4   :  { %v5683_v60 = vpop.xlane.xlu1 %5682 }
0x18e5   :  { %v5707_v7 = vadd.f32 %v5706_v54, %v5683_v60 }
0x18e6   :  { %v5689_v2 = vpop.xlane.xlu0 %5688 }
0x18e7   :  { %v5708_v42 = vadd.f32 %v5707_v7, %v5685_v27  ;;  %v12294_v7 = vld [vmem:[%s12992_s29 + $0x4] ss:$0 sm:$0xff] }
0x18e8   :  { %v5687_v3 = vpop.xlane.xlu1 %5686 }
0x18e9   :  { %v5709_v25 = vadd.f32 %v5708_v42, %v5687_v3 }
0x18ea   :  { %v5693_v51 = vpop.xlane.xlu0 %5692 }
0x18eb   :  { %v5710_v22 = vadd.f32 %v5709_v25, %v5689_v2 }
0x18ec   :  { %v5691_v29 = vpop.xlane.xlu1 %5690 }
0x18ed   :  { %v5711_v10 = vadd.f32 %v5710_v22, %v5691_v29 }
0x18ee   :  { %v5697_v20 = vpop.xlane.xlu0 %5696 }
0x18ef   :  { %v5712_v48 = vadd.f32 %v5711_v10, %v5693_v51  ;;  %v12305_v51 = vld [vmem:[%s12993_s3 + $0x4] ss:$0 sm:$0xff] }
0x18f0   :  { %v5695_v21 = vpop.xlane.xlu1 %5694 }
0x18f1   :  { %v5713_v44 = vadd.f32 %v5712_v48, %v5695_v21 }
0x18f2   :  { %v5701_v45 = vpop.xlane.xlu0 %5700 }
0x18f3   :  { %v5714_v36 = vadd.f32 %v5713_v44, %v5697_v20 }
0x18f4   :  { %v5699_v9 = vpop.xlane.xlu1 %5698 }
0x18f5   :  { %v5715_v30 = vadd.f32 %v5714_v36, %v5699_v9 }
0x18f7   :  { %v5716_v40 = vadd.f32 %v5715_v30, %v5701_v45 }
0x18f9   :  { %v5717_v0 = vrot.slane %v5716_v40, 4 }
0x18fb   :  { %v5718_v43 = vadd.f32 %v5717_v0, %v5716_v40 }
0x18fd   :  { %v5719_v35 = vrot.slane %v5718_v43, 2 }
0x18ff   :  { %v5720_v57 = vadd.f32 %v5719_v35, %v5718_v43 }
0x1901   :  { %v5721_v24 = vrot.slane %v5720_v57, 1 }
0x1903   :  { %v5722_v17 = vadd.f32 %v5721_v24, %v5720_v57 }
0x1905   :  { %9064 = vrsqrt.f32 %v5722_v17  ;;  %vm5725_vm10 = vcmp.eq.f32.partialorder %v5722_v17, inf  ;;  %v5728_v28 = vand.u32 2147483648, %v5722_v17  ;;  %vm5727_vm11 = vcmp.eq.f32.partialorder %v5722_v17, 0.0 }
0x1912   :  { %v9065_v31 = vpop.eup %9064 }
0x1913   :  { %v5724_v52 = vmul.f32 %v9065_v31, %v5722_v17 }
0x1915   :  { %v5726_v59 = vsel %vm5725_vm10, %v5722_v17, %v5724_v52 }
0x1916   :  { %v5729_v61 = vsel %vm5727_vm11, %v5728_v28, %v5726_v59 }
0x1917   :  { %v5730_v27 = vadd.f32 1e-06, %v5729_v61 }
0x1919   :  { %9066 = vrcp.f32 %v5730_v27 }
0x1926   :  { %v9067_v54 = vpop.eup %9066 }
0x1927   :  { %v12291_v60 = vmul.f32 %v9067_v54, %v5729_v61 }
0x1929   :  { %v5735_v2 = vmul.f32 %v12291_v60, %v12210_v38  ;;  %v5736_v42 = vmul.f32 %v12291_v60, %v12204_v55  ;;  %v5737_v3 = vmul.f32 %v12291_v60, %v12226_v56  ;;  %v5738_v25 = vmul.f32 %v12291_v60, %v12220_v58 }
0x192a   :  { %v5739_v22 = vmul.f32 %v12291_v60, %v12237_v32  ;;  %v5740_v21 = vmul.f32 %v12291_v60, %v12232_v16  ;;  %v5741_v44 = vmul.f32 %v12291_v60, %v12248_v41  ;;  %v5742_v57 = vmul.f32 %v12291_v60, %v12244_v19 }
0x192b   :  { %v5757_v29 = vmul.f32 %v12294_v7, %v5735_v2  ;;  %v5758_v10 = vmul.f32 %v12294_v7, %v5736_v42  ;;  %v5759_v48 = vmul.f32 %v12294_v7, %v5737_v3  ;;  %v5760_v20 = vmul.f32 %v12294_v7, %v5738_v25 }
0x192c   :  { %v5761_v45 = vmul.f32 %v12294_v7, %v5739_v22  ;;  %v5762_v35 = vmul.f32 %v12294_v7, %v5740_v21  ;;  %v5763_v31 = vmul.f32 %v12294_v7, %v5741_v44  ;;  %v5743_v52 = vmul.f32 %v12291_v60, %v12258_v63 }
0x192d   :  { %v5781_v36 = vadd.f32 %v12305_v51, %v5757_v29  ;;  %v5782_v9 = vadd.f32 %v12305_v51, %v5758_v10  ;;  %v5783_v30 = vadd.f32 %v12305_v51, %v5759_v48  ;;  %v5784_v43 = vadd.f32 %v12305_v51, %v5760_v20 }
0x192e   :  { %v5785_v17 = vadd.f32 %v12305_v51, %v5761_v45  ;;  %v5764_v28 = vmul.f32 %v12294_v7, %v5742_v57  ;;  %v5744_v59 = vmul.f32 %v12291_v60, %v12253_v4  ;;  %v5787_v61 = vadd.f32 %v12305_v51, %v5763_v31  ;;  %v12380_v31 = vld [vmem:[%s12994_s8 + $0x4] ss:$0 sm:$0xff] }
0x192f   :  { %v5797_v40 = vadd.f32 %v5781_v36, %v12210_v38  ;;  %v5798_v0 = vadd.f32 %v5782_v9, %v12204_v55  ;;  %v5799_v24 = vadd.f32 %v5783_v30, %v12226_v56  ;;  %v5800_v55 = vadd.f32 %v5784_v43, %v12220_v58 }
0x1930   :  { %v5786_v38 = vadd.f32 %v12305_v51, %v5762_v35  ;;  %v5801_v56 = vadd.f32 %v5785_v17, %v12237_v32  ;;  %v5765_v27 = vmul.f32 %v12294_v7, %v5743_v52  ;;  %v5745_v54 = vmul.f32 %v12291_v60, %v12271_v53  ;;  %v12384_v52 = vld [vmem:[%s12987_s9 + $0x5] ss:$0 sm:$0xff] }
0x1931   :  { %8388 = vmatprep.mubr.f32.mxu0 %v5797_v40  ;;  %v5788_v2 = vadd.f32 %v12305_v51, %v5764_v28  ;;  %v5766_v42 = vmul.f32 %v12294_v7, %v5744_v59  ;;  %v5746_v3 = vmul.f32 %v12291_v60, %v12263_v18  ;;  %v5803_v32 = vadd.f32 %v5787_v61, %v12248_v41 }
0x1932   :  { %8389 = vmatmul.mubr.f32.vlgmr.msra.gmra.mxu0 %v5798_v0  ;;  %v5802_v58 = vadd.f32 %v5786_v38, %v12232_v16  ;;  %v5789_v25 = vadd.f32 %v12305_v51, %v5765_v27  ;;  %v5767_v22 = vmul.f32 %v12294_v7, %v5745_v54  ;;  %v5747_v29 = vmul.f32 %v12291_v60, %v12279_v26 }
0x1933   :  { %8391 = vmatprep.mubr.f32.mxu0 %v5799_v24  ;;  %v5804_v16 = vadd.f32 %v5788_v2, %v12244_v19  ;;  %v5790_v10 = vadd.f32 %v12305_v51, %v5766_v42  ;;  %v5768_v48 = vmul.f32 %v12294_v7, %v5746_v3  ;;  %v5748_v20 = vmul.f32 %v12291_v60, %v12273_v12 }
0x1934   :  { %v5805_v41 = vadd.f32 %v5789_v25, %v12258_v63  ;;  %v5791_v21 = vadd.f32 %v12305_v51, %v5767_v22  ;;  %v5769_v44 = vmul.f32 %v12294_v7, %v5747_v29  ;;  %v5749_v36 = vmul.f32 %v12291_v60, %v12287_v14 }
0x1935   :  { %v5806_v19 = vadd.f32 %v5790_v10, %v12253_v4  ;;  %v5792_v9 = vadd.f32 %v12305_v51, %v5768_v48  ;;  %v5770_v30 = vmul.f32 %v12294_v7, %v5748_v20  ;;  %v5750_v45 = vmul.f32 %v12291_v60, %v12281_v49 }
0x1936   :  { %8392 = vmatmul.mubr.f32.gmra.mxu0 %v5800_v55  ;;  %v5807_v63 = vadd.f32 %v5791_v21, %v12271_v53  ;;  %v5793_v40 = vadd.f32 %v12305_v51, %v5769_v44  ;;  %v5771_v0 = vmul.f32 %v12294_v7, %v5749_v36 }
0x1937   :  { %8394 = vmatprep.mubr.f32.mxu0 %v5801_v56  ;;  %v5808_v43 = vadd.f32 %v5792_v9, %v12263_v18  ;;  %v5794_v4 = vadd.f32 %v12305_v51, %v5770_v30  ;;  %v5772_v35 = vmul.f32 %v12294_v7, %v5750_v45 }
0x1938   :  { %v5809_v57 = vadd.f32 %v5793_v40, %v12279_v26  ;;  %v5795_v60 = vadd.f32 %v12305_v51, %v5771_v0 }
0x1939   :  { %v5810_v53 = vadd.f32 %v5794_v4, %v12273_v12  ;;  %v5796_v24 = vadd.f32 %v12305_v51, %v5772_v35 }
0x193a   :  { %8395 = vmatmul.mubr.f32.gmra.mxu0 %v5802_v58  ;;  %v5811_v17 = vadd.f32 %v5795_v60, %v12287_v14  ;;  %v12391_v14 = vld [vmem:[%s12988_s13 + $0x5] ss:$0 sm:$0xff] }
0x193b   :  { %8397 = vmatprep.mubr.f32.mxu0 %v5803_v32  ;;  %v5812_v18 = vadd.f32 %v5796_v24, %v12281_v49 }
0x193e   :  { %8398 = vmatmul.mubr.f32.gmra.mxu0 %v5804_v16 }
0x193f   :  { %8400 = vmatprep.mubr.f32.mxu0 %v5805_v41 }
0x1942   :  { %8401 = vmatmul.mubr.f32.gmra.mxu0 %v5806_v19 }
0x1943   :  { %8403 = vmatprep.mubr.f32.mxu0 %v5807_v63 }
0x1946   :  { %8404 = vmatmul.mubr.f32.gmra.mxu0 %v5808_v43 }
0x1947   :  { %8406 = vmatprep.mubr.f32.mxu0 %v5809_v57 }
0x194a   :  { %8407 = vmatmul.mubr.f32.gmra.mxu0 %v5810_v53 }
0x194b   :  { %8409 = vmatprep.mubr.f32.mxu0 %v5811_v17 }
0x194e   :  { %8410 = vmatmul.mubr.f32.gmra.mxu0 %v5812_v18 }
0x19f2   :  { %v8390_v7 = vpop.f32.mrf.mxu0 }
0x19f3   :  { %v5910_v26 = vadd.f32 %v8390_v7, %v12380_v31 }
0x19f4   :  { %v5904_v55 = vpop.f32.mrf.mxu0 }
0x19f5   :  { %v12387_v38 = vadd.f32 %v5910_v26, %v11885_v1  ;;  %v5905_v12 = vadd.f32 %v12380_v31, %v5904_v55 }
0x19f6   :  { %v8393_v51 = vpop.f32.mrf.mxu0 }
0x19f7   :  { %v6008_v49 = vmul.f32 %v12384_v52, %v12387_v38  ;;  %v12396_v28 = vadd.f32 %v5905_v12, %v11894_v11  ;;  %v5920_v59 = vadd.f32 %v8393_v51, %v12380_v31 }
0x19f8   :  { %v5914_v56 = vpop.f32.mrf.mxu0 }
0x19f9   :  { %v6007_v61 = vmul.f32 %v12384_v52, %v12396_v28  ;;  %v12402_v1 = vadd.f32 %v5920_v59, %v11900_v15  ;;  %v5915_v27 = vadd.f32 %v12380_v31, %v5914_v56  ;;  %v12406_v54 = vadd.f32 %v12391_v14, %v6008_v49 }
0x19fa   :  { %v8396_v58 = vpop.f32.mrf.mxu0 }
0x19fb   :  { %v6010_v2 = vmul.f32 %v12384_v52, %v12402_v1  ;;  %v12411_v11 = vadd.f32 %v5915_v27, %v11909_v50  ;;  %v5930_v42 = vadd.f32 %v8396_v58, %v12380_v31  ;;  %6053 = vadd.xlane.f32.xlu0 %v12406_v54  ;;  %v12416_v3 = vadd.f32 %v12391_v14, %v6007_v61 }
0x19fc   :  { %v5924_v15 = vpop.f32.mrf.mxu0 }
0x19fd   :  { %v6009_v32 = vmul.f32 %v12384_v52, %v12411_v11  ;;  %v12421_v25 = vadd.f32 %v5930_v42, %v11919_v47  ;;  %v5925_v22 = vadd.f32 %v12380_v31, %v5924_v15  ;;  %6051 = vadd.xlane.f32.xlu1 %v12416_v3  ;;  %v12426_v50 = vadd.f32 %v12391_v14, %v6010_v2 }
0x19fe   :  { %v8399_v29 = vpop.f32.mrf.mxu0 }
0x19ff   :  { %v6012_v16 = vmul.f32 %v12384_v52, %v12421_v25  ;;  %v12431_v10 = vadd.f32 %v5925_v22, %v11929_v8  ;;  %v5940_v48 = vadd.f32 %v8399_v29, %v12380_v31  ;;  %6057 = vadd.xlane.f32.xlu0 %v12426_v50  ;;  %v12436_v47 = vadd.f32 %v12391_v14, %v6009_v32 }
0x1a00   :  { %v5934_v20 = vpop.f32.mrf.mxu0 }
0x1a01   :  { %v6011_v41 = vmul.f32 %v12384_v52, %v12431_v10  ;;  %v12441_v21 = vadd.f32 %v5940_v48, %v11939_v37  ;;  %v5935_v44 = vadd.f32 %v12380_v31, %v5934_v20  ;;  %6055 = vadd.xlane.f32.xlu1 %v12436_v47  ;;  %v12446_v8 = vadd.f32 %v12391_v14, %v6012_v16  ;;  %v6286_v20 = vld [vmem:[#allocation2 + $0x2f0] sm:$0xff] }
0x1a02   :  { %v8402_v36 = vpop.f32.mrf.mxu0 }
0x1a03   :  { %v6014_v19 = vmul.f32 %v12384_v52, %v12441_v21  ;;  %v12451_v9 = vadd.f32 %v5935_v44, %v11949_v34  ;;  %v5950_v30 = vadd.f32 %v8402_v36, %v12380_v31  ;;  %6061 = vadd.xlane.f32.xlu0 %v12446_v8  ;;  %v12456_v37 = vadd.f32 %v12391_v14, %v6011_v41  ;;  %v6285_v41 = vld [vmem:[#allocation2 + $0x2e8] sm:$0xff] }
0x1a04   :  { %v5944_v45 = vpop.f32.mrf.mxu0 }
0x1a05   :  { %v6013_v63 = vmul.f32 %v12384_v52, %v12451_v9  ;;  %v12461_v40 = vadd.f32 %v5950_v30, %v11959_v23  ;;  %v5945_v0 = vadd.f32 %v12380_v31, %v5944_v45  ;;  %6059 = vadd.xlane.f32.xlu1 %v12456_v37  ;;  %v12466_v34 = vadd.f32 %v12391_v14, %v6014_v19 }
0x1a06   :  { %v8405_v43 = vpop.f32.mrf.mxu0 }
0x1a07   :  { %v6016_v4 = vmul.f32 %v12384_v52, %v12461_v40  ;;  %v12471_v35 = vadd.f32 %v5945_v0, %v11969_v5  ;;  %v5960_v57 = vadd.f32 %v8405_v43, %v12380_v31  ;;  %6065 = vadd.xlane.f32.xlu0 %v12466_v34  ;;  %v12476_v23 = vadd.f32 %v12391_v14, %v6013_v63 }
0x1a08   :  { %v5954_v60 = vpop.f32.mrf.mxu0 }
0x1a09   :  { %v6015_v53 = vmul.f32 %v12384_v52, %v12471_v35  ;;  %v12481_v24 = vadd.f32 %v5960_v57, %v11979_v33  ;;  %v5955_v17 = vadd.f32 %v12380_v31, %v5954_v60  ;;  %6063 = vadd.xlane.f32.xlu1 %v12476_v23  ;;  %v12486_v5 = vadd.f32 %v12391_v14, %v6016_v4 }
0x1a0a   :  { %v8408_v18 = vpop.f32.mrf.mxu0 }
0x1a0b   :  { %v6018_v7 = vmul.f32 %v12384_v52, %v12481_v24  ;;  %v12491_v26 = vadd.f32 %v5955_v17, %v11989_v39  ;;  %v5970_v55 = vadd.f32 %v8408_v18, %v12380_v31  ;;  %6069 = vadd.xlane.f32.xlu0 %v12486_v5  ;;  %v12496_v33 = vadd.f32 %v12391_v14, %v6015_v53 }
0x1a0c   :  { %v5964_v12 = vpop.f32.mrf.mxu0 }
0x1a0d   :  { %v6017_v51 = vmul.f32 %v12384_v52, %v12491_v26  ;;  %v12501_v49 = vadd.f32 %v5970_v55, %v11999_v46  ;;  %v5965_v59 = vadd.f32 %v12380_v31, %v5964_v12  ;;  %6067 = vadd.xlane.f32.xlu1 %v12496_v33  ;;  %v12506_v39 = vadd.f32 %v12391_v14, %v6018_v7 }
0x1a0e   :  { %v8411_v56 = vpop.f32.mrf.mxu0 }
0x1a0f   :  { %v6020_v61 = vmul.f32 %v12384_v52, %v12501_v49  ;;  %v12511_v27 = vadd.f32 %v5965_v59, %v12009_v62  ;;  %v5980_v58 = vadd.f32 %v8411_v56, %v12380_v31  ;;  %6073 = vadd.xlane.f32.xlu0 %v12506_v39  ;;  %v12516_v46 = vadd.f32 %v12391_v14, %v6017_v51 }
0x1a10   :  { %v5974_v2 = vpop.f32.mrf.mxu0 }
0x1a11   :  { %v6019_v42 = vmul.f32 %v12384_v52, %v12511_v27  ;;  %v12521_v15 = vadd.f32 %v5980_v58, %v12019_v6  ;;  %v5975_v32 = vadd.f32 %v12380_v31, %v5974_v2  ;;  %6071 = vadd.xlane.f32.xlu1 %v12516_v46  ;;  %v12526_v62 = vadd.f32 %v12391_v14, %v6020_v61 }
0x1a13   :  { %v6022_v22 = vmul.f32 %v12384_v52, %v12521_v15  ;;  %v12531_v29 = vadd.f32 %v5975_v32, %v12029_v13  ;;  %6077 = vadd.xlane.f32.xlu0 %v12526_v62  ;;  %v12535_v16 = vadd.f32 %v12391_v14, %v6019_v42  ;;  %v6287_v13 = vld [vmem:[#allocation2 + $0x2f8] sm:$0xff] }
0x1a14   :  { %8412 = vmatprep.subr.mxu1 %v6287_v13 }
0x1a15   :  { %v6021_v6 = vmul.f32 %v12384_v52, %v12531_v29  ;;  %6075 = vadd.xlane.f32.xlu1 %v12535_v16  ;;  %v12541_v31 = vadd.f32 %v12391_v14, %v6022_v22  ;;  %8413 = vmatpush3.msra.mxu1 %v6287_v13 }
0x1a16   :  { %8414 = vmatprep.subr.mxu1 %v6286_v20 }
0x1a17   :  { %6081 = vadd.xlane.f32.xlu0 %v12541_v31  ;;  %v12545_v48 = vadd.f32 %v12391_v14, %v6021_v6  ;;  %8415 = vmatpush3.msra.mxu1 %v6286_v20 }
0x1a18   :  { %8416 = vmatprep.subr.mxu1 %v6285_v41 }
0x1a19   :  { %6079 = vadd.xlane.f32.xlu1 %v12545_v48  ;;  %8417 = vmatpush3.msra.mxu1 %v6285_v41 }
0x1a84   :  { %v6054_v52 = vpop.xlane.xlu0 %6053 }
0x1a85   :  { %v6084_v44 = vmul.f32 0.0078125, %v6054_v52 }
0x1a86   :  { %v6052_v36 = vpop.xlane.xlu1 %6051 }
0x1a87   :  { %v12549_v19 = vsub.f32 %v12406_v54, %v6084_v44  ;;  %v6083_v30 = vmul.f32 0.0078125, %v6052_v36 }
0x1a88   :  { %v6058_v14 = vpop.xlane.xlu0 %6057 }
0x1a89   :  { %v12552_v45 = vsub.f32 %v12416_v3, %v6083_v30  ;;  %v6086_v63 = vmul.f32 0.0078125, %v6058_v14  ;;  %v6116_v0 = vmul.f32 %v12549_v19, %v12549_v19 }
0x1a8a   :  { %v6056_v43 = vpop.xlane.xlu1 %6055 }
0x1a8b   :  { %v12557_v4 = vsub.f32 %v12426_v50, %v6086_v63  ;;  %v6085_v57 = vmul.f32 0.0078125, %v6056_v43  ;;  %6133 = vadd.xlane.f32.xlu0 %v6116_v0  ;;  %v6115_v60 = vmul.f32 %v12552_v45, %v12552_v45 }
0x1a8c   :  { %v6062_v54 = vpop.xlane.xlu0 %6061 }
0x1a8d   :  { %v12562_v53 = vsub.f32 %v12436_v47, %v6085_v57  ;;  %v6088_v17 = vmul.f32 0.0078125, %v6062_v54  ;;  %6131 = vadd.xlane.f32.xlu1 %v6115_v60  ;;  %v6118_v3 = vmul.f32 %v12557_v4, %v12557_v4  ;;  %v6284_v57 = vld [vmem:[#allocation2 + $0x2e0] sm:$0xff] }
0x1a8e   :  { %v6060_v18 = vpop.xlane.xlu1 %6059  ;;  %8418 = vmatprep.subr.mxu1 %v6284_v57 }
0x1a8f   :  { %v12567_v7 = vsub.f32 %v12446_v8, %v6088_v17  ;;  %v6087_v50 = vmul.f32 0.0078125, %v6060_v18  ;;  %6137 = vadd.xlane.f32.xlu0 %v6118_v3  ;;  %v6117_v55 = vmul.f32 %v12562_v53, %v12562_v53  ;;  %8419 = vmatpush3.msra.mxu1 %v6284_v57 }
0x1a90   :  { %v6066_v12 = vpop.xlane.xlu0 %6065 }
0x1a91   :  { %v12572_v51 = vsub.f32 %v12456_v37, %v6087_v50  ;;  %v6090_v47 = vmul.f32 0.0078125, %v6066_v12  ;;  %6135 = vadd.xlane.f32.xlu1 %v6117_v55  ;;  %v6120_v59 = vmul.f32 %v12567_v7, %v12567_v7  ;;  %v6282_v55 = vld [vmem:[#allocation2 + $0x2d0] sm:$0xff] }
0x1a92   :  { %v6064_v56 = vpop.xlane.xlu1 %6063 }
0x1a93   :  { %v12577_v61 = vsub.f32 %v12466_v34, %v6090_v47  ;;  %v6089_v8 = vmul.f32 0.0078125, %v6064_v56  ;;  %6141 = vadd.xlane.f32.xlu0 %v6120_v59  ;;  %v6119_v58 = vmul.f32 %v12572_v51, %v12572_v51 }
0x1a94   :  { %v6070_v2 = vpop.xlane.xlu0 %6069 }
0x1a95   :  { %v12582_v42 = vsub.f32 %v12476_v23, %v6089_v8  ;;  %v6092_v37 = vmul.f32 0.0078125, %v6070_v2  ;;  %6139 = vadd.xlane.f32.xlu1 %v6119_v58  ;;  %v6122_v32 = vmul.f32 %v12577_v61, %v12577_v61  ;;  %v6280_v58 = vld [vmem:[#allocation2 + $0x2c0] sm:$0xff]  ;;  %v6279_v2 = vld [vmem:[#allocation2 + $0x2b8] sm:$0xff] }
0x1a96   :  { %v6068_v22 = vpop.xlane.xlu1 %6067 }
0x1a97   :  { %v12587_v6 = vsub.f32 %v12486_v5, %v6092_v37  ;;  %v6091_v34 = vmul.f32 0.0078125, %v6068_v22  ;;  %6145 = vadd.xlane.f32.xlu0 %v6122_v32  ;;  %v6121_v13 = vmul.f32 %v12582_v42, %v12582_v42  ;;  %v6278_v37 = vld [vmem:[#allocation2 + $0x2b0] sm:$0xff]  ;;  %v6276_v32 = vld [vmem:[#allocation2 + $0x2a0] sm:$0xff]  ;;  %v6275_v22 = vld [vmem:[#allocation2 + $0x298] sm:$0xff] }
0x1a98   :  { %v6074_v20 = vpop.xlane.xlu0 %6073 }
0x1a99   :  { %v12592_v41 = vsub.f32 %v12496_v33, %v6091_v34  ;;  %v6094_v23 = vmul.f32 0.0078125, %v6074_v20  ;;  %6143 = vadd.xlane.f32.xlu1 %v6121_v13  ;;  %v6124_v52 = vmul.f32 %v12587_v6, %v12587_v6  ;;  %v6274_v34 = vld [vmem:[#allocation2 + $0x290] sm:$0xff]  ;;  %v6273_v13 = vld [vmem:[#allocation2 + $0x288] sm:$0xff]  ;;  %v6272_v20 = vld [vmem:[#allocation2 + $0x280] sm:$0xff] }
0x1a9a   :  { %v6072_v44 = vpop.xlane.xlu1 %6071 }
0x1a9b   :  { %v12597_v36 = vsub.f32 %v12506_v39, %v6094_v23  ;;  %v6093_v5 = vmul.f32 0.0078125, %v6072_v44  ;;  %6149 = vadd.xlane.f32.xlu0 %v6124_v52  ;;  %v6123_v30 = vmul.f32 %v12592_v41, %v12592_v41 }
0x1a9c   :  { %v6078_v14 = vpop.xlane.xlu0 %6077 }
0x1a9d   :  { %v12602_v63 = vsub.f32 %v12516_v46, %v6093_v5  ;;  %v6096_v33 = vmul.f32 0.0078125, %v6078_v14  ;;  %6147 = vadd.xlane.f32.xlu1 %v6123_v30  ;;  %v6126_v0 = vmul.f32 %v12597_v36, %v12597_v36  ;;  %v6283_v46 = vld [vmem:[#allocation2 + $0x2d8] sm:$0xff] }
0x1a9e   :  { %v6076_v43 = vpop.xlane.xlu1 %6075  ;;  %8420 = vmatprep.subr.mxu1 %v6283_v46 }
0x1a9f   :  { %v12607_v60 = vsub.f32 %v12526_v62, %v6096_v33  ;;  %v6095_v39 = vmul.f32 0.0078125, %v6076_v43  ;;  %6153 = vadd.xlane.f32.xlu0 %v6126_v0  ;;  %v6125_v54 = vmul.f32 %v12602_v63, %v12602_v63  ;;  %8421 = vmatpush3.msra.mxu1 %v6283_v46 }
0x1aa0   :  { %v6082_v17 = vpop.xlane.xlu0 %6081  ;;  %8422 = vmatprep.subr.mxu1 %v6282_v55 }
0x1aa1   :  { %v12612_v3 = vsub.f32 %v12535_v16, %v6095_v39  ;;  %v6098_v18 = vmul.f32 0.0078125, %v6082_v17  ;;  %6151 = vadd.xlane.f32.xlu1 %v6125_v54  ;;  %v6128_v50 = vmul.f32 %v12607_v60, %v12607_v60  ;;  %8423 = vmatpush3.msra.mxu1 %v6282_v55  ;;  %v6281_v16 = vld [vmem:[#allocation2 + $0x2c8] sm:$0xff] }
0x1aa2   :  { %v6080_v62 = vpop.xlane.xlu1 %6079  ;;  %8424 = vmatprep.subr.mxu1 %v6281_v16 }
0x1aa3   :  { %v12617_v12 = vsub.f32 %v12541_v31, %v6098_v18  ;;  %v6097_v47 = vmul.f32 0.0078125, %v6080_v62  ;;  %6157 = vadd.xlane.f32.xlu0 %v6128_v50  ;;  %v6127_v59 = vmul.f32 %v12612_v3, %v12612_v3  ;;  %8425 = vmatpush3.msra.mxu1 %v6281_v16 }
0x1aa4   :  { %8426 = vmatprep.subr.mxu1 %v6280_v58 }
0x1aa5   :  { %v12622_v56 = vsub.f32 %v12545_v48, %v6097_v47  ;;  %6155 = vadd.xlane.f32.xlu1 %v6127_v59  ;;  %v6130_v8 = vmul.f32 %v12617_v12, %v12617_v12  ;;  %8427 = vmatpush3.msra.mxu1 %v6280_v58  ;;  %v6277_v48 = vld [vmem:[#allocation2 + $0x2a8] sm:$0xff] }
0x1aa6   :  { %8428 = vmatprep.subr.mxu1 %v6279_v2 }
0x1aa7   :  { %6161 = vadd.xlane.f32.xlu0 %v6130_v8  ;;  %v6129_v31 = vmul.f32 %v12622_v56, %v12622_v56  ;;  %8429 = vmatpush3.msra.mxu1 %v6279_v2 }
0x1aa8   :  { %8430 = vmatprep.subr.mxu1 %v6278_v37 }
0x1aa9   :  { %6159 = vadd.xlane.f32.xlu1 %v6129_v31  ;;  %8431 = vmatpush3.msra.mxu1 %v6278_v37 }
0x1aaa   :  { %8432 = vmatprep.subr.mxu1 %v6277_v48 }
0x1aab   :  { %8433 = vmatpush3.msra.mxu1 %v6277_v48 }
0x1aac   :  { %8434 = vmatprep.subr.mxu1 %v6276_v32 }
0x1aad   :  { %8435 = vmatpush3.msra.mxu1 %v6276_v32 }
0x1aae   :  { %8436 = vmatprep.subr.mxu1 %v6275_v22 }
0x1aaf   :  { %8437 = vmatpush3.msra.mxu1 %v6275_v22 }
0x1ab0   :  { %8438 = vmatprep.subr.mxu1 %v6274_v34 }
0x1ab1   :  { %8439 = vmatpush3.msra.mxu1 %v6274_v34 }
0x1ab2   :  { %8440 = vmatprep.subr.mxu1 %v6273_v13 }
0x1ab3   :  { %8441 = vmatpush3.msra.mxu1 %v6273_v13 }
0x1ab4   :  { %8442 = vmatprep.subr.mxu1 %v6272_v20 }
0x1ab5   :  { %8443 = vmatpush3.msra.mxu1 %v6272_v20  ;;  %v12630_v20 = vld [vmem:[%s12989_s17 + $0x5] ss:$0 sm:$0xff] }
0x1b14   :  { %v6134_v23 = vpop.xlane.xlu0 %6133 }
0x1b15   :  { %v6164_v52 = vmul.f32 0.0078125, %v6134_v23 }
0x1b16   :  { %v6132_v44 = vpop.xlane.xlu1 %6131 }
0x1b17   :  { %v6180_v5 = vadd.f32 1e-05, %v6164_v52  ;;  %v6163_v30 = vmul.f32 0.0078125, %v6132_v44 }
0x1b18   :  { %v6138_v14 = vpop.xlane.xlu0 %6137 }
0x1b19   :  { %9068 = vrsqrt.f32 %v6180_v5  ;;  %v6179_v33 = vadd.f32 1e-05, %v6163_v30  ;;  %v6166_v0 = vmul.f32 0.0078125, %v6138_v14 }
0x1b1a   :  { %v6136_v43 = vpop.xlane.xlu1 %6135 }
0x1b1b   :  { %9070 = vrsqrt.f32 %v6179_v33  ;;  %v6182_v57 = vadd.f32 1e-05, %v6166_v0  ;;  %v6165_v39 = vmul.f32 0.0078125, %v6136_v43 }
0x1b1c   :  { %v6142_v54 = vpop.xlane.xlu0 %6141 }
0x1b1d   :  { %9072 = vrsqrt.f32 %v6182_v57  ;;  %v6181_v17 = vadd.f32 1e-05, %v6165_v39  ;;  %v6168_v46 = vmul.f32 0.0078125, %v6142_v54  ;;  %v12635_v57 = vld [vmem:[%s12990_s21 + $0x5] ss:$0 sm:$0xff] }
0x1b1e   :  { %v6140_v18 = vpop.xlane.xlu1 %6139 }
0x1b1f   :  { %9074 = vrsqrt.f32 %v6181_v17  ;;  %v6184_v50 = vadd.f32 1e-05, %v6168_v46  ;;  %v6167_v62 = vmul.f32 0.0078125, %v6140_v18 }
0x1b20   :  { %v6146_v55 = vpop.xlane.xlu0 %6145 }
0x1b21   :  { %9076 = vrsqrt.f32 %v6184_v50  ;;  %v6183_v47 = vadd.f32 1e-05, %v6167_v62  ;;  %v6170_v59 = vmul.f32 0.0078125, %v6146_v55 }
0x1b22   :  { %v6144_v16 = vpop.xlane.xlu1 %6143 }
0x1b23   :  { %9078 = vrsqrt.f32 %v6183_v47  ;;  %v6186_v8 = vadd.f32 1e-05, %v6170_v59  ;;  %v6169_v58 = vmul.f32 0.0078125, %v6144_v16 }
0x1b24   :  { %v6150_v31 = vpop.xlane.xlu0 %6149 }
0x1b25   :  { %9080 = vrsqrt.f32 %v6186_v8  ;;  %v6185_v2 = vadd.f32 1e-05, %v6169_v58  ;;  %v6172_v37 = vmul.f32 0.0078125, %v6150_v31 }
0x1b26   :  { %v9069_v48 = vpop.eup %9068  ;;  %v6148_v32 = vpop.xlane.xlu1 %6147 }
0x1b27   :  { %v6212_v22 = vmul.f32 %v9069_v48, %v12549_v19  ;;  %9082 = vrsqrt.f32 %v6185_v2  ;;  %v6188_v34 = vadd.f32 1e-05, %v6172_v37  ;;  %v6171_v13 = vmul.f32 0.0078125, %v6148_v32 }
0x1b28   :  { %v9071_v23 = vpop.eup %9070  ;;  %v6154_v52 = vpop.xlane.xlu0 %6153 }
0x1b29   :  { %9084 = vrsqrt.f32 %v6188_v34  ;;  %v6187_v44 = vadd.f32 1e-05, %v6171_v13  ;;  %v6174_v5 = vmul.f32 0.0078125, %v6154_v52  ;;  %v6211_v30 = vmul.f32 %v9071_v23, %v12552_v45 }
0x1b2a   :  { %v9073_v14 = vpop.eup %9072  ;;  %v6152_v33 = vpop.xlane.xlu1 %6151  ;;  %v6234_v0 = vmul.f32 %v12630_v20, %v6212_v22 }
0x1b2b   :  { %9086 = vrsqrt.f32 %v6187_v44  ;;  %v6190_v43 = vadd.f32 1e-05, %v6174_v5  ;;  %v6173_v19 = vmul.f32 0.0078125, %v6152_v33  ;;  %v6233_v39 = vmul.f32 %v12630_v20, %v6211_v30 }
0x1b2c   :  { %v9075_v54 = vpop.eup %9074  ;;  %v6158_v17 = vpop.xlane.xlu0 %6157  ;;  %v6214_v46 = vmul.f32 %v9073_v14, %v12557_v4  ;;  %v6256_v47 = vadd.f32 %v12635_v57, %v6234_v0 }
0x1b2d   :  { %9088 = vrsqrt.f32 %v6190_v43  ;;  %v6189_v18 = vadd.f32 1e-05, %v6173_v19  ;;  %v6176_v50 = vmul.f32 0.0078125, %v6158_v17  ;;  %v6255_v45 = vadd.f32 %v12635_v57, %v6233_v39 }
0x1b2e   :  { %v9077_v62 = vpop.eup %9076  ;;  %v6156_v55 = vpop.xlane.xlu1 %6155  ;;  %v6213_v59 = vmul.f32 %v9075_v54, %v12562_v53  ;;  %v6236_v16 = vmul.f32 %v12630_v20, %v6214_v46 }
0x1b2f   :  { %9090 = vrsqrt.f32 %v6189_v18  ;;  %v6192_v8 = vadd.f32 1e-05, %v6176_v50  ;;  %v6175_v58 = vmul.f32 0.0078125, %v6156_v55  ;;  %8444 = vmatprep.mubr.f32.mxu1 %v6255_v45  ;;  %v6216_v31 = vmul.f32 %v9077_v62, %v12567_v7 }
0x1b30   :  { %v9079_v4 = vpop.eup %9078  ;;  %v6162_v2 = vpop.xlane.xlu0 %6161  ;;  %8445 = vmatmul.mubr.f32.vlgmr.msra.gmra.mxu1 %v6256_v47  ;;  %v6235_v37 = vmul.f32 %v12630_v20, %v6213_v59  ;;  %v6258_v23 = vadd.f32 %v12635_v57, %v6236_v16 }
0x1b31   :  { %9092 = vrsqrt.f32 %v6192_v8  ;;  %v6191_v48 = vadd.f32 1e-05, %v6175_v58  ;;  %v6178_v32 = vmul.f32 0.0078125, %v6162_v2  ;;  %v6215_v22 = vmul.f32 %v9079_v4, %v12572_v51 }
0x1b32   :  { %v9081_v34 = vpop.eup %9080  ;;  %v6160_v53 = vpop.xlane.xlu1 %6159  ;;  %v6257_v13 = vadd.f32 %v12635_v57, %v6235_v37  ;;  %v6238_v52 = vmul.f32 %v12630_v20, %v6216_v31 }
0x1b33   :  { %9094 = vrsqrt.f32 %v6191_v48  ;;  %v6194_v7 = vadd.f32 1e-05, %v6178_v32  ;;  %v6177_v44 = vmul.f32 0.0078125, %v6160_v53  ;;  %v6237_v5 = vmul.f32 %v12630_v20, %v6215_v22 }
0x1b34   :  { %v9083_v30 = vpop.eup %9082  ;;  %8447 = vmatprep.mubr.f32.mxu1 %v6257_v13  ;;  %v6218_v14 = vmul.f32 %v9081_v34, %v12577_v61  ;;  %v6260_v19 = vadd.f32 %v12635_v57, %v6238_v52 }
0x1b35   :  { %9096 = vrsqrt.f32 %v6194_v7  ;;  %v6193_v33 = vadd.f32 1e-05, %v6177_v44  ;;  %8448 = vmatmul.mubr.f32.gmra.mxu1 %v6258_v23  ;;  %v6259_v51 = vadd.f32 %v12635_v57, %v6237_v5  ;;  %v6217_v0 = vmul.f32 %v9083_v30, %v12582_v42 }
0x1b36   :  { %v9085_v43 = vpop.eup %9084  ;;  %v6240_v54 = vmul.f32 %v12630_v20, %v6218_v14 }
0x1b37   :  { %9098 = vrsqrt.f32 %v6193_v33  ;;  %8450 = vmatprep.mubr.f32.mxu1 %v6259_v51  ;;  %v6239_v39 = vmul.f32 %v12630_v20, %v6217_v0  ;;  %v6220_v17 = vmul.f32 %v9085_v43, %v12587_v6 }
0x1b38   :  { %v9087_v46 = vpop.eup %9086  ;;  %v6262_v42 = vadd.f32 %v12635_v57, %v6240_v54 }
0x1b39   :  { %8451 = vmatmul.mubr.f32.gmra.mxu1 %v6260_v19  ;;  %v6261_v61 = vadd.f32 %v12635_v57, %v6239_v39  ;;  %v6219_v18 = vmul.f32 %v9087_v46, %v12592_v41  ;;  %v6242_v62 = vmul.f32 %v12630_v20, %v6220_v17 }
0x1b3a   :  { %v9089_v50 = vpop.eup %9088 }
0x1b3b   :  { %8453 = vmatprep.mubr.f32.mxu1 %v6261_v61  ;;  %v6241_v45 = vmul.f32 %v12630_v20, %v6219_v18  ;;  %v6222_v55 = vmul.f32 %v9089_v50, %v12597_v36  ;;  %v6264_v41 = vadd.f32 %v12635_v57, %v6242_v62 }
0x1b3c   :  { %v9091_v47 = vpop.eup %9090 }
0x1b3d   :  { %8454 = vmatmul.mubr.f32.gmra.mxu1 %v6262_v42  ;;  %v6263_v6 = vadd.f32 %v12635_v57, %v6241_v45  ;;  %v6221_v59 = vmul.f32 %v9091_v47, %v12602_v63  ;;  %v6244_v58 = vmul.f32 %v12630_v20, %v6222_v55 }
0x1b3e   :  { %v9093_v16 = vpop.eup %9092 }
0x1b3f   :  { %8456 = vmatprep.mubr.f32.mxu1 %v6263_v6  ;;  %v6243_v8 = vmul.f32 %v12630_v20, %v6221_v59  ;;  %v6224_v31 = vmul.f32 %v9093_v16, %v12607_v60  ;;  %v6266_v63 = vadd.f32 %v12635_v57, %v6244_v58 }
0x1b40   :  { %v9095_v4 = vpop.eup %9094 }
0x1b41   :  { %8457 = vmatmul.mubr.f32.gmra.mxu1 %v6264_v41  ;;  %v6265_v36 = vadd.f32 %v12635_v57, %v6243_v8  ;;  %v6223_v2 = vmul.f32 %v9095_v4, %v12612_v3  ;;  %v6246_v32 = vmul.f32 %v12630_v20, %v6224_v31 }
0x1b42   :  { %v9097_v37 = vpop.eup %9096 }
0x1b43   :  { %8459 = vmatprep.mubr.f32.mxu1 %v6265_v36  ;;  %v6245_v48 = vmul.f32 %v12630_v20, %v6223_v2  ;;  %v6226_v22 = vmul.f32 %v9097_v37, %v12617_v12  ;;  %v6268_v3 = vadd.f32 %v12635_v57, %v6246_v32  ;;  %v12683_v12 = vld [vmem:[%s12991_s25 + $0x5] ss:$0 sm:$0xff] }
0x1b44   :  { %v9099_v34 = vpop.eup %9098 }
0x1b45   :  { %8460 = vmatmul.mubr.f32.gmra.mxu1 %v6266_v63  ;;  %v6267_v60 = vadd.f32 %v12635_v57, %v6245_v48  ;;  %v6225_v53 = vmul.f32 %v9099_v34, %v12622_v56  ;;  %v6248_v23 = vmul.f32 %v12630_v20, %v6226_v22 }
0x1b47   :  { %8462 = vmatprep.mubr.f32.mxu1 %v6267_v60  ;;  %v6247_v13 = vmul.f32 %v12630_v20, %v6225_v53  ;;  %v6270_v7 = vadd.f32 %v12635_v57, %v6248_v23 }
0x1b49   :  { %8463 = vmatmul.mubr.f32.gmra.mxu1 %v6268_v3  ;;  %v6269_v52 = vadd.f32 %v12635_v57, %v6247_v13 }
0x1b4b   :  { %8465 = vmatprep.mubr.f32.mxu1 %v6269_v52 }
0x1b4d   :  { %8466 = vmatmul.mubr.f32.gmra.mxu1 %v6270_v7 }
0x1bf0   :  { %v8446_v44 = vpop.f32.mrf.mxu1 }
0x1bf1   :  { %v6368_v5 = vadd.f32 %v8446_v44, %v12683_v12 }
0x1bf2   :  { %v6362_v56 = vpop.f32.mrf.mxu1 }
0x1bf3   :  { %v6458_v30 = vmul.f32 0.70710677, %v6368_v5  ;;  %v6363_v14 = vadd.f32 %v12683_v12, %v6362_v56  ;;  %v6442_v41 = vmul.f32 0.5, %v6368_v5 }
0x1bf5   :  { %9100 = verf.f32 %v6458_v30  ;;  %v6457_v33 = vmul.f32 0.70710677, %v6363_v14  ;;  %v8449_v51 = vpop.f32.mrf.mxu1  ;;  %v6441_v37 = vmul.f32 0.5, %v6363_v14 }
0x1bf6   :  { %v6378_v20 = vadd.f32 %v8449_v51, %v12683_v12 }
0x1bf7   :  { %9102 = verf.f32 %v6457_v33  ;;  %v6372_v0 = vpop.f32.mrf.mxu1 }
0x1bf8   :  { %v6460_v43 = vmul.f32 0.70710677, %v6378_v20  ;;  %v6373_v57 = vadd.f32 %v12683_v12, %v6372_v0  ;;  %v6444_v13 = vmul.f32 0.5, %v6378_v20 }
0x1bf9   :  { %v8452_v19 = vpop.f32.mrf.mxu1 }
0x1bfa   :  { %9104 = verf.f32 %v6460_v43  ;;  %v6459_v39 = vmul.f32 0.70710677, %v6373_v57  ;;  %v6388_v54 = vadd.f32 %v8452_v19, %v12683_v12  ;;  %v6443_v44 = vmul.f32 0.5, %v6373_v57 }
0x1bfb   :  { %v6382_v17 = vpop.f32.mrf.mxu1 }
0x1bfc   :  { %9106 = verf.f32 %v6459_v39  ;;  %v6462_v46 = vmul.f32 0.70710677, %v6388_v54  ;;  %v6383_v61 = vadd.f32 %v12683_v12, %v6382_v17  ;;  %v6446_v19 = vmul.f32 0.5, %v6388_v54 }
0x1bfd   :  { %v8455_v18 = vpop.f32.mrf.mxu1 }
0x1bfe   :  { %9108 = verf.f32 %v6462_v46  ;;  %v6461_v50 = vmul.f32 0.70710677, %v6383_v61  ;;  %v12692_v42 = vadd.f32 %v8455_v18, %v12683_v12  ;;  %v6445_v18 = vmul.f32 0.5, %v6383_v61 }
0x1bff   :  { %v6392_v45 = vpop.f32.mrf.mxu1 }
0x1c00   :  { %9110 = verf.f32 %v6461_v50  ;;  %v6464_v62 = vmul.f32 0.70710677, %v12692_v42  ;;  %v12696_v55 = vadd.f32 %v12683_v12, %v6392_v45 }
0x1c01   :  { %v8458_v47 = vpop.f32.mrf.mxu1 }
0x1c02   :  { %v9101_v6 = vpop.eup %9100  ;;  %9112 = verf.f32 %v6464_v62  ;;  %v6463_v59 = vmul.f32 0.70710677, %v12696_v55  ;;  %v12700_v16 = vadd.f32 %v8458_v47, %v12683_v12 }
0x1c03   :  { %v6490_v8 = vadd.f32 1.0, %v9101_v6  ;;  %v6402_v58 = vpop.f32.mrf.mxu1 }
0x1c04   :  { %v9103_v31 = vpop.eup %9102  ;;  %9114 = verf.f32 %v6463_v59  ;;  %v6466_v4 = vmul.f32 0.70710677, %v12700_v16  ;;  %v12704_v36 = vadd.f32 %v12683_v12, %v6402_v58 }
0x1c05   :  { %v12706_v2 = vmul.f32 %v6490_v8, %v6442_v41  ;;  %v6489_v63 = vadd.f32 1.0, %v9103_v31  ;;  %v8461_v48 = vpop.f32.mrf.mxu1  ;;  %v6448_v31 = vmul.f32 0.5, %v12692_v42 }
0x1c06   :  { %9116 = verf.f32 %v6466_v4  ;;  %v6465_v32 = vmul.f32 0.70710677, %v12704_v36  ;;  %v12710_v22 = vadd.f32 %v8461_v48, %v12683_v12  ;;  %v6447_v48 = vmul.f32 0.5, %v12696_v55 }
0x1c07   :  { %v9105_v34 = vpop.eup %9104  ;;  %v12712_v60 = vmul.f32 %v6489_v63, %v6441_v37  ;;  %v6412_v53 = vpop.f32.mrf.mxu1  ;;  %v6522_v3 = vmul.f32 %v12706_v2, %v12706_v2  ;;  %v6450_v55 = vmul.f32 0.5, %v12700_v16 }
0x1c08   :  { %v6492_v23 = vadd.f32 1.0, %v9105_v34  ;;  %9118 = verf.f32 %v6465_v32  ;;  %v6468_v52 = vmul.f32 0.70710677, %v12710_v22  ;;  %v12718_v5 = vadd.f32 %v12683_v12, %v6412_v53 }
0x1c09   :  { %v9107_v7 = vpop.eup %9106  ;;  %v8464_v56 = vpop.f32.mrf.mxu1  ;;  %6539 = vadd.xlane.f32.xlu0 %v6522_v3  ;;  %v6521_v30 = vmul.f32 %v12712_v60, %v12712_v60  ;;  %v6452_v16 = vmul.f32 0.5, %v12710_v22 }
0x1c0a   :  { %v12722_v14 = vmul.f32 %v6492_v23, %v6444_v13  ;;  %v6491_v33 = vadd.f32 1.0, %v9107_v7  ;;  %9120 = verf.f32 %v6468_v52  ;;  %v12725_v51 = vadd.f32 %v8464_v56, %v12683_v12 }
0x1c0b   :  { %v9109_v20 = vpop.eup %9108  ;;  %v6467_v0 = vmul.f32 0.70710677, %v12718_v5  ;;  %v6422_v43 = vpop.f32.mrf.mxu1  ;;  %6537 = vadd.xlane.f32.xlu1 %v6521_v30  ;;  %v6449_v30 = vmul.f32 0.5, %v12704_v36 }
0x1c0c   :  { %v12728_v57 = vmul.f32 %v6491_v33, %v6443_v44  ;;  %v6494_v39 = vadd.f32 1.0, %v9109_v20  ;;  %v6470_v17 = vmul.f32 0.70710677, %v12725_v51  ;;  %v6423_v50 = vadd.f32 %v12683_v12, %v6422_v43 }
0x1c0d   :  { %v9111_v46 = vpop.eup %9110  ;;  %9122 = verf.f32 %v6467_v0  ;;  %v8467_v45 = vpop.f32.mrf.mxu1  ;;  %v6524_v62 = vmul.f32 %v12722_v14, %v12722_v14 }
0x1c0e   :  { %v12734_v47 = vmul.f32 %v6494_v39, %v6446_v19  ;;  %v6493_v6 = vadd.f32 1.0, %v9111_v46  ;;  %9124 = verf.f32 %v6470_v17  ;;  %v6438_v59 = vadd.f32 %v8467_v45, %v12683_v12 }
0x1c0f   :  { %v9113_v41 = vpop.eup %9112  ;;  %v6469_v54 = vmul.f32 0.70710677, %v6423_v50  ;;  %6543 = vadd.xlane.f32.xlu0 %v6524_v62  ;;  %v6432_v8 = vpop.f32.mrf.mxu1  ;;  %v6523_v61 = vmul.f32 %v12728_v57, %v12728_v57  ;;  %v6451_v45 = vmul.f32 0.5, %v12718_v5 }
0x1c10   :  { %v12739_v58 = vmul.f32 %v6493_v6, %v6445_v18  ;;  %v6496_v4 = vadd.f32 1.0, %v9113_v41  ;;  %v6472_v37 = vmul.f32 0.70710677, %v6438_v59  ;;  %v6433_v32 = vadd.f32 %v12683_v12, %v6432_v8 }
0x1c11   :  { %v9115_v63 = vpop.eup %9114  ;;  %9126 = verf.f32 %v6469_v54  ;;  %6541 = vadd.xlane.f32.xlu1 %v6523_v61  ;;  %v6526_v34 = vmul.f32 %v12734_v47, %v12734_v47  ;;  %v6454_v6 = vmul.f32 0.5, %v12725_v51 }
0x1c12   :  { %v12746_v53 = vmul.f32 %v6496_v4, %v6448_v31  ;;  %v6495_v3 = vadd.f32 1.0, %v9115_v63  ;;  %9128 = verf.f32 %v6472_v37  ;;  %v6525_v13 = vmul.f32 %v12739_v58, %v12739_v58 }
0x1c13   :  { %v9117_v42 = vpop.eup %9116  ;;  %v6471_v23 = vmul.f32 0.70710677, %v6433_v32  ;;  %6547 = vadd.xlane.f32.xlu0 %v6526_v34  ;;  %v6453_v4 = vmul.f32 0.5, %v6423_v50  ;;  %v6456_v63 = vmul.f32 0.5, %v6438_v59 }
0x1c14   :  { %v12750_v52 = vmul.f32 %v6495_v3, %v6447_v48  ;;  %v6498_v7 = vadd.f32 1.0, %v9117_v42  ;;  %v6528_v12 = vmul.f32 %v12746_v53, %v12746_v53  ;;  %v6455_v42 = vmul.f32 0.5, %v6433_v32  ;;  %v6695_v32 = vld [vmem:[#allocation4 + $0x2f0] sm:$0xff] }
0x1c15   :  { %v9119_v44 = vpop.eup %9118  ;;  %9130 = verf.f32 %v6471_v23  ;;  %6545 = vadd.xlane.f32.xlu1 %v6525_v13 }
0x1c16   :  { %v12755_v56 = vmul.f32 %v6498_v7, %v6450_v55  ;;  %v6497_v33 = vadd.f32 1.0, %v9119_v44  ;;  %v6527_v20 = vmul.f32 %v12750_v52, %v12750_v52  ;;  %v6696_v44 = vld [vmem:[#allocation4 + $0x2f8] sm:$0xff] }
0x1c17   :  { %v9121_v0 = vpop.eup %9120  ;;  %6551 = vadd.xlane.f32.xlu0 %v6528_v12  ;;  %v6867_v12 = vld [vmem:[%s12995_s14] sm:$0x7]  ;;  %8468 = vmatprep.subr.mxu0 %v6696_v44 }
0x1c18   :  { %v12760_v43 = vmul.f32 %v6497_v33, %v6449_v30  ;;  %v6500_v19 = vadd.f32 1.0, %v9121_v0  ;;  %v6530_v39 = vmul.f32 %v12755_v56, %v12755_v56  ;;  %8469 = vmatpush3.msra.mxu0 %v6696_v44  ;;  %v6694_v30 = vld [vmem:[#allocation4 + $0x2e8] sm:$0xff]  ;;  %v6693_v33 = vld [vmem:[#allocation4 + $0x2e0] sm:$0xff]  ;;  %v6691_v0 = vld [vmem:[#allocation4 + $0x2d0] sm:$0xff] }
0x1c19   :  { %6549 = vadd.xlane.f32.xlu1 %v6527_v20  ;;  %8470 = vmatprep.subr.mxu0 %v6695_v32  ;;  %v6692_v20 = vld [vmem:[#allocation4 + $0x2d8] sm:$0xff] }
0x1c1a   :  { %v9123_v17 = vpop.eup %9122  ;;  %v12765_v46 = vmul.f32 %v6500_v19, %v6452_v16  ;;  %v6529_v36 = vmul.f32 %v12760_v43, %v12760_v43  ;;  %8471 = vmatpush3.msra.mxu0 %v6695_v32  ;;  %v6690_v16 = vld [vmem:[#allocation4 + $0x2c8] sm:$0xff]  ;;  %v6689_v19 = vld [vmem:[#allocation4 + $0x2c0] sm:$0xff] }
0x1c1b   :  { %v9125_v18 = vpop.eup %9124  ;;  %v6499_v62 = vadd.f32 1.0, %v9123_v17  ;;  %6555 = vadd.xlane.f32.xlu0 %v6530_v39  ;;  %8472 = vmatprep.subr.mxu0 %v6694_v30  ;;  %v6688_v39 = vld [vmem:[#allocation4 + $0x2b8] sm:$0xff]  ;;  %v6687_v17 = vld [vmem:[#allocation4 + $0x2b0] sm:$0xff] }
0x1c1c   :  { %v6502_v41 = vadd.f32 1.0, %v9125_v18  ;;  %v6532_v22 = vmul.f32 %v12765_v46, %v12765_v46  ;;  %8473 = vmatpush3.msra.mxu0 %v6694_v30  ;;  %v6685_v18 = vld [vmem:[#allocation4 + $0x2a0] sm:$0xff] }
0x1c1d   :  { %v12773_v54 = vmul.f32 %v6499_v62, %v6451_v45  ;;  %6553 = vadd.xlane.f32.xlu1 %v6529_v36  ;;  %8474 = vmatprep.subr.mxu0 %v6693_v33  ;;  %v6686_v36 = vld [vmem:[#allocation4 + $0x2a8] sm:$0xff]  ;;  %v6684_v45 = vld [vmem:[#allocation4 + $0x298] sm:$0xff]  ;;  %v6683_v62 = vld [vmem:[#allocation4 + $0x290] sm:$0xff] }
0x1c1e   :  { %v9127_v8 = vpop.eup %9126  ;;  %v12775_v61 = vmul.f32 %v6502_v41, %v6454_v6  ;;  %8475 = vmatpush3.msra.mxu0 %v6693_v33  ;;  %v6682_v6 = vld [vmem:[#allocation4 + $0x288] sm:$0xff]  ;;  %v6681_v41 = vld [vmem:[#allocation4 + $0x280] sm:$0xff] }
0x1c1f   :  { %v9129_v31 = vpop.eup %9128  ;;  %v6501_v37 = vadd.f32 1.0, %v9127_v8  ;;  %6559 = vadd.xlane.f32.xlu0 %v6532_v22  ;;  %v6531_v5 = vmul.f32 %v12773_v54, %v12773_v54  ;;  %8476 = vmatprep.subr.mxu0 %v6692_v20 }
0x1c20   :  { %v6504_v48 = vadd.f32 1.0, %v9129_v31  ;;  %v6534_v51 = vmul.f32 %v12775_v61, %v12775_v61  ;;  %8477 = vmatpush3.msra.mxu0 %v6692_v20 }
0x1c21   :  { %v12781_v34 = vmul.f32 %v6501_v37, %v6453_v4  ;;  %6557 = vadd.xlane.f32.xlu1 %v6531_v5  ;;  %8478 = vmatprep.subr.mxu0 %v6691_v0 }
0x1c22   :  { %v9131_v3 = vpop.eup %9130  ;;  %v12783_v13 = vmul.f32 %v6504_v48, %v6456_v63  ;;  %8479 = vmatpush3.msra.mxu0 %v6691_v0 }
0x1c23   :  { %v6503_v23 = vadd.f32 1.0, %v9131_v3  ;;  %6563 = vadd.xlane.f32.xlu0 %v6534_v51  ;;  %v6533_v50 = vmul.f32 %v12781_v34, %v12781_v34  ;;  %8480 = vmatprep.subr.mxu0 %v6690_v16 }
0x1c24   :  { %v6536_v59 = vmul.f32 %v12783_v13, %v12783_v13  ;;  %8481 = vmatpush3.msra.mxu0 %v6690_v16 }
0x1c25   :  { %v12789_v55 = vmul.f32 %v6503_v23, %v6455_v42  ;;  %6561 = vadd.xlane.f32.xlu1 %v6533_v50  ;;  %8482 = vmatprep.subr.mxu0 %v6689_v19 }
0x1c26   :  { %8483 = vmatpush3.msra.mxu0 %v6689_v19 }
0x1c27   :  { %6567 = vadd.xlane.f32.xlu0 %v6536_v59  ;;  %v6535_v7 = vmul.f32 %v12789_v55, %v12789_v55  ;;  %8484 = vmatprep.subr.mxu0 %v6688_v39 }
0x1c28   :  { %8485 = vmatpush3.msra.mxu0 %v6688_v39 }
0x1c29   :  { %6565 = vadd.xlane.f32.xlu1 %v6535_v7  ;;  %8486 = vmatprep.subr.mxu0 %v6687_v17 }
0x1c2a   :  { %8487 = vmatpush3.msra.mxu0 %v6687_v17 }
0x1c2b   :  { %8488 = vmatprep.subr.mxu0 %v6686_v36 }
0x1c2c   :  { %8489 = vmatpush3.msra.mxu0 %v6686_v36 }
0x1c2d   :  { %8490 = vmatprep.subr.mxu0 %v6685_v18 }
0x1c2e   :  { %8491 = vmatpush3.msra.mxu0 %v6685_v18 }
0x1c2f   :  { %8492 = vmatprep.subr.mxu0 %v6684_v45 }
0x1c30   :  { %8493 = vmatpush3.msra.mxu0 %v6684_v45 }
0x1c31   :  { %8494 = vmatprep.subr.mxu0 %v6683_v62 }
0x1c32   :  { %8495 = vmatpush3.msra.mxu0 %v6683_v62 }
0x1c33   :  { %8496 = vmatprep.subr.mxu0 %v6682_v6 }
0x1c34   :  { %8497 = vmatpush3.msra.mxu0 %v6682_v6 }
0x1c35   :  { %8498 = vmatprep.subr.mxu0 %v6681_v41 }
0x1c36   :  { %8499 = vmatpush3.msra.mxu0 %v6681_v41 }
0x1c3a   :  { %6870 = vperm.xlu1 %8631, %v6867_v12  }
0x1c92   :  { %v6540_v22 = vpop.xlane.xlu0 %6539 }
0x1c94   :  { %v6538_v8 = vpop.xlane.xlu1 %6537 }
0x1c95   :  { %v6569_v4 = vadd.f32 %v6540_v22, %v6538_v8 }
0x1c98   :  { %v6544_v31 = vpop.xlane.xlu0 %6543 }
0x1c9a   :  { %v6542_v37 = vpop.xlane.xlu1 %6541 }
0x1c9b   :  { %v6570_v5 = vadd.f32 %v6569_v4, %v6542_v37 }
0x1c9c   :  { %v6548_v63 = vpop.xlane.xlu0 %6547 }
0x1c9d   :  { %v6571_v48 = vadd.f32 %v6570_v5, %v6544_v31 }
0x1c9e   :  { %v6546_v51 = vpop.xlane.xlu1 %6545 }
0x1c9f   :  { %v6572_v3 = vadd.f32 %v6571_v48, %v6546_v51 }
0x1ca0   :  { %v6552_v42 = vpop.xlane.xlu0 %6551 }
0x1ca1   :  { %v6573_v23 = vadd.f32 %v6572_v3, %v6548_v63 }
0x1ca2   :  { %v6550_v50 = vpop.xlane.xlu1 %6549 }
0x1ca3   :  { %v6574_v59 = vadd.f32 %v6573_v23, %v6550_v50 }
0x1ca4   :  { %v6556_v7 = vpop.xlane.xlu0 %6555 }
0x1ca5   :  { %v6575_v12 = vadd.f32 %v6574_v59, %v6552_v42  ;;  %v12797_v59 = vld [vmem:[%s12992_s29 + $0x5] ss:$0 sm:$0xff] }
0x1ca6   :  { %v6554_v44 = vpop.xlane.xlu1 %6553 }
0x1ca7   :  { %v6576_v32 = vadd.f32 %v6575_v12, %v6554_v44 }
0x1ca8   :  { %v6560_v30 = vpop.xlane.xlu0 %6559 }
0x1ca9   :  { %v6577_v33 = vadd.f32 %v6576_v32, %v6556_v7 }
0x1caa   :  { %v6558_v20 = vpop.xlane.xlu1 %6557 }
0x1cab   :  { %v6578_v0 = vadd.f32 %v6577_v33, %v6558_v20 }
0x1cac   :  { %v6564_v19 = vpop.xlane.xlu0 %6563 }
0x1cad   :  { %v6579_v16 = vadd.f32 %v6578_v0, %v6560_v30  ;;  %v12808_v30 = vld [vmem:[%s12993_s3 + $0x5] ss:$0 sm:$0xff] }
0x1cae   :  { %v6562_v39 = vpop.xlane.xlu1 %6561 }
0x1caf   :  { %v6580_v17 = vadd.f32 %v6579_v16, %v6562_v39 }
0x1cb0   :  { %v6568_v62 = vpop.xlane.xlu0 %6567 }
0x1cb1   :  { %v6581_v36 = vadd.f32 %v6580_v17, %v6564_v19 }
0x1cb2   :  { %v6566_v18 = vpop.xlane.xlu1 %6565 }
0x1cb3   :  { %v6582_v45 = vadd.f32 %v6581_v36, %v6566_v18 }
0x1cb5   :  { %v6583_v6 = vadd.f32 %v6582_v45, %v6568_v62 }
0x1cb7   :  { %v6584_v41 = vrot.slane %v6583_v6, 4 }
0x1cb9   :  { %v6585_v22 = vadd.f32 %v6584_v41, %v6583_v6 }
0x1cbb   :  { %v6586_v8 = vrot.slane %v6585_v22, 2 }
0x1cbd   :  { %v6587_v31 = vadd.f32 %v6586_v8, %v6585_v22 }
0x1cbf   :  { %v6588_v4 = vrot.slane %v6587_v31, 1 }
0x1cc1   :  { %v6589_v37 = vadd.f32 %v6588_v4, %v6587_v31 }
0x1cc3   :  { %9132 = vrsqrt.f32 %v6589_v37  ;;  %vm6592_vm12 = vcmp.eq.f32.partialorder %v6589_v37, inf  ;;  %v6595_v48 = vand.u32 2147483648, %v6589_v37  ;;  %vm6594_vm13 = vcmp.eq.f32.partialorder %v6589_v37, 0.0 }
0x1cd0   :  { %v9133_v5 = vpop.eup %9132 }
0x1cd1   :  { %v6591_v63 = vmul.f32 %v9133_v5, %v6589_v37 }
0x1cd3   :  { %v6593_v51 = vsel %vm6592_vm12, %v6589_v37, %v6591_v63 }
0x1cd4   :  { %v6596_v3 = vsel %vm6594_vm13, %v6595_v48, %v6593_v51 }
0x1cd5   :  { %v6597_v42 = vadd.f32 1e-06, %v6596_v3 }
0x1cd7   :  { %9134 = vrcp.f32 %v6597_v42 }
0x1ce4   :  { %v9135_v23 = vpop.eup %9134 }
0x1ce5   :  { %v12794_v50 = vmul.f32 %v9135_v23, %v6596_v3 }
0x1ce7   :  { %v6602_v7 = vmul.f32 %v12794_v50, %v12712_v60  ;;  %v6603_v12 = vmul.f32 %v12794_v50, %v12706_v2  ;;  %v6604_v44 = vmul.f32 %v12794_v50, %v12728_v57  ;;  %v6605_v32 = vmul.f32 %v12794_v50, %v12722_v14 }
0x1ce8   :  { %v6606_v33 = vmul.f32 %v12794_v50, %v12739_v58  ;;  %v6607_v39 = vmul.f32 %v12794_v50, %v12734_v47  ;;  %v6608_v17 = vmul.f32 %v12794_v50, %v12750_v52  ;;  %v6609_v31 = vmul.f32 %v12794_v50, %v12746_v53 }
0x1ce9   :  { %v6624_v20 = vmul.f32 %v12797_v59, %v6602_v7  ;;  %v6625_v0 = vmul.f32 %v12797_v59, %v6603_v12  ;;  %v6626_v16 = vmul.f32 %v12797_v59, %v6604_v44  ;;  %v6627_v19 = vmul.f32 %v12797_v59, %v6605_v32 }
0x1cea   :  { %v6628_v62 = vmul.f32 %v12797_v59, %v6606_v33  ;;  %v6629_v8 = vmul.f32 %v12797_v59, %v6607_v39  ;;  %v6630_v5 = vmul.f32 %v12797_v59, %v6608_v17  ;;  %v6610_v63 = vmul.f32 %v12794_v50, %v12760_v43 }
0x1ceb   :  { %v6648_v36 = vadd.f32 %v12808_v30, %v6624_v20  ;;  %v6649_v18 = vadd.f32 %v12808_v30, %v6625_v0  ;;  %v6650_v45 = vadd.f32 %v12808_v30, %v6626_v16  ;;  %v6651_v22 = vadd.f32 %v12808_v30, %v6627_v19 }
0x1cec   :  { %v6652_v37 = vadd.f32 %v12808_v30, %v6628_v62  ;;  %v6631_v48 = vmul.f32 %v12797_v59, %v6609_v31  ;;  %v6611_v51 = vmul.f32 %v12794_v50, %v12755_v56  ;;  %v6654_v3 = vadd.f32 %v12808_v30, %v6630_v5 }
0x1ced   :  { %v6664_v6 = vadd.f32 %v6648_v36, %v12712_v60  ;;  %v6665_v41 = vadd.f32 %v6649_v18, %v12706_v2  ;;  %v6666_v4 = vadd.f32 %v6650_v45, %v12728_v57  ;;  %v6667_v2 = vadd.f32 %v6651_v22, %v12722_v14 }
0x1cee   :  { %v6653_v60 = vadd.f32 %v12808_v30, %v6629_v8  ;;  %v6668_v57 = vadd.f32 %v6652_v37, %v12739_v58  ;;  %v6632_v42 = vmul.f32 %v12797_v59, %v6610_v63  ;;  %v6612_v23 = vmul.f32 %v12794_v50, %v12773_v54 }
0x1cef   :  { %8500 = vmatprep.mubr.f32.mxu0 %v6664_v6  ;;  %v6655_v7 = vadd.f32 %v12808_v30, %v6631_v48  ;;  %v6633_v12 = vmul.f32 %v12797_v59, %v6611_v51  ;;  %v6613_v44 = vmul.f32 %v12794_v50, %v12765_v46  ;;  %v6670_v58 = vadd.f32 %v6654_v3, %v12750_v52 }
0x1cf0   :  { %8501 = vmatmul.mubr.f32.vlgmr.msra.gmra.mxu0 %v6665_v41  ;;  %v6669_v14 = vadd.f32 %v6653_v60, %v12734_v47  ;;  %v6656_v32 = vadd.f32 %v12808_v30, %v6632_v42  ;;  %v6634_v33 = vmul.f32 %v12797_v59, %v6612_v23  ;;  %v6614_v20 = vmul.f32 %v12794_v50, %v12781_v34  ;;  %v7211_v23 = vld [vmem:[%s12994_s8 + $0x5] ss:$0 sm:$0xff] }
0x1cf1   :  { %8503 = vmatprep.mubr.f32.mxu0 %v6666_v4  ;;  %v6671_v47 = vadd.f32 %v6655_v7, %v12746_v53  ;;  %v6657_v0 = vadd.f32 %v12808_v30, %v6633_v12  ;;  %v6635_v16 = vmul.f32 %v12797_v59, %v6613_v44  ;;  %v6615_v19 = vmul.f32 %v12794_v50, %v12775_v61 }
0x1cf2   :  { %v6672_v52 = vadd.f32 %v6656_v32, %v12760_v43  ;;  %v6658_v39 = vadd.f32 %v12808_v30, %v6634_v33  ;;  %v6636_v17 = vmul.f32 %v12797_v59, %v6614_v20  ;;  %v6616_v36 = vmul.f32 %v12794_v50, %v12789_v55 }
0x1cf3   :  { %v6673_v53 = vadd.f32 %v6657_v0, %v12755_v56  ;;  %v6659_v18 = vadd.f32 %v12808_v30, %v6635_v16  ;;  %v6637_v45 = vmul.f32 %v12797_v59, %v6615_v19  ;;  %v6617_v62 = vmul.f32 %v12794_v50, %v12783_v13 }
0x1cf4   :  { %8504 = vmatmul.mubr.f32.gmra.mxu0 %v6667_v2  ;;  %v6674_v43 = vadd.f32 %v6658_v39, %v12773_v54  ;;  %v6660_v6 = vadd.f32 %v12808_v30, %v6636_v17  ;;  %v6638_v41 = vmul.f32 %v12797_v59, %v6616_v36  ;;  %v9216_v5 = vmov 0.0  }
0x1cf5   :  { %8506 = vmatprep.mubr.f32.mxu0 %v6668_v57  ;;  %v6675_v22 = vadd.f32 %v6659_v18, %v12765_v46  ;;  %v6661_v8 = vadd.f32 %v12808_v30, %v6637_v45  ;;  %v6639_v56 = vmul.f32 %v12797_v59, %v6617_v62  ;;  %8524 = vmatprep.subr.mxu1 %v9216_v5 }
0x1cf6   :  { %v6676_v31 = vadd.f32 %v6660_v6, %v12781_v34  ;;  %v6662_v4 = vadd.f32 %v12808_v30, %v6638_v41  ;;  %8559 = vmatprep.subr.mxu0 %v9216_v5  ;;  %8556 = vmatprep.mubr.msk.f32.mxu1 %vm9217_vm14, %v9216_v5  ;;  %v6866_v6 = vld [vmem:[%s12996_s24] sm:$0x7] }
0x1cf7   :  { %v6677_v54 = vadd.f32 %v6661_v8, %v12775_v61  ;;  %v6663_v50 = vadd.f32 %v12808_v30, %v6639_v56 }
0x1cf8   :  { %8507 = vmatmul.mubr.f32.gmra.mxu0 %v6669_v14  ;;  %v6678_v37 = vadd.f32 %v6662_v4, %v12789_v55  ;;  %v6985_v4 = vld [vmem:[%s9361_s20 + $0x68] sm:$0xff] }
0x1cf9   :  { %8509 = vmatprep.mubr.f32.mxu0 %v6670_v58  ;;  %v6679_v46 = vadd.f32 %v6663_v50, %v12783_v13 }
0x1cfc   :  { %8510 = vmatmul.mubr.f32.gmra.mxu0 %v6671_v47 }
0x1cfd   :  { %8512 = vmatprep.mubr.f32.mxu0 %v6672_v52 }
0x1d00   :  { %8513 = vmatmul.mubr.f32.gmra.mxu0 %v6673_v53 }
0x1d01   :  { %8515 = vmatprep.mubr.f32.mxu0 %v6674_v43 }
0x1d04   :  { %8516 = vmatmul.mubr.f32.gmra.mxu0 %v6675_v22 }
0x1d05   :  { %8518 = vmatprep.mubr.f32.mxu0 %v6676_v31  ;;  %v6986_v31 = vld [vmem:[%s9361_s20 + $0x70] sm:$0xff] }
0x1d08   :  { %8519 = vmatmul.mubr.f32.gmra.mxu0 %v6677_v54 }
0x1d09   :  { %8521 = vmatprep.mubr.f32.mxu0 %v6678_v37 }
0x1d0c   :  { %8522 = vmatmul.mubr.f32.gmra.mxu0 %v6679_v46 }
0x1d0d   :  { %8591 = vmatprep.mubr.msk.f32.mxu0 %vm9217_vm14, %v9216_v5 }
0x1db0   :  { %v12886_v61 = vpop.f32.mrf.mxu0 }
0x1db2   :  { %v12888_v34 = vpop.f32.mrf.mxu0 }
0x1db3   :  { %v6772_v43 = vadd.f32 %v7211_v23, %v12888_v34  ;;  %v6983_v34 = vld [vmem:[%s9361_s20 + $0x58] sm:$0xff] }
0x1db4   :  { %v8505_v55 = vpop.f32.mrf.mxu0 }
0x1db6   :  { %v12890_v59 = vpop.f32.mrf.mxu0 }
0x1db8   :  { %v8508_v13 = vpop.f32.mrf.mxu0 }
0x1dba   :  { %v6791_v30 = vpop.f32.mrf.mxu0 }
0x1dbb   :  { %v6792_v18 = vadd.f32 %v7211_v23, %v6791_v30  ;;  %v6979_v30 = vld [vmem:[%s9361_s20 + $0x38] sm:$0xff] }
0x1dbc   :  { %v8511_v63 = vpop.f32.mrf.mxu0 }
0x1dbd   :  { %v6854_v45 = vadd.f32 %v6792_v18, %v12431_v10 }
0x1dbe   :  { %v6801_v2 = vpop.f32.mrf.mxu0 }
0x1dbf   :  { %v6802_v36 = vadd.f32 %v7211_v23, %v6801_v2  ;;  %v6977_v2 = vld [vmem:[%s9361_s20 + $0x28] sm:$0xff] }
0x1dc0   :  { %v8514_v60 = vpop.f32.mrf.mxu0 }
0x1dc1   :  { %v6856_v53 = vadd.f32 %v6802_v36, %v12451_v9  ;;  %v6782_v9 = vadd.f32 %v7211_v23, %v12890_v59  ;;  %v6981_v59 = vld [vmem:[%s9361_s20 + $0x48] sm:$0xff] }
0x1dc2   :  { %v6811_v48 = vpop.f32.mrf.mxu0 }
0x1dc3   :  { %v6812_v39 = vadd.f32 %v7211_v23, %v6811_v48  ;;  %v6852_v62 = vadd.f32 %v6782_v9, %v12411_v11  ;;  %v6871_v11 = vpop.permute.xlu1 %6870  ;;  %v6975_v48 = vld [vmem:[%s9361_s20 + $0x18] sm:$0xff] }
0x1dc4   :  { %v8517_v51 = vpop.f32.mrf.mxu0 }
0x1dc5   :  { %v6827_v0 = vadd.f32 %v8517_v51, %v7211_v23  ;;  %v6858_v17 = vadd.f32 %v6812_v39, %v12471_v35  ;;  %v6787_v35 = vadd.f32 %v8505_v55, %v7211_v23  ;;  %v6982_v55 = vld [vmem:[%s9361_s20 + $0x50] sm:$0xff] }
0x1dc6   :  { %v6821_v57 = vpop.f32.mrf.mxu0  ;;  %v6974_v51 = vld [vmem:[%s9361_s20 + $0x10] sm:$0xff] }
0x1dc7   :  { %v6822_v19 = vadd.f32 %v7211_v23, %v6821_v57  ;;  %v6973_v57 = vld [vmem:[%s9361_s20 + $0x8] sm:$0xff] }
0x1dc8   :  { %v8520_v3 = vpop.f32.mrf.mxu0 }
0x1dc9   :  { %v6837_v32 = vadd.f32 %v8520_v3, %v7211_v23  ;;  %v6860_v52 = vadd.f32 %v6822_v19, %v12491_v26  ;;  %v6797_v26 = vadd.f32 %v8508_v13, %v7211_v23  ;;  %v6980_v13 = vld [vmem:[%s9361_s20 + $0x40] sm:$0xff] }
0x1dca   :  { %v6831_v42 = vpop.f32.mrf.mxu0  ;;  %v6972_v3 = vld [vmem:[%s9361_s20] sm:$0xff] }
0x1dcb   :  { %v6863_v20 = vadd.f32 %v6837_v32, %v12501_v49  ;;  %v6832_v47 = vadd.f32 %v7211_v23, %v6831_v42 }
0x1dcc   :  { %v8523_v14 = vpop.f32.mrf.mxu0 }
0x1dcd   :  { %v6847_v7 = vadd.f32 %v8523_v14, %v7211_v23  ;;  %v6862_v16 = vadd.f32 %v6832_v47, %v12511_v27  ;;  %v6807_v27 = vadd.f32 %v8511_v63, %v7211_v23  ;;  %v6978_v63 = vld [vmem:[%s9361_s20 + $0x30] sm:$0xff] }
0x1dce   :  { %v6841_v12 = vpop.f32.mrf.mxu0 }
0x1dcf   :  { %v6865_v44 = vadd.f32 %v6847_v7, %v12521_v15  ;;  %v6842_v58 = vadd.f32 %v7211_v23, %v6841_v12  ;;  %v6861_v15 = vadd.f32 %v6827_v0, %v12481_v24  ;;  %v6857_v24 = vadd.f32 %v6807_v27, %v12441_v21  ;;  %v7212_v12 = vld [vmem:[%s12997_s30] ss:$0 sm:$0xff] }
0x1dd0   :  { %v6853_v21 = vadd.f32 %v6787_v35, %v12402_v1  ;;  %v6850_v1 = vadd.f32 %v6772_v43, %v12396_v28  ;;  %v6984_v28 = vld [vmem:[%s9361_s20 + $0x60] sm:$0xff] }
0x1dd1   :  { %8525 = vmatpush3.xpose.msra.mxu1 %v6865_v44  ;;  %v6864_v33 = vadd.f32 %v6842_v58, %v12531_v29  ;;  %v6817_v29 = vadd.f32 %v8514_v60, %v7211_v23  ;;  %v6976_v60 = vld [vmem:[%s9361_s20 + $0x20] sm:$0xff] }
0x1dd2   :  { %8526 = vmatprep.subr.mxu1 %v9216_v5  ;;  %v7213_v58 = vld [vmem:[%s9356_s12] ss:$0 sm:$0xff] }
0x1dd3   :  { %v6859_v49 = vadd.f32 %v6817_v29, %v12461_v40  ;;  %v6855_v40 = vadd.f32 %v6797_v26, %v12421_v25  ;;  %v6777_v25 = vadd.f32 %v12886_v61, %v7211_v23 }
0x1dd5   :  { %8527 = vmatpush3.xpose.msra.mxu1 %v6864_v33  ;;  %v6851_v10 = vadd.f32 %v6777_v25, %v12387_v38  ;;  %v6987_v38 = vld [vmem:[%s9361_s20 + $0x78] sm:$0xff] }
0x1dd6   :  { %8528 = vmatprep.subr.mxu1 %v9216_v5  ;;  %8560 = vmatpush3.msra.mxu0 %v6987_v38 }
0x1dd7   :  { %8561 = vmatprep.subr.mxu0 %v9216_v5 }
0x1dd8   :  { %8562 = vmatpush3.msra.mxu0 %v6986_v31 }
0x1dd9   :  { %8529 = vmatpush3.xpose.msra.mxu1 %v6863_v20  ;;  %8563 = vmatprep.subr.mxu0 %v9216_v5  ;;  %v7214_v20 = vld [vmem:[%s9366_s27] ss:$0 sm:$0xff] }
0x1dda   :  { %8530 = vmatprep.subr.mxu1 %v9216_v5  ;;  %8564 = vmatpush3.msra.mxu0 %v6985_v4 }
0x1ddb   :  { %8565 = vmatprep.subr.mxu0 %v9216_v5 }
0x1ddc   :  { %8566 = vmatpush3.msra.mxu0 %v6984_v28 }
0x1ddd   :  { %8531 = vmatpush3.xpose.msra.mxu1 %v6862_v16  ;;  %8567 = vmatprep.subr.mxu0 %v9216_v5 }
0x1dde   :  { %8532 = vmatprep.subr.mxu1 %v9216_v5  ;;  %8568 = vmatpush3.msra.mxu0 %v6983_v34 }
0x1ddf   :  { %8569 = vmatprep.subr.mxu0 %v9216_v5 }
0x1de0   :  { %8570 = vmatpush3.msra.mxu0 %v6982_v55 }
0x1de1   :  { %8533 = vmatpush3.xpose.msra.mxu1 %v6861_v15  ;;  %8571 = vmatprep.subr.mxu0 %v9216_v5 }
0x1de2   :  { %8534 = vmatprep.subr.mxu1 %v9216_v5  ;;  %8572 = vmatpush3.msra.mxu0 %v6981_v59 }
0x1de3   :  { %8573 = vmatprep.subr.mxu0 %v9216_v5 }
0x1de4   :  { %8574 = vmatpush3.msra.mxu0 %v6980_v13 }
0x1de5   :  { %8535 = vmatpush3.xpose.msra.mxu1 %v6860_v52  ;;  %8575 = vmatprep.subr.mxu0 %v9216_v5 }
0x1de6   :  { %8536 = vmatprep.subr.mxu1 %v9216_v5  ;;  %8576 = vmatpush3.msra.mxu0 %v6979_v30 }
0x1de7   :  { %8577 = vmatprep.subr.mxu0 %v9216_v5 }
0x1de8   :  { %8578 = vmatpush3.msra.mxu0 %v6978_v63 }
0x1de9   :  { %8537 = vmatpush3.xpose.msra.mxu1 %v6859_v49  ;;  %8579 = vmatprep.subr.mxu0 %v9216_v5 }
0x1dea   :  { %8538 = vmatprep.subr.mxu1 %v9216_v5  ;;  %8580 = vmatpush3.msra.mxu0 %v6977_v2 }
0x1deb   :  { %8581 = vmatprep.subr.mxu0 %v9216_v5 }
0x1dec   :  { %8582 = vmatpush3.msra.mxu0 %v6976_v60 }
0x1ded   :  { %8539 = vmatpush3.xpose.msra.mxu1 %v6858_v17  ;;  %8583 = vmatprep.subr.mxu0 %v9216_v5 }
0x1dee   :  { %8540 = vmatprep.subr.mxu1 %v9216_v5  ;;  %8584 = vmatpush3.msra.mxu0 %v6975_v48 }
0x1def   :  { %8585 = vmatprep.subr.mxu0 %v9216_v5 }
0x1df0   :  { %8586 = vmatpush3.msra.mxu0 %v6974_v51 }
0x1df1   :  { %8541 = vmatpush3.xpose.msra.mxu1 %v6857_v24  ;;  %8587 = vmatprep.subr.mxu0 %v9216_v5 }
0x1df2   :  { %8542 = vmatprep.subr.mxu1 %v9216_v5  ;;  %8588 = vmatpush3.msra.mxu0 %v6973_v57 }
0x1df3   :  { %8589 = vmatprep.subr.mxu0 %v9216_v5 }
0x1df4   :  { %8590 = vmatpush3.msra.mxu0 %v6972_v3 }
0x1df5   :  { %8543 = vmatpush3.xpose.msra.mxu1 %v6856_v53 }
0x1df6   :  { %8544 = vmatprep.subr.mxu1 %v9216_v5 }
0x1df9   :  { %8545 = vmatpush3.xpose.msra.mxu1 %v6855_v40 }
0x1dfa   :  { %8546 = vmatprep.subr.mxu1 %v9216_v5 }
0x1dfd   :  { %8547 = vmatpush3.xpose.msra.mxu1 %v6854_v45 }
0x1dfe   :  { %8548 = vmatprep.subr.mxu1 %v9216_v5 }
0x1e01   :  { %8549 = vmatpush3.xpose.msra.mxu1 %v6853_v21 }
0x1e02   :  { %8550 = vmatprep.subr.mxu1 %v9216_v5 }
0x1e05   :  { %8551 = vmatpush3.xpose.msra.mxu1 %v6852_v62 }
0x1e06   :  { %8552 = vmatprep.subr.mxu1 %v9216_v5 }
0x1e09   :  { %8553 = vmatpush3.xpose.msra.mxu1 %v6851_v10 }
0x1e0a   :  { %8554 = vmatprep.subr.mxu1 %v9216_v5 }
0x1e0d   :  { %8555 = vmatpush3.xpose.msra.mxu1 %v6850_v1 }
0x1e10   :  { %8557 = vmatmul.mubr.f32.vlgmr.msra.gmra.mxu1 %v6866_v6 }
0x1ed0   :  { %v6939_v41 = vpop.f32.mrf.mxu1 }
0x1ed1   :  { %v6940_v22 = vadd.f32 %v6939_v41, %v6871_v11 }
0x1ed2   :  { %v8558_v8 = vpop.f32.mrf.mxu1 }
0x1ed3   :  { %v6945_v56 = vsel %vm312_vm0, %v6940_v22, 0.0 }
0x1ed4   :  { %6946 = vadd.xlane.f32.xlu0 %v6945_v56 }
0x1f5d   :  { %v6947_v54 = vpop.xlane.xlu0 %6946 }
0x1f5e   :  { %v6948_v50 = vmul.f32 0.0078125, %v6947_v54 }
0x1f60   :  { %v6949_v37 = vsub.f32 %v6940_v22, %v6948_v50 }
0x1f62   :  { %v6950_v46 = vmul.f32 %v6949_v37, %v6949_v37 }
0x1f64   :  { %v6951_v61 = vsel %vm312_vm0, %v6950_v46, 0.0 }
0x1f65   :  { %6952 = vadd.xlane.f32.xlu0 %v6951_v61 }
0x1fee   :  { %v6953_v42 = vpop.xlane.xlu0 %6952 }
0x1fef   :  { %v6954_v23 = vmul.f32 0.0078125, %v6953_v42 }
0x1ff1   :  { %v6955_v14 = vadd.f32 1e-06, %v6954_v23 }
0x1ff3   :  { %9136 = vrsqrt.f32 %v6955_v14 }
0x2000   :  { %v9137_v7 = vpop.eup %9136 }
0x2001   :  { %v6957_v44 = vmul.f32 %v9137_v7, %v6949_v37 }
0x2003   :  { %v6964_v32 = vmul.f32 %v7212_v12, %v6957_v44 }
0x2005   :  { %v6971_v33 = vadd.f32 %v7213_v58, %v6964_v32 }
0x2007   :  { %8592 = vmatmul.mubr.f32.vlgmr.msra.gmra.mxu0 %v6971_v33 }
0x20c7   :  { %v7061_v47 = vpop.f32.mrf.mxu0 }
0x20c8   :  { %v7062_v0 = vadd.f32 %v7214_v20, %v7061_v47 }
0x20c9   :  { %v8593_v16 = vpop.f32.mrf.mxu0 }
0x20ca   :  { %7065 = vst [vmem:[%s9371_s19] sm:$0x7] %v7062_v0 }
0x20cb   :  { %7070 = vsyncpa [#allocation3], 1 }
0x20cc   :  { %7071 = vsyncpa [#allocation5], 1 }

</bundles_post_ra>
